<compile_context>
chip_gen: v7x
topology: tpu7x:2x2x1
jax: 0.10.0
libtpu: 0.0.40
codegen_flags: <defaults>
</compile_context>

<pallas_src>
import jax
import jax.numpy as jnp
from jax.experimental import pallas as pl
from jax.experimental.pallas import tpu as pltpu

_DIMS = [(256, 256), (256, 512), (512, 1024), (1024, 3072)]
_D_IN = 256
_D_OUT = 3072


def _round_up(n, m):
    return ((n + m - 1) // m) * m


def _mlp_kernel(x_ref,
                w1_ref, b1_ref,
                w2_ref, b2_ref,
                w3_ref, b3_ref,
                w4_ref, b4_ref,
                o_ref):
    """Fused forward: tanh(tanh(tanh(tanh(xW1+b1)W2+b2)W3+b3)W4+b4).

    Weights/activations feed the MXU in bf16; accumulation, bias-add and tanh
    are f32.
    """
    def layer(h, w_ref, b_ref):
        acc = jnp.dot(h.astype(jnp.bfloat16), w_ref[...],
                      preferred_element_type=jnp.float32)
        return jnp.tanh(acc + b_ref[...])

    h = x_ref[...]            # bf16 (tm, 256)
    h = layer(h, w1_ref, b1_ref)
    h = layer(h, w2_ref, b2_ref)
    h = layer(h, w3_ref, b3_ref)
    h = layer(h, w4_ref, b4_ref)
    o_ref[...] = h.astype(o_ref.dtype)


def generator_net_forward(x, params, *, tm=None):
    """x: (B, 256) float. params: bf16 weights (in,out), f32 biases (1,out)."""
    B = x.shape[0]
    # Batch tile: 256 rows (MXU-friendly) when batch is large enough, else the
    # smallest sublane-aligned tile covering the batch.
    if tm is None:
        tm = 256 if B >= 256 else _round_up(B, 8)
    B_pad = _round_up(B, tm)

    x = x.astype(jnp.bfloat16)
    if B_pad != B:
        x = jnp.pad(x, ((0, B_pad - B), (0, 0)))

    w1, b1 = params["w1"], params["b1"]
    w2, b2 = params["w2"], params["b2"]
    w3, b3 = params["w3"], params["b3"]
    w4, b4 = params["w4"], params["b4"]

    grid = (B_pad // tm,)

    # x / out tiles move with the batch grid index; weights & biases use a
    # constant index_map so they are DMA'd once and stay VMEM-resident.
    x_spec = pl.BlockSpec((tm, _D_IN), lambda i: (i, 0))
    out_spec = pl.BlockSpec((tm, _D_OUT), lambda i: (i, 0))
    in_specs = [x_spec]
    for (fin, fout) in _DIMS:
        in_specs.append(pl.BlockSpec((fin, fout), lambda i: (0, 0)))
        in_specs.append(pl.BlockSpec((1, fout), lambda i: (0, 0)))

    # Advisory cost estimate (per call).
    total_mac = sum(fin * fout for fin, fout in _DIMS)          # 3,866,624
    total_out = sum(fout for _, fout in _DIMS)                  # 4,864
    weight_bytes = sum(fin * fout * 2 for fin, fout in _DIMS)   # bf16 weights
    bias_bytes = sum(fout * 4 for _, fout in _DIMS)             # f32 biases
    io_bytes = B_pad * _D_IN * 2 + B_pad * _D_OUT * 4           # bf16 in / f32 out
    cost = pl.CostEstimate(
        flops=2 * B_pad * total_mac,
        transcendentals=B_pad * total_out,
        bytes_accessed=weight_bytes + bias_bytes + io_bytes,
    )

    out_flat = pl.pallas_call(
        _mlp_kernel,
        out_shape=jax.ShapeDtypeStruct((B_pad, _D_OUT), jnp.float32),
        grid=grid,
        in_specs=in_specs,
        out_specs=out_spec,
        compiler_params=pltpu.CompilerParams(
            dimension_semantics=("parallel",),
            vmem_limit_bytes=48 * 1024 * 1024,   # safe under v7x's 64 MiB VMEM
        ),
        cost_estimate=cost,
    )(x, w1, b1, w2, b2, w3, b3, w4, b4)

    out_flat = out_flat[:B]
    # Matches torch: x.reshape(-1, 3, 32, 32)  (NCHW output)
    return out_flat.reshape(-1, 3, 32, 32)


def init_params(key):
    """Deterministic init mimicking nn.Linear default (uniform +/- 1/sqrt(fan_in)).

    Weights are stored as (in_features, out_features) in bf16 (fed to the MXU
    as-is); biases stay f32 with shape (1, out) for clean lane broadcast.
    """
    params = {}
    keys = jax.random.split(key, 2 * len(_DIMS))
    for i, (fin, fout) in enumerate(_DIMS):
        bound = 1.0 / jnp.sqrt(jnp.float32(fin))
        w = jax.random.uniform(keys[2 * i], (fin, fout), jnp.float32,
                               minval=-bound, maxval=bound)
        b = jax.random.uniform(keys[2 * i + 1], (1, fout), jnp.float32,
                               minval=-bound, maxval=bound)
        params[f"w{i + 1}"] = w.astype(jnp.bfloat16)
        params[f"b{i + 1}"] = b
    return params


if __name__ == "__main__":
    key = jax.random.PRNGKey(0)
    pkey, xkey = jax.random.split(key)
    params = init_params(pkey)

    B = 8  # small batch; kernel pads to a sublane-aligned tile internally
    x = jax.random.normal(xkey, (B, 256), jnp.float32)

    out = generator_net_forward(x, params)
    out = jax.block_until_ready(out)
    assert out.shape == (B, 3, 32, 32), out.shape

    # Reference 1: exact same math as the kernel (bf16 x bf16 matmul, f32
    # accumulation, f32 bias + tanh) -> tight tolerance.
    h = x.astype(jnp.bfloat16)
    for i in range(1, 5):
        acc = jnp.dot(h, params[f"w{i}"], preferred_element_type=jnp.float32)
        h = jnp.tanh(acc + params[f"b{i}"]).astype(jnp.bfloat16)
    ref_bf16 = jnp.tanh(
        jnp.dot(
            jnp.tanh(
                jnp.dot(
                    jnp.tanh(
                        jnp.dot(
                            jnp.tanh(
                                jnp.dot(x.astype(jnp.bfloat16), params["w1"],
                                        preferred_element_type=jnp.float32)
                                + params["b1"]).astype(jnp.bfloat16),
                            params["w2"], preferred_element_type=jnp.float32)
                        + params["b2"]).astype(jnp.bfloat16),
                    params["w3"], preferred_element_type=jnp.float32)
                + params["b3"]).astype(jnp.bfloat16),
            params["w4"], preferred_element_type=jnp.float32)
        + params["b4"]).reshape(-1, 3, 32, 32)
    assert jnp.allclose(out, ref_bf16, atol=2e-3, rtol=2e-3)

    # Reference 2: full-f32 math (semantics of the original torch module) ->
    # loose tolerance covering bf16 weight quantization.
    hf = x
    for i in range(1, 5):
        hf = jnp.tanh(jnp.dot(hf, params[f"w{i}"].astype(jnp.float32),
                              preferred_element_type=jnp.float32)
                      + params[f"b{i}"])
    ref_f32 = hf.reshape(-1, 3, 32, 32)
    assert jnp.allclose(out, ref_f32, atol=5e-2, rtol=0)

    print("KERNEL_OK")
</pallas_src>

<mosaic_0001>
module attributes {stable_mosaic.version = 11 : i64} {
  func.func @_mlp_kernel(%arg0: i32, %arg1: memref<8x256xbf16, #tpu.memory_space<vmem>>, %arg2: memref<256x256xbf16, #tpu.memory_space<vmem>>, %arg3: memref<1x256xf32, #tpu.memory_space<vmem>>, %arg4: memref<256x512xbf16, #tpu.memory_space<vmem>>, %arg5: memref<1x512xf32, #tpu.memory_space<vmem>>, %arg6: memref<512x1024xbf16, #tpu.memory_space<vmem>>, %arg7: memref<1x1024xf32, #tpu.memory_space<vmem>>, %arg8: memref<1024x3072xbf16, #tpu.memory_space<vmem>>, %arg9: memref<1x3072xf32, #tpu.memory_space<vmem>>, %arg10: memref<8x3072xf32, #tpu.memory_space<vmem>>) attributes {dimension_semantics = [#tpu.dimension_semantics<parallel>], iteration_bounds = array<i64: 1>, scalar_prefetch = 0 : i64, scratch_operands = 0 : i64, tpu.core_type = #tpu.core_type<tc>, window_params = [{transform_indices = @transform_0, window_bounds = array<i64: 8, 256>}, {pipeline_mode = #tpu.pipeline_mode<synchronous>, transform_indices = @transform_1, window_bounds = array<i64: 256, 256>}, {pipeline_mode = #tpu.pipeline_mode<synchronous>, transform_indices = @transform_2, window_bounds = array<i64: 1, 256>}, {pipeline_mode = #tpu.pipeline_mode<synchronous>, transform_indices = @transform_3, window_bounds = array<i64: 256, 512>}, {pipeline_mode = #tpu.pipeline_mode<synchronous>, transform_indices = @transform_4, window_bounds = array<i64: 1, 512>}, {pipeline_mode = #tpu.pipeline_mode<synchronous>, transform_indices = @transform_5, window_bounds = array<i64: 512, 1024>}, {pipeline_mode = #tpu.pipeline_mode<synchronous>, transform_indices = @transform_6, window_bounds = array<i64: 1, 1024>}, {pipeline_mode = #tpu.pipeline_mode<synchronous>, transform_indices = @transform_7, window_bounds = array<i64: 1024, 3072>}, {pipeline_mode = #tpu.pipeline_mode<synchronous>, transform_indices = @transform_8, window_bounds = array<i64: 1, 3072>}, {transform_indices = @transform_9, window_bounds = array<i64: 8, 3072>}]} {
    %c0 = arith.constant 0 : index
    %c0_0 = arith.constant 0 : index
    %0 = vector.load %arg1[%c0, %c0_0] : memref<8x256xbf16, #tpu.memory_space<vmem>>, vector<8x256xbf16>
    %c0_1 = arith.constant 0 : index
    %c0_2 = arith.constant 0 : index
    %1 = vector.load %arg2[%c0_1, %c0_2] : memref<256x256xbf16, #tpu.memory_space<vmem>>, vector<256x256xbf16>
    %cst = arith.constant dense<0.000000e+00> : vector<8x256xf32>
    %2 = tpu.matmul %0, %1, %cst {dimension_numbers = #tpu.dot_dimension_numbers<[1], [0], [0], [1], [0, 0, 1, 1], [], []>} : vector<8x256xbf16>, vector<256x256xbf16>, vector<8x256xf32> -> vector<8x256xf32>
    %c0_3 = arith.constant 0 : index
    %c0_4 = arith.constant 0 : index
    %3 = vector.load %arg3[%c0_3, %c0_4] : memref<1x256xf32, #tpu.memory_space<vmem>>, vector<1x256xf32>
    %4 = vector.broadcast %3 : vector<1x256xf32> to vector<8x256xf32>
    %5 = arith.addf %2, %4 : vector<8x256xf32>
    %6 = math.tanh %5 : vector<8x256xf32>
    %7 = arith.truncf %6 : vector<8x256xf32> to vector<8x256xbf16>
    %c0_5 = arith.constant 0 : index
    %c0_6 = arith.constant 0 : index
    %8 = vector.load %arg4[%c0_5, %c0_6] : memref<256x512xbf16, #tpu.memory_space<vmem>>, vector<256x512xbf16>
    %cst_7 = arith.constant dense<0.000000e+00> : vector<8x512xf32>
    %9 = tpu.matmul %7, %8, %cst_7 {dimension_numbers = #tpu.dot_dimension_numbers<[1], [0], [0], [1], [0, 0, 1, 1], [], []>} : vector<8x256xbf16>, vector<256x512xbf16>, vector<8x512xf32> -> vector<8x512xf32>
    %c0_8 = arith.constant 0 : index
    %c0_9 = arith.constant 0 : index
    %10 = vector.load %arg5[%c0_8, %c0_9] : memref<1x512xf32, #tpu.memory_space<vmem>>, vector<1x512xf32>
    %11 = vector.broadcast %10 : vector<1x512xf32> to vector<8x512xf32>
    %12 = arith.addf %9, %11 : vector<8x512xf32>
    %13 = math.tanh %12 : vector<8x512xf32>
    %14 = arith.truncf %13 : vector<8x512xf32> to vector<8x512xbf16>
    %c0_10 = arith.constant 0 : index
    %c0_11 = arith.constant 0 : index
    %15 = vector.load %arg6[%c0_10, %c0_11] : memref<512x1024xbf16, #tpu.memory_space<vmem>>, vector<512x1024xbf16>
    %cst_12 = arith.constant dense<0.000000e+00> : vector<8x1024xf32>
    %16 = tpu.matmul %14, %15, %cst_12 {dimension_numbers = #tpu.dot_dimension_numbers<[1], [0], [0], [1], [0, 0, 1, 1], [], []>} : vector<8x512xbf16>, vector<512x1024xbf16>, vector<8x1024xf32> -> vector<8x1024xf32>
    %c0_13 = arith.constant 0 : index
    %c0_14 = arith.constant 0 : index
    %17 = vector.load %arg7[%c0_13, %c0_14] : memref<1x1024xf32, #tpu.memory_space<vmem>>, vector<1x1024xf32>
    %18 = vector.broadcast %17 : vector<1x1024xf32> to vector<8x1024xf32>
    %19 = arith.addf %16, %18 : vector<8x1024xf32>
    %20 = math.tanh %19 : vector<8x1024xf32>
    %21 = arith.truncf %20 : vector<8x1024xf32> to vector<8x1024xbf16>
    %c0_15 = arith.constant 0 : index
    %c0_16 = arith.constant 0 : index
    %22 = vector.load %arg8[%c0_15, %c0_16] : memref<1024x3072xbf16, #tpu.memory_space<vmem>>, vector<1024x3072xbf16>
    %cst_17 = arith.constant dense<0.000000e+00> : vector<8x3072xf32>
    %23 = tpu.matmul %21, %22, %cst_17 {dimension_numbers = #tpu.dot_dimension_numbers<[1], [0], [0], [1], [0, 0, 1, 1], [], []>} : vector<8x1024xbf16>, vector<1024x3072xbf16>, vector<8x3072xf32> -> vector<8x3072xf32>
    %c0_18 = arith.constant 0 : index
    %c0_19 = arith.constant 0 : index
    %24 = vector.load %arg9[%c0_18, %c0_19] : memref<1x3072xf32, #tpu.memory_space<vmem>>, vector<1x3072xf32>
    %25 = vector.broadcast %24 : vector<1x3072xf32> to vector<8x3072xf32>
    %26 = arith.addf %23, %25 : vector<8x3072xf32>
    %27 = math.tanh %26 : vector<8x3072xf32>
    %c0_20 = arith.constant 0 : index
    %c0_21 = arith.constant 0 : index
    %28 = vector.load %arg10[%c0_20, %c0_21] : memref<8x3072xf32, #tpu.memory_space<vmem>>, vector<8x3072xf32>
    tpu.vector_store %arg10[%c0_20, %c0_21], %27 {strides = array<i32>} : memref<8x3072xf32, #tpu.memory_space<vmem>>, vector<8x3072xf32>,
    return
  }
  func.func @transform_0(%arg0: i32) -> (i32, i32) {
    %c0_i32 = arith.constant 0 : i32
    %c0_i32_0 = arith.constant 0 : i32
    return %arg0, %c0_i32 : i32, i32
  }
  func.func @transform_1(%arg0: i32) -> (i32, i32) {
    %c0_i32 = arith.constant 0 : i32
    %c0_i32_0 = arith.constant 0 : i32
    %c0_i32_1 = arith.constant 0 : i32
    return %c0_i32, %c0_i32_0 : i32, i32
  }
  func.func @transform_2(%arg0: i32) -> (i32, i32) {
    %c0_i32 = arith.constant 0 : i32
    %c0_i32_0 = arith.constant 0 : i32
    %c0_i32_1 = arith.constant 0 : i32
    return %c0_i32, %c0_i32_0 : i32, i32
  }
  func.func @transform_3(%arg0: i32) -> (i32, i32) {
    %c0_i32 = arith.constant 0 : i32
    %c0_i32_0 = arith.constant 0 : i32
    %c0_i32_1 = arith.constant 0 : i32
    return %c0_i32, %c0_i32_0 : i32, i32
  }
  func.func @transform_4(%arg0: i32) -> (i32, i32) {
    %c0_i32 = arith.constant 0 : i32
    %c0_i32_0 = arith.constant 0 : i32
    %c0_i32_1 = arith.constant 0 : i32
    return %c0_i32, %c0_i32_0 : i32, i32
  }
  func.func @transform_5(%arg0: i32) -> (i32, i32) {
    %c0_i32 = arith.constant 0 : i32
    %c0_i32_0 = arith.constant 0 : i32
    %c0_i32_1 = arith.constant 0 : i32
    return %c0_i32, %c0_i32_0 : i32, i32
  }
  func.func @transform_6(%arg0: i32) -> (i32, i32) {
    %c0_i32 = arith.constant 0 : i32
    %c0_i32_0 = arith.constant 0 : i32
    %c0_i32_1 = arith.constant 0 : i32
    return %c0_i32, %c0_i32_0 : i32, i32
  }
  func.func @transform_7(%arg0: i32) -> (i32, i32) {
    %c0_i32 = arith.constant 0 : i32
    %c0_i32_0 = arith.constant 0 : i32
    %c0_i32_1 = arith.constant 0 : i32
    return %c0_i32, %c0_i32_0 : i32, i32
  }
  func.func @transform_8(%arg0: i32) -> (i32, i32) {
    %c0_i32 = arith.constant 0 : i32
    %c0_i32_0 = arith.constant 0 : i32
    %c0_i32_1 = arith.constant 0 : i32
    return %c0_i32, %c0_i32_0 : i32, i32
  }
  func.func @transform_9(%arg0: i32) -> (i32, i32) {
    %c0_i32 = arith.constant 0 : i32
    %c0_i32_0 = arith.constant 0 : i32
    return %arg0, %c0_i32 : i32, i32
  }
}

</mosaic_0001>

<bundles_post_ra>
// kernel: tpu_custom_call.1
= control target key start
LH: loop header
LB: loop body
LE: loop exit
PB: predicated region body
PF: predicated region fallthrough
CT: control target
= control target key end

     0   :  { %14 = vsyncpa [#allocation3], 0  ;;  %s17182_s0 = inlined_call_operand.hbm [shape: bf16[8,256], index: 0, kind: input, shape index: {}]   ;;  %s17183_s1 = inlined_call_operand.hbm [shape: bf16[256,256], index: 1, kind: input, shape index: {}]   ;;  %s17184_s2 = inlined_call_operand.hbm [shape: f32[1,256], index: 2, kind: input, shape index: {}]   ;;  %s17185_s3 = inlined_call_operand.hbm [shape: bf16[256,512], index: 3, kind: input, shape index: {}]   ;;  %s17186_s4 = inlined_call_operand.hbm [shape: f32[1,512], index: 4, kind: input, shape index: {}]   ;;  %s17187_s5 = inlined_call_operand.hbm [shape: bf16[512,1024], index: 5, kind: input, shape index: {}]   ;;  %s17188_s6 = inlined_call_operand.hbm [shape: f32[1,1024], index: 6, kind: input, shape index: {}]   ;;  %s17189_s7 = inlined_call_operand.hbm [shape: bf16[1024,3072], index: 7, kind: input, shape index: {}]   ;;  %s17190_s8 = inlined_call_operand.hbm [shape: f32[1,3072], index: 8, kind: input, shape index: {}]   ;;  %s17191_s9 = inlined_call_operand.hbm [shape: f32[8,3072], index: 9, kind: output, shape index: {}]  }
   0x1   :  { %15 = vsyncpa [#allocation6], 0 }
   0x2   :  { %16 = vsyncpa [#allocation9], 0 }
   0x3   :  { %17 = vsyncpa [#allocation12], 0 }
   0x4   :  { %18 = vsyncpa [#allocation15], 0 }
   0x5   :  { %19 = vsyncpa [#allocation4], 0  ;;  %s16754_s30 = smov [#allocation5]   ;;  %s16522_s13 = scalar_lea.hbm %s17183_s1, 4096 }
   0x6   :  { %s35_s10 = sshll.u32 %s16754_s30, 4  ;;  %p16523_p0 = scmp.ne.s32.totalorder %s17183_s1, %s16522_s13  ;;  %s36_s10 = int_to_ptr.vmem [resolvable:$true] %s35_s10 }
   0x7   :  { %p16526_p1 = scmp.lt.u32.totalorder %s16522_s13, %s17183_s1 }
   0x9   :  { %p16528_p2 = pnand %p16526_p1, %p16523_p0 }
   0xb   :  { %16531 = shalt.err (!%p16528_p2)
}
   0xc   :  { %s16532_s18 = scalar_lea.vmem %s36_s10, 4096  ;;  %p16537_p4 = scmp.lt.s32.totalorder %s36_s10, %s36_s10 }
   0xd   :  { %p16533_p3 = scmp.ne.s32.totalorder %s36_s10, %s16532_s18  ;;  %p16538_p5 = scmp.lt.s32.totalorder %s16532_s18, %s16532_s18 }
   0xf   :  { %p16539_p6 = por %p16538_p5, %p16537_p4 }
  0x11   :  { %p16540_p7 = pnand %p16539_p6, %p16533_p3 }
  0x13   :  { %16543 = shalt.err (!%p16540_p7)
}
  0x14   :  { %s16755_s19 = smov 128   ;;  %s16756_s20 = smov 8  }
  0x15   :  { %41 = dma.hbm_to_vmem [thread:$0]  %s17183_s1, 4096, %s36_s10, [#allocation6], %s16755_s19, %s16755_s19, %s16756_s20  }
  0x16   :  { %s16757_s23 = smov [#allocation8]   ;;  %s16544_s27 = scalar_lea.hbm %s17185_s3, 8192 }
  0x17   :  { %s57_s24 = sshll.u32 %s16757_s23, 4  ;;  %p16545_p8 = scmp.ne.s32.totalorder %s17185_s3, %s16544_s27  ;;  %s58_s24 = int_to_ptr.vmem [resolvable:$true] %s57_s24 }
  0x18   :  { %p16548_p9 = scmp.lt.u32.totalorder %s16544_s27, %s17185_s3 }
  0x1a   :  { %p16550_p10 = pnand %p16548_p9, %p16545_p8 }
  0x1c   :  { %16553 = shalt.err (!%p16550_p10)
}
  0x1d   :  { %s16554_s12 = scalar_lea.vmem %s58_s24, 8192  ;;  %p16559_p12 = scmp.lt.s32.totalorder %s58_s24, %s58_s24 }
  0x1e   :  { %p16555_p11 = scmp.ne.s32.totalorder %s58_s24, %s16554_s12  ;;  %p16560_p13 = scmp.lt.s32.totalorder %s16554_s12, %s16554_s12 }
  0x20   :  { %p16561_p0 = por %p16560_p13, %p16559_p12 }
  0x22   :  { %p16562_p1 = pnand %p16561_p0, %p16555_p11 }
  0x24   :  { %16565 = shalt.err (!%p16562_p1)
}
  0x25   :  { %s16758_s1 = smov 256   ;;  %s16759_s10 = smov 16  }
  0x26   :  { %63 = dma.hbm_to_vmem [thread:$0]  %s17185_s3, 8192, %s58_s24, [#allocation9], %s16758_s1, %s16758_s1, %s16759_s10  }
  0x27   :  { %s16760_s15 = smov [#allocation11]   ;;  %s16566_s19 = scalar_lea.hbm %s17187_s5, 32768 }
  0x28   :  { %s79_s16 = sshll.u32 %s16760_s15, 4  ;;  %p16567_p2 = scmp.ne.s32.totalorder %s17187_s5, %s16566_s19  ;;  %s80_s16 = int_to_ptr.vmem [resolvable:$true] %s79_s16 }
  0x29   :  { %p16570_p3 = scmp.lt.u32.totalorder %s16566_s19, %s17187_s5 }
  0x2b   :  { %p16572_p4 = pnand %p16570_p3, %p16567_p2 }
  0x2d   :  { %16575 = shalt.err (!%p16572_p4)
}
  0x2e   :  { %s16576_s25 = scalar_lea.vmem %s80_s16, 32768  ;;  %p16581_p6 = scmp.lt.s32.totalorder %s80_s16, %s80_s16 }
  0x2f   :  { %p16577_p5 = scmp.ne.s32.totalorder %s80_s16, %s16576_s25  ;;  %p16582_p7 = scmp.lt.s32.totalorder %s16576_s25, %s16576_s25 }
  0x31   :  { %p16583_p8 = por %p16582_p7, %p16581_p6 }
  0x33   :  { %p16584_p9 = pnand %p16583_p8, %p16577_p5 }
  0x35   :  { %16587 = shalt.err (!%p16584_p9)
}
  0x36   :  { %s16761_s3 = smov 512   ;;  %s16762_s24 = smov 32  }
  0x37   :  { %85 = dma.hbm_to_vmem [thread:$0]  %s17187_s5, 32768, %s80_s16, [#allocation12], %s16761_s3, %s16761_s3, %s16762_s24  }
  0x38   :  { %s16763_s28 = smov [#allocation14]   ;;  %s16588_s12 = scalar_lea.hbm %s17189_s7, 196608 }
  0x39   :  { %s101_s29 = sshll.u32 %s16763_s28, 4  ;;  %p16589_p10 = scmp.ne.s32.totalorder %s17189_s7, %s16588_s12  ;;  %s102_s29 = int_to_ptr.vmem [resolvable:$true] %s101_s29 }
  0x3a   :  { %p16592_p11 = scmp.lt.u32.totalorder %s16588_s12, %s17189_s7 }
  0x3c   :  { %p16594_p12 = pnand %p16592_p11, %p16589_p10 }
  0x3e   :  { %16597 = shalt.err (!%p16594_p12)
}
  0x3f   :  { %s16598_s15 = scalar_lea.vmem %s102_s29, 196608  ;;  %p16603_p0 = scmp.lt.s32.totalorder %s102_s29, %s102_s29 }
  0x40   :  { %p16599_p13 = scmp.ne.s32.totalorder %s102_s29, %s16598_s15  ;;  %p16604_p1 = scmp.lt.s32.totalorder %s16598_s15, %s16598_s15 }
  0x42   :  { %p16605_p2 = por %p16604_p1, %p16603_p0 }
  0x44   :  { %p16606_p3 = pnand %p16605_p2, %p16599_p13 }
  0x46   :  { %16609 = shalt.err (!%p16606_p3)
}
  0x47   :  { %s16764_s5 = smov 1536   ;;  %s16765_s16 = smov 96  }
  0x48   :  { %107 = dma.hbm_to_vmem [thread:$0]  %s17189_s7, 196608, %s102_s29, [#allocation15], %s16764_s5, %s16764_s5, %s16765_s16  }
  0x49   :  { %s16766_s19 = smov [#allocation2]   ;;  %s16767_s21 = smov [#allocation7]  }
  0x4a   :  { %s26_s20 = sshll.u32 %s16766_s19, 4  ;;  %s48_s22 = sshll.u32 %s16767_s21, 4  ;;  %s27_s20 = int_to_ptr.vmem [resolvable:$true] %s26_s20  ;;  %s49_s22 = int_to_ptr.vmem [resolvable:$true] %s48_s22 }
  0x4b   :  { %s16610_s3 = scalar_lea.hbm %s17182_s0, 128 }
  0x4c   :  { %p16611_p4 = scmp.ne.s32.totalorder %s17182_s0, %s16610_s3  ;;  %p16614_p5 = scmp.lt.u32.totalorder %s16610_s3, %s17182_s0 }
  0x4e   :  { %p16616_p6 = pnand %p16614_p5, %p16611_p4 }
  0x50   :  { %16619 = shalt.err (!%p16616_p6)
}
  0x51   :  { %s16620_s7 = scalar_lea.vmem %s27_s20, 128  ;;  %p16625_p8 = scmp.lt.s32.totalorder %s27_s20, %s27_s20 }
  0x52   :  { %p16621_p7 = scmp.ne.s32.totalorder %s27_s20, %s16620_s7  ;;  %p16626_p9 = scmp.lt.s32.totalorder %s16620_s7, %s16620_s7 }
  0x54   :  { %p16627_p10 = por %p16626_p9, %p16625_p8 }
  0x56   :  { %p16628_p11 = pnand %p16627_p10, %p16621_p7 }
  0x58   :  { %16631 = shalt.err (!%p16628_p11)
}
  0x59   :  { %29 = dma.hbm_to_vmem [thread:$0]  %s17182_s0, 128, %s27_s20, [#allocation3]  }
  0x5a   :  { %s16632_s1 = scalar_lea.hbm %s17184_s2, 32 }
  0x5b   :  { %p16633_p12 = scmp.ne.s32.totalorder %s17184_s2, %s16632_s1  ;;  %p16636_p13 = scmp.lt.u32.totalorder %s16632_s1, %s17184_s2 }
  0x5d   :  { %p16638_p0 = pnand %p16636_p13, %p16633_p12 }
  0x5f   :  { %16641 = shalt.err (!%p16638_p0)
}
  0x60   :  { %s16642_s5 = scalar_lea.vmem %s49_s22, 32  ;;  %p16647_p2 = scmp.lt.s32.totalorder %s49_s22, %s49_s22 }
  0x61   :  { %p16643_p1 = scmp.ne.s32.totalorder %s49_s22, %s16642_s5  ;;  %p16648_p3 = scmp.lt.s32.totalorder %s16642_s5, %s16642_s5 }
  0x63   :  { %p16649_p4 = por %p16648_p3, %p16647_p2 }
  0x65   :  { %p16650_p5 = pnand %p16649_p4, %p16643_p1 }
  0x67   :  { %16653 = shalt.err (!%p16650_p5)
}
  0x68   :  { %51 = dma.hbm_to_vmem [thread:$0]  %s17184_s2, 32, %s49_s22, [#allocation6]  }
  0x69   :  { %s16768_s17 = smov [#allocation10]   ;;  %s16769_s19 = smov [#allocation13]  }
  0x6a   :  { %s70_s18 = sshll.u32 %s16768_s17, 4  ;;  %s92_s20 = sshll.u32 %s16769_s19, 4  ;;  %s71_s18 = int_to_ptr.vmem [resolvable:$true] %s70_s18  ;;  %s93_s20 = int_to_ptr.vmem [resolvable:$true] %s92_s20 }
  0x6b   :  { %s16654_s25 = scalar_lea.hbm %s17186_s4, 64 }
  0x6c   :  { %p16655_p6 = scmp.ne.s32.totalorder %s17186_s4, %s16654_s25  ;;  %p16658_p7 = scmp.lt.u32.totalorder %s16654_s25, %s17186_s4 }
  0x6e   :  { %p16660_p8 = pnand %p16658_p7, %p16655_p6 }
  0x70   :  { %16663 = shalt.err (!%p16660_p8)
}
  0x71   :  { %s16664_s2 = scalar_lea.vmem %s71_s18, 64  ;;  %p16669_p10 = scmp.lt.s32.totalorder %s71_s18, %s71_s18 }
  0x72   :  { %p16665_p9 = scmp.ne.s32.totalorder %s71_s18, %s16664_s2  ;;  %p16670_p11 = scmp.lt.s32.totalorder %s16664_s2, %s16664_s2 }
  0x74   :  { %p16671_p12 = por %p16670_p11, %p16669_p10 }
  0x76   :  { %p16672_p13 = pnand %p16671_p12, %p16665_p9 }
  0x78   :  { %16675 = shalt.err (!%p16672_p13)
}
  0x79   :  { %73 = dma.hbm_to_vmem [thread:$0]  %s17186_s4, 64, %s71_s18, [#allocation9]  }
  0x7a   :  { %s16676_s30 = scalar_lea.hbm %s17188_s6, 128 }
  0x7b   :  { %p16677_p0 = scmp.ne.s32.totalorder %s17188_s6, %s16676_s30  ;;  %p16680_p1 = scmp.lt.u32.totalorder %s16676_s30, %s17188_s6 }
  0x7d   :  { %p16682_p2 = pnand %p16680_p1, %p16677_p0 }
  0x7f   :  { %16685 = shalt.err (!%p16682_p2)
}
  0x80   :  { %s16686_s13 = scalar_lea.vmem %s93_s20, 128  ;;  %p16691_p4 = scmp.lt.s32.totalorder %s93_s20, %s93_s20 }
  0x81   :  { %p16687_p3 = scmp.ne.s32.totalorder %s93_s20, %s16686_s13  ;;  %p16692_p5 = scmp.lt.s32.totalorder %s16686_s13, %s16686_s13 }
  0x83   :  { %p16693_p6 = por %p16692_p5, %p16691_p4 }
  0x85   :  { %p16694_p7 = pnand %p16693_p6, %p16687_p3 }
  0x87   :  { %16697 = shalt.err (!%p16694_p7)
}
  0x88   :  { %95 = dma.hbm_to_vmem [thread:$0]  %s17188_s6, 128, %s93_s20, [#allocation12]  }
  0x89   :  { %s16770_s15 = smov [#allocation16]   ;;  %s16698_s17 = scalar_lea.hbm %s17190_s8, 384 }
  0x8a   :  { %s114_s5 = sshll.u32 %s16770_s15, 4  ;;  %p16699_p8 = scmp.ne.s32.totalorder %s17190_s8, %s16698_s17  ;;  %s115_s5 = int_to_ptr.vmem [resolvable:$true] %s114_s5 }
  0x8b   :  { %p16702_p9 = scmp.lt.u32.totalorder %s16698_s17, %s17190_s8 }
  0x8d   :  { %p16704_p10 = pnand %p16702_p9, %p16699_p8 }
  0x8f   :  { %16707 = shalt.err (!%p16704_p10)
}
  0x90   :  { %s16708_s25 = scalar_lea.vmem %s115_s5, 384  ;;  %p16713_p12 = scmp.lt.s32.totalorder %s115_s5, %s115_s5 }
  0x91   :  { %p16709_p11 = scmp.ne.s32.totalorder %s115_s5, %s16708_s25  ;;  %p16714_p13 = scmp.lt.s32.totalorder %s16708_s25, %s16708_s25 }
  0x93   :  { %p16715_p0 = por %p16714_p13, %p16713_p12 }
  0x95   :  { %p16716_p1 = pnand %p16715_p0, %p16709_p11 }
  0x97   :  { %16719 = shalt.err (!%p16716_p1)
}
  0x98   :  { %117 = dma.hbm_to_vmem [thread:$0]  %s17190_s8, 384, %s115_s5, [#allocation15]  }
  0x99   :  { %16742 = dma.done.wait [#allocation3], 128  }
  0x9a   :  { %16743 = vsyncadd [#allocation3], 4294967168 }
  0x9b   :  { %16744 = dma.done.wait [#allocation6], 4128  }
  0x9c   :  { %16745 = vsyncadd [#allocation6], 4294963168 }
  0x9d   :  { %16746 = dma.done.wait [#allocation9], 8256  }
  0x9e   :  { %16747 = vsyncadd [#allocation9], 4294959040 }
  0x9f   :  { %16748 = dma.done.wait [#allocation12], 32896  }
  0xa0   :  { %16749 = vsyncadd [#allocation12], 4294934400 }
  0xa1   :  { %16750 = dma.done.wait [#allocation15], 196992  }
  0xa2   :  { %16751 = vsyncadd [#allocation15], 4294770304  ;;  %v16297_v0 = vld [vmem:[#allocation5 + $0x4] ss:$8 sps:$4 sm:$0xff]   ;;  %v16299_v1 = vld [vmem:[#allocation5] ss:$8 sps:$4 sm:$0xff]  }
  0xa3   :  { %357 = vmatprep.subr.bf16.mxu0 %v16297_v0  ;;  %v16300_v2 = vld [vmem:[#allocation5 + $0x14] ss:$8 sps:$4 sm:$0xff]   ;;  %v16302_v3 = vld [vmem:[#allocation5 + $0x10] ss:$8 sps:$4 sm:$0xff]   ;;  %v16303_v4 = vld [vmem:[#allocation5 + $0x24] ss:$8 sps:$4 sm:$0xff]  }
  0xa4   :  { %358 = vmatpush1.bf16.msra.mxu0 %v16299_v1  ;;  %v16305_v5 = vld [vmem:[#allocation5 + $0x20] ss:$8 sps:$4 sm:$0xff]   ;;  %v16306_v6 = vld [vmem:[#allocation5 + $0x34] ss:$8 sps:$4 sm:$0xff]   ;;  %v16308_v7 = vld [vmem:[#allocation5 + $0x30] ss:$8 sps:$4 sm:$0xff]  }
  0xa5   :  { %359 = vmatprep.subr.bf16.mxu0 %v16300_v2  ;;  %v16309_v8 = vld [vmem:[#allocation5 + $0x44] ss:$8 sps:$4 sm:$0xff]   ;;  %v16311_v9 = vld [vmem:[#allocation5 + $0x40] ss:$8 sps:$4 sm:$0xff]   ;;  %v16312_v10 = vld [vmem:[#allocation5 + $0x54] ss:$8 sps:$4 sm:$0xff]  }
  0xa6   :  { %v16314_v11 = vld [vmem:[#allocation5 + $0x50] ss:$8 sps:$4 sm:$0xff]   ;;  %v16315_v12 = vld [vmem:[#allocation5 + $0x64] ss:$8 sps:$4 sm:$0xff]   ;;  %v16317_v16 = vld [vmem:[#allocation5 + $0x60] ss:$8 sps:$4 sm:$0xff]  }
  0xa7   :  { %v16930_v13 = vld [vmem:[#allocation2] sm:$0xff]  ;;  %v16352_v18 = vld [vmem:[#allocation8] ss:$16 sps:$4 sm:$0xff]   ;;  %s16771_s8 = smov [#allocation17]  }
  0xa8   :  { %360 = vmatpush1.bf16.msra.mxu0 %v16302_v3  ;;  %v14198_v14 = vcombine.high %v16930_v13, %v16930_v13  ;;  %v16347_v15 = vld [vmem:[#allocation8 + $0x4] ss:$16 sps:$4 sm:$0xff]   ;;  %v16358_v21 = vld [vmem:[#allocation8 + $0x20] ss:$16 sps:$4 sm:$0xff]   ;;  %v16351_v55 = vld [vmem:[#allocation8 + $0xc] ss:$16 sps:$4 sm:$0xff]   ;;  %v14197_v56 = vcombine.low %v16930_v13, %v16930_v13 }
  0xa9   :  { %361 = vmatprep.subr.bf16.mxu0 %v16303_v4  ;;  %v16318_v17 = vld [vmem:[#allocation5 + $0x74] ss:$8 sps:$4 sm:$0xff]   ;;  %808 = vmatprep.subr.bf16.mxu1 %v16347_v15  ;;  %v16320_v20 = vld [vmem:[#allocation5 + $0x70] ss:$8 sps:$4 sm:$0xff]   ;;  %v16321_v23 = vld [vmem:[#allocation5 + $0x84] ss:$8 sps:$4 sm:$0xff]  }
  0xaa   :  { %389 = vmatprep.mubr.bf16.mxu0 %v14198_v14  ;;  %v16353_v19 = vld [vmem:[#allocation8 + $0x24] ss:$16 sps:$4 sm:$0xff]   ;;  %809 = vmatpush1.bf16.msra.mxu1 %v16352_v18  ;;  %v16364_v24 = vld [vmem:[#allocation8 + $0x40] ss:$16 sps:$4 sm:$0xff]   ;;  %v16349_v58 = vld [vmem:[#allocation8 + $0x8] ss:$16 sps:$4 sm:$0xff]  }
  0xab   :  { %810 = vmatprep.subr.bf16.mxu1 %v16353_v19  ;;  %v16359_v22 = vld [vmem:[#allocation8 + $0x44] ss:$16 sps:$4 sm:$0xff]   ;;  %v16370_v29 = vld [vmem:[#allocation8 + $0x60] ss:$16 sps:$4 sm:$0xff]   ;;  %v16357_v60 = vld [vmem:[#allocation8 + $0x2c] ss:$16 sps:$4 sm:$0xff]  }
  0xac   :  { %362 = vmatpush1.bf16.msra.mxu0 %v16305_v5  ;;  %v16323_v25 = vld [vmem:[#allocation5 + $0x80] ss:$8 sps:$4 sm:$0xff]   ;;  %v16324_v27 = vld [vmem:[#allocation5 + $0x94] ss:$8 sps:$4 sm:$0xff]   ;;  %v16326_v28 = vld [vmem:[#allocation5 + $0x90] ss:$8 sps:$4 sm:$0xff]  }
  0xad   :  { %363 = vmatprep.subr.bf16.mxu0 %v16306_v6  ;;  %v16365_v26 = vld [vmem:[#allocation8 + $0x64] ss:$16 sps:$4 sm:$0xff]   ;;  %v16376_v32 = vld [vmem:[#allocation8 + $0x80] ss:$16 sps:$4 sm:$0xff]   ;;  %v16355_v62 = vld [vmem:[#allocation8 + $0x28] ss:$16 sps:$4 sm:$0xff]  }
  0xae   :  { %811 = vmatpush1.bf16.msra.mxu1 %v16358_v21  ;;  %v16371_v30 = vld [vmem:[#allocation8 + $0x84] ss:$16 sps:$4 sm:$0xff]   ;;  %v16382_v37 = vld [vmem:[#allocation8 + $0xa0] ss:$16 sps:$4 sm:$0xff]   ;;  %v16363_v63 = vld [vmem:[#allocation8 + $0x4c] ss:$16 sps:$4 sm:$0xff]  }
  0xaf   :  { %812 = vmatprep.subr.bf16.mxu1 %v16359_v22  ;;  %v16327_v31 = vld [vmem:[#allocation5 + $0xa4] ss:$8 sps:$4 sm:$0xff]   ;;  %v16329_v33 = vld [vmem:[#allocation5 + $0xa0] ss:$8 sps:$4 sm:$0xff]   ;;  %v16330_v35 = vld [vmem:[#allocation5 + $0xb4] ss:$8 sps:$4 sm:$0xff]  }
  0xb0   :  { %364 = vmatpush1.bf16.msra.mxu0 %v16308_v7  ;;  %v16377_v34 = vld [vmem:[#allocation8 + $0xa4] ss:$16 sps:$4 sm:$0xff]   ;;  %v16388_v40 = vld [vmem:[#allocation8 + $0xc0] ss:$16 sps:$4 sm:$0xff]   ;;  %v16361_v0 = vld [vmem:[#allocation8 + $0x48] ss:$16 sps:$4 sm:$0xff]  }
  0xb1   :  { %365 = vmatprep.subr.bf16.mxu0 %v16309_v8  ;;  %v16332_v36 = vld [vmem:[#allocation5 + $0xb0] ss:$8 sps:$4 sm:$0xff]   ;;  %v16333_v39 = vld [vmem:[#allocation5 + $0xc4] ss:$8 sps:$4 sm:$0xff]   ;;  %v16335_v41 = vld [vmem:[#allocation5 + $0xc0] ss:$8 sps:$4 sm:$0xff]  }
  0xb2   :  { %813 = vmatpush1.bf16.msra.mxu1 %v16364_v24  ;;  %v16383_v38 = vld [vmem:[#allocation8 + $0xc4] ss:$16 sps:$4 sm:$0xff]   ;;  %v16394_v45 = vld [vmem:[#allocation8 + $0xe0] ss:$16 sps:$4 sm:$0xff]   ;;  %v16369_v1 = vld [vmem:[#allocation8 + $0x6c] ss:$16 sps:$4 sm:$0xff]  }
  0xb3   :  { %814 = vmatprep.subr.bf16.mxu1 %v16365_v26  ;;  %v16389_v42 = vld [vmem:[#allocation8 + $0xe4] ss:$16 sps:$4 sm:$0xff]   ;;  %v16400_v49 = vld [vmem:[#allocation8 + $0x100] ss:$16 sps:$4 sm:$0xff]   ;;  %v16367_v2 = vld [vmem:[#allocation8 + $0x68] ss:$16 sps:$4 sm:$0xff]  }
  0xb4   :  { %366 = vmatpush1.bf16.msra.mxu0 %v16311_v9  ;;  %v16336_v43 = vld [vmem:[#allocation5 + $0xd4] ss:$8 sps:$4 sm:$0xff]   ;;  %v16338_v44 = vld [vmem:[#allocation5 + $0xd0] ss:$8 sps:$4 sm:$0xff]   ;;  %v16339_v47 = vld [vmem:[#allocation5 + $0xe4] ss:$8 sps:$4 sm:$0xff]  }
  0xb5   :  { %367 = vmatprep.subr.bf16.mxu0 %v16312_v10  ;;  %v16395_v46 = vld [vmem:[#allocation8 + $0x104] ss:$16 sps:$4 sm:$0xff]   ;;  %v16406_v52 = vld [vmem:[#allocation8 + $0x120] ss:$16 sps:$4 sm:$0xff]   ;;  %v16375_v3 = vld [vmem:[#allocation8 + $0x8c] ss:$16 sps:$4 sm:$0xff]  }
  0xb6   :  { %815 = vmatpush1.bf16.msra.mxu1 %v16370_v29  ;;  %v16341_v48 = vld [vmem:[#allocation5 + $0xe0] ss:$8 sps:$4 sm:$0xff]   ;;  %v16342_v51 = vld [vmem:[#allocation5 + $0xf4] ss:$8 sps:$4 sm:$0xff]   ;;  %v16344_v53 = vld [vmem:[#allocation5 + $0xf0] ss:$8 sps:$4 sm:$0xff]  }
  0xb7   :  { %816 = vmatprep.subr.bf16.mxu1 %v16371_v30  ;;  %v16401_v50 = vld [vmem:[#allocation8 + $0x124] ss:$16 sps:$4 sm:$0xff]   ;;  %v16412_v57 = vld [vmem:[#allocation8 + $0x140] ss:$16 sps:$4 sm:$0xff]   ;;  %v16373_v4 = vld [vmem:[#allocation8 + $0x88] ss:$16 sps:$4 sm:$0xff]  }
  0xb8   :  { %368 = vmatpush1.bf16.msra.mxu0 %v16314_v11  ;;  %v16407_v54 = vld [vmem:[#allocation8 + $0x144] ss:$16 sps:$4 sm:$0xff]   ;;  %v16418_v61 = vld [vmem:[#allocation8 + $0x160] ss:$16 sps:$4 sm:$0xff]   ;;  %v16381_v5 = vld [vmem:[#allocation8 + $0xac] ss:$16 sps:$4 sm:$0xff]  }
  0xb9   :  { %369 = vmatprep.subr.bf16.mxu0 %v16315_v12  ;;  %v16413_v59 = vld [vmem:[#allocation8 + $0x164] ss:$16 sps:$4 sm:$0xff]   ;;  %v16379_v6 = vld [vmem:[#allocation8 + $0xa8] ss:$16 sps:$4 sm:$0xff]   ;;  %v16387_v7 = vld [vmem:[#allocation8 + $0xcc] ss:$16 sps:$4 sm:$0xff]  }
  0xba   :  { %817 = vmatpush1.bf16.msra.mxu1 %v16376_v32  ;;  %v16385_v8 = vld [vmem:[#allocation8 + $0xc8] ss:$16 sps:$4 sm:$0xff]   ;;  %v16393_v9 = vld [vmem:[#allocation8 + $0xec] ss:$16 sps:$4 sm:$0xff]   ;;  %v16419_v19 = vld [vmem:[#allocation8 + $0x184] ss:$16 sps:$4 sm:$0xff]  }
  0xbb   :  { %818 = vmatprep.subr.bf16.mxu1 %v16377_v34  ;;  %v16391_v10 = vld [vmem:[#allocation8 + $0xe8] ss:$16 sps:$4 sm:$0xff]   ;;  %v16399_v11 = vld [vmem:[#allocation8 + $0x10c] ss:$16 sps:$4 sm:$0xff]   ;;  %v16424_v22 = vld [vmem:[#allocation8 + $0x180] ss:$16 sps:$4 sm:$0xff]  }
  0xbc   :  { %370 = vmatpush1.bf16.msra.mxu0 %v16317_v16  ;;  %v16397_v12 = vld [vmem:[#allocation8 + $0x108] ss:$16 sps:$4 sm:$0xff]   ;;  %v16405_v13 = vld [vmem:[#allocation8 + $0x12c] ss:$16 sps:$4 sm:$0xff]   ;;  %v16430_v26 = vld [vmem:[#allocation8 + $0x1a0] ss:$16 sps:$4 sm:$0xff]  }
  0xbd   :  { %371 = vmatprep.subr.bf16.mxu0 %v16318_v17  ;;  %v16403_v14 = vld [vmem:[#allocation8 + $0x128] ss:$16 sps:$4 sm:$0xff]   ;;  %v16411_v15 = vld [vmem:[#allocation8 + $0x14c] ss:$16 sps:$4 sm:$0xff]   ;;  %v16436_v30 = vld [vmem:[#allocation8 + $0x1c0] ss:$16 sps:$4 sm:$0xff]  }
  0xbe   :  { %819 = vmatpush1.bf16.msra.mxu1 %v16382_v37  ;;  %v16409_v16 = vld [vmem:[#allocation8 + $0x148] ss:$16 sps:$4 sm:$0xff]   ;;  %v16417_v17 = vld [vmem:[#allocation8 + $0x16c] ss:$16 sps:$4 sm:$0xff]   ;;  %v16442_v34 = vld [vmem:[#allocation8 + $0x1e0] ss:$16 sps:$4 sm:$0xff]  }
  0xbf   :  { %820 = vmatprep.subr.bf16.mxu1 %v16383_v38  ;;  %v16415_v18 = vld [vmem:[#allocation8 + $0x168] ss:$16 sps:$4 sm:$0xff]   ;;  %v16429_v24 = vld [vmem:[#allocation8 + $0x1ac] ss:$16 sps:$4 sm:$0xff]   ;;  %s14184_s3 = sshll.u32 %s16771_s8, 4  ;;  %s14185_s3 = int_to_ptr.vmem [resolvable:$true] %s14184_s3 }
  0xc0   :  { %372 = vmatpush1.bf16.msra.mxu0 %v16320_v20  ;;  %v16423_v20 = vld [vmem:[#allocation8 + $0x18c] ss:$16 sps:$4 sm:$0xff]   ;;  %v16421_v21 = vld [vmem:[#allocation8 + $0x188] ss:$16 sps:$4 sm:$0xff]   ;;  %s16720_s24 = scalar_lea.vmem %s14185_s3, 3072  ;;  %p16725_p3 = scmp.lt.s32.totalorder %s14185_s3, %s14185_s3 }
  0xc1   :  { %373 = vmatprep.subr.bf16.mxu0 %v16321_v23  ;;  %v16425_v23 = vld [vmem:[#allocation8 + $0x1a4] ss:$16 sps:$4 sm:$0xff]   ;;  %v16433_v29 = vld [vmem:[#allocation8 + $0x1c8] ss:$16 sps:$4 sm:$0xff]   ;;  %v16441_v32 = vld [vmem:[#allocation8 + $0x1ec] ss:$16 sps:$4 sm:$0xff]   ;;  %p16721_p2 = scmp.ne.s32.totalorder %s14185_s3, %s16720_s24  ;;  %p16726_p4 = scmp.lt.s32.totalorder %s16720_s24, %s16720_s24 }
  0xc2   :  { %821 = vmatpush1.bf16.msra.mxu1 %v16388_v40  ;;  %v899_v37 = vld [vmem:[#allocation11 + $0x8] sm:$0xff] }
  0xc3   :  { %822 = vmatprep.subr.bf16.mxu1 %v16389_v42  ;;  %v903_v40 = vld [vmem:[#allocation11 + $0x28] sm:$0xff]  ;;  %p16727_p5 = por %p16726_p4, %p16725_p3 }
  0xc4   :  { %374 = vmatpush1.bf16.msra.mxu0 %v16323_v25  ;;  %v16427_v25 = vld [vmem:[#allocation8 + $0x1a8] ss:$16 sps:$4 sm:$0xff]   ;;  %v14298_v42 = vcombine.high %v899_v37, %v903_v40 }
  0xc5   :  { %375 = vmatprep.subr.bf16.mxu0 %v16324_v27  ;;  %v16431_v27 = vld [vmem:[#allocation8 + $0x1c4] ss:$16 sps:$4 sm:$0xff]   ;;  %p16728_p6 = pnand %p16727_p5, %p16721_p2 }
  0xc6   :  { %823 = vmatpush1.bf16.msra.mxu1 %v16394_v45 }
  0xc7   :  { %824 = vmatprep.subr.bf16.mxu1 %v16395_v46  ;;  %v178_v46 = vld [vmem:[#allocation7] sm:$0x3] }
  0xc8   :  { %376 = vmatpush1.bf16.msra.mxu0 %v16326_v28  ;;  %v16435_v28 = vld [vmem:[#allocation8 + $0x1cc] ss:$16 sps:$4 sm:$0xff]  }
  0xc9   :  { %377 = vmatprep.subr.bf16.mxu0 %v16327_v31  ;;  %v16437_v31 = vld [vmem:[#allocation8 + $0x1e4] ss:$16 sps:$4 sm:$0xff]  }
  0xca   :  { %825 = vmatpush1.bf16.msra.mxu1 %v16400_v49 }
  0xcb   :  { %826 = vmatprep.subr.bf16.mxu1 %v16401_v50 }
  0xcc   :  { %378 = vmatpush1.bf16.msra.mxu0 %v16329_v33  ;;  %v16439_v33 = vld [vmem:[#allocation8 + $0x1e8] ss:$16 sps:$4 sm:$0xff]  }
  0xcd   :  { %379 = vmatprep.subr.bf16.mxu0 %v16330_v35  ;;  %v898_v35 = vld [vmem:[#allocation11] sm:$0xff] }
  0xce   :  { %827 = vmatpush1.bf16.msra.mxu1 %v16406_v52 }
  0xcf   :  { %828 = vmatprep.subr.bf16.mxu1 %v16407_v54 }
  0xd0   :  { %380 = vmatpush1.bf16.msra.mxu0 %v16332_v36  ;;  %v902_v36 = vld [vmem:[#allocation11 + $0x20] sm:$0xff] }
  0xd1   :  { %381 = vmatprep.subr.bf16.mxu0 %v16333_v39  ;;  %v14295_v38 = vcombine.low %v898_v35, %v902_v36  ;;  %v14296_v39 = vcombine.high %v898_v35, %v902_v36  ;;  %v950_v35 = vld [vmem:[#allocation11 + $0x1a0] sm:$0xff]  ;;  %v947_v36 = vld [vmem:[#allocation11 + $0x188] sm:$0xff] }
  0xd2   :  { %829 = vmatpush1.bf16.msra.mxu1 %v16412_v57 }
  0xd3   :  { %830 = vmatprep.subr.bf16.mxu1 %v16413_v59  ;;  %v907_v59 = vld [vmem:[#allocation11 + $0x48] sm:$0xff] }
  0xd4   :  { %382 = vmatpush1.bf16.msra.mxu0 %v16335_v41  ;;  %v14297_v41 = vcombine.low %v899_v37, %v903_v40  ;;  %v951_v37 = vld [vmem:[#allocation11 + $0x1a8] sm:$0xff] }
  0xd5   :  { %383 = vmatprep.subr.bf16.mxu0 %v16336_v43  ;;  %v180_v43 = vlaneseq }
  0xd6   :  { %831 = vmatpush1.bf16.msra.mxu1 %v16418_v61 }
  0xd7   :  { %832 = vmatprep.subr.bf16.mxu1 %v16419_v19  ;;  %v934_v19 = vld [vmem:[#allocation11 + $0x120] sm:$0xff] }
  0xd8   :  { %384 = vmatpush1.bf16.msra.mxu0 %v16338_v44  ;;  %v16936_v44 = vshrl.u32 %v180_v43, 7  ;;  %v958_v43 = vld [vmem:[#allocation11 + $0x1e0] sm:$0xff] }
  0xd9   :  { %385 = vmatprep.subr.bf16.mxu0 %v16339_v47 }
  0xda   :  { %833 = vmatpush1.bf16.msra.mxu1 %v16424_v22  ;;  %v16939_v45 = vsub.s32 0, %v16936_v44  ;;  %v16942_v47 = vsub.s32 1, %v16936_v44 }
  0xdb   :  { %834 = vmatprep.subr.bf16.mxu1 %v16425_v23 }
  0xdc   :  { %386 = vmatpush1.bf16.msra.mxu0 %v16341_v48  ;;  %v183_v48 = vrot.slane %v178_v46, %v16939_v45  ;;  %v187_v49 = vrot.slane %v178_v46, %v16942_v47  ;;  %v955_v46 = vld [vmem:[#allocation11 + $0x1c8] sm:$0xff] }
  0xdd   :  { %387 = vmatprep.subr.bf16.mxu0 %v16342_v51 }
  0xde   :  { %835 = vmatpush1.bf16.msra.mxu1 %v16430_v26  ;;  %v938_v26 = vld [vmem:[#allocation11 + $0x140] sm:$0xff] }
  0xdf   :  { %836 = vmatprep.subr.bf16.mxu1 %v16431_v27  ;;  %v942_v27 = vld [vmem:[#allocation11 + $0x160] sm:$0xff] }
  0xe0   :  { %388 = vmatpush1.bf16.msra.mxu0 %v16344_v53 }
  0xe1   :  { %849 = vmatprep.subr.bf16.mxu0 %v16351_v55 }
  0xe2   :  { %837 = vmatpush1.bf16.msra.mxu1 %v16436_v30 }
  0xe3   :  { %390 = vmatmul.mubr.bf16.vlgmr.msra.gmra.mrb[0].mxu0 %v14197_v56  ;;  %838 = vmatprep.subr.bf16.mxu1 %v16437_v31  ;;  %v906_v56 = vld [vmem:[#allocation11 + $0x40] sm:$0xff] }
  0xe4   :  { %850 = vmatpush1.bf16.msra.mxu0 %v16349_v58  ;;  %v910_v58 = vld [vmem:[#allocation11 + $0x60] sm:$0xff] }
  0xe5   :  { %851 = vmatprep.subr.bf16.mxu0 %v16357_v60  ;;  %v911_v60 = vld [vmem:[#allocation11 + $0x68] sm:$0xff] }
  0xe6   :  { %839 = vmatpush1.bf16.msra.mxu1 %v16442_v34  ;;  %v946_v34 = vld [vmem:[#allocation11 + $0x180] sm:$0xff] }
  0xe7   :  { %2476 = vmatprep.subr.bf16.mxu1 %v14296_v39  ;;  %v14344_v40 = vcombine.high %v946_v34, %v950_v35 }
  0xe8   :  { %852 = vmatpush1.bf16.msra.mxu0 %v16355_v62 }
  0xe9   :  { %853 = vmatprep.subr.bf16.mxu0 %v16363_v63 }
  0xec   :  { %854 = vmatpush1.bf16.msra.mxu0 %v16361_v0  ;;  %v14304_v0 = vcombine.high %v906_v56, %v910_v58 }
  0xed   :  { %855 = vmatprep.subr.bf16.mxu0 %v16369_v1  ;;  %v14306_v1 = vcombine.high %v907_v59, %v911_v60 }
  0xf0   :  { %856 = vmatpush1.bf16.msra.mxu0 %v16367_v2  ;;  %v914_v2 = vld [vmem:[#allocation11 + $0x80] sm:$0xff] }
  0xf1   :  { %857 = vmatprep.subr.bf16.mxu0 %v16375_v3  ;;  %v918_v3 = vld [vmem:[#allocation11 + $0xa0] sm:$0xff] }
  0xf4   :  { %858 = vmatpush1.bf16.msra.mxu0 %v16373_v4  ;;  %v915_v4 = vld [vmem:[#allocation11 + $0x88] sm:$0xff] }
  0xf5   :  { %859 = vmatprep.subr.bf16.mxu0 %v16381_v5  ;;  %v919_v5 = vld [vmem:[#allocation11 + $0xa8] sm:$0xff] }
  0xf8   :  { %860 = vmatpush1.bf16.msra.mxu0 %v16379_v6  ;;  %v14303_v6 = vcombine.low %v906_v56, %v910_v58  ;;  %v967_v56 = vld [vmem:[#allocation11 + $0x228] sm:$0xff] }
  0xf9   :  { %861 = vmatprep.subr.bf16.mxu0 %v16387_v7  ;;  %v14305_v7 = vcombine.low %v907_v59, %v911_v60 }
  0xfc   :  { %862 = vmatpush1.bf16.msra.mxu0 %v16385_v8  ;;  %v14312_v8 = vcombine.high %v914_v2, %v918_v3 }
  0xfd   :  { %863 = vmatprep.subr.bf16.mxu0 %v16393_v9  ;;  %v14314_v9 = vcombine.high %v915_v4, %v919_v5 }
 0x100   :  { %864 = vmatpush1.bf16.msra.mxu0 %v16391_v10  ;;  %v922_v10 = vld [vmem:[#allocation11 + $0xc0] sm:$0xff] }
 0x101   :  { %865 = vmatprep.subr.bf16.mxu0 %v16399_v11  ;;  %v926_v11 = vld [vmem:[#allocation11 + $0xe0] sm:$0xff] }
 0x102   :  { %v14319_v22 = vcombine.low %v922_v10, %v926_v11 }
 0x104   :  { %866 = vmatpush1.bf16.msra.mxu0 %v16397_v12  ;;  %v923_v12 = vld [vmem:[#allocation11 + $0xc8] sm:$0xff] }
 0x105   :  { %867 = vmatprep.subr.bf16.mxu0 %v16405_v13  ;;  %v927_v13 = vld [vmem:[#allocation11 + $0xe8] sm:$0xff] }
 0x106   :  { %v14321_v23 = vcombine.low %v923_v12, %v927_v13 }
 0x108   :  { %868 = vmatpush1.bf16.msra.mxu0 %v16403_v14  ;;  %v14311_v14 = vcombine.low %v914_v2, %v918_v3 }
 0x109   :  { %869 = vmatprep.subr.bf16.mxu0 %v16411_v15  ;;  %v14313_v15 = vcombine.low %v915_v4, %v919_v5  ;;  %v978_v5 = vld [vmem:[#allocation11 + $0x280] sm:$0xff] }
 0x10c   :  { %870 = vmatpush1.bf16.msra.mxu0 %v16409_v16  ;;  %v14320_v16 = vcombine.high %v922_v10, %v926_v11 }
 0x10d   :  { %871 = vmatprep.subr.bf16.mxu0 %v16417_v17  ;;  %v14322_v17 = vcombine.high %v923_v12, %v927_v13  ;;  %v986_v13 = vld [vmem:[#allocation11 + $0x2c0] sm:$0xff] }
 0x110   :  { %872 = vmatpush1.bf16.msra.mxu0 %v16415_v18  ;;  %v930_v18 = vld [vmem:[#allocation11 + $0x100] sm:$0xff] }
 0x111   :  { %873 = vmatprep.subr.bf16.mxu0 %v16423_v20  ;;  %v931_v20 = vld [vmem:[#allocation11 + $0x108] sm:$0xff]  ;;  %v14327_v30 = vcombine.low %v930_v18, %v934_v19 }
 0x114   :  { %874 = vmatpush1.bf16.msra.mxu0 %v16421_v21  ;;  %v935_v21 = vld [vmem:[#allocation11 + $0x128] sm:$0xff] }
 0x115   :  { %875 = vmatprep.subr.bf16.mxu0 %v16429_v24  ;;  %v14328_v24 = vcombine.high %v930_v18, %v934_v19  ;;  %v14329_v31 = vcombine.low %v931_v20, %v935_v21 }
 0x118   :  { %876 = vmatpush1.bf16.msra.mxu0 %v16427_v25  ;;  %v14330_v25 = vcombine.high %v931_v20, %v935_v21 }
 0x119   :  { %877 = vmatprep.subr.bf16.mxu0 %v16435_v28  ;;  %v939_v28 = vld [vmem:[#allocation11 + $0x148] sm:$0xff] }
 0x11c   :  { %878 = vmatpush1.bf16.msra.mxu0 %v16433_v29  ;;  %v943_v29 = vld [vmem:[#allocation11 + $0x168] sm:$0xff] }
 0x11d   :  { %879 = vmatprep.subr.bf16.mxu0 %v16441_v32  ;;  %v14336_v32 = vcombine.high %v938_v26, %v942_v27  ;;  %v14337_v39 = vcombine.low %v939_v28, %v943_v29 }
 0x120   :  { %880 = vmatpush1.bf16.msra.mxu0 %v16439_v33  ;;  %v14338_v33 = vcombine.high %v939_v28, %v943_v29 }
 0x121   :  { %2558 = vmatprep.subr.bf16.mxu0 %v14298_v42  ;;  %v954_v42 = vld [vmem:[#allocation11 + $0x1c0] sm:$0xff] }
 0x1b6   :  { %v391_v50 = vpop.f32.mrb[0].mxu0 }
 0x1b7   :  { %v392_v51 = vadd.f32 %v391_v50, %v183_v48  ;;  %v393_v52 = vpop.f32.mrb[1].mxu0  ;;  %v959_v48 = vld [vmem:[#allocation11 + $0x1e8] sm:$0xff]  ;;  %v14345_v50 = vcombine.low %v947_v36, %v951_v37 }
 0x1b8   :  { %v394_v53 = vadd.f32 %v393_v52, %v187_v49  ;;  %v395_v54 = vpop.f32.mrb[2].mxu0  ;;  %v14343_v49 = vcombine.low %v946_v34, %v950_v35  ;;  %v14354_v52 = vcombine.high %v955_v46, %v959_v48  ;;  %v14353_v58 = vcombine.low %v955_v46, %v959_v48  ;;  %v1007_v35 = vld [vmem:[#allocation11 + $0x368] sm:$0xff] }
 0x1b9   :  { %16443 = vtanh.f32 %v392_v51  ;;  %v396_v55 = vpop.f32.mrb[3].mxu0  ;;  %v14352_v51 = vcombine.high %v954_v42, %v958_v43  ;;  %v966_v54 = vld [vmem:[#allocation11 + $0x220] sm:$0xff] }
 0x1ba   :  { %16445 = vtanh.f32 %v394_v53  ;;  %v962_v53 = vld [vmem:[#allocation11 + $0x200] sm:$0xff]  ;;  %v963_v55 = vld [vmem:[#allocation11 + $0x208] sm:$0xff] }
 0x1bb   :  { %v14360_v59 = vcombine.high %v962_v53, %v966_v54  ;;  %v14362_v60 = vcombine.high %v963_v55, %v967_v56  ;;  %v14361_v2 = vcombine.low %v963_v55, %v967_v56 }
 0x1c3   :  { %v16444_v57 = vpop.eup %16443 }
 0x1c4   :  { %v16446_v61 = vpop.eup %16445  ;;  %v400_v63 = vpack.c.bf16 %v16444_v57, %v16444_v57  ;;  %v14351_v57 = vcombine.low %v954_v42, %v958_v43  ;;  %v1015_v43 = vld [vmem:[#allocation11 + $0x3a8] sm:$0xff] }
 0x1c5   :  { %v401_v62 = vpack.c.bf16 %v16446_v61, %v16446_v61  ;;  %v970_v61 = vld [vmem:[#allocation11 + $0x240] sm:$0xff] }
 0x1c7   :  { %840 = vmatprep.mubr.bf16.mxu1 %v401_v62  ;;  %881 = vmatprep.mubr.bf16.mxu0 %v401_v62  ;;  %v974_v62 = vld [vmem:[#allocation11 + $0x260] sm:$0xff] }
 0x1c8   :  { %841 = vmatmul.mubr.bf16.vlgmr.msra.gmra.mrb[0].mxu1 %v400_v63  ;;  %882 = vmatmul.mubr.bf16.vlgmr.msra.gmra.mrb[4].mxu0 %v400_v63  ;;  %v971_v63 = vld [vmem:[#allocation11 + $0x248] sm:$0xff]  ;;  %v14368_v3 = vcombine.high %v970_v61, %v974_v62 }
 0x1c9   :  { %2477 = vmatpush1.bf16.msra.mxu1 %v14295_v38  ;;  %2559 = vmatpush1.bf16.msra.mxu0 %v14297_v41  ;;  %v14335_v38 = vcombine.low %v938_v26, %v942_v27  ;;  %v14346_v41 = vcombine.high %v947_v36, %v951_v37  ;;  %v999_v27 = vld [vmem:[#allocation11 + $0x328] sm:$0xff] }
 0x1ca   :  { %2478 = vmatprep.subr.bf16.mxu1 %v14304_v0  ;;  %2560 = vmatprep.subr.bf16.mxu0 %v14306_v1  ;;  %v975_v0 = vld [vmem:[#allocation11 + $0x268] sm:$0xff]  ;;  %v14359_v1 = vcombine.low %v962_v53, %v966_v54 }
 0x1cb   :  { %v14370_v4 = vcombine.high %v971_v63, %v975_v0  ;;  %v14369_v10 = vcombine.low %v971_v63, %v975_v0  ;;  %v1023_v54 = vld [vmem:[#allocation11 + $0x3e8] sm:$0xff] }
 0x1cd   :  { %2479 = vmatpush1.bf16.msra.mxu1 %v14303_v6  ;;  %2561 = vmatpush1.bf16.msra.mxu0 %v14305_v7  ;;  %v982_v6 = vld [vmem:[#allocation11 + $0x2a0] sm:$0xff]  ;;  %v979_v7 = vld [vmem:[#allocation11 + $0x288] sm:$0xff] }
 0x1ce   :  { %2480 = vmatprep.subr.bf16.mxu1 %v14312_v8  ;;  %2562 = vmatprep.subr.bf16.mxu0 %v14314_v9  ;;  %v983_v8 = vld [vmem:[#allocation11 + $0x2a8] sm:$0xff]  ;;  %v14367_v9 = vcombine.low %v970_v61, %v974_v62  ;;  %v14376_v11 = vcombine.high %v978_v5, %v982_v6 }
 0x1cf   :  { %v14378_v12 = vcombine.high %v979_v7, %v983_v8  ;;  %v14377_v18 = vcombine.low %v979_v7, %v983_v8  ;;  %v1031_v62 = vld [vmem:[#allocation11 + $0x428] sm:$0xff] }
 0x1d1   :  { %2481 = vmatpush1.bf16.msra.mxu1 %v14311_v14  ;;  %2563 = vmatpush1.bf16.msra.mxu0 %v14313_v15  ;;  %v990_v14 = vld [vmem:[#allocation11 + $0x2e0] sm:$0xff]  ;;  %v987_v15 = vld [vmem:[#allocation11 + $0x2c8] sm:$0xff] }
 0x1d2   :  { %2482 = vmatprep.subr.bf16.mxu1 %v14320_v16  ;;  %2564 = vmatprep.subr.bf16.mxu0 %v14322_v17  ;;  %v991_v16 = vld [vmem:[#allocation11 + $0x2e8] sm:$0xff]  ;;  %v14375_v17 = vcombine.low %v978_v5, %v982_v6  ;;  %v14384_v19 = vcombine.high %v986_v13, %v990_v14  ;;  %v14383_v21 = vcombine.low %v986_v13, %v990_v14 }
 0x1d3   :  { %v14386_v20 = vcombine.high %v987_v15, %v991_v16 }
 0x1d5   :  { %2483 = vmatpush1.bf16.msra.mxu1 %v14319_v22  ;;  %2565 = vmatpush1.bf16.msra.mxu0 %v14321_v23  ;;  %v14385_v22 = vcombine.low %v987_v15, %v991_v16  ;;  %v994_v23 = vld [vmem:[#allocation11 + $0x300] sm:$0xff] }
 0x1d6   :  { %2484 = vmatprep.subr.bf16.mxu1 %v14328_v24  ;;  %2566 = vmatprep.subr.bf16.mxu0 %v14330_v25  ;;  %v998_v24 = vld [vmem:[#allocation11 + $0x320] sm:$0xff]  ;;  %v995_v25 = vld [vmem:[#allocation11 + $0x308] sm:$0xff] }
 0x1d7   :  { %v14392_v26 = vcombine.high %v994_v23, %v998_v24  ;;  %v14391_v28 = vcombine.low %v994_v23, %v998_v24  ;;  %v14393_v29 = vcombine.low %v995_v25, %v999_v27  ;;  %v1039_v23 = vld [vmem:[#allocation11 + $0x468] sm:$0xff] }
 0x1d9   :  { %2485 = vmatpush1.bf16.msra.mxu1 %v14327_v30  ;;  %2567 = vmatpush1.bf16.msra.mxu0 %v14329_v31  ;;  %v14394_v30 = vcombine.high %v995_v25, %v999_v27  ;;  %v1002_v31 = vld [vmem:[#allocation11 + $0x340] sm:$0xff] }
 0x1da   :  { %2486 = vmatprep.subr.bf16.mxu1 %v14336_v32  ;;  %2568 = vmatprep.subr.bf16.mxu0 %v14338_v33  ;;  %v1006_v32 = vld [vmem:[#allocation11 + $0x360] sm:$0xff]  ;;  %v1003_v33 = vld [vmem:[#allocation11 + $0x348] sm:$0xff] }
 0x1db   :  { %v14400_v34 = vcombine.high %v1002_v31, %v1006_v32  ;;  %v14399_v36 = vcombine.low %v1002_v31, %v1006_v32  ;;  %v14401_v37 = vcombine.low %v1003_v33, %v1007_v35  ;;  %v1042_v27 = vld [vmem:[#allocation11 + $0x480] sm:$0xff]  ;;  %v1043_v31 = vld [vmem:[#allocation11 + $0x488] sm:$0xff] }
 0x1dc   :  { %v1047_v32 = vld [vmem:[#allocation11 + $0x4a8] sm:$0xff] }
 0x1dd   :  { %2487 = vmatpush1.bf16.msra.mxu1 %v14335_v38  ;;  %2569 = vmatpush1.bf16.msra.mxu0 %v14337_v39  ;;  %v14402_v38 = vcombine.high %v1003_v33, %v1007_v35  ;;  %v1010_v39 = vld [vmem:[#allocation11 + $0x380] sm:$0xff] }
 0x1de   :  { %2488 = vmatprep.subr.bf16.mxu1 %v14344_v40  ;;  %2570 = vmatprep.subr.bf16.mxu0 %v14346_v41  ;;  %v1014_v40 = vld [vmem:[#allocation11 + $0x3a0] sm:$0xff]  ;;  %v1011_v41 = vld [vmem:[#allocation11 + $0x388] sm:$0xff] }
 0x1df   :  { %v14408_v42 = vcombine.high %v1010_v39, %v1014_v40  ;;  %v14407_v46 = vcombine.low %v1010_v39, %v1014_v40  ;;  %v14409_v48 = vcombine.low %v1011_v41, %v1015_v43  ;;  %v1054_v39 = vld [vmem:[#allocation11 + $0x4e0] sm:$0xff]  ;;  %v1051_v40 = vld [vmem:[#allocation11 + $0x4c8] sm:$0xff] }
 0x1e1   :  { %2489 = vmatpush1.bf16.msra.mxu1 %v14343_v49  ;;  %2571 = vmatpush1.bf16.msra.mxu0 %v14345_v50  ;;  %v14410_v49 = vcombine.high %v1011_v41, %v1015_v43  ;;  %v1018_v50 = vld [vmem:[#allocation11 + $0x3c0] sm:$0xff]  ;;  %v1055_v41 = vld [vmem:[#allocation11 + $0x4e8] sm:$0xff]  ;;  %v14441_v43 = vcombine.low %v1043_v31, %v1047_v32 }
 0x1e2   :  { %2490 = vmatprep.subr.bf16.mxu1 %v14352_v51  ;;  %2572 = vmatprep.subr.bf16.mxu0 %v14354_v52  ;;  %v1022_v51 = vld [vmem:[#allocation11 + $0x3e0] sm:$0xff]  ;;  %v1019_v52 = vld [vmem:[#allocation11 + $0x3c8] sm:$0xff] }
 0x1e3   :  { %v14416_v53 = vcombine.high %v1018_v50, %v1022_v51  ;;  %v14415_v55 = vcombine.low %v1018_v50, %v1022_v51  ;;  %v14417_v56 = vcombine.low %v1019_v52, %v1023_v54  ;;  %v1062_v50 = vld [vmem:[#allocation11 + $0x520] sm:$0xff]  ;;  %v1059_v51 = vld [vmem:[#allocation11 + $0x508] sm:$0xff] }
 0x1e5   :  { %2491 = vmatpush1.bf16.msra.mxu1 %v14351_v57  ;;  %2573 = vmatpush1.bf16.msra.mxu0 %v14353_v58  ;;  %v14418_v57 = vcombine.high %v1019_v52, %v1023_v54  ;;  %v1026_v58 = vld [vmem:[#allocation11 + $0x400] sm:$0xff]  ;;  %v1063_v52 = vld [vmem:[#allocation11 + $0x528] sm:$0xff]  ;;  %v14449_v54 = vcombine.low %v1051_v40, %v1055_v41 }
 0x1e6   :  { %2492 = vmatprep.subr.bf16.mxu1 %v14360_v59  ;;  %2574 = vmatprep.subr.bf16.mxu0 %v14362_v60  ;;  %v1030_v59 = vld [vmem:[#allocation11 + $0x420] sm:$0xff]  ;;  %v1027_v60 = vld [vmem:[#allocation11 + $0x408] sm:$0xff] }
 0x1e7   :  { %v14424_v61 = vcombine.high %v1026_v58, %v1030_v59  ;;  %v14423_v63 = vcombine.low %v1026_v58, %v1030_v59  ;;  %v14425_v0 = vcombine.low %v1027_v60, %v1031_v62  ;;  %v1070_v58 = vld [vmem:[#allocation11 + $0x560] sm:$0xff]  ;;  %v1067_v59 = vld [vmem:[#allocation11 + $0x548] sm:$0xff] }
 0x1e9   :  { %2493 = vmatpush1.bf16.msra.mxu1 %v14359_v1  ;;  %2575 = vmatpush1.bf16.msra.mxu0 %v14361_v2  ;;  %v14426_v1 = vcombine.high %v1027_v60, %v1031_v62  ;;  %v16946_v2 = vld [vmem:[#allocation10] sm:$0xf]  ;;  %v1071_v60 = vld [vmem:[#allocation11 + $0x568] sm:$0xff]  ;;  %v14457_v62 = vcombine.low %v1059_v51, %v1063_v52 }
 0x1ea   :  { %2494 = vmatprep.subr.bf16.mxu1 %v14368_v3  ;;  %2576 = vmatprep.subr.bf16.mxu0 %v14370_v4  ;;  %v16949_v3 = vsub.s32 3, %v16936_v44  ;;  %v471_v4 = vrot.slane %v16946_v2, %v16939_v45  ;;  %v475_v5 = vrot.slane %v16946_v2, %v16942_v47 }
 0x1ec   :  { %v483_v6 = vrot.slane %v16946_v2, %v16949_v3 }
 0x1ed   :  { %2495 = vmatpush1.bf16.msra.mxu1 %v14367_v9  ;;  %2577 = vmatpush1.bf16.msra.mxu0 %v14369_v10 }
 0x1ee   :  { %2496 = vmatprep.subr.bf16.mxu1 %v14376_v11  ;;  %2578 = vmatprep.subr.bf16.mxu0 %v14378_v12 }
 0x1f1   :  { %2497 = vmatpush1.bf16.msra.mxu1 %v14375_v17  ;;  %2579 = vmatpush1.bf16.msra.mxu0 %v14377_v18 }
 0x1f2   :  { %2498 = vmatprep.subr.bf16.mxu1 %v14384_v19  ;;  %2580 = vmatprep.subr.bf16.mxu0 %v14386_v20  ;;  %v1034_v19 = vld [vmem:[#allocation11 + $0x440] sm:$0xff] }
 0x1f5   :  { %2499 = vmatpush1.bf16.msra.mxu1 %v14383_v21  ;;  %2581 = vmatpush1.bf16.msra.mxu0 %v14385_v22  ;;  %v1038_v21 = vld [vmem:[#allocation11 + $0x460] sm:$0xff]  ;;  %v1035_v22 = vld [vmem:[#allocation11 + $0x448] sm:$0xff] }
 0x1f6   :  { %2500 = vmatprep.subr.bf16.mxu1 %v14392_v26  ;;  %2582 = vmatprep.subr.bf16.mxu0 %v14394_v30  ;;  %v1046_v30 = vld [vmem:[#allocation11 + $0x4a0] sm:$0xff]  ;;  %v14433_v35 = vcombine.low %v1035_v22, %v1039_v23 }
 0x1f9   :  { %2501 = vmatpush1.bf16.msra.mxu1 %v14391_v28  ;;  %2583 = vmatpush1.bf16.msra.mxu0 %v14393_v29  ;;  %v14432_v28 = vcombine.high %v1034_v19, %v1038_v21  ;;  %v14434_v29 = vcombine.high %v1035_v22, %v1039_v23  ;;  %v1091_v22 = vld [vmem:[#allocation11 + $0x608] sm:$0xff] }
 0x1fa   :  { %2502 = vmatprep.subr.bf16.mxu1 %v14400_v34  ;;  %2584 = vmatprep.subr.bf16.mxu0 %v14402_v38  ;;  %v14431_v34 = vcombine.low %v1034_v19, %v1038_v21  ;;  %v1050_v38 = vld [vmem:[#allocation11 + $0x4c0] sm:$0xff]  ;;  %v1095_v23 = vld [vmem:[#allocation11 + $0x628] sm:$0xff] }
 0x1fb   :  { %v1094_v21 = vld [vmem:[#allocation11 + $0x620] sm:$0xff] }
 0x1fd   :  { %2503 = vmatpush1.bf16.msra.mxu1 %v14399_v36  ;;  %2585 = vmatpush1.bf16.msra.mxu0 %v14401_v37  ;;  %v14440_v36 = vcombine.high %v1042_v27, %v1046_v30  ;;  %v14442_v37 = vcombine.high %v1043_v31, %v1047_v32  ;;  %v1102_v31 = vld [vmem:[#allocation11 + $0x660] sm:$0xff]  ;;  %v1099_v32 = vld [vmem:[#allocation11 + $0x648] sm:$0xff] }
 0x1fe   :  { %2504 = vmatprep.subr.bf16.mxu1 %v14408_v42  ;;  %2586 = vmatprep.subr.bf16.mxu0 %v14410_v49  ;;  %v14439_v42 = vcombine.low %v1042_v27, %v1046_v30  ;;  %v1058_v49 = vld [vmem:[#allocation11 + $0x500] sm:$0xff] }
 0x1ff   :  { %v1098_v30 = vld [vmem:[#allocation11 + $0x640] sm:$0xff] }
 0x201   :  { %2505 = vmatpush1.bf16.msra.mxu1 %v14407_v46  ;;  %2587 = vmatpush1.bf16.msra.mxu0 %v14409_v48  ;;  %v14448_v46 = vcombine.high %v1050_v38, %v1054_v39  ;;  %v14450_v48 = vcombine.high %v1051_v40, %v1055_v41  ;;  %v1110_v40 = vld [vmem:[#allocation11 + $0x6a0] sm:$0xff]  ;;  %v1107_v41 = vld [vmem:[#allocation11 + $0x688] sm:$0xff] }
 0x202   :  { %2506 = vmatprep.subr.bf16.mxu1 %v14416_v53  ;;  %2588 = vmatprep.subr.bf16.mxu0 %v14418_v57  ;;  %v14447_v53 = vcombine.low %v1050_v38, %v1054_v39  ;;  %v1066_v57 = vld [vmem:[#allocation11 + $0x540] sm:$0xff] }
 0x203   :  { %v1106_v39 = vld [vmem:[#allocation11 + $0x680] sm:$0xff] }
 0x205   :  { %2507 = vmatpush1.bf16.msra.mxu1 %v14415_v55  ;;  %2589 = vmatpush1.bf16.msra.mxu0 %v14417_v56  ;;  %v14456_v55 = vcombine.high %v1058_v49, %v1062_v50  ;;  %v14458_v56 = vcombine.high %v1059_v51, %v1063_v52  ;;  %v1118_v51 = vld [vmem:[#allocation11 + $0x6e0] sm:$0xff]  ;;  %v1115_v52 = vld [vmem:[#allocation11 + $0x6c8] sm:$0xff] }
 0x206   :  { %2517 = vmatprep.subr.bf16.mxu1 %v14424_v61  ;;  %2599 = vmatprep.subr.bf16.mxu0 %v14426_v1  ;;  %v14455_v61 = vcombine.low %v1058_v49, %v1062_v50  ;;  %v1074_v1 = vld [vmem:[#allocation11 + $0x580] sm:$0xff] }
 0x207   :  { %v1114_v50 = vld [vmem:[#allocation11 + $0x6c0] sm:$0xff] }
 0x29b   :  { %v842_v7 = vpop.f32.mrb[0].mxu1  ;;  %v16957_v8 = vpop.f32.mrb[4].mxu0 }
 0x29c   :  { %v843_v9 = vadd.f32 %v842_v7, %v471_v4  ;;  %v844_v10 = vpop.f32.mrb[1].mxu1  ;;  %v885_v11 = vpop.f32.mrb[5].mxu0  ;;  %v1078_v4 = vld [vmem:[#allocation11 + $0x5a0] sm:$0xff]  ;;  %v14463_v7 = vcombine.low %v1066_v57, %v1070_v58 }
 0x29d   :  { %v845_v12 = vadd.f32 %v844_v10, %v475_v5  ;;  %v886_v13 = vadd.f32 %v885_v11, %v483_v6  ;;  %v846_v14 = vpop.f32.mrb[2].mxu1  ;;  %v887_v15 = vpop.f32.mrb[6].mxu0  ;;  %v1075_v5 = vld [vmem:[#allocation11 + $0x588] sm:$0xff]  ;;  %v14472_v10 = vcombine.high %v1074_v1, %v1078_v4 }
 0x29e   :  { %v847_v16 = vpop.f32.mrb[3].mxu1  ;;  %v888_v17 = vpop.f32.mrb[7].mxu0  ;;  %16447 = vtanh.f32 %v843_v9  ;;  %v1079_v6 = vld [vmem:[#allocation11 + $0x5a8] sm:$0xff]  ;;  %v14465_v9 = vcombine.low %v1067_v59, %v1071_v60 }
 0x29f   :  { %16449 = vtanh.f32 %v845_v12  ;;  %v14474_v11 = vcombine.high %v1075_v5, %v1079_v6  ;;  %v1082_v12 = vld [vmem:[#allocation11 + $0x5c0] sm:$0xff]  ;;  %v1083_v14 = vld [vmem:[#allocation11 + $0x5c8] sm:$0xff]  ;;  %v14471_v16 = vcombine.low %v1074_v1, %v1078_v4  ;;  %v14473_v17 = vcombine.low %v1075_v5, %v1079_v6 }
 0x2a0   :  { %16451 = vtanh.f32 %v886_v13  ;;  %v1086_v13 = vld [vmem:[#allocation11 + $0x5e0] sm:$0xff]  ;;  %v1087_v15 = vld [vmem:[#allocation11 + $0x5e8] sm:$0xff] }
 0x2a1   :  { %v14482_v19 = vcombine.high %v1083_v14, %v1087_v15  ;;  %v14481_v27 = vcombine.low %v1083_v14, %v1087_v15  ;;  %v1130_v6 = vld [vmem:[#allocation11 + $0x740] sm:$0xff] }
 0x2a2   :  { %v1138_v15 = vld [vmem:[#allocation11 + $0x780] sm:$0xff] }
 0x2a8   :  { %v16448_v18 = vpop.eup %16447 }
 0x2a9   :  { %v16450_v20 = vpop.eup %16449  ;;  %v16961_v26 = vpack.c.bf16 %v16448_v18, %v16448_v18  ;;  %v14480_v18 = vcombine.high %v1082_v12, %v1086_v13 }
 0x2aa   :  { %v16452_v24 = vpop.eup %16451  ;;  %v16959_v25 = vpack.c.bf16 %v16450_v20, %v16450_v20  ;;  %v1090_v20 = vld [vmem:[#allocation11 + $0x600] sm:$0xff] }
 0x2ab   :  { %v16965_v33 = vpack.c.bf16 %v16452_v24, %v16452_v24  ;;  %v14479_v24 = vcombine.low %v1082_v12, %v1086_v13 }
 0x2ac   :  { %2508 = vmatprep.mubr.bf16.mxu1 %v16959_v25  ;;  %2590 = vmatprep.mubr.bf16.mxu0 %v16959_v25 }
 0x2ad   :  { %2509 = vmatmul.mubr.bf16.vlgmr.msra.gmra.mrb[4].mxu1 %v16961_v26  ;;  %2591 = vmatmul.mubr.bf16.vlgmr.msra.gmra.mrb[8].mxu0 %v16961_v26 }
 0x2ae   :  { %2518 = vmatpush1.bf16.msra.mxu1 %v14423_v63  ;;  %2600 = vmatpush1.bf16.msra.mxu0 %v14425_v0  ;;  %v14464_v63 = vcombine.high %v1066_v57, %v1070_v58  ;;  %v14466_v0 = vcombine.high %v1067_v59, %v1071_v60  ;;  %v14512_v57 = vcombine.high %v1114_v50, %v1118_v51  ;;  %v1122_v59 = vld [vmem:[#allocation11 + $0x700] sm:$0xff] }
 0x2af   :  { %2549 = vmatprep.mubr.bf16.mxu1 %v16965_v33  ;;  %2631 = vmatprep.mubr.bf16.mxu0 %v16965_v33  ;;  %v1126_v60 = vld [vmem:[#allocation11 + $0x720] sm:$0xff] }
 0x2b0   :  { %2519 = vmatprep.subr.bf16.mxu1 %v14432_v28  ;;  %2601 = vmatprep.subr.bf16.mxu0 %v14434_v29  ;;  %v14488_v28 = vcombine.high %v1090_v20, %v1094_v21  ;;  %v14490_v29 = vcombine.high %v1091_v22, %v1095_v23  ;;  %v14520_v4 = vcombine.high %v1122_v59, %v1126_v60 }
 0x2b1   :  { %v14519_v12 = vcombine.low %v1122_v59, %v1126_v60 }
 0x2b2   :  { %2520 = vmatpush1.bf16.msra.mxu1 %v14431_v34  ;;  %2602 = vmatpush1.bf16.msra.mxu0 %v14433_v35  ;;  %v1103_v34 = vld [vmem:[#allocation11 + $0x668] sm:$0xff]  ;;  %v14487_v35 = vcombine.low %v1090_v20, %v1094_v21 }
 0x2b3   :  { %2521 = vmatprep.subr.bf16.mxu1 %v14440_v36  ;;  %2603 = vmatprep.subr.bf16.mxu0 %v14442_v37  ;;  %v14489_v36 = vcombine.low %v1091_v22, %v1095_v23  ;;  %v14496_v37 = vcombine.high %v1098_v30, %v1102_v31  ;;  %v14498_v38 = vcombine.high %v1099_v32, %v1103_v34  ;;  %v1146_v22 = vld [vmem:[#allocation11 + $0x7c0] sm:$0xff] }
 0x2b4   :  { %v1150_v23 = vld [vmem:[#allocation11 + $0x7e0] sm:$0xff] }
 0x2b6   :  { %2522 = vmatpush1.bf16.msra.mxu1 %v14439_v42  ;;  %2604 = vmatpush1.bf16.msra.mxu0 %v14441_v43  ;;  %v1111_v42 = vld [vmem:[#allocation11 + $0x6a8] sm:$0xff]  ;;  %v14495_v43 = vcombine.low %v1098_v30, %v1102_v31  ;;  %v14544_v30 = vcombine.high %v1146_v22, %v1150_v23 }
 0x2b7   :  { %2523 = vmatprep.subr.bf16.mxu1 %v14448_v46  ;;  %2605 = vmatprep.subr.bf16.mxu0 %v14450_v48  ;;  %v14497_v46 = vcombine.low %v1099_v32, %v1103_v34  ;;  %v14504_v48 = vcombine.high %v1106_v39, %v1110_v40  ;;  %v14506_v49 = vcombine.high %v1107_v41, %v1111_v42  ;;  %v900_v32 = vld [vmem:[#allocation11 + $0x10] sm:$0xff] }
 0x2b8   :  { %v904_v34 = vld [vmem:[#allocation11 + $0x30] sm:$0xff] }
 0x2ba   :  { %2524 = vmatpush1.bf16.msra.mxu1 %v14447_v53  ;;  %2606 = vmatpush1.bf16.msra.mxu0 %v14449_v54  ;;  %v1119_v53 = vld [vmem:[#allocation11 + $0x6e8] sm:$0xff]  ;;  %v16972_v54 = vsub.s32 2, %v16936_v44 }
 0x2bb   :  { %2525 = vmatprep.subr.bf16.mxu1 %v14456_v55  ;;  %2607 = vmatprep.subr.bf16.mxu0 %v14458_v56  ;;  %v14503_v55 = vcombine.low %v1106_v39, %v1110_v40  ;;  %v14505_v56 = vcombine.low %v1107_v41, %v1111_v42  ;;  %v14514_v58 = vcombine.high %v1115_v52, %v1119_v53  ;;  %v908_v42 = vld [vmem:[#allocation11 + $0x50] sm:$0xff] }
 0x2bc   :  { %v14513_v1 = vcombine.low %v1115_v52, %v1119_v53  ;;  %v14300_v39 = vcombine.high %v900_v32, %v904_v34 }
 0x2be   :  { %2526 = vmatpush1.bf16.msra.mxu1 %v14455_v61  ;;  %2608 = vmatpush1.bf16.msra.mxu0 %v14457_v62  ;;  %v1123_v61 = vld [vmem:[#allocation11 + $0x708] sm:$0xff] }
 0x2bf   :  { %2527 = vmatprep.subr.bf16.mxu1 %v14464_v63  ;;  %2609 = vmatprep.subr.bf16.mxu0 %v14466_v0  ;;  %v1127_v62 = vld [vmem:[#allocation11 + $0x728] sm:$0xff]  ;;  %v479_v63 = vrot.slane %v16946_v2, %v16972_v54  ;;  %v14511_v0 = vcombine.low %v1114_v50, %v1118_v51 }
 0x2c0   :  { %v14522_v5 = vcombine.high %v1123_v61, %v1127_v62  ;;  %v14521_v13 = vcombine.low %v1123_v61, %v1127_v62 }
 0x2c2   :  { %2528 = vmatpush1.bf16.msra.mxu1 %v14463_v7  ;;  %2610 = vmatpush1.bf16.msra.mxu0 %v14465_v9  ;;  %v1134_v7 = vld [vmem:[#allocation11 + $0x760] sm:$0xff]  ;;  %v1131_v9 = vld [vmem:[#allocation11 + $0x748] sm:$0xff] }
 0x2c3   :  { %2529 = vmatprep.subr.bf16.mxu1 %v14472_v10  ;;  %2611 = vmatprep.subr.bf16.mxu0 %v14474_v11  ;;  %v1135_v10 = vld [vmem:[#allocation11 + $0x768] sm:$0xff]  ;;  %v884_v11 = vadd.f32 %v16957_v8, %v479_v63  ;;  %v14528_v2 = vcombine.high %v1130_v6, %v1134_v7  ;;  %v924_v63 = vld [vmem:[#allocation11 + $0xd0] sm:$0xff] }
 0x2c4   :  { %v14530_v14 = vcombine.high %v1131_v9, %v1135_v10  ;;  %v14529_v20 = vcombine.low %v1131_v9, %v1135_v10  ;;  %v932_v10 = vld [vmem:[#allocation11 + $0x110] sm:$0xff] }
 0x2c5   :  { %16453 = vtanh.f32 %v884_v11  ;;  %v936_v11 = vld [vmem:[#allocation11 + $0x130] sm:$0xff] }
 0x2c6   :  { %2530 = vmatpush1.bf16.msra.mxu1 %v14471_v16  ;;  %2612 = vmatpush1.bf16.msra.mxu0 %v14473_v17  ;;  %v1142_v16 = vld [vmem:[#allocation11 + $0x7a0] sm:$0xff]  ;;  %v1139_v17 = vld [vmem:[#allocation11 + $0x788] sm:$0xff] }
 0x2c7   :  { %2531 = vmatprep.subr.bf16.mxu1 %v14480_v18  ;;  %2613 = vmatprep.subr.bf16.mxu0 %v14482_v19  ;;  %v1143_v18 = vld [vmem:[#allocation11 + $0x7a8] sm:$0xff]  ;;  %v14527_v19 = vcombine.low %v1130_v6, %v1134_v7  ;;  %v14536_v8 = vcombine.high %v1138_v15, %v1142_v16 }
 0x2c8   :  { %v14538_v21 = vcombine.high %v1139_v17, %v1143_v18 }
 0x2ca   :  { %2532 = vmatpush1.bf16.msra.mxu1 %v14479_v24  ;;  %2614 = vmatpush1.bf16.msra.mxu0 %v14481_v27  ;;  %v1147_v24 = vld [vmem:[#allocation11 + $0x7c8] sm:$0xff] }
 0x2cb   :  { %2533 = vmatprep.subr.bf16.mxu1 %v14488_v28  ;;  %2615 = vmatprep.subr.bf16.mxu0 %v14490_v29  ;;  %v1151_v27 = vld [vmem:[#allocation11 + $0x7e8] sm:$0xff]  ;;  %v14535_v28 = vcombine.low %v1138_v15, %v1142_v16  ;;  %v14537_v29 = vcombine.low %v1139_v17, %v1143_v18  ;;  %v940_v16 = vld [vmem:[#allocation11 + $0x150] sm:$0xff]  ;;  %v941_v18 = vld [vmem:[#allocation11 + $0x158] sm:$0xff] }
 0x2cc   :  { %v14546_v31 = vcombine.high %v1147_v24, %v1151_v27  ;;  %v944_v17 = vld [vmem:[#allocation11 + $0x170] sm:$0xff] }
 0x2ce   :  { %2534 = vmatpush1.bf16.msra.mxu1 %v14487_v35  ;;  %2616 = vmatpush1.bf16.msra.mxu0 %v14489_v36  ;;  %v901_v35 = vld [vmem:[#allocation11 + $0x18] sm:$0xff] }
 0x2cf   :  { %2535 = vmatprep.subr.bf16.mxu1 %v14496_v37  ;;  %2617 = vmatprep.subr.bf16.mxu0 %v14498_v38  ;;  %v905_v36 = vld [vmem:[#allocation11 + $0x38] sm:$0xff]  ;;  %v14543_v37 = vcombine.low %v1146_v22, %v1150_v23  ;;  %v14545_v38 = vcombine.low %v1147_v24, %v1151_v27  ;;  %v16454_v41 = vpop.eup %16453  ;;  %v948_v23 = vld [vmem:[#allocation11 + $0x190] sm:$0xff] }
 0x2d0   :  { %v14302_v40 = vcombine.high %v901_v35, %v905_v36  ;;  %v16977_v50 = vpack.c.bf16 %v16454_v41, %v16454_v41  ;;  %v14301_v51 = vcombine.low %v901_v35, %v905_v36  ;;  %v952_v24 = vld [vmem:[#allocation11 + $0x1b0] sm:$0xff]  ;;  %v949_v27 = vld [vmem:[#allocation11 + $0x198] sm:$0xff] }
 0x2d1   :  { %v960_v35 = vld [vmem:[#allocation11 + $0x1f0] sm:$0xff]  ;;  %v957_v36 = vld [vmem:[#allocation11 + $0x1d8] sm:$0xff] }
 0x2d2   :  { %2536 = vmatpush1.bf16.msra.mxu1 %v14495_v43  ;;  %2618 = vmatpush1.bf16.msra.mxu0 %v14497_v46  ;;  %v912_v43 = vld [vmem:[#allocation11 + $0x70] sm:$0xff]  ;;  %v909_v46 = vld [vmem:[#allocation11 + $0x58] sm:$0xff] }
 0x2d3   :  { %2537 = vmatprep.subr.bf16.mxu1 %v14504_v48  ;;  %2619 = vmatprep.subr.bf16.mxu0 %v14506_v49  ;;  %v913_v48 = vld [vmem:[#allocation11 + $0x78] sm:$0xff]  ;;  %v14299_v49 = vcombine.low %v900_v32, %v904_v34  ;;  %v14308_v52 = vcombine.high %v908_v42, %v912_v43  ;;  %v14307_v59 = vcombine.low %v908_v42, %v912_v43  ;;  %v956_v34 = vld [vmem:[#allocation11 + $0x1d0] sm:$0xff] }
 0x2d4   :  { %v14310_v53 = vcombine.high %v909_v46, %v913_v48  ;;  %v14309_v60 = vcombine.low %v909_v46, %v913_v48  ;;  %v964_v42 = vld [vmem:[#allocation11 + $0x210] sm:$0xff]  ;;  %v965_v46 = vld [vmem:[#allocation11 + $0x218] sm:$0xff] }
 0x2d5   :  { %v968_v43 = vld [vmem:[#allocation11 + $0x230] sm:$0xff]  ;;  %v969_v48 = vld [vmem:[#allocation11 + $0x238] sm:$0xff] }
 0x2d6   :  { %2538 = vmatpush1.bf16.msra.mxu1 %v14503_v55  ;;  %2620 = vmatpush1.bf16.msra.mxu0 %v14505_v56  ;;  %v916_v55 = vld [vmem:[#allocation11 + $0x90] sm:$0xff] }
 0x2d7   :  { %2539 = vmatprep.subr.bf16.mxu1 %v14512_v57  ;;  %2621 = vmatprep.subr.bf16.mxu0 %v14514_v58  ;;  %v920_v56 = vld [vmem:[#allocation11 + $0xb0] sm:$0xff]  ;;  %v917_v57 = vld [vmem:[#allocation11 + $0x98] sm:$0xff] }
 0x2d8   :  { %v921_v58 = vld [vmem:[#allocation11 + $0xb8] sm:$0xff]  ;;  %v14316_v61 = vcombine.high %v916_v55, %v920_v56 }
 0x2d9   :  { %v14318_v62 = vcombine.high %v917_v57, %v921_v58  ;;  %v14317_v6 = vcombine.low %v917_v57, %v921_v58  ;;  %v973_v57 = vld [vmem:[#allocation11 + $0x258] sm:$0xff] }
 0x2da   :  { %2540 = vmatpush1.bf16.msra.mxu1 %v14511_v0  ;;  %2622 = vmatpush1.bf16.msra.mxu0 %v14513_v1  ;;  %v928_v0 = vld [vmem:[#allocation11 + $0xf0] sm:$0xff]  ;;  %v925_v1 = vld [vmem:[#allocation11 + $0xd8] sm:$0xff] }
 0x2db   :  { %2541 = vmatprep.subr.bf16.mxu1 %v14520_v4  ;;  %2623 = vmatprep.subr.bf16.mxu0 %v14522_v5  ;;  %v929_v4 = vld [vmem:[#allocation11 + $0xf8] sm:$0xff]  ;;  %v14315_v5 = vcombine.low %v916_v55, %v920_v56  ;;  %v14324_v7 = vcombine.high %v924_v63, %v928_v0  ;;  %v972_v55 = vld [vmem:[#allocation11 + $0x250] sm:$0xff] }
 0x2dc   :  { %v14326_v9 = vcombine.high %v925_v1, %v929_v4  ;;  %v976_v56 = vld [vmem:[#allocation11 + $0x270] sm:$0xff]  ;;  %v977_v58 = vld [vmem:[#allocation11 + $0x278] sm:$0xff] }
 0x2de   :  { %2542 = vmatpush1.bf16.msra.mxu1 %v14519_v12  ;;  %2624 = vmatpush1.bf16.msra.mxu0 %v14521_v13  ;;  %v937_v12 = vld [vmem:[#allocation11 + $0x138] sm:$0xff]  ;;  %v14323_v13 = vcombine.low %v924_v63, %v928_v0  ;;  %v980_v63 = vld [vmem:[#allocation11 + $0x290] sm:$0xff] }
 0x2df   :  { %2543 = vmatprep.subr.bf16.mxu1 %v14528_v2  ;;  %2625 = vmatprep.subr.bf16.mxu0 %v14530_v14  ;;  %v14325_v2 = vcombine.low %v925_v1, %v929_v4  ;;  %v14332_v14 = vcombine.high %v932_v10, %v936_v11  ;;  %v984_v0 = vld [vmem:[#allocation11 + $0x2b0] sm:$0xff]  ;;  %v981_v1 = vld [vmem:[#allocation11 + $0x298] sm:$0xff] }
 0x2e0   :  { %v985_v4 = vld [vmem:[#allocation11 + $0x2b8] sm:$0xff] }
 0x2e2   :  { %2544 = vmatpush1.bf16.msra.mxu1 %v14527_v19  ;;  %2626 = vmatpush1.bf16.msra.mxu0 %v14529_v20  ;;  %v945_v19 = vld [vmem:[#allocation11 + $0x178] sm:$0xff]  ;;  %v14331_v20 = vcombine.low %v932_v10, %v936_v11  ;;  %v988_v10 = vld [vmem:[#allocation11 + $0x2d0] sm:$0xff] }
 0x2e3   :  { %2545 = vmatprep.subr.bf16.mxu1 %v14536_v8  ;;  %2627 = vmatprep.subr.bf16.mxu0 %v14538_v21  ;;  %v14340_v21 = vcombine.high %v940_v16, %v944_v17  ;;  %v14342_v22 = vcombine.high %v941_v18, %v945_v19  ;;  %v992_v11 = vld [vmem:[#allocation11 + $0x2f0] sm:$0xff] }
 0x2e6   :  { %2546 = vmatpush1.bf16.msra.mxu1 %v14535_v28  ;;  %2628 = vmatpush1.bf16.msra.mxu0 %v14537_v29  ;;  %v953_v28 = vld [vmem:[#allocation11 + $0x1b8] sm:$0xff]  ;;  %v14339_v29 = vcombine.low %v940_v16, %v944_v17  ;;  %v996_v16 = vld [vmem:[#allocation11 + $0x310] sm:$0xff] }
 0x2e7   :  { %2547 = vmatprep.subr.bf16.mxu1 %v14544_v30  ;;  %2629 = vmatprep.subr.bf16.mxu0 %v14546_v31  ;;  %v14341_v30 = vcombine.low %v941_v18, %v945_v19  ;;  %v14348_v31 = vcombine.high %v948_v23, %v952_v24  ;;  %v14350_v32 = vcombine.high %v949_v27, %v953_v28  ;;  %v1000_v17 = vld [vmem:[#allocation11 + $0x330] sm:$0xff]  ;;  %v997_v18 = vld [vmem:[#allocation11 + $0x318] sm:$0xff] }
 0x2e8   :  { %v1001_v19 = vld [vmem:[#allocation11 + $0x338] sm:$0xff] }
 0x2ea   :  { %2548 = vmatpush1.bf16.msra.mxu1 %v14543_v37  ;;  %2630 = vmatpush1.bf16.msra.mxu0 %v14545_v38  ;;  %v961_v37 = vld [vmem:[#allocation11 + $0x1f8] sm:$0xff]  ;;  %v14347_v38 = vcombine.low %v948_v23, %v952_v24  ;;  %v1004_v23 = vld [vmem:[#allocation11 + $0x350] sm:$0xff] }
 0x2eb   :  { %2640 = vmatprep.subr.bf16.mxu1 %v14300_v39  ;;  %2722 = vmatprep.subr.bf16.mxu0 %v14302_v40  ;;  %v14349_v39 = vcombine.low %v949_v27, %v953_v28  ;;  %v14356_v40 = vcombine.high %v956_v34, %v960_v35  ;;  %v14358_v41 = vcombine.high %v957_v36, %v961_v37  ;;  %v1008_v24 = vld [vmem:[#allocation11 + $0x370] sm:$0xff]  ;;  %v1005_v27 = vld [vmem:[#allocation11 + $0x358] sm:$0xff] }
 0x2ec   :  { %v1009_v28 = vld [vmem:[#allocation11 + $0x378] sm:$0xff] }
 0x2ed   :  { %2550 = vmatmul.mubr.bf16.vlgmr.msra.gmra.mrb[4].mxu1 %v16977_v50  ;;  %2632 = vmatmul.mubr.bf16.vlgmr.msra.gmra.mrb[8].mxu0 %v16977_v50 }
 0x2ee   :  { %2641 = vmatpush1.bf16.msra.mxu1 %v14299_v49  ;;  %2672 = vmatprep.mubr.bf16.mxu1 %v16959_v25  ;;  %v14355_v49 = vcombine.low %v956_v34, %v960_v35  ;;  %v1012_v34 = vld [vmem:[#allocation11 + $0x390] sm:$0xff] }
 0x2ef   :  { %2723 = vmatpush1.bf16.msra.mxu0 %v14301_v51  ;;  %2754 = vmatprep.mubr.bf16.mxu0 %v16959_v25  ;;  %v933_v25 = vld [vmem:[#allocation11 + $0x118] sm:$0xff]  ;;  %v14357_v51 = vcombine.low %v957_v36, %v961_v37  ;;  %v1016_v35 = vld [vmem:[#allocation11 + $0x3b0] sm:$0xff] }
 0x2f0   :  { %2642 = vmatprep.subr.bf16.mxu1 %v14308_v52  ;;  %2724 = vmatprep.subr.bf16.mxu0 %v14310_v53  ;;  %v14334_v15 = vcombine.high %v933_v25, %v937_v12  ;;  %v14333_v8 = vcombine.low %v933_v25, %v937_v12  ;;  %v14364_v52 = vcombine.high %v964_v42, %v968_v43  ;;  %v989_v25 = vld [vmem:[#allocation11 + $0x2d8] sm:$0xff] }
 0x2f1   :  { %v14366_v53 = vcombine.high %v965_v46, %v969_v48  ;;  %v993_v12 = vld [vmem:[#allocation11 + $0x2f8] sm:$0xff] }
 0x2f2   :  { %2643 = vmatpush1.bf16.msra.mxu1 %v14307_v59  ;;  %v14363_v59 = vcombine.low %v964_v42, %v968_v43  ;;  %v1013_v36 = vld [vmem:[#allocation11 + $0x398] sm:$0xff]  ;;  %v1020_v42 = vld [vmem:[#allocation11 + $0x3d0] sm:$0xff] }
 0x2f3   :  { %2725 = vmatpush1.bf16.msra.mxu0 %v14309_v60  ;;  %2644 = vmatprep.subr.bf16.mxu1 %v14316_v61  ;;  %v14365_v60 = vcombine.low %v965_v46, %v969_v48  ;;  %v14372_v61 = vcombine.high %v972_v55, %v976_v56  ;;  %v1017_v37 = vld [vmem:[#allocation11 + $0x3b8] sm:$0xff]  ;;  %v1024_v43 = vld [vmem:[#allocation11 + $0x3f0] sm:$0xff] }
 0x2f4   :  { %2726 = vmatprep.subr.bf16.mxu0 %v14318_v62  ;;  %v14374_v62 = vcombine.high %v973_v57, %v977_v58  ;;  %v1021_v46 = vld [vmem:[#allocation11 + $0x3d8] sm:$0xff] }
 0x2f5   :  { %v1025_v48 = vld [vmem:[#allocation11 + $0x3f8] sm:$0xff] }
 0x2f6   :  { %2645 = vmatpush1.bf16.msra.mxu1 %v14315_v5  ;;  %v14371_v5 = vcombine.low %v972_v55, %v976_v56  ;;  %v1028_v55 = vld [vmem:[#allocation11 + $0x410] sm:$0xff] }
 0x2f7   :  { %2727 = vmatpush1.bf16.msra.mxu0 %v14317_v6  ;;  %2646 = vmatprep.subr.bf16.mxu1 %v14324_v7  ;;  %v14373_v6 = vcombine.low %v973_v57, %v977_v58  ;;  %v14380_v7 = vcombine.high %v980_v63, %v984_v0  ;;  %v1032_v56 = vld [vmem:[#allocation11 + $0x430] sm:$0xff]  ;;  %v1029_v57 = vld [vmem:[#allocation11 + $0x418] sm:$0xff] }
 0x2f8   :  { %2728 = vmatprep.subr.bf16.mxu0 %v14326_v9  ;;  %v14382_v9 = vcombine.high %v981_v1, %v985_v4  ;;  %v1033_v58 = vld [vmem:[#allocation11 + $0x438] sm:$0xff] }
 0x2fa   :  { %2647 = vmatpush1.bf16.msra.mxu1 %v14323_v13  ;;  %v14379_v13 = vcombine.low %v980_v63, %v984_v0  ;;  %v1036_v63 = vld [vmem:[#allocation11 + $0x450] sm:$0xff] }
 0x2fb   :  { %2729 = vmatpush1.bf16.msra.mxu0 %v14325_v2  ;;  %2648 = vmatprep.subr.bf16.mxu1 %v14332_v14  ;;  %v14381_v2 = vcombine.low %v981_v1, %v985_v4  ;;  %v14388_v14 = vcombine.high %v988_v10, %v992_v11  ;;  %v1040_v0 = vld [vmem:[#allocation11 + $0x470] sm:$0xff]  ;;  %v14427_v1 = vcombine.low %v1028_v55, %v1032_v56  ;;  %v1037_v4 = vld [vmem:[#allocation11 + $0x458] sm:$0xff] }
 0x2fc   :  { %2730 = vmatprep.subr.bf16.mxu0 %v14334_v15  ;;  %v14390_v15 = vcombine.high %v989_v25, %v993_v12 }
 0x2fe   :  { %2649 = vmatpush1.bf16.msra.mxu1 %v14331_v20  ;;  %v14387_v20 = vcombine.low %v988_v10, %v992_v11  ;;  %v1048_v10 = vld [vmem:[#allocation11 + $0x4b0] sm:$0xff] }
 0x2ff   :  { %2731 = vmatpush1.bf16.msra.mxu0 %v14333_v8  ;;  %2650 = vmatprep.subr.bf16.mxu1 %v14340_v21  ;;  %v14389_v8 = vcombine.low %v989_v25, %v993_v12  ;;  %v14396_v21 = vcombine.high %v996_v16, %v1000_v17  ;;  %v1045_v25 = vld [vmem:[#allocation11 + $0x498] sm:$0xff] }
 0x300   :  { %2732 = vmatprep.subr.bf16.mxu0 %v14342_v22  ;;  %v14398_v22 = vcombine.high %v997_v18, %v1001_v19  ;;  %v1049_v12 = vld [vmem:[#allocation11 + $0x4b8] sm:$0xff] }
 0x302   :  { %2651 = vmatpush1.bf16.msra.mxu1 %v14339_v29  ;;  %v14395_v29 = vcombine.low %v996_v16, %v1000_v17  ;;  %v1052_v16 = vld [vmem:[#allocation11 + $0x4d0] sm:$0xff] }
 0x303   :  { %2733 = vmatpush1.bf16.msra.mxu0 %v14341_v30  ;;  %2652 = vmatprep.subr.bf16.mxu1 %v14348_v31  ;;  %v14397_v30 = vcombine.low %v997_v18, %v1001_v19  ;;  %v14404_v31 = vcombine.high %v1004_v23, %v1008_v24  ;;  %v1056_v17 = vld [vmem:[#allocation11 + $0x4f0] sm:$0xff]  ;;  %v1053_v18 = vld [vmem:[#allocation11 + $0x4d8] sm:$0xff] }
 0x304   :  { %2734 = vmatprep.subr.bf16.mxu0 %v14350_v32  ;;  %v14406_v32 = vcombine.high %v1005_v27, %v1009_v28  ;;  %v1057_v19 = vld [vmem:[#allocation11 + $0x4f8] sm:$0xff] }
 0x306   :  { %2653 = vmatpush1.bf16.msra.mxu1 %v14347_v38  ;;  %v14403_v38 = vcombine.low %v1004_v23, %v1008_v24  ;;  %v1064_v23 = vld [vmem:[#allocation11 + $0x530] sm:$0xff]  ;;  %v1061_v24 = vld [vmem:[#allocation11 + $0x518] sm:$0xff] }
 0x307   :  { %2735 = vmatpush1.bf16.msra.mxu0 %v14349_v39  ;;  %2654 = vmatprep.subr.bf16.mxu1 %v14356_v40  ;;  %v14405_v39 = vcombine.low %v1005_v27, %v1009_v28  ;;  %v14412_v40 = vcombine.high %v1012_v34, %v1016_v35  ;;  %v1065_v27 = vld [vmem:[#allocation11 + $0x538] sm:$0xff]  ;;  %v14453_v28 = vcombine.low %v1053_v18, %v1057_v19 }
 0x308   :  { %2736 = vmatprep.subr.bf16.mxu0 %v14358_v41  ;;  %v14414_v41 = vcombine.high %v1013_v36, %v1017_v37 }
 0x30a   :  { %2655 = vmatpush1.bf16.msra.mxu1 %v14355_v49  ;;  %v14411_v49 = vcombine.low %v1012_v34, %v1016_v35  ;;  %v1069_v34 = vld [vmem:[#allocation11 + $0x558] sm:$0xff] }
 0x30b   :  { %2737 = vmatpush1.bf16.msra.mxu0 %v14357_v51  ;;  %2656 = vmatprep.subr.bf16.mxu1 %v14364_v52  ;;  %v14413_v51 = vcombine.low %v1013_v36, %v1017_v37  ;;  %v14420_v52 = vcombine.high %v1020_v42, %v1024_v43  ;;  %v1073_v35 = vld [vmem:[#allocation11 + $0x578] sm:$0xff]  ;;  %v14461_v37 = vcombine.low %v1061_v24, %v1065_v27 }
 0x30c   :  { %2738 = vmatprep.subr.bf16.mxu0 %v14366_v53  ;;  %v14422_v53 = vcombine.high %v1021_v46, %v1025_v48 }
 0x30e   :  { %2657 = vmatpush1.bf16.msra.mxu1 %v14363_v59  ;;  %v14419_v59 = vcombine.low %v1020_v42, %v1024_v43  ;;  %v1077_v42 = vld [vmem:[#allocation11 + $0x598] sm:$0xff] }
 0x30f   :  { %2739 = vmatpush1.bf16.msra.mxu0 %v14365_v60  ;;  %2658 = vmatprep.subr.bf16.mxu1 %v14372_v61  ;;  %v14421_v60 = vcombine.low %v1021_v46, %v1025_v48  ;;  %v14428_v61 = vcombine.high %v1028_v55, %v1032_v56  ;;  %v1081_v43 = vld [vmem:[#allocation11 + $0x5b8] sm:$0xff]  ;;  %v14469_v48 = vcombine.low %v1069_v34, %v1073_v35 }
 0x310   :  { %2740 = vmatprep.subr.bf16.mxu0 %v14374_v62  ;;  %v14430_v62 = vcombine.high %v1029_v57, %v1033_v58  ;;  %v1085_v55 = vld [vmem:[#allocation11 + $0x5d8] sm:$0xff] }
 0x311   :  { %v1089_v56 = vld [vmem:[#allocation11 + $0x5f8] sm:$0xff] }
 0x312   :  { %2659 = vmatpush1.bf16.msra.mxu1 %v14371_v5  ;;  %v1041_v5 = vld [vmem:[#allocation11 + $0x478] sm:$0xff] }
 0x313   :  { %2741 = vmatpush1.bf16.msra.mxu0 %v14373_v6  ;;  %2660 = vmatprep.subr.bf16.mxu1 %v14380_v7  ;;  %v14429_v6 = vcombine.low %v1029_v57, %v1033_v58  ;;  %v14436_v7 = vcombine.high %v1036_v63, %v1040_v0  ;;  %v14438_v11 = vcombine.high %v1037_v4, %v1041_v5 }
 0x314   :  { %2742 = vmatprep.subr.bf16.mxu0 %v14382_v9  ;;  %v1044_v9 = vld [vmem:[#allocation11 + $0x490] sm:$0xff]  ;;  %v14477_v58 = vcombine.low %v1077_v42, %v1081_v43 }
 0x316   :  { %2661 = vmatpush1.bf16.msra.mxu1 %v14379_v13  ;;  %v14435_v13 = vcombine.low %v1036_v63, %v1040_v0  ;;  %v1093_v63 = vld [vmem:[#allocation11 + $0x618] sm:$0xff] }
 0x317   :  { %2743 = vmatpush1.bf16.msra.mxu0 %v14381_v2  ;;  %2662 = vmatprep.subr.bf16.mxu1 %v14388_v14  ;;  %v14437_v2 = vcombine.low %v1037_v4, %v1041_v5  ;;  %v14444_v14 = vcombine.high %v1044_v9, %v1048_v10  ;;  %v1097_v0 = vld [vmem:[#allocation11 + $0x638] sm:$0xff]  ;;  %v14485_v4 = vcombine.low %v1085_v55, %v1089_v56 }
 0x318   :  { %2744 = vmatprep.subr.bf16.mxu0 %v14390_v15  ;;  %v14446_v15 = vcombine.high %v1045_v25, %v1049_v12 }
 0x31a   :  { %2663 = vmatpush1.bf16.msra.mxu1 %v14387_v20  ;;  %v14443_v20 = vcombine.low %v1044_v9, %v1048_v10  ;;  %v1104_v9 = vld [vmem:[#allocation11 + $0x670] sm:$0xff]  ;;  %v1101_v10 = vld [vmem:[#allocation11 + $0x658] sm:$0xff] }
 0x31b   :  { %2745 = vmatpush1.bf16.msra.mxu0 %v14389_v8  ;;  %2664 = vmatprep.subr.bf16.mxu1 %v14396_v21  ;;  %v14452_v8 = vcombine.high %v1052_v16, %v1056_v17  ;;  %v14454_v21 = vcombine.high %v1053_v18, %v1057_v19 }
 0x31c   :  { %2746 = vmatprep.subr.bf16.mxu0 %v14398_v22  ;;  %v1060_v22 = vld [vmem:[#allocation11 + $0x510] sm:$0xff] }
 0x31d   :  { %v14459_v36 = vcombine.low %v1060_v22, %v1064_v23 }
 0x31e   :  { %2665 = vmatpush1.bf16.msra.mxu1 %v14395_v29  ;;  %v14460_v29 = vcombine.high %v1060_v22, %v1064_v23  ;;  %v1117_v22 = vld [vmem:[#allocation11 + $0x6d8] sm:$0xff] }
 0x31f   :  { %2747 = vmatpush1.bf16.msra.mxu0 %v14397_v30  ;;  %2666 = vmatprep.subr.bf16.mxu1 %v14404_v31  ;;  %v14462_v30 = vcombine.high %v1061_v24, %v1065_v27  ;;  %v1068_v31 = vld [vmem:[#allocation11 + $0x550] sm:$0xff]  ;;  %v1121_v23 = vld [vmem:[#allocation11 + $0x6f8] sm:$0xff] }
 0x320   :  { %2748 = vmatprep.subr.bf16.mxu0 %v14406_v32  ;;  %v1072_v32 = vld [vmem:[#allocation11 + $0x570] sm:$0xff] }
 0x321   :  { %v14467_v46 = vcombine.low %v1068_v31, %v1072_v32 }
 0x322   :  { %2667 = vmatpush1.bf16.msra.mxu1 %v14403_v38  ;;  %v14468_v38 = vcombine.high %v1068_v31, %v1072_v32  ;;  %v1125_v31 = vld [vmem:[#allocation11 + $0x718] sm:$0xff] }
 0x323   :  { %2749 = vmatpush1.bf16.msra.mxu0 %v14405_v39  ;;  %2668 = vmatprep.subr.bf16.mxu1 %v14412_v40  ;;  %v14470_v39 = vcombine.high %v1069_v34, %v1073_v35  ;;  %v1076_v40 = vld [vmem:[#allocation11 + $0x590] sm:$0xff]  ;;  %v1129_v32 = vld [vmem:[#allocation11 + $0x738] sm:$0xff]  ;;  %v14517_v35 = vcombine.low %v1117_v22, %v1121_v23 }
 0x324   :  { %2750 = vmatprep.subr.bf16.mxu0 %v14414_v41  ;;  %v1080_v41 = vld [vmem:[#allocation11 + $0x5b0] sm:$0xff] }
 0x325   :  { %v14475_v57 = vcombine.low %v1076_v40, %v1080_v41 }
 0x326   :  { %2669 = vmatpush1.bf16.msra.mxu1 %v14411_v49  ;;  %v14476_v49 = vcombine.high %v1076_v40, %v1080_v41  ;;  %v1133_v40 = vld [vmem:[#allocation11 + $0x758] sm:$0xff] }
 0x327   :  { %2751 = vmatpush1.bf16.msra.mxu0 %v14413_v51  ;;  %2670 = vmatprep.subr.bf16.mxu1 %v14420_v52  ;;  %v14478_v51 = vcombine.high %v1077_v42, %v1081_v43  ;;  %v1084_v52 = vld [vmem:[#allocation11 + $0x5d0] sm:$0xff]  ;;  %v1137_v41 = vld [vmem:[#allocation11 + $0x778] sm:$0xff]  ;;  %v14525_v43 = vcombine.low %v1125_v31, %v1129_v32 }
 0x328   :  { %2752 = vmatprep.subr.bf16.mxu0 %v14422_v53  ;;  %v1088_v53 = vld [vmem:[#allocation11 + $0x5f0] sm:$0xff] }
 0x32a   :  { %2671 = vmatpush1.bf16.msra.mxu1 %v14419_v59  ;;  %v14484_v59 = vcombine.high %v1084_v52, %v1088_v53 }
 0x32b   :  { %2753 = vmatpush1.bf16.msra.mxu0 %v14421_v60  ;;  %2681 = vmatprep.subr.bf16.mxu1 %v14428_v61  ;;  %v14486_v60 = vcombine.high %v1085_v55, %v1089_v56  ;;  %v1092_v61 = vld [vmem:[#allocation11 + $0x610] sm:$0xff]  ;;  %v14533_v56 = vcombine.low %v1133_v40, %v1137_v41 }
 0x32c   :  { %2763 = vmatprep.subr.bf16.mxu0 %v14430_v62  ;;  %v1096_v62 = vld [vmem:[#allocation11 + $0x630] sm:$0xff] }
 0x32d   :  { %2673 = vmatmul.mubr.bf16.vlgmr.msra.gmra.mrb[8].mxu1 %v16961_v26  ;;  %v14492_v5 = vcombine.high %v1092_v61, %v1096_v62 }
 0x32e   :  { %2755 = vmatmul.mubr.bf16.vlgmr.msra.gmra.mrb[12].mxu0 %v16961_v26  ;;  %2682 = vmatpush1.bf16.msra.mxu1 %v14427_v1  ;;  %v14445_v26 = vcombine.low %v1045_v25, %v1049_v12  ;;  %v14483_v1 = vcombine.low %v1084_v52, %v1088_v53  ;;  %v14491_v25 = vcombine.low %v1092_v61, %v1096_v62  ;;  %v1141_v52 = vld [vmem:[#allocation11 + $0x798] sm:$0xff] }
 0x32f   :  { %2713 = vmatprep.mubr.bf16.mxu1 %v16965_v33  ;;  %2764 = vmatpush1.bf16.msra.mxu0 %v14429_v6  ;;  %v14494_v6 = vcombine.high %v1093_v63, %v1097_v0  ;;  %v14493_v12 = vcombine.low %v1093_v63, %v1097_v0  ;;  %v1145_v53 = vld [vmem:[#allocation11 + $0x7b8] sm:$0xff] }
 0x330   :  { %2795 = vmatprep.mubr.bf16.mxu0 %v16965_v33  ;;  %2683 = vmatprep.subr.bf16.mxu1 %v14436_v7  ;;  %v14451_v33 = vcombine.low %v1052_v16, %v1056_v17  ;;  %v1100_v7 = vld [vmem:[#allocation11 + $0x650] sm:$0xff]  ;;  %v1109_v16 = vld [vmem:[#allocation11 + $0x698] sm:$0xff]  ;;  %v14541_v0 = vcombine.low %v1141_v52, %v1145_v53 }
 0x331   :  { %2765 = vmatprep.subr.bf16.mxu0 %v14438_v11  ;;  %v1105_v11 = vld [vmem:[#allocation11 + $0x678] sm:$0xff]  ;;  %v14499_v18 = vcombine.low %v1100_v7, %v1104_v9 }
 0x332   :  { %2684 = vmatpush1.bf16.msra.mxu1 %v14435_v13  ;;  %v14500_v13 = vcombine.high %v1100_v7, %v1104_v9  ;;  %v1113_v17 = vld [vmem:[#allocation11 + $0x6b8] sm:$0xff]  ;;  %v14501_v19 = vcombine.low %v1101_v10, %v1105_v11  ;;  %v2821_v7 = vld [vmem:[#allocation14 + $0x8] sm:$0xff] }
 0x333   :  { %2766 = vmatpush1.bf16.msra.mxu0 %v14437_v2  ;;  %2685 = vmatprep.subr.bf16.mxu1 %v14444_v14  ;;  %v14502_v2 = vcombine.high %v1101_v10, %v1105_v11  ;;  %v1108_v14 = vld [vmem:[#allocation11 + $0x690] sm:$0xff]  ;;  %v14509_v27 = vcombine.low %v1109_v16, %v1113_v17  ;;  %v1149_v61 = vld [vmem:[#allocation11 + $0x7d8] sm:$0xff] }
 0x334   :  { %2767 = vmatprep.subr.bf16.mxu0 %v14446_v15  ;;  %v1112_v15 = vld [vmem:[#allocation11 + $0x6b0] sm:$0xff]  ;;  %v1153_v62 = vld [vmem:[#allocation11 + $0x7f8] sm:$0xff] }
 0x335   :  { %v14507_v24 = vcombine.low %v1108_v14, %v1112_v15  ;;  %v2833_v9 = vld [vmem:[#allocation14 + $0x68] sm:$0xff]  ;;  %v14549_v11 = vcombine.low %v1149_v61, %v1153_v62 }
 0x336   :  { %2686 = vmatpush1.bf16.msra.mxu1 %v14443_v20  ;;  %v14508_v20 = vcombine.high %v1108_v14, %v1112_v15  ;;  %v2845_v14 = vld [vmem:[#allocation14 + $0xc8] sm:$0xff] }
 0x337   :  { %2768 = vmatpush1.bf16.msra.mxu0 %v14445_v26  ;;  %2687 = vmatprep.subr.bf16.mxu1 %v14452_v8  ;;  %v14510_v26 = vcombine.high %v1109_v16, %v1113_v17  ;;  %v1116_v8 = vld [vmem:[#allocation11 + $0x6d0] sm:$0xff]  ;;  %v14553_v17 = vcombine.low %v2821_v7, %v2833_v9 }
 0x338   :  { %2769 = vmatprep.subr.bf16.mxu0 %v14454_v21  ;;  %v1120_v21 = vld [vmem:[#allocation11 + $0x6f0] sm:$0xff] }
 0x339   :  { %v14515_v34 = vcombine.low %v1116_v8, %v1120_v21  ;;  %v2857_v15 = vld [vmem:[#allocation14 + $0x128] sm:$0xff] }
 0x33a   :  { %2688 = vmatpush1.bf16.msra.mxu1 %v14451_v33  ;;  %v14516_v33 = vcombine.high %v1116_v8, %v1120_v21  ;;  %v2869_v8 = vld [vmem:[#allocation14 + $0x188] sm:$0xff] }
 0x33b   :  { %2770 = vmatpush1.bf16.msra.mxu0 %v14453_v28  ;;  %2689 = vmatprep.subr.bf16.mxu1 %v14460_v29  ;;  %v14518_v28 = vcombine.high %v1117_v22, %v1121_v23  ;;  %v1124_v29 = vld [vmem:[#allocation11 + $0x710] sm:$0xff]  ;;  %v14577_v23 = vcombine.low %v2845_v14, %v2857_v15 }
 0x33c   :  { %2771 = vmatprep.subr.bf16.mxu0 %v14462_v30  ;;  %v1128_v30 = vld [vmem:[#allocation11 + $0x730] sm:$0xff] }
 0x33d   :  { %v14523_v42 = vcombine.low %v1124_v29, %v1128_v30  ;;  %v2881_v21 = vld [vmem:[#allocation14 + $0x1e8] sm:$0xff] }
 0x33e   :  { %2690 = vmatpush1.bf16.msra.mxu1 %v14459_v36  ;;  %v14524_v36 = vcombine.high %v1124_v29, %v1128_v30  ;;  %v2893_v29 = vld [vmem:[#allocation14 + $0x248] sm:$0xff] }
 0x33f   :  { %2772 = vmatpush1.bf16.msra.mxu0 %v14461_v37  ;;  %2691 = vmatprep.subr.bf16.mxu1 %v14468_v38  ;;  %v14526_v37 = vcombine.high %v1125_v31, %v1129_v32  ;;  %v1132_v38 = vld [vmem:[#allocation11 + $0x750] sm:$0xff]  ;;  %v14601_v32 = vcombine.low %v2869_v8, %v2881_v21 }
 0x340   :  { %2773 = vmatprep.subr.bf16.mxu0 %v14470_v39  ;;  %v1136_v39 = vld [vmem:[#allocation11 + $0x770] sm:$0xff] }
 0x341   :  { %v14531_v55 = vcombine.low %v1132_v38, %v1136_v39  ;;  %v2905_v30 = vld [vmem:[#allocation14 + $0x2a8] sm:$0xff] }
 0x342   :  { %2692 = vmatpush1.bf16.msra.mxu1 %v14467_v46  ;;  %v14532_v46 = vcombine.high %v1132_v38, %v1136_v39  ;;  %v2929_v38 = vld [vmem:[#allocation14 + $0x368] sm:$0xff] }
 0x343   :  { %2774 = vmatpush1.bf16.msra.mxu0 %v14469_v48  ;;  %2693 = vmatprep.subr.bf16.mxu1 %v14476_v49  ;;  %v14534_v48 = vcombine.high %v1133_v40, %v1137_v41  ;;  %v1140_v49 = vld [vmem:[#allocation11 + $0x790] sm:$0xff]  ;;  %v14625_v40 = vcombine.low %v2893_v29, %v2905_v30 }
 0x344   :  { %2775 = vmatprep.subr.bf16.mxu0 %v14478_v51  ;;  %v1144_v51 = vld [vmem:[#allocation11 + $0x7b0] sm:$0xff] }
 0x345   :  { %v14539_v63 = vcombine.low %v1140_v49, %v1144_v51 }
 0x346   :  { %2694 = vmatpush1.bf16.msra.mxu1 %v14475_v57  ;;  %v14540_v57 = vcombine.high %v1140_v49, %v1144_v51  ;;  %v2953_v49 = vld [vmem:[#allocation14 + $0x428] sm:$0xff] }
 0x347   :  { %2776 = vmatpush1.bf16.msra.mxu0 %v14477_v58  ;;  %2695 = vmatprep.subr.bf16.mxu1 %v14484_v59  ;;  %v14542_v58 = vcombine.high %v1141_v52, %v1145_v53  ;;  %v1148_v59 = vld [vmem:[#allocation11 + $0x7d0] sm:$0xff] }
 0x348   :  { %2777 = vmatprep.subr.bf16.mxu0 %v14486_v60  ;;  %v1152_v60 = vld [vmem:[#allocation11 + $0x7f0] sm:$0xff] }
 0x349   :  { %v14547_v10 = vcombine.low %v1148_v59, %v1152_v60 }
 0x34a   :  { %2696 = vmatpush1.bf16.msra.mxu1 %v14483_v1  ;;  %v14548_v1 = vcombine.high %v1148_v59, %v1152_v60  ;;  %v2977_v59 = vld [vmem:[#allocation14 + $0x4e8] sm:$0xff] }
 0x34b   :  { %2778 = vmatpush1.bf16.msra.mxu0 %v14485_v4  ;;  %2697 = vmatprep.subr.bf16.mxu1 %v14492_v5  ;;  %v14550_v4 = vcombine.high %v1149_v61, %v1153_v62  ;;  %v2820_v5 = vld [vmem:[#allocation14] sm:$0xff] }
 0x34c   :  { %2779 = vmatprep.subr.bf16.mxu0 %v14494_v6  ;;  %v2832_v6 = vld [vmem:[#allocation14 + $0x60] sm:$0xff] }
 0x34d   :  { %v14551_v16 = vcombine.low %v2820_v5, %v2832_v6 }
 0x34e   :  { %2698 = vmatpush1.bf16.msra.mxu1 %v14491_v25  ;;  %v14552_v25 = vcombine.high %v2820_v5, %v2832_v6  ;;  %v3001_v5 = vld [vmem:[#allocation14 + $0x5a8] sm:$0xff] }
 0x34f   :  { %2780 = vmatpush1.bf16.msra.mxu0 %v14493_v12  ;;  %2699 = vmatprep.subr.bf16.mxu1 %v14500_v13  ;;  %v14554_v12 = vcombine.high %v2821_v7, %v2833_v9  ;;  %v2844_v13 = vld [vmem:[#allocation14 + $0xc0] sm:$0xff] }
 0x350   :  { %2781 = vmatprep.subr.bf16.mxu0 %v14502_v2  ;;  %v2856_v2 = vld [vmem:[#allocation14 + $0x120] sm:$0xff] }
 0x351   :  { %v14575_v22 = vcombine.low %v2844_v13, %v2856_v2 }
 0x352   :  { %2700 = vmatpush1.bf16.msra.mxu1 %v14499_v18  ;;  %v14576_v18 = vcombine.high %v2844_v13, %v2856_v2  ;;  %v3025_v13 = vld [vmem:[#allocation14 + $0x668] sm:$0xff] }
 0x353   :  { %2782 = vmatpush1.bf16.msra.mxu0 %v14501_v19  ;;  %2701 = vmatprep.subr.bf16.mxu1 %v14508_v20  ;;  %v14578_v19 = vcombine.high %v2845_v14, %v2857_v15  ;;  %v2868_v20 = vld [vmem:[#allocation14 + $0x180] sm:$0xff] }
 0x354   :  { %2783 = vmatprep.subr.bf16.mxu0 %v14510_v26  ;;  %v2880_v26 = vld [vmem:[#allocation14 + $0x1e0] sm:$0xff] }
 0x355   :  { %v14599_v31 = vcombine.low %v2868_v20, %v2880_v26 }
 0x356   :  { %2702 = vmatpush1.bf16.msra.mxu1 %v14507_v24  ;;  %v14600_v24 = vcombine.high %v2868_v20, %v2880_v26  ;;  %v3049_v20 = vld [vmem:[#allocation14 + $0x728] sm:$0xff] }
 0x357   :  { %2784 = vmatpush1.bf16.msra.mxu0 %v14509_v27  ;;  %2703 = vmatprep.subr.bf16.mxu1 %v14516_v33  ;;  %v14602_v27 = vcombine.high %v2869_v8, %v2881_v21  ;;  %v2892_v33 = vld [vmem:[#allocation14 + $0x240] sm:$0xff] }
 0x358   :  { %2785 = vmatprep.subr.bf16.mxu0 %v14518_v28  ;;  %v2904_v28 = vld [vmem:[#allocation14 + $0x2a0] sm:$0xff] }
 0x359   :  { %v14623_v39 = vcombine.low %v2892_v33, %v2904_v28 }
 0x35a   :  { %2704 = vmatpush1.bf16.msra.mxu1 %v14515_v34  ;;  %v14624_v34 = vcombine.high %v2892_v33, %v2904_v28  ;;  %v3073_v33 = vld [vmem:[#allocation14 + $0x7e8] sm:$0xff] }
 0x35b   :  { %2786 = vmatpush1.bf16.msra.mxu0 %v14517_v35  ;;  %2705 = vmatprep.subr.bf16.mxu1 %v14524_v36  ;;  %v2916_v35 = vld [vmem:[#allocation14 + $0x300] sm:$0xff] }
 0x35c   :  { %2787 = vmatprep.subr.bf16.mxu0 %v14526_v37  ;;  %v2928_v36 = vld [vmem:[#allocation14 + $0x360] sm:$0xff]  ;;  %v2917_v37 = vld [vmem:[#allocation14 + $0x308] sm:$0xff] }
 0x35d   :  { %v14648_v41 = vcombine.high %v2916_v35, %v2928_v36  ;;  %v14647_v51 = vcombine.low %v2916_v35, %v2928_v36  ;;  %v14649_v52 = vcombine.low %v2917_v37, %v2929_v38  ;;  %v3097_v35 = vld [vmem:[#allocation14 + $0x8a8] sm:$0xff] }
 0x35e   :  { %2706 = vmatpush1.bf16.msra.mxu1 %v14523_v42  ;;  %v14650_v42 = vcombine.high %v2917_v37, %v2929_v38 }
 0x35f   :  { %2788 = vmatpush1.bf16.msra.mxu0 %v14525_v43  ;;  %2707 = vmatprep.subr.bf16.mxu1 %v14532_v46  ;;  %v2940_v43 = vld [vmem:[#allocation14 + $0x3c0] sm:$0xff] }
 0x360   :  { %2789 = vmatprep.subr.bf16.mxu0 %v14534_v48  ;;  %v2952_v46 = vld [vmem:[#allocation14 + $0x420] sm:$0xff]  ;;  %v2941_v48 = vld [vmem:[#allocation14 + $0x3c8] sm:$0xff] }
 0x361   :  { %v14672_v53 = vcombine.high %v2940_v43, %v2952_v46  ;;  %v14671_v60 = vcombine.low %v2940_v43, %v2952_v46  ;;  %v14673_v61 = vcombine.low %v2941_v48, %v2953_v49  ;;  %v3121_v43 = vld [vmem:[#allocation14 + $0x968] sm:$0xff] }
 0x362   :  { %2708 = vmatpush1.bf16.msra.mxu1 %v14531_v55  ;;  %v14674_v55 = vcombine.high %v2941_v48, %v2953_v49 }
 0x363   :  { %2790 = vmatpush1.bf16.msra.mxu0 %v14533_v56  ;;  %2709 = vmatprep.subr.bf16.mxu1 %v14540_v57  ;;  %v2964_v56 = vld [vmem:[#allocation14 + $0x480] sm:$0xff] }
 0x364   :  { %2791 = vmatprep.subr.bf16.mxu0 %v14542_v58  ;;  %v2976_v57 = vld [vmem:[#allocation14 + $0x4e0] sm:$0xff]  ;;  %v2965_v58 = vld [vmem:[#allocation14 + $0x488] sm:$0xff] }
 0x365   :  { %v14696_v62 = vcombine.high %v2964_v56, %v2976_v57  ;;  %v14695_v6 = vcombine.low %v2964_v56, %v2976_v57  ;;  %v14697_v7 = vcombine.low %v2965_v58, %v2977_v59  ;;  %v3145_v56 = vld [vmem:[#allocation14 + $0xa28] sm:$0xff] }
 0x366   :  { %2710 = vmatpush1.bf16.msra.mxu1 %v14539_v63  ;;  %v14698_v63 = vcombine.high %v2965_v58, %v2977_v59 }
 0x367   :  { %2792 = vmatpush1.bf16.msra.mxu0 %v14541_v0  ;;  %2711 = vmatprep.subr.bf16.mxu1 %v14548_v1  ;;  %v2988_v0 = vld [vmem:[#allocation14 + $0x540] sm:$0xff] }
 0x368   :  { %2793 = vmatprep.subr.bf16.mxu0 %v14550_v4  ;;  %v3000_v1 = vld [vmem:[#allocation14 + $0x5a0] sm:$0xff]  ;;  %v2989_v4 = vld [vmem:[#allocation14 + $0x548] sm:$0xff] }
 0x369   :  { %v14720_v9 = vcombine.high %v2988_v0, %v3000_v1  ;;  %v14719_v2 = vcombine.low %v2988_v0, %v3000_v1  ;;  %v14721_v14 = vcombine.low %v2989_v4, %v3001_v5  ;;  %v3169_v0 = vld [vmem:[#allocation14 + $0xae8] sm:$0xff] }
 0x36a   :  { %2712 = vmatpush1.bf16.msra.mxu1 %v14547_v10  ;;  %v14722_v10 = vcombine.high %v2989_v4, %v3001_v5 }
 0x36b   :  { %2794 = vmatpush1.bf16.msra.mxu0 %v14549_v11  ;;  %12162 = vmatprep.subr.bf16.mxu1 %v14552_v25  ;;  %v3012_v11 = vld [vmem:[#allocation14 + $0x600] sm:$0xff] }
 0x36c   :  { %12326 = vmatprep.subr.bf16.mxu0 %v14554_v12  ;;  %v3024_v25 = vld [vmem:[#allocation14 + $0x660] sm:$0xff]  ;;  %v3013_v12 = vld [vmem:[#allocation14 + $0x608] sm:$0xff] }
 0x36d   :  { %2714 = vmatmul.mubr.bf16.vlgmr.msra.gmra.mrb[8].mxu1 %v16977_v50  ;;  %v14744_v15 = vcombine.high %v3012_v11, %v3024_v25  ;;  %v14743_v26 = vcombine.low %v3012_v11, %v3024_v25  ;;  %v14745_v8 = vcombine.low %v3013_v12, %v3025_v13  ;;  %v3193_v11 = vld [vmem:[#allocation14 + $0xba8] sm:$0xff] }
 0x36e   :  { %2796 = vmatmul.mubr.bf16.vlgmr.msra.gmra.mrb[12].mxu0 %v16977_v50  ;;  %12163 = vmatpush1.bf16.msra.mxu1 %v14551_v16  ;;  %v14626_v50 = vcombine.high %v2893_v29, %v2905_v30  ;;  %v14746_v16 = vcombine.high %v3013_v12, %v3025_v13 }
 0x36f   :  { %12327 = vmatpush1.bf16.msra.mxu0 %v14553_v17  ;;  %12164 = vmatprep.subr.bf16.mxu1 %v14576_v18  ;;  %v3036_v17 = vld [vmem:[#allocation14 + $0x6c0] sm:$0xff] }
 0x370   :  { %12328 = vmatprep.subr.bf16.mxu0 %v14578_v19  ;;  %v3048_v18 = vld [vmem:[#allocation14 + $0x720] sm:$0xff]  ;;  %v3037_v19 = vld [vmem:[#allocation14 + $0x6c8] sm:$0xff] }
 0x371   :  { %v14768_v21 = vcombine.high %v3036_v17, %v3048_v18  ;;  %v14767_v28 = vcombine.low %v3036_v17, %v3048_v18  ;;  %v14769_v29 = vcombine.low %v3037_v19, %v3049_v20  ;;  %v3217_v17 = vld [vmem:[#allocation14 + $0xc68] sm:$0xff] }
 0x372   :  { %12165 = vmatpush1.bf16.msra.mxu1 %v14575_v22  ;;  %v14770_v22 = vcombine.high %v3037_v19, %v3049_v20 }
 0x373   :  { %12329 = vmatpush1.bf16.msra.mxu0 %v14577_v23  ;;  %12166 = vmatprep.subr.bf16.mxu1 %v14600_v24  ;;  %v3060_v23 = vld [vmem:[#allocation14 + $0x780] sm:$0xff] }
 0x374   :  { %12330 = vmatprep.subr.bf16.mxu0 %v14602_v27  ;;  %v3072_v24 = vld [vmem:[#allocation14 + $0x7e0] sm:$0xff]  ;;  %v3061_v27 = vld [vmem:[#allocation14 + $0x788] sm:$0xff] }
 0x375   :  { %v14792_v30 = vcombine.high %v3060_v23, %v3072_v24  ;;  %v14791_v36 = vcombine.low %v3060_v23, %v3072_v24  ;;  %v14793_v37 = vcombine.low %v3061_v27, %v3073_v33 }
 0x376   :  { %12167 = vmatpush1.bf16.msra.mxu1 %v14599_v31  ;;  %v14794_v31 = vcombine.high %v3061_v27, %v3073_v33 }
 0x377   :  { %12331 = vmatpush1.bf16.msra.mxu0 %v14601_v32  ;;  %12168 = vmatprep.subr.bf16.mxu1 %v14624_v34  ;;  %v3084_v32 = vld [vmem:[#allocation14 + $0x840] sm:$0xff] }
 0x378   :  { %12332 = vmatprep.subr.bf16.mxu0 %v14626_v50  ;;  %v3096_v34 = vld [vmem:[#allocation14 + $0x8a0] sm:$0xff]  ;;  %v3085_v50 = vld [vmem:[#allocation14 + $0x848] sm:$0xff] }
 0x379   :  { %v14816_v38 = vcombine.high %v3084_v32, %v3096_v34  ;;  %v14815_v46 = vcombine.low %v3084_v32, %v3096_v34  ;;  %v14817_v48 = vcombine.low %v3085_v50, %v3097_v35 }
 0x37a   :  { %12169 = vmatpush1.bf16.msra.mxu1 %v14623_v39  ;;  %v14818_v39 = vcombine.high %v3085_v50, %v3097_v35 }
 0x37b   :  { %12333 = vmatpush1.bf16.msra.mxu0 %v14625_v40  ;;  %12170 = vmatprep.subr.bf16.mxu1 %v14648_v41  ;;  %v3108_v40 = vld [vmem:[#allocation14 + $0x900] sm:$0xff] }
 0x37c   :  { %12334 = vmatprep.subr.bf16.mxu0 %v14650_v42  ;;  %v3120_v41 = vld [vmem:[#allocation14 + $0x960] sm:$0xff]  ;;  %v3109_v42 = vld [vmem:[#allocation14 + $0x908] sm:$0xff] }
 0x37d   :  { %v14840_v49 = vcombine.high %v3108_v40, %v3120_v41  ;;  %v14839_v57 = vcombine.low %v3108_v40, %v3120_v41  ;;  %v14841_v58 = vcombine.low %v3109_v42, %v3121_v43  ;;  %v3229_v40 = vld [vmem:[#allocation14 + $0xcc8] sm:$0xff] }
 0x37e   :  { %12171 = vmatpush1.bf16.msra.mxu1 %v14647_v51  ;;  %v14842_v51 = vcombine.high %v3109_v42, %v3121_v43  ;;  %v3241_v41 = vld [vmem:[#allocation14 + $0xd28] sm:$0xff] }
 0x37f   :  { %12335 = vmatpush1.bf16.msra.mxu0 %v14649_v52  ;;  %12172 = vmatprep.subr.bf16.mxu1 %v14672_v53  ;;  %v3132_v52 = vld [vmem:[#allocation14 + $0x9c0] sm:$0xff] }
 0x380   :  { %12336 = vmatprep.subr.bf16.mxu0 %v14674_v55  ;;  %v3144_v53 = vld [vmem:[#allocation14 + $0xa20] sm:$0xff]  ;;  %v3133_v55 = vld [vmem:[#allocation14 + $0x9c8] sm:$0xff] }
 0x381   :  { %v14864_v59 = vcombine.high %v3132_v52, %v3144_v53  ;;  %v14863_v1 = vcombine.low %v3132_v52, %v3144_v53  ;;  %v14865_v4 = vcombine.low %v3133_v55, %v3145_v56  ;;  %v14962_v53 = vcombine.high %v3229_v40, %v3241_v41 }
 0x382   :  { %12173 = vmatpush1.bf16.msra.mxu1 %v14671_v60  ;;  %v14866_v60 = vcombine.high %v3133_v55, %v3145_v56  ;;  %v3264_v55 = vld [vmem:[#allocation14 + $0xde0] sm:$0xff]  ;;  %v3253_v56 = vld [vmem:[#allocation14 + $0xd88] sm:$0xff] }
 0x383   :  { %12337 = vmatpush1.bf16.msra.mxu0 %v14673_v61  ;;  %12174 = vmatprep.subr.bf16.mxu1 %v14696_v62  ;;  %v3156_v61 = vld [vmem:[#allocation14 + $0xa80] sm:$0xff] }
 0x384   :  { %12338 = vmatprep.subr.bf16.mxu0 %v14698_v63  ;;  %v3168_v62 = vld [vmem:[#allocation14 + $0xae0] sm:$0xff]  ;;  %v3157_v63 = vld [vmem:[#allocation14 + $0xa88] sm:$0xff] }
 0x385   :  { %v14888_v5 = vcombine.high %v3156_v61, %v3168_v62  ;;  %v14887_v25 = vcombine.low %v3156_v61, %v3168_v62  ;;  %v14889_v12 = vcombine.low %v3157_v63, %v3169_v0 }
 0x386   :  { %12175 = vmatpush1.bf16.msra.mxu1 %v14695_v6  ;;  %v14890_v6 = vcombine.high %v3157_v63, %v3169_v0  ;;  %v3276_v63 = vld [vmem:[#allocation14 + $0xe40] sm:$0xff] }
 0x387   :  { %12339 = vmatpush1.bf16.msra.mxu0 %v14697_v7  ;;  %12176 = vmatprep.subr.bf16.mxu1 %v14720_v9  ;;  %v3180_v7 = vld [vmem:[#allocation14 + $0xb40] sm:$0xff] }
 0x388   :  { %12340 = vmatprep.subr.bf16.mxu0 %v14722_v10  ;;  %v3192_v9 = vld [vmem:[#allocation14 + $0xba0] sm:$0xff]  ;;  %v3181_v10 = vld [vmem:[#allocation14 + $0xb48] sm:$0xff] }
 0x389   :  { %v14912_v13 = vcombine.high %v3180_v7, %v3192_v9  ;;  %v14911_v18 = vcombine.low %v3180_v7, %v3192_v9  ;;  %v14913_v19 = vcombine.low %v3181_v10, %v3193_v11  ;;  %v3288_v0 = vld [vmem:[#allocation14 + $0xea0] sm:$0xff] }
 0x38a   :  { %12177 = vmatpush1.bf16.msra.mxu1 %v14719_v2  ;;  %v14914_v2 = vcombine.high %v3181_v10, %v3193_v11  ;;  %v15008_v7 = vcombine.high %v3276_v63, %v3288_v0  ;;  %v3300_v10 = vld [vmem:[#allocation14 + $0xf00] sm:$0xff] }
 0x38b   :  { %12341 = vmatpush1.bf16.msra.mxu0 %v14721_v14  ;;  %12178 = vmatprep.subr.bf16.mxu1 %v14744_v15  ;;  %v3204_v14 = vld [vmem:[#allocation14 + $0xc00] sm:$0xff] }
 0x38c   :  { %12342 = vmatprep.subr.bf16.mxu0 %v14746_v16  ;;  %v3216_v15 = vld [vmem:[#allocation14 + $0xc60] sm:$0xff]  ;;  %v3205_v16 = vld [vmem:[#allocation14 + $0xc08] sm:$0xff] }
 0x38d   :  { %v14936_v20 = vcombine.high %v3204_v14, %v3216_v15  ;;  %v3312_v11 = vld [vmem:[#allocation14 + $0xf60] sm:$0xff] }
 0x38e   :  { %12179 = vmatpush1.bf16.msra.mxu1 %v14743_v26  ;;  %v14938_v26 = vcombine.high %v3205_v16, %v3217_v17 }
 0x38f   :  { %12343 = vmatpush1.bf16.msra.mxu0 %v14745_v8  ;;  %12180 = vmatprep.subr.bf16.mxu1 %v14768_v21  ;;  %v16989_v8 = vld [vmem:[#allocation13] sm:$0xff] }
 0x390   :  { %12344 = vmatprep.subr.bf16.mxu0 %v14770_v22  ;;  %v1159_v21 = vrot.slane %v16989_v8, %v16939_v45  ;;  %v1163_v22 = vrot.slane %v16989_v8, %v16942_v47  ;;  %v1171_v23 = vrot.slane %v16989_v8, %v16949_v3 }
 0x392   :  { %12181 = vmatpush1.bf16.msra.mxu1 %v14767_v28 }
 0x393   :  { %12345 = vmatpush1.bf16.msra.mxu0 %v14769_v29  ;;  %12182 = vmatprep.subr.bf16.mxu1 %v14792_v30 }
 0x394   :  { %12346 = vmatprep.subr.bf16.mxu0 %v14794_v31 }
 0x396   :  { %12183 = vmatpush1.bf16.msra.mxu1 %v14791_v36 }
 0x397   :  { %12347 = vmatpush1.bf16.msra.mxu0 %v14793_v37  ;;  %12184 = vmatprep.subr.bf16.mxu1 %v14816_v38  ;;  %v3228_v37 = vld [vmem:[#allocation14 + $0xcc0] sm:$0xff] }
 0x398   :  { %12348 = vmatprep.subr.bf16.mxu0 %v14818_v39  ;;  %v3240_v39 = vld [vmem:[#allocation14 + $0xd20] sm:$0xff] }
 0x399   :  { %v14960_v52 = vcombine.high %v3228_v37, %v3240_v39 }
 0x39a   :  { %12185 = vmatpush1.bf16.msra.mxu1 %v14815_v46  ;;  %v14935_v46 = vcombine.low %v3204_v14, %v3216_v15  ;;  %v15032_v14 = vcombine.high %v3300_v10, %v3312_v11 }
 0x39b   :  { %12349 = vmatpush1.bf16.msra.mxu0 %v14817_v48  ;;  %12186 = vmatprep.subr.bf16.mxu1 %v14840_v49  ;;  %v14937_v48 = vcombine.low %v3205_v16, %v3217_v17  ;;  %v3324_v16 = vld [vmem:[#allocation14 + $0xfc0] sm:$0xff] }
 0x39c   :  { %12350 = vmatprep.subr.bf16.mxu0 %v14842_v51  ;;  %v3252_v51 = vld [vmem:[#allocation14 + $0xd80] sm:$0xff] }
 0x39d   :  { %v14984_v61 = vcombine.high %v3252_v51, %v3264_v55  ;;  %v3336_v17 = vld [vmem:[#allocation14 + $0x1020] sm:$0xff] }
 0x39e   :  { %12187 = vmatpush1.bf16.msra.mxu1 %v14839_v57  ;;  %v3265_v57 = vld [vmem:[#allocation14 + $0xde8] sm:$0xff] }
 0x39f   :  { %12351 = vmatpush1.bf16.msra.mxu0 %v14841_v58  ;;  %12188 = vmatprep.subr.bf16.mxu1 %v14864_v59  ;;  %v14959_v59 = vcombine.low %v3228_v37, %v3240_v39  ;;  %v14986_v62 = vcombine.high %v3253_v56, %v3265_v57 }
 0x3a0   :  { %12352 = vmatprep.subr.bf16.mxu0 %v14866_v60  ;;  %v14961_v60 = vcombine.low %v3229_v40, %v3241_v41  ;;  %v3396_v41 = vld [vmem:[#allocation14 + $0x1200] sm:$0xff] }
 0x3a2   :  { %12189 = vmatpush1.bf16.msra.mxu1 %v14863_v1  ;;  %v3277_v1 = vld [vmem:[#allocation14 + $0xe48] sm:$0xff] }
 0x3a3   :  { %12353 = vmatpush1.bf16.msra.mxu0 %v14865_v4  ;;  %12190 = vmatprep.subr.bf16.mxu1 %v14888_v5  ;;  %v3289_v4 = vld [vmem:[#allocation14 + $0xea8] sm:$0xff]  ;;  %v14983_v5 = vcombine.low %v3252_v51, %v3264_v55 }
 0x3a4   :  { %12354 = vmatprep.subr.bf16.mxu0 %v14890_v6  ;;  %v14985_v6 = vcombine.low %v3253_v56, %v3265_v57  ;;  %v15010_v9 = vcombine.high %v3277_v1, %v3289_v4  ;;  %v3420_v56 = vld [vmem:[#allocation14 + $0x12c0] sm:$0xff] }
 0x3a5   :  { %v3432_v57 = vld [vmem:[#allocation14 + $0x1320] sm:$0xff] }
 0x3a6   :  { %12191 = vmatpush1.bf16.msra.mxu1 %v14887_v25  ;;  %v3301_v25 = vld [vmem:[#allocation14 + $0xf08] sm:$0xff] }
 0x3a7   :  { %12355 = vmatpush1.bf16.msra.mxu0 %v14889_v12  ;;  %12192 = vmatprep.subr.bf16.mxu1 %v14912_v13  ;;  %v3313_v12 = vld [vmem:[#allocation14 + $0xf68] sm:$0xff]  ;;  %v15007_v13 = vcombine.low %v3276_v63, %v3288_v0  ;;  %v15152_v63 = vcombine.high %v3420_v56, %v3432_v57 }
 0x3a8   :  { %12356 = vmatprep.subr.bf16.mxu0 %v14914_v2  ;;  %v15009_v2 = vcombine.low %v3277_v1, %v3289_v4  ;;  %v15034_v15 = vcombine.high %v3301_v25, %v3313_v12  ;;  %v3444_v1 = vld [vmem:[#allocation14 + $0x1380] sm:$0xff] }
 0x3a9   :  { %v3456_v4 = vld [vmem:[#allocation14 + $0x13e0] sm:$0xff] }
 0x3aa   :  { %12193 = vmatpush1.bf16.msra.mxu1 %v14911_v18  ;;  %v3325_v18 = vld [vmem:[#allocation14 + $0xfc8] sm:$0xff] }
 0x3ab   :  { %12357 = vmatpush1.bf16.msra.mxu0 %v14913_v19  ;;  %12203 = vmatprep.subr.bf16.mxu1 %v14936_v20  ;;  %v3337_v19 = vld [vmem:[#allocation14 + $0x1028] sm:$0xff]  ;;  %v15031_v20 = vcombine.low %v3300_v10, %v3312_v11  ;;  %v15176_v10 = vcombine.high %v3444_v1, %v3456_v4 }
 0x3ac   :  { %12367 = vmatprep.subr.bf16.mxu0 %v14938_v26  ;;  %v15033_v26 = vcombine.low %v3301_v25, %v3313_v12  ;;  %v3468_v25 = vld [vmem:[#allocation14 + $0x1440] sm:$0xff] }
 0x3ad   :  { %v3480_v12 = vld [vmem:[#allocation14 + $0x14a0] sm:$0xff] }
 0x3c0   :  { %v2551_v24 = vpop.f32.mrb[4].mxu1  ;;  %v16997_v27 = vpop.f32.mrb[8].mxu0 }
 0x3c1   :  { %v16087_v33 = vadd.f32 %v2551_v24, %v1159_v21  ;;  %v2553_v28 = vpop.f32.mrb[5].mxu1  ;;  %v2635_v29 = vpop.f32.mrb[9].mxu0  ;;  %v15056_v21 = vcombine.high %v3324_v16, %v3336_v17  ;;  %v3360_v24 = vld [vmem:[#allocation14 + $0x10e0] sm:$0xff] }
 0x3c2   :  { %v16088_v30 = vadd.f32 %v2553_v28, %v1163_v22  ;;  %v16090_v31 = vadd.f32 %v2635_v29, %v1171_v23  ;;  %v2555_v32 = vpop.f32.mrb[6].mxu1  ;;  %v2637_v34 = vpop.f32.mrb[10].mxu0  ;;  %v15058_v22 = vcombine.high %v3325_v18, %v3337_v19  ;;  %v3348_v23 = vld [vmem:[#allocation14 + $0x1080] sm:$0xff]  ;;  %v3361_v28 = vld [vmem:[#allocation14 + $0x10e8] sm:$0xff]  ;;  %v15055_v29 = vcombine.low %v3324_v16, %v3336_v17 }
 0x3c3   :  { %v2556_v50 = vpop.f32.mrb[7].mxu1  ;;  %v2638_v35 = vpop.f32.mrb[11].mxu0  ;;  %16455 = vtanh.f32 %v16087_v33  ;;  %v3349_v33 = vld [vmem:[#allocation14 + $0x1088] sm:$0xff]  ;;  %v3372_v34 = vld [vmem:[#allocation14 + $0x1140] sm:$0xff]  ;;  %v15079_v37 = vcombine.low %v3348_v23, %v3360_v24  ;;  %v15200_v16 = vcombine.high %v3468_v25, %v3480_v12 }
 0x3c4   :  { %16457 = vtanh.f32 %v16088_v30  ;;  %v15057_v30 = vcombine.low %v3325_v18, %v3337_v19  ;;  %v15082_v32 = vcombine.high %v3349_v33, %v3361_v28  ;;  %v3384_v50 = vld [vmem:[#allocation14 + $0x11a0] sm:$0xff]  ;;  %v3373_v35 = vld [vmem:[#allocation14 + $0x1148] sm:$0xff] }
 0x3c5   :  { %16459 = vtanh.f32 %v16090_v31  ;;  %v15080_v31 = vcombine.high %v3348_v23, %v3360_v24  ;;  %v15104_v39 = vcombine.high %v3372_v34, %v3384_v50  ;;  %v15103_v51 = vcombine.low %v3372_v34, %v3384_v50  ;;  %v3492_v18 = vld [vmem:[#allocation14 + $0x1500] sm:$0xff] }
 0x3c6   :  { %v3504_v19 = vld [vmem:[#allocation14 + $0x1560] sm:$0xff] }
 0x3c7   :  { %v15224_v24 = vcombine.high %v3492_v18, %v3504_v19  ;;  %v15223_v34 = vcombine.low %v3492_v18, %v3504_v19  ;;  %v3649_v18 = vld [vmem:[#allocation14 + $0x19e8] sm:$0xff] }
 0x3cd   :  { %v16456_v36 = vpop.eup %16455 }
 0x3ce   :  { %v16458_v38 = vpop.eup %16457  ;;  %v17001_v49 = vpack.c.bf16 %v16456_v36, %v16456_v36  ;;  %v3385_v36 = vld [vmem:[#allocation14 + $0x11a8] sm:$0xff] }
 0x3cf   :  { %v16460_v42 = vpop.eup %16459  ;;  %v16999_v43 = vpack.c.bf16 %v16458_v38, %v16458_v38  ;;  %v15081_v38 = vcombine.low %v3349_v33, %v3361_v28  ;;  %v15106_v40 = vcombine.high %v3373_v35, %v3385_v36  ;;  %v3516_v28 = vld [vmem:[#allocation14 + $0x15c0] sm:$0xff] }
 0x3d0   :  { %v17005_v58 = vpack.c.bf16 %v16460_v42, %v16460_v42  ;;  %v3408_v42 = vld [vmem:[#allocation14 + $0x1260] sm:$0xff] }
 0x3d1   :  { %12194 = vmatprep.mubr.bf16.mxu1 %v16999_v43  ;;  %12358 = vmatprep.mubr.bf16.mxu0 %v16999_v43 }
 0x3d2   :  { %12195 = vmatmul.mubr.bf16.vlgmr.msra.gmra.mrb[12].mxu1 %v17001_v49  ;;  %12359 = vmatmul.mubr.bf16.vlgmr.msra.gmra.mrb[16].mxu0 %v17001_v49 }
 0x3d3   :  { %12204 = vmatpush1.bf16.msra.mxu1 %v14935_v46  ;;  %12368 = vmatpush1.bf16.msra.mxu0 %v14937_v48  ;;  %v3397_v46 = vld [vmem:[#allocation14 + $0x1208] sm:$0xff] }
 0x3d4   :  { %12235 = vmatprep.mubr.bf16.mxu1 %v17005_v58  ;;  %12399 = vmatprep.mubr.bf16.mxu0 %v17005_v58  ;;  %v3409_v48 = vld [vmem:[#allocation14 + $0x1268] sm:$0xff] }
 0x3d5   :  { %12205 = vmatprep.subr.bf16.mxu1 %v14960_v52  ;;  %12369 = vmatprep.subr.bf16.mxu0 %v14962_v53  ;;  %v15105_v52 = vcombine.low %v3373_v35, %v3385_v36  ;;  %v15128_v53 = vcombine.high %v3396_v41, %v3408_v42  ;;  %v15130_v55 = vcombine.high %v3397_v46, %v3409_v48 }
 0x3d7   :  { %12206 = vmatpush1.bf16.msra.mxu1 %v14959_v59  ;;  %12370 = vmatpush1.bf16.msra.mxu0 %v14961_v60  ;;  %v3421_v59 = vld [vmem:[#allocation14 + $0x12c8] sm:$0xff] }
 0x3d8   :  { %12207 = vmatprep.subr.bf16.mxu1 %v14984_v61  ;;  %12371 = vmatprep.subr.bf16.mxu0 %v14986_v62  ;;  %v3433_v60 = vld [vmem:[#allocation14 + $0x1328] sm:$0xff]  ;;  %v15127_v61 = vcombine.low %v3396_v41, %v3408_v42  ;;  %v15129_v62 = vcombine.low %v3397_v46, %v3409_v48  ;;  %v3564_v48 = vld [vmem:[#allocation14 + $0x1740] sm:$0xff] }
 0x3d9   :  { %v15154_v0 = vcombine.high %v3421_v59, %v3433_v60 }
 0x3db   :  { %12208 = vmatpush1.bf16.msra.mxu1 %v14983_v5  ;;  %12372 = vmatpush1.bf16.msra.mxu0 %v14985_v6  ;;  %v3445_v5 = vld [vmem:[#allocation14 + $0x1388] sm:$0xff] }
 0x3dc   :  { %12209 = vmatprep.subr.bf16.mxu1 %v15008_v7  ;;  %12373 = vmatprep.subr.bf16.mxu0 %v15010_v9  ;;  %v3457_v6 = vld [vmem:[#allocation14 + $0x13e8] sm:$0xff]  ;;  %v15151_v7 = vcombine.low %v3420_v56, %v3432_v57  ;;  %v15153_v9 = vcombine.low %v3421_v59, %v3433_v60  ;;  %v3588_v60 = vld [vmem:[#allocation14 + $0x1800] sm:$0xff] }
 0x3dd   :  { %v15178_v11 = vcombine.high %v3445_v5, %v3457_v6 }
 0x3df   :  { %12210 = vmatpush1.bf16.msra.mxu1 %v15007_v13  ;;  %12374 = vmatpush1.bf16.msra.mxu0 %v15009_v2  ;;  %v3469_v13 = vld [vmem:[#allocation14 + $0x1448] sm:$0xff] }
 0x3e0   :  { %12211 = vmatprep.subr.bf16.mxu1 %v15032_v14  ;;  %12375 = vmatprep.subr.bf16.mxu0 %v15034_v15  ;;  %v3481_v2 = vld [vmem:[#allocation14 + $0x14a8] sm:$0xff]  ;;  %v15175_v14 = vcombine.low %v3444_v1, %v3456_v4  ;;  %v15177_v15 = vcombine.low %v3445_v5, %v3457_v6  ;;  %v3612_v6 = vld [vmem:[#allocation14 + $0x18c0] sm:$0xff] }
 0x3e1   :  { %v15202_v17 = vcombine.high %v3469_v13, %v3481_v2  ;;  %v15201_v23 = vcombine.low %v3469_v13, %v3481_v2 }
 0x3e3   :  { %12212 = vmatpush1.bf16.msra.mxu1 %v15031_v20  ;;  %12376 = vmatpush1.bf16.msra.mxu0 %v15033_v26  ;;  %v3493_v20 = vld [vmem:[#allocation14 + $0x1508] sm:$0xff] }
 0x3e4   :  { %12213 = vmatprep.subr.bf16.mxu1 %v15056_v21  ;;  %12377 = vmatprep.subr.bf16.mxu0 %v15058_v22  ;;  %v3505_v26 = vld [vmem:[#allocation14 + $0x1568] sm:$0xff]  ;;  %v1167_v21 = vrot.slane %v16989_v8, %v16972_v54  ;;  %v15199_v22 = vcombine.low %v3468_v25, %v3480_v12 }
 0x3e5   :  { %v15226_v33 = vcombine.high %v3493_v20, %v3505_v26  ;;  %v15225_v50 = vcombine.low %v3493_v20, %v3505_v26 }
 0x3e7   :  { %12214 = vmatpush1.bf16.msra.mxu1 %v15055_v29  ;;  %12378 = vmatpush1.bf16.msra.mxu0 %v15057_v30  ;;  %v3528_v29 = vld [vmem:[#allocation14 + $0x1620] sm:$0xff]  ;;  %v3517_v30 = vld [vmem:[#allocation14 + $0x15c8] sm:$0xff] }
 0x3e8   :  { %12215 = vmatprep.subr.bf16.mxu1 %v15080_v31  ;;  %12379 = vmatprep.subr.bf16.mxu0 %v15082_v32  ;;  %v3529_v31 = vld [vmem:[#allocation14 + $0x1628] sm:$0xff]  ;;  %v16089_v32 = vadd.f32 %v16997_v27, %v1167_v21  ;;  %v15248_v35 = vcombine.high %v3516_v28, %v3528_v29  ;;  %v15247_v41 = vcombine.low %v3516_v28, %v3528_v29 }
 0x3e9   :  { %v15250_v36 = vcombine.high %v3517_v30, %v3529_v31  ;;  %v15249_v42 = vcombine.low %v3517_v30, %v3529_v31 }
 0x3ea   :  { %16461 = vtanh.f32 %v16089_v32  ;;  %v3684_v32 = vld [vmem:[#allocation14 + $0x1b00] sm:$0xff] }
 0x3eb   :  { %12216 = vmatpush1.bf16.msra.mxu1 %v15079_v37  ;;  %12380 = vmatpush1.bf16.msra.mxu0 %v15081_v38  ;;  %v3540_v37 = vld [vmem:[#allocation14 + $0x1680] sm:$0xff] }
 0x3ec   :  { %12217 = vmatprep.subr.bf16.mxu1 %v15104_v39  ;;  %12381 = vmatprep.subr.bf16.mxu0 %v15106_v40  ;;  %v3552_v38 = vld [vmem:[#allocation14 + $0x16e0] sm:$0xff]  ;;  %v3541_v39 = vld [vmem:[#allocation14 + $0x1688] sm:$0xff] }
 0x3ed   :  { %v3553_v40 = vld [vmem:[#allocation14 + $0x16e8] sm:$0xff]  ;;  %v15272_v27 = vcombine.high %v3540_v37, %v3552_v38 }
 0x3ee   :  { %v15274_v46 = vcombine.high %v3541_v39, %v3553_v40  ;;  %v15273_v56 = vcombine.low %v3541_v39, %v3553_v40  ;;  %v3708_v40 = vld [vmem:[#allocation14 + $0x1bc0] sm:$0xff] }
 0x3ef   :  { %12218 = vmatpush1.bf16.msra.mxu1 %v15103_v51  ;;  %12382 = vmatpush1.bf16.msra.mxu0 %v15105_v52  ;;  %v3576_v51 = vld [vmem:[#allocation14 + $0x17a0] sm:$0xff]  ;;  %v3565_v52 = vld [vmem:[#allocation14 + $0x1748] sm:$0xff] }
 0x3f0   :  { %12219 = vmatprep.subr.bf16.mxu1 %v15128_v53  ;;  %12383 = vmatprep.subr.bf16.mxu0 %v15130_v55  ;;  %v3577_v53 = vld [vmem:[#allocation14 + $0x17a8] sm:$0xff]  ;;  %v15271_v55 = vcombine.low %v3540_v37, %v3552_v38  ;;  %v15296_v57 = vcombine.high %v3564_v48, %v3576_v51 }
 0x3f1   :  { %v15298_v59 = vcombine.high %v3565_v52, %v3577_v53  ;;  %v15297_v1 = vcombine.low %v3565_v52, %v3577_v53  ;;  %v3732_v53 = vld [vmem:[#allocation14 + $0x1c80] sm:$0xff] }
 0x3f3   :  { %12220 = vmatpush1.bf16.msra.mxu1 %v15127_v61  ;;  %12384 = vmatpush1.bf16.msra.mxu0 %v15129_v62  ;;  %v3600_v61 = vld [vmem:[#allocation14 + $0x1860] sm:$0xff]  ;;  %v3589_v62 = vld [vmem:[#allocation14 + $0x1808] sm:$0xff] }
 0x3f4   :  { %12221 = vmatprep.subr.bf16.mxu1 %v15152_v63  ;;  %12385 = vmatprep.subr.bf16.mxu0 %v15154_v0  ;;  %v3601_v63 = vld [vmem:[#allocation14 + $0x1868] sm:$0xff]  ;;  %v15295_v0 = vcombine.low %v3564_v48, %v3576_v51  ;;  %v15320_v4 = vcombine.high %v3588_v60, %v3600_v61  ;;  %v15319_v25 = vcombine.low %v3588_v60, %v3600_v61 }
 0x3f5   :  { %v15322_v5 = vcombine.high %v3589_v62, %v3601_v63  ;;  %v15321_v12 = vcombine.low %v3589_v62, %v3601_v63  ;;  %v3756_v63 = vld [vmem:[#allocation14 + $0x1d40] sm:$0xff] }
 0x3f7   :  { %12222 = vmatpush1.bf16.msra.mxu1 %v15151_v7  ;;  %12386 = vmatpush1.bf16.msra.mxu0 %v15153_v9  ;;  %v16462_v7 = vpop.eup %16461  ;;  %v3624_v9 = vld [vmem:[#allocation14 + $0x1920] sm:$0xff] }
 0x3f8   :  { %12223 = vmatprep.subr.bf16.mxu1 %v15176_v10  ;;  %12387 = vmatprep.subr.bf16.mxu0 %v15178_v11  ;;  %v3613_v10 = vld [vmem:[#allocation14 + $0x18c8] sm:$0xff]  ;;  %v17014_v13 = vpack.c.bf16 %v16462_v7, %v16462_v7  ;;  %v15344_v2 = vcombine.high %v3612_v6, %v3624_v9  ;;  %v15343_v19 = vcombine.low %v3612_v6, %v3624_v9 }
 0x3f9   :  { %v3625_v11 = vld [vmem:[#allocation14 + $0x1928] sm:$0xff] }
 0x3fa   :  { %v15345_v20 = vcombine.low %v3613_v10, %v3625_v11 }
 0x3fb   :  { %12224 = vmatpush1.bf16.msra.mxu1 %v15175_v14  ;;  %12388 = vmatpush1.bf16.msra.mxu0 %v15177_v15  ;;  %v15346_v14 = vcombine.high %v3613_v10, %v3625_v11  ;;  %v3636_v15 = vld [vmem:[#allocation14 + $0x1980] sm:$0xff] }
 0x3fc   :  { %12225 = vmatprep.subr.bf16.mxu1 %v15200_v16  ;;  %12389 = vmatprep.subr.bf16.mxu0 %v15202_v17  ;;  %v3648_v16 = vld [vmem:[#allocation14 + $0x19e0] sm:$0xff]  ;;  %v3637_v17 = vld [vmem:[#allocation14 + $0x1988] sm:$0xff] }
 0x3fd   :  { %v15368_v26 = vcombine.high %v3636_v15, %v3648_v16  ;;  %v15370_v21 = vcombine.high %v3637_v17, %v3649_v18  ;;  %v15367_v28 = vcombine.low %v3636_v15, %v3648_v16  ;;  %v15369_v29 = vcombine.low %v3637_v17, %v3649_v18  ;;  %v3780_v10 = vld [vmem:[#allocation14 + $0x1e00] sm:$0xff] }
 0x3fe   :  { %v3792_v11 = vld [vmem:[#allocation14 + $0x1e60] sm:$0xff] }
 0x3ff   :  { %12226 = vmatpush1.bf16.msra.mxu1 %v15199_v22  ;;  %12390 = vmatpush1.bf16.msra.mxu0 %v15201_v23  ;;  %v3660_v22 = vld [vmem:[#allocation14 + $0x1a40] sm:$0xff]  ;;  %v15512_v15 = vcombine.high %v3780_v10, %v3792_v11 }
 0x400   :  { %12227 = vmatprep.subr.bf16.mxu1 %v15224_v24  ;;  %12391 = vmatprep.subr.bf16.mxu0 %v15226_v33  ;;  %v3672_v23 = vld [vmem:[#allocation14 + $0x1aa0] sm:$0xff]  ;;  %v3661_v24 = vld [vmem:[#allocation14 + $0x1a48] sm:$0xff] }
 0x401   :  { %v3673_v33 = vld [vmem:[#allocation14 + $0x1aa8] sm:$0xff]  ;;  %v15392_v30 = vcombine.high %v3660_v22, %v3672_v23  ;;  %v3804_v17 = vld [vmem:[#allocation14 + $0x1ec0] sm:$0xff] }
 0x402   :  { %v15394_v31 = vcombine.high %v3661_v24, %v3673_v33  ;;  %v15393_v37 = vcombine.low %v3661_v24, %v3673_v33  ;;  %v3816_v18 = vld [vmem:[#allocation14 + $0x1f20] sm:$0xff] }
 0x403   :  { %12228 = vmatpush1.bf16.msra.mxu1 %v15223_v34  ;;  %12392 = vmatpush1.bf16.msra.mxu0 %v15225_v50  ;;  %v3696_v34 = vld [vmem:[#allocation14 + $0x1b60] sm:$0xff]  ;;  %v3685_v50 = vld [vmem:[#allocation14 + $0x1b08] sm:$0xff] }
 0x404   :  { %12229 = vmatprep.subr.bf16.mxu1 %v15248_v35  ;;  %12393 = vmatprep.subr.bf16.mxu0 %v15250_v36  ;;  %v3697_v35 = vld [vmem:[#allocation14 + $0x1b68] sm:$0xff]  ;;  %v15391_v36 = vcombine.low %v3660_v22, %v3672_v23  ;;  %v15416_v38 = vcombine.high %v3684_v32, %v3696_v34  ;;  %v15536_v22 = vcombine.high %v3804_v17, %v3816_v18  ;;  %v3828_v24 = vld [vmem:[#allocation14 + $0x1f80] sm:$0xff] }
 0x405   :  { %v15418_v39 = vcombine.high %v3685_v50, %v3697_v35  ;;  %v15417_v48 = vcombine.low %v3685_v50, %v3697_v35  ;;  %v3840_v33 = vld [vmem:[#allocation14 + $0x1fe0] sm:$0xff] }
 0x406   :  { %v3852_v50 = vld [vmem:[#allocation14 + $0x2040] sm:$0xff] }
 0x407   :  { %12230 = vmatpush1.bf16.msra.mxu1 %v15247_v41  ;;  %12394 = vmatpush1.bf16.msra.mxu0 %v15249_v42  ;;  %v3720_v41 = vld [vmem:[#allocation14 + $0x1c20] sm:$0xff]  ;;  %v3709_v42 = vld [vmem:[#allocation14 + $0x1bc8] sm:$0xff] }
 0x408   :  { %12231 = vmatprep.subr.bf16.mxu1 %v15272_v27  ;;  %12395 = vmatprep.subr.bf16.mxu0 %v15274_v46  ;;  %v3721_v27 = vld [vmem:[#allocation14 + $0x1c28] sm:$0xff]  ;;  %v15415_v46 = vcombine.low %v3684_v32, %v3696_v34  ;;  %v15440_v51 = vcombine.high %v3708_v40, %v3720_v41  ;;  %v15560_v32 = vcombine.high %v3828_v24, %v3840_v33  ;;  %v3864_v35 = vld [vmem:[#allocation14 + $0x20a0] sm:$0xff] }
 0x409   :  { %v15442_v52 = vcombine.high %v3709_v42, %v3721_v27  ;;  %v15441_v60 = vcombine.low %v3709_v42, %v3721_v27  ;;  %v17019_v42 = vsub.s32 4, %v16936_v44  ;;  %v3876_v27 = vld [vmem:[#allocation14 + $0x2100] sm:$0xff] }
 0x40b   :  { %12232 = vmatpush1.bf16.msra.mxu1 %v15271_v55  ;;  %12396 = vmatpush1.bf16.msra.mxu0 %v15273_v56  ;;  %v3744_v55 = vld [vmem:[#allocation14 + $0x1ce0] sm:$0xff]  ;;  %v3733_v56 = vld [vmem:[#allocation14 + $0x1c88] sm:$0xff] }
 0x40c   :  { %12233 = vmatprep.subr.bf16.mxu1 %v15296_v57  ;;  %12397 = vmatprep.subr.bf16.mxu0 %v15298_v59  ;;  %v3745_v57 = vld [vmem:[#allocation14 + $0x1ce8] sm:$0xff]  ;;  %v15439_v59 = vcombine.low %v3708_v40, %v3720_v41  ;;  %v15464_v61 = vcombine.high %v3732_v53, %v3744_v55  ;;  %v15584_v40 = vcombine.high %v3852_v50, %v3864_v35 }
 0x40d   :  { %v15466_v62 = vcombine.high %v3733_v56, %v3745_v57  ;;  %v15465_v6 = vcombine.low %v3733_v56, %v3745_v57  ;;  %v1175_v57 = vrot.slane %v16989_v8, %v17019_v42 }
 0x40f   :  { %12234 = vmatpush1.bf16.msra.mxu1 %v15295_v0  ;;  %12398 = vmatpush1.bf16.msra.mxu0 %v15297_v1  ;;  %v3768_v0 = vld [vmem:[#allocation14 + $0x1da0] sm:$0xff]  ;;  %v3757_v1 = vld [vmem:[#allocation14 + $0x1d48] sm:$0xff] }
 0x410   :  { %12244 = vmatprep.subr.bf16.mxu1 %v15320_v4  ;;  %12408 = vmatprep.subr.bf16.mxu0 %v15322_v5  ;;  %v3769_v4 = vld [vmem:[#allocation14 + $0x1da8] sm:$0xff]  ;;  %v15463_v5 = vcombine.low %v3732_v53, %v3744_v55  ;;  %v15488_v7 = vcombine.high %v3756_v63, %v3768_v0  ;;  %v17025_v53 = vsub.s32 7, %v16936_v44  ;;  %v15583_v55 = vcombine.low %v3852_v50, %v3864_v35 }
 0x411   :  { %v15490_v9 = vcombine.high %v3757_v1, %v3769_v4 }
 0x412   :  { %12236 = vmatmul.mubr.bf16.vlgmr.msra.gmra.mrb[12].mxu1 %v17014_v13  ;;  %12400 = vmatmul.mubr.bf16.vlgmr.msra.gmra.mrb[16].mxu0 %v17014_v13 }
 0x413   :  { %12245 = vmatpush1.bf16.msra.mxu1 %v15319_v25  ;;  %12409 = vmatpush1.bf16.msra.mxu0 %v15321_v12  ;;  %v3781_v25 = vld [vmem:[#allocation14 + $0x1e08] sm:$0xff] }
 0x414   :  { %12246 = vmatprep.subr.bf16.mxu1 %v15344_v2  ;;  %12410 = vmatprep.subr.bf16.mxu0 %v15346_v14  ;;  %v3793_v12 = vld [vmem:[#allocation14 + $0x1e68] sm:$0xff]  ;;  %v15487_v2 = vcombine.low %v3756_v63, %v3768_v0  ;;  %v15489_v14 = vcombine.low %v3757_v1, %v3769_v4  ;;  %v3912_v63 = vld [vmem:[#allocation14 + $0x2220] sm:$0xff]  ;;  %v1187_v4 = vrot.slane %v16989_v8, %v17025_v53 }
 0x415   :  { %v15514_v16 = vcombine.high %v3781_v25, %v3793_v12  ;;  %v3901_v0 = vld [vmem:[#allocation14 + $0x21c8] sm:$0xff] }
 0x416   :  { %v3913_v1 = vld [vmem:[#allocation14 + $0x2228] sm:$0xff] }
 0x417   :  { %12247 = vmatpush1.bf16.msra.mxu1 %v15343_v19  ;;  %12411 = vmatpush1.bf16.msra.mxu0 %v15345_v20  ;;  %v3805_v19 = vld [vmem:[#allocation14 + $0x1ec8] sm:$0xff] }
 0x418   :  { %12248 = vmatprep.subr.bf16.mxu1 %v15368_v26  ;;  %12412 = vmatprep.subr.bf16.mxu0 %v15370_v21  ;;  %v3817_v20 = vld [vmem:[#allocation14 + $0x1f28] sm:$0xff]  ;;  %v15511_v26 = vcombine.low %v3780_v10, %v3792_v11  ;;  %v15513_v21 = vcombine.low %v3781_v25, %v3793_v12  ;;  %v15634_v12 = vcombine.high %v3901_v0, %v3913_v1 }
 0x419   :  { %v15538_v23 = vcombine.high %v3805_v19, %v3817_v20 }
 0x41b   :  { %12249 = vmatpush1.bf16.msra.mxu1 %v15367_v28  ;;  %12413 = vmatpush1.bf16.msra.mxu0 %v15369_v29  ;;  %v3829_v28 = vld [vmem:[#allocation14 + $0x1f88] sm:$0xff] }
 0x41c   :  { %12250 = vmatprep.subr.bf16.mxu1 %v15392_v30  ;;  %12414 = vmatprep.subr.bf16.mxu0 %v15394_v31  ;;  %v3841_v29 = vld [vmem:[#allocation14 + $0x1fe8] sm:$0xff]  ;;  %v15535_v30 = vcombine.low %v3804_v17, %v3816_v18  ;;  %v15537_v31 = vcombine.low %v3805_v19, %v3817_v20  ;;  %v3936_v17 = vld [vmem:[#allocation14 + $0x22e0] sm:$0xff] }
 0x41d   :  { %v15562_v34 = vcombine.high %v3829_v28, %v3841_v29  ;;  %v3925_v18 = vld [vmem:[#allocation14 + $0x2288] sm:$0xff] }
 0x41f   :  { %12251 = vmatpush1.bf16.msra.mxu1 %v15391_v36  ;;  %12415 = vmatpush1.bf16.msra.mxu0 %v15393_v37  ;;  %v3853_v36 = vld [vmem:[#allocation14 + $0x2048] sm:$0xff] }
 0x420   :  { %12252 = vmatprep.subr.bf16.mxu1 %v15416_v38  ;;  %12416 = vmatprep.subr.bf16.mxu0 %v15418_v39  ;;  %v3865_v37 = vld [vmem:[#allocation14 + $0x20a8] sm:$0xff]  ;;  %v15559_v38 = vcombine.low %v3828_v24, %v3840_v33  ;;  %v15561_v39 = vcombine.low %v3829_v28, %v3841_v29  ;;  %v3948_v28 = vld [vmem:[#allocation14 + $0x2340] sm:$0xff] }
 0x421   :  { %v15586_v41 = vcombine.high %v3853_v36, %v3865_v37  ;;  %v15585_v56 = vcombine.low %v3853_v36, %v3865_v37  ;;  %v3960_v29 = vld [vmem:[#allocation14 + $0x23a0] sm:$0xff] }
 0x422   :  { %v15680_v50 = vcombine.high %v3948_v28, %v3960_v29  ;;  %v3972_v36 = vld [vmem:[#allocation14 + $0x2400] sm:$0xff] }
 0x423   :  { %12253 = vmatpush1.bf16.msra.mxu1 %v15415_v46  ;;  %12417 = vmatpush1.bf16.msra.mxu0 %v15417_v48  ;;  %v17022_v46 = vsub.s32 5, %v16936_v44  ;;  %v3888_v48 = vld [vmem:[#allocation14 + $0x2160] sm:$0xff] }
 0x424   :  { %12254 = vmatprep.subr.bf16.mxu1 %v15440_v51  ;;  %12418 = vmatprep.subr.bf16.mxu0 %v15442_v52  ;;  %v3877_v51 = vld [vmem:[#allocation14 + $0x2108] sm:$0xff]  ;;  %v3984_v37 = vld [vmem:[#allocation14 + $0x2460] sm:$0xff] }
 0x425   :  { %v3889_v52 = vld [vmem:[#allocation14 + $0x2168] sm:$0xff] }
 0x427   :  { %12255 = vmatpush1.bf16.msra.mxu1 %v15439_v59  ;;  %12419 = vmatpush1.bf16.msra.mxu0 %v15441_v60  ;;  %v15608_v59 = vcombine.high %v3876_v27, %v3888_v48  ;;  %v15610_v60 = vcombine.high %v3877_v51, %v3889_v52 }
 0x428   :  { %12256 = vmatprep.subr.bf16.mxu1 %v15464_v61  ;;  %12420 = vmatprep.subr.bf16.mxu0 %v15466_v62  ;;  %v3900_v61 = vld [vmem:[#allocation14 + $0x21c0] sm:$0xff]  ;;  %v1179_v62 = vrot.slane %v16989_v8, %v17022_v46  ;;  %v3937_v8 = vld [vmem:[#allocation14 + $0x22e8] sm:$0xff] }
 0x429   :  { %v15632_v25 = vcombine.high %v3900_v61, %v3912_v63  ;;  %v15658_v33 = vcombine.high %v3925_v18, %v3937_v8 }
 0x42b   :  { %12257 = vmatpush1.bf16.msra.mxu1 %v15463_v5  ;;  %12421 = vmatpush1.bf16.msra.mxu0 %v15465_v6  ;;  %v15607_v6 = vcombine.low %v3876_v27, %v3888_v48  ;;  %v15704_v27 = vcombine.high %v3972_v36, %v3984_v37 }
 0x42c   :  { %12258 = vmatprep.subr.bf16.mxu1 %v15488_v7  ;;  %12422 = vmatprep.subr.bf16.mxu0 %v15490_v9  ;;  %v15609_v7 = vcombine.low %v3877_v51, %v3889_v52  ;;  %v3996_v52 = vld [vmem:[#allocation14 + $0x24c0] sm:$0xff] }
 0x42f   :  { %12259 = vmatpush1.bf16.msra.mxu1 %v15487_v2  ;;  %12423 = vmatpush1.bf16.msra.mxu0 %v15489_v14  ;;  %v3924_v2 = vld [vmem:[#allocation14 + $0x2280] sm:$0xff] }
 0x430   :  { %12260 = vmatprep.subr.bf16.mxu1 %v15512_v15  ;;  %12424 = vmatprep.subr.bf16.mxu0 %v15514_v16  ;;  %v15656_v24 = vcombine.high %v3924_v2, %v3936_v17 }
 0x433   :  { %12261 = vmatpush1.bf16.msra.mxu1 %v15511_v26  ;;  %12425 = vmatpush1.bf16.msra.mxu0 %v15513_v21 }
 0x434   :  { %12262 = vmatprep.subr.bf16.mxu1 %v15536_v22  ;;  %12426 = vmatprep.subr.bf16.mxu0 %v15538_v23  ;;  %v15631_v22 = vcombine.low %v3900_v61, %v3912_v63  ;;  %v15633_v23 = vcombine.low %v3901_v0, %v3913_v1  ;;  %v4020_v1 = vld [vmem:[#allocation14 + $0x2580] sm:$0xff] }
 0x437   :  { %12263 = vmatpush1.bf16.msra.mxu1 %v15535_v30  ;;  %12427 = vmatpush1.bf16.msra.mxu0 %v15537_v31  ;;  %v3949_v30 = vld [vmem:[#allocation14 + $0x2348] sm:$0xff] }
 0x438   :  { %12264 = vmatprep.subr.bf16.mxu1 %v15560_v32  ;;  %12428 = vmatprep.subr.bf16.mxu0 %v15562_v34  ;;  %v3961_v31 = vld [vmem:[#allocation14 + $0x23a8] sm:$0xff]  ;;  %v15655_v32 = vcombine.low %v3924_v2, %v3936_v17  ;;  %v15657_v34 = vcombine.low %v3925_v18, %v3937_v8 }
 0x439   :  { %v15682_v35 = vcombine.high %v3949_v30, %v3961_v31  ;;  %v4045_v17 = vld [vmem:[#allocation14 + $0x2648] sm:$0xff] }
 0x43a   :  { %v4057_v18 = vld [vmem:[#allocation14 + $0x26a8] sm:$0xff] }
 0x43b   :  { %12265 = vmatpush1.bf16.msra.mxu1 %v15559_v38  ;;  %12429 = vmatpush1.bf16.msra.mxu0 %v15561_v39  ;;  %v3973_v38 = vld [vmem:[#allocation14 + $0x2408] sm:$0xff] }
 0x43c   :  { %12266 = vmatprep.subr.bf16.mxu1 %v15584_v40  ;;  %12430 = vmatprep.subr.bf16.mxu0 %v15586_v41  ;;  %v3985_v39 = vld [vmem:[#allocation14 + $0x2468] sm:$0xff]  ;;  %v15679_v40 = vcombine.low %v3948_v28, %v3960_v29  ;;  %v15681_v41 = vcombine.low %v3949_v30, %v3961_v31  ;;  %v15777_v28 = vcombine.low %v4045_v17, %v4057_v18  ;;  %v4092_v31 = vld [vmem:[#allocation14 + $0x27c0] sm:$0xff] }
 0x43d   :  { %v15706_v48 = vcombine.high %v3973_v38, %v3985_v39  ;;  %v15705_v63 = vcombine.low %v3973_v38, %v3985_v39  ;;  %v4116_v39 = vld [vmem:[#allocation14 + $0x2880] sm:$0xff] }
 0x43f   :  { %12267 = vmatpush1.bf16.msra.mxu1 %v15583_v55  ;;  %12431 = vmatpush1.bf16.msra.mxu0 %v15585_v56  ;;  %v4008_v56 = vld [vmem:[#allocation14 + $0x2520] sm:$0xff] }
 0x440   :  { %v2715_v5 = vpop.f32.mrb[8].mxu1  ;;  %12268 = vmatprep.subr.bf16.mxu1 %v15608_v59  ;;  %12432 = vmatprep.subr.bf16.mxu0 %v15610_v60  ;;  %v4009_v59 = vld [vmem:[#allocation14 + $0x2528] sm:$0xff] }
 0x441   :  { %v16091_v9 = vadd.f32 %v2715_v5, %v1175_v57  ;;  %v17033_v10 = vpop.f32.mrb[12].mxu0  ;;  %v2717_v11 = vpop.f32.mrb[9].mxu1  ;;  %v3997_v57 = vld [vmem:[#allocation14 + $0x24c8] sm:$0xff] }
 0x442   :  { %v16092_v14 = vadd.f32 %v2717_v11, %v1179_v62  ;;  %v2799_v15 = vpop.f32.mrb[13].mxu0  ;;  %v2719_v16 = vpop.f32.mrb[10].mxu1  ;;  %v15703_v62 = vcombine.low %v3972_v36, %v3984_v37  ;;  %v15730_v5 = vcombine.high %v3997_v57, %v4009_v59 }
 0x443   :  { %v16094_v19 = vadd.f32 %v2799_v15, %v1187_v4  ;;  %v2801_v20 = vpop.f32.mrb[14].mxu0  ;;  %v2720_v26 = vpop.f32.mrb[11].mxu1  ;;  %16463 = vtanh.f32 %v16091_v9  ;;  %12269 = vmatpush1.bf16.msra.mxu1 %v15607_v6  ;;  %12433 = vmatpush1.bf16.msra.mxu0 %v15609_v7  ;;  %v15728_v4 = vcombine.high %v3996_v52, %v4008_v56  ;;  %v4032_v6 = vld [vmem:[#allocation14 + $0x25e0] sm:$0xff]  ;;  %v4021_v7 = vld [vmem:[#allocation14 + $0x2588] sm:$0xff] }
 0x444   :  { %v2802_v21 = vpop.f32.mrb[15].mxu0  ;;  %16465 = vtanh.f32 %v16092_v14  ;;  %12270 = vmatprep.subr.bf16.mxu1 %v15632_v25  ;;  %12434 = vmatprep.subr.bf16.mxu0 %v15634_v12  ;;  %v4033_v9 = vld [vmem:[#allocation14 + $0x25e8] sm:$0xff]  ;;  %v15727_v25 = vcombine.low %v3996_v52, %v4008_v56  ;;  %v15729_v12 = vcombine.low %v3997_v57, %v4009_v59  ;;  %v15752_v2 = vcombine.high %v4020_v1, %v4032_v6  ;;  %v4044_v15 = vld [vmem:[#allocation14 + $0x2640] sm:$0xff] }
 0x445   :  { %16467 = vtanh.f32 %v16094_v19  ;;  %v15754_v14 = vcombine.high %v4021_v7, %v4033_v9  ;;  %v4056_v16 = vld [vmem:[#allocation14 + $0x26a0] sm:$0xff]  ;;  %v15751_v8 = vcombine.low %v4020_v1, %v4032_v6  ;;  %v15753_v19 = vcombine.low %v4021_v7, %v4033_v9  ;;  %v4141_v59 = vld [vmem:[#allocation14 + $0x2948] sm:$0xff] }
 0x446   :  { %v15776_v20 = vcombine.high %v4044_v15, %v4056_v16  ;;  %v15778_v26 = vcombine.high %v4045_v17, %v4057_v18  ;;  %v4068_v21 = vld [vmem:[#allocation14 + $0x2700] sm:$0xff]  ;;  %v4165_v7 = vld [vmem:[#allocation14 + $0x2a08] sm:$0xff] }
 0x447   :  { %12271 = vmatpush1.bf16.msra.mxu1 %v15631_v22  ;;  %12435 = vmatpush1.bf16.msra.mxu0 %v15633_v23  ;;  %v4080_v22 = vld [vmem:[#allocation14 + $0x2760] sm:$0xff]  ;;  %v4069_v23 = vld [vmem:[#allocation14 + $0x2708] sm:$0xff] }
 0x448   :  { %12272 = vmatprep.subr.bf16.mxu1 %v15656_v24  ;;  %12436 = vmatprep.subr.bf16.mxu0 %v15658_v33  ;;  %v4081_v24 = vld [vmem:[#allocation14 + $0x2768] sm:$0xff]  ;;  %v15775_v33 = vcombine.low %v4044_v15, %v4056_v16  ;;  %v15800_v29 = vcombine.high %v4068_v21, %v4080_v22  ;;  %v4140_v56 = vld [vmem:[#allocation14 + $0x2940] sm:$0xff] }
 0x449   :  { %v15802_v30 = vcombine.high %v4069_v23, %v4081_v24  ;;  %v15801_v36 = vcombine.low %v4069_v23, %v4081_v24  ;;  %v4152_v57 = vld [vmem:[#allocation14 + $0x29a0] sm:$0xff]  ;;  %v4177_v9 = vld [vmem:[#allocation14 + $0x2a68] sm:$0xff] }
 0x44a   :  { %v15872_v1 = vcombine.high %v4140_v56, %v4152_v57  ;;  %v4176_v6 = vld [vmem:[#allocation14 + $0x2a60] sm:$0xff]  ;;  %v4189_v17 = vld [vmem:[#allocation14 + $0x2ac8] sm:$0xff] }
 0x44b   :  { %12273 = vmatpush1.bf16.msra.mxu1 %v15655_v32  ;;  %12437 = vmatpush1.bf16.msra.mxu0 %v15657_v34  ;;  %v4104_v32 = vld [vmem:[#allocation14 + $0x2820] sm:$0xff]  ;;  %v4093_v34 = vld [vmem:[#allocation14 + $0x27c8] sm:$0xff] }
 0x44c   :  { %12274 = vmatprep.subr.bf16.mxu1 %v15680_v50  ;;  %12438 = vmatprep.subr.bf16.mxu0 %v15682_v35  ;;  %v4105_v50 = vld [vmem:[#allocation14 + $0x2828] sm:$0xff]  ;;  %v15799_v35 = vcombine.low %v4068_v21, %v4080_v22  ;;  %v15824_v37 = vcombine.high %v4092_v31, %v4104_v32  ;;  %v4188_v15 = vld [vmem:[#allocation14 + $0x2ac0] sm:$0xff] }
 0x44d   :  { %v16464_v51 = vpop.eup %16463  ;;  %v15826_v38 = vcombine.high %v4093_v34, %v4105_v50  ;;  %v4200_v16 = vld [vmem:[#allocation14 + $0x2b20] sm:$0xff]  ;;  %v4201_v18 = vld [vmem:[#allocation14 + $0x2b28] sm:$0xff] }
 0x44e   :  { %v16466_v55 = vpop.eup %16465  ;;  %v17037_v0 = vpack.c.bf16 %v16464_v51, %v16464_v51  ;;  %v15825_v51 = vcombine.low %v4093_v34, %v4105_v50  ;;  %v4212_v21 = vld [vmem:[#allocation14 + $0x2b80] sm:$0xff]  ;;  %v4213_v23 = vld [vmem:[#allocation14 + $0x2b88] sm:$0xff] }
 0x44f   :  { %v16468_v60 = vpop.eup %16467  ;;  %v17035_v61 = vpack.c.bf16 %v16466_v55, %v16466_v55  ;;  %12275 = vmatpush1.bf16.msra.mxu1 %v15679_v40  ;;  %12439 = vmatpush1.bf16.msra.mxu0 %v15681_v41  ;;  %v4128_v40 = vld [vmem:[#allocation14 + $0x28e0] sm:$0xff]  ;;  %v4117_v41 = vld [vmem:[#allocation14 + $0x2888] sm:$0xff] }
 0x450   :  { %12285 = vmatprep.subr.bf16.mxu1 %v15704_v27  ;;  %12449 = vmatprep.subr.bf16.mxu0 %v15706_v48  ;;  %v17041_v11 = vpack.c.bf16 %v16468_v60, %v16468_v60  ;;  %v4129_v27 = vld [vmem:[#allocation14 + $0x28e8] sm:$0xff]  ;;  %v15823_v48 = vcombine.low %v4092_v31, %v4104_v32  ;;  %v15848_v52 = vcombine.high %v4116_v39, %v4128_v40  ;;  %v4224_v22 = vld [vmem:[#allocation14 + $0x2be0] sm:$0xff] }
 0x451   :  { %12276 = vmatprep.mubr.bf16.mxu1 %v17035_v61  ;;  %12440 = vmatprep.mubr.bf16.mxu0 %v17035_v61  ;;  %v15850_v55 = vcombine.high %v4117_v41, %v4129_v27  ;;  %v4153_v60 = vld [vmem:[#allocation14 + $0x29a8] sm:$0xff]  ;;  %v4236_v31 = vld [vmem:[#allocation14 + $0x2c40] sm:$0xff] }
 0x452   :  { %12277 = vmatmul.mubr.bf16.vlgmr.msra.gmra.mrb[12].mxu1 %v17037_v0  ;;  %12441 = vmatmul.mubr.bf16.vlgmr.msra.gmra.mrb[16].mxu0 %v17037_v0  ;;  %v4225_v24 = vld [vmem:[#allocation14 + $0x2be8] sm:$0xff]  ;;  %v4248_v32 = vld [vmem:[#allocation14 + $0x2ca0] sm:$0xff] }
 0x453   :  { %12286 = vmatpush1.bf16.msra.mxu1 %v15703_v62  ;;  %12450 = vmatpush1.bf16.msra.mxu0 %v15705_v63  ;;  %v15847_v62 = vcombine.low %v4116_v39, %v4128_v40  ;;  %v15849_v63 = vcombine.low %v4117_v41, %v4129_v27  ;;  %v4237_v34 = vld [vmem:[#allocation14 + $0x2c48] sm:$0xff]  ;;  %v4260_v40 = vld [vmem:[#allocation14 + $0x2d00] sm:$0xff] }
 0x454   :  { %12317 = vmatprep.mubr.bf16.mxu1 %v17041_v11  ;;  %12481 = vmatprep.mubr.bf16.mxu0 %v17041_v11  ;;  %v4249_v50 = vld [vmem:[#allocation14 + $0x2ca8] sm:$0xff]  ;;  %v4272_v41 = vld [vmem:[#allocation14 + $0x2d60] sm:$0xff] }
 0x455   :  { %12287 = vmatprep.subr.bf16.mxu1 %v15728_v4  ;;  %12451 = vmatprep.subr.bf16.mxu0 %v15730_v5  ;;  %v15874_v4 = vcombine.high %v4141_v59, %v4153_v60  ;;  %v4164_v5 = vld [vmem:[#allocation14 + $0x2a00] sm:$0xff]  ;;  %v15970_v39 = vcombine.high %v4237_v34, %v4249_v50  ;;  %v4261_v27 = vld [vmem:[#allocation14 + $0x2d08] sm:$0xff] }
 0x457   :  { %12288 = vmatpush1.bf16.msra.mxu1 %v15727_v25  ;;  %12452 = vmatpush1.bf16.msra.mxu0 %v15729_v12  ;;  %v15871_v25 = vcombine.low %v4140_v56, %v4152_v57  ;;  %v15873_v12 = vcombine.low %v4141_v59, %v4153_v60  ;;  %v15992_v56 = vcombine.high %v4260_v40, %v4272_v41  ;;  %v4284_v59 = vld [vmem:[#allocation14 + $0x2dc0] sm:$0xff] }
 0x458   :  { %12289 = vmatprep.subr.bf16.mxu1 %v15752_v2  ;;  %12453 = vmatprep.subr.bf16.mxu0 %v15754_v14  ;;  %v15896_v2 = vcombine.high %v4164_v5, %v4176_v6  ;;  %v15898_v14 = vcombine.high %v4165_v7, %v4177_v9  ;;  %v4296_v60 = vld [vmem:[#allocation14 + $0x2e20] sm:$0xff] }
 0x45b   :  { %12290 = vmatpush1.bf16.msra.mxu1 %v15751_v8  ;;  %12454 = vmatpush1.bf16.msra.mxu0 %v15753_v19  ;;  %v15895_v8 = vcombine.low %v4164_v5, %v4176_v6  ;;  %v15897_v19 = vcombine.low %v4165_v7, %v4177_v9  ;;  %v16016_v6 = vcombine.high %v4284_v59, %v4296_v60  ;;  %v4308_v9 = vld [vmem:[#allocation14 + $0x2e80] sm:$0xff] }
 0x45c   :  { %12291 = vmatprep.subr.bf16.mxu1 %v15776_v20  ;;  %12455 = vmatprep.subr.bf16.mxu0 %v15778_v26  ;;  %v15920_v20 = vcombine.high %v4188_v15, %v4200_v16  ;;  %v15922_v26 = vcombine.high %v4189_v17, %v4201_v18 }
 0x45f   :  { %12292 = vmatpush1.bf16.msra.mxu1 %v15775_v33  ;;  %12456 = vmatpush1.bf16.msra.mxu0 %v15777_v28  ;;  %v15919_v33 = vcombine.low %v4188_v15, %v4200_v16  ;;  %v15921_v28 = vcombine.low %v4189_v17, %v4201_v18  ;;  %v4332_v17 = vld [vmem:[#allocation14 + $0x2f40] sm:$0xff] }
 0x460   :  { %12293 = vmatprep.subr.bf16.mxu1 %v15800_v29  ;;  %12457 = vmatprep.subr.bf16.mxu0 %v15802_v30  ;;  %v15944_v29 = vcombine.high %v4212_v21, %v4224_v22  ;;  %v15946_v30 = vcombine.high %v4213_v23, %v4225_v24  ;;  %v4344_v18 = vld [vmem:[#allocation14 + $0x2fa0] sm:$0xff] }
 0x463   :  { %12294 = vmatpush1.bf16.msra.mxu1 %v15799_v35  ;;  %12458 = vmatpush1.bf16.msra.mxu0 %v15801_v36  ;;  %v17048_v35 = vsub.s32 6, %v16936_v44  ;;  %v15943_v36 = vcombine.low %v4212_v21, %v4224_v22  ;;  %v15969_v44 = vcombine.low %v4237_v34, %v4249_v50  ;;  %v16064_v21 = vcombine.high %v4332_v17, %v4344_v18  ;;  %v2846_v50 = vld [vmem:[#allocation14 + $0xd0] sm:$0xff] }
 0x464   :  { %12295 = vmatprep.subr.bf16.mxu1 %v15824_v37  ;;  %12459 = vmatprep.subr.bf16.mxu0 %v15826_v38  ;;  %v15945_v37 = vcombine.low %v4213_v23, %v4225_v24  ;;  %v15968_v38 = vcombine.high %v4236_v31, %v4248_v32  ;;  %v2822_v23 = vld [vmem:[#allocation14 + $0x10] sm:$0xff] }
 0x465   :  { %v2834_v24 = vld [vmem:[#allocation14 + $0x70] sm:$0xff] }
 0x467   :  { %12296 = vmatpush1.bf16.msra.mxu1 %v15823_v48  ;;  %12460 = vmatpush1.bf16.msra.mxu0 %v15825_v51  ;;  %v4273_v48 = vld [vmem:[#allocation14 + $0x2d68] sm:$0xff]  ;;  %v16519_v51 = vld [vmem:[#allocation13] sm:$0xff] }
 0x468   :  { %12297 = vmatprep.subr.bf16.mxu1 %v15848_v52  ;;  %12461 = vmatprep.subr.bf16.mxu0 %v15850_v55  ;;  %v1183_v52 = vrot.slane %v16519_v51, %v17048_v35  ;;  %v15967_v55 = vcombine.low %v4236_v31, %v4248_v32  ;;  %v15994_v57 = vcombine.high %v4261_v27, %v4273_v48  ;;  %v2870_v51 = vld [vmem:[#allocation14 + $0x190] sm:$0xff] }
 0x469   :  { %v15993_v5 = vcombine.low %v4261_v27, %v4273_v48  ;;  %v14556_v31 = vcombine.high %v2822_v23, %v2834_v24 }
 0x46b   :  { %12298 = vmatpush1.bf16.msra.mxu1 %v15847_v62  ;;  %12462 = vmatpush1.bf16.msra.mxu0 %v15849_v63  ;;  %v4285_v62 = vld [vmem:[#allocation14 + $0x2dc8] sm:$0xff] }
 0x46c   :  { %12299 = vmatprep.subr.bf16.mxu1 %v15872_v1  ;;  %12463 = vmatprep.subr.bf16.mxu0 %v15874_v4  ;;  %v4297_v63 = vld [vmem:[#allocation14 + $0x2e28] sm:$0xff]  ;;  %v16093_v1 = vadd.f32 %v17033_v10, %v1183_v52  ;;  %v15991_v4 = vcombine.low %v4260_v40, %v4272_v41  ;;  %v2882_v52 = vld [vmem:[#allocation14 + $0x1f0] sm:$0xff] }
 0x46d   :  { %v16018_v7 = vcombine.high %v4285_v62, %v4297_v63  ;;  %v16017_v15 = vcombine.low %v4285_v62, %v4297_v63  ;;  %v2894_v62 = vld [vmem:[#allocation14 + $0x250] sm:$0xff] }
 0x46e   :  { %16469 = vtanh.f32 %v16093_v1  ;;  %v2906_v63 = vld [vmem:[#allocation14 + $0x2b0] sm:$0xff]  ;;  %v2895_v1 = vld [vmem:[#allocation14 + $0x258] sm:$0xff] }
 0x46f   :  { %12300 = vmatpush1.bf16.msra.mxu1 %v15871_v25  ;;  %12464 = vmatpush1.bf16.msra.mxu0 %v15873_v12  ;;  %v4320_v25 = vld [vmem:[#allocation14 + $0x2ee0] sm:$0xff]  ;;  %v4309_v12 = vld [vmem:[#allocation14 + $0x2e88] sm:$0xff] }
 0x470   :  { %12301 = vmatprep.subr.bf16.mxu1 %v15896_v2  ;;  %12465 = vmatprep.subr.bf16.mxu0 %v15898_v14  ;;  %v4321_v2 = vld [vmem:[#allocation14 + $0x2ee8] sm:$0xff]  ;;  %v16015_v14 = vcombine.low %v4284_v59, %v4296_v60  ;;  %v16040_v10 = vcombine.high %v4308_v9, %v4320_v25  ;;  %v14604_v59 = vcombine.high %v2870_v51, %v2882_v52 }
 0x471   :  { %v16042_v16 = vcombine.high %v4309_v12, %v4321_v2 }
 0x473   :  { %12302 = vmatpush1.bf16.msra.mxu1 %v15895_v8  ;;  %12466 = vmatpush1.bf16.msra.mxu0 %v15897_v19  ;;  %v4333_v8 = vld [vmem:[#allocation14 + $0x2f48] sm:$0xff] }
 0x474   :  { %12303 = vmatprep.subr.bf16.mxu1 %v15920_v20  ;;  %12467 = vmatprep.subr.bf16.mxu0 %v15922_v26  ;;  %v4345_v19 = vld [vmem:[#allocation14 + $0x2fa8] sm:$0xff]  ;;  %v16039_v20 = vcombine.low %v4308_v9, %v4320_v25  ;;  %v16041_v26 = vcombine.low %v4309_v12, %v4321_v2  ;;  %v2918_v25 = vld [vmem:[#allocation14 + $0x310] sm:$0xff]  ;;  %v2919_v2 = vld [vmem:[#allocation14 + $0x318] sm:$0xff] }
 0x475   :  { %v16066_v22 = vcombine.high %v4333_v8, %v4345_v19  ;;  %v2930_v12 = vld [vmem:[#allocation14 + $0x370] sm:$0xff] }
 0x477   :  { %12304 = vmatpush1.bf16.msra.mxu1 %v15919_v33  ;;  %12468 = vmatpush1.bf16.msra.mxu0 %v15921_v28  ;;  %v2823_v33 = vld [vmem:[#allocation14 + $0x18] sm:$0xff] }
 0x478   :  { %12305 = vmatprep.subr.bf16.mxu1 %v15944_v29  ;;  %12469 = vmatprep.subr.bf16.mxu0 %v15946_v30  ;;  %v2835_v28 = vld [vmem:[#allocation14 + $0x78] sm:$0xff]  ;;  %v16063_v29 = vcombine.low %v4332_v17, %v4344_v18  ;;  %v16065_v30 = vcombine.low %v4333_v8, %v4345_v19  ;;  %v16470_v34 = vpop.eup %16469  ;;  %v2942_v18 = vld [vmem:[#allocation14 + $0x3d0] sm:$0xff] }
 0x479   :  { %v14558_v32 = vcombine.high %v2823_v33, %v2835_v28  ;;  %v17052_v40 = vpack.c.bf16 %v16470_v34, %v16470_v34  ;;  %v14557_v41 = vcombine.low %v2823_v33, %v2835_v28  ;;  %v2954_v8 = vld [vmem:[#allocation14 + $0x430] sm:$0xff]  ;;  %v2943_v19 = vld [vmem:[#allocation14 + $0x3d8] sm:$0xff] }
 0x47a   :  { %v2978_v33 = vld [vmem:[#allocation14 + $0x4f0] sm:$0xff]  ;;  %v2967_v28 = vld [vmem:[#allocation14 + $0x498] sm:$0xff] }
 0x47b   :  { %12306 = vmatpush1.bf16.msra.mxu1 %v15943_v36  ;;  %12470 = vmatpush1.bf16.msra.mxu0 %v15945_v37  ;;  %v2858_v36 = vld [vmem:[#allocation14 + $0x130] sm:$0xff]  ;;  %v2847_v37 = vld [vmem:[#allocation14 + $0xd8] sm:$0xff] }
 0x47c   :  { %12307 = vmatprep.subr.bf16.mxu1 %v15968_v38  ;;  %12471 = vmatprep.subr.bf16.mxu0 %v15970_v39  ;;  %v2859_v38 = vld [vmem:[#allocation14 + $0x138] sm:$0xff]  ;;  %v14555_v39 = vcombine.low %v2822_v23, %v2834_v24  ;;  %v14580_v27 = vcombine.high %v2846_v50, %v2858_v36  ;;  %v2966_v24 = vld [vmem:[#allocation14 + $0x490] sm:$0xff] }
 0x47d   :  { %v14582_v48 = vcombine.high %v2847_v37, %v2859_v38 }
 0x47f   :  { %12308 = vmatpush1.bf16.msra.mxu1 %v15967_v55  ;;  %12472 = vmatpush1.bf16.msra.mxu0 %v15969_v44  ;;  %v2871_v55 = vld [vmem:[#allocation14 + $0x198] sm:$0xff] }
 0x480   :  { %12309 = vmatprep.subr.bf16.mxu1 %v15992_v56  ;;  %12473 = vmatprep.subr.bf16.mxu0 %v15994_v57  ;;  %v2883_v44 = vld [vmem:[#allocation14 + $0x1f8] sm:$0xff]  ;;  %v14579_v56 = vcombine.low %v2846_v50, %v2858_v36  ;;  %v14581_v57 = vcombine.low %v2847_v37, %v2859_v38  ;;  %v2990_v50 = vld [vmem:[#allocation14 + $0x550] sm:$0xff] }
 0x481   :  { %v14606_v60 = vcombine.high %v2871_v55, %v2883_v44  ;;  %v3002_v36 = vld [vmem:[#allocation14 + $0x5b0] sm:$0xff]  ;;  %v2991_v37 = vld [vmem:[#allocation14 + $0x558] sm:$0xff] }
 0x482   :  { %v3003_v38 = vld [vmem:[#allocation14 + $0x5b8] sm:$0xff] }
 0x483   :  { %12310 = vmatpush1.bf16.msra.mxu1 %v15991_v4  ;;  %12474 = vmatpush1.bf16.msra.mxu0 %v15993_v5  ;;  %v2907_v4 = vld [vmem:[#allocation14 + $0x2b8] sm:$0xff]  ;;  %v14603_v5 = vcombine.low %v2870_v51, %v2882_v52  ;;  %v3014_v51 = vld [vmem:[#allocation14 + $0x610] sm:$0xff] }
 0x484   :  { %12311 = vmatprep.subr.bf16.mxu1 %v16016_v6  ;;  %12475 = vmatprep.subr.bf16.mxu0 %v16018_v7  ;;  %v14605_v6 = vcombine.low %v2871_v55, %v2883_v44  ;;  %v14628_v7 = vcombine.high %v2894_v62, %v2906_v63  ;;  %v14630_v9 = vcombine.high %v2895_v1, %v2907_v4  ;;  %v3026_v52 = vld [vmem:[#allocation14 + $0x670] sm:$0xff]  ;;  %v3015_v55 = vld [vmem:[#allocation14 + $0x618] sm:$0xff] }
 0x485   :  { %v3027_v44 = vld [vmem:[#allocation14 + $0x678] sm:$0xff] }
 0x487   :  { %12312 = vmatpush1.bf16.msra.mxu1 %v16015_v14  ;;  %12476 = vmatpush1.bf16.msra.mxu0 %v16017_v15  ;;  %v2931_v14 = vld [vmem:[#allocation14 + $0x378] sm:$0xff]  ;;  %v14627_v15 = vcombine.low %v2894_v62, %v2906_v63  ;;  %v3038_v62 = vld [vmem:[#allocation14 + $0x6d0] sm:$0xff] }
 0x488   :  { %12313 = vmatprep.subr.bf16.mxu1 %v16040_v10  ;;  %12477 = vmatprep.subr.bf16.mxu0 %v16042_v16  ;;  %v14629_v10 = vcombine.low %v2895_v1, %v2907_v4  ;;  %v14652_v16 = vcombine.high %v2918_v25, %v2930_v12  ;;  %v14654_v17 = vcombine.high %v2919_v2, %v2931_v14  ;;  %v3050_v63 = vld [vmem:[#allocation14 + $0x730] sm:$0xff]  ;;  %v3039_v1 = vld [vmem:[#allocation14 + $0x6d8] sm:$0xff] }
 0x489   :  { %v3051_v4 = vld [vmem:[#allocation14 + $0x738] sm:$0xff] }
 0x48b   :  { %12314 = vmatpush1.bf16.msra.mxu1 %v16039_v20  ;;  %12478 = vmatpush1.bf16.msra.mxu0 %v16041_v26  ;;  %v2955_v20 = vld [vmem:[#allocation14 + $0x438] sm:$0xff]  ;;  %v14651_v26 = vcombine.low %v2918_v25, %v2930_v12  ;;  %v3062_v25 = vld [vmem:[#allocation14 + $0x790] sm:$0xff] }
 0x48c   :  { %12315 = vmatprep.subr.bf16.mxu1 %v16064_v21  ;;  %12479 = vmatprep.subr.bf16.mxu0 %v16066_v22  ;;  %v14653_v21 = vcombine.low %v2919_v2, %v2931_v14  ;;  %v14676_v22 = vcombine.high %v2942_v18, %v2954_v8  ;;  %v14678_v23 = vcombine.high %v2943_v19, %v2955_v20  ;;  %v3074_v12 = vld [vmem:[#allocation14 + $0x7f0] sm:$0xff]  ;;  %v3063_v2 = vld [vmem:[#allocation14 + $0x798] sm:$0xff] }
 0x48d   :  { %v3075_v14 = vld [vmem:[#allocation14 + $0x7f8] sm:$0xff] }
 0x48f   :  { %12316 = vmatpush1.bf16.msra.mxu1 %v16063_v29  ;;  %12480 = vmatpush1.bf16.msra.mxu0 %v16065_v30  ;;  %v2979_v29 = vld [vmem:[#allocation14 + $0x4f8] sm:$0xff]  ;;  %v14675_v30 = vcombine.low %v2942_v18, %v2954_v8  ;;  %v3086_v18 = vld [vmem:[#allocation14 + $0x850] sm:$0xff] }
 0x490   :  { %12490 = vmatprep.subr.bf16.mxu1 %v14556_v31  ;;  %12654 = vmatprep.subr.bf16.mxu0 %v14558_v32  ;;  %v14677_v31 = vcombine.low %v2943_v19, %v2955_v20  ;;  %v14700_v32 = vcombine.high %v2966_v24, %v2978_v33  ;;  %v14702_v34 = vcombine.high %v2967_v28, %v2979_v29  ;;  %v3098_v8 = vld [vmem:[#allocation14 + $0x8b0] sm:$0xff]  ;;  %v3087_v19 = vld [vmem:[#allocation14 + $0x858] sm:$0xff] }
 0x491   :  { %v3099_v20 = vld [vmem:[#allocation14 + $0x8b8] sm:$0xff] }
 0x492   :  { %12318 = vmatmul.mubr.bf16.vlgmr.msra.gmra.mrb[12].mxu1 %v17052_v40  ;;  %12482 = vmatmul.mubr.bf16.vlgmr.msra.gmra.mrb[16].mxu0 %v17052_v40 }
 0x493   :  { %12491 = vmatpush1.bf16.msra.mxu1 %v14555_v39  ;;  %12522 = vmatprep.mubr.bf16.mxu1 %v16999_v43  ;;  %v14699_v39 = vcombine.low %v2966_v24, %v2978_v33  ;;  %v3110_v24 = vld [vmem:[#allocation14 + $0x910] sm:$0xff] }
 0x494   :  { %12655 = vmatpush1.bf16.msra.mxu0 %v14557_v41  ;;  %12686 = vmatprep.mubr.bf16.mxu0 %v16999_v43  ;;  %v14701_v41 = vcombine.low %v2967_v28, %v2979_v29  ;;  %v3122_v33 = vld [vmem:[#allocation14 + $0x970] sm:$0xff]  ;;  %v3111_v28 = vld [vmem:[#allocation14 + $0x918] sm:$0xff] }
 0x495   :  { %12492 = vmatprep.subr.bf16.mxu1 %v14580_v27  ;;  %12656 = vmatprep.subr.bf16.mxu0 %v14582_v48  ;;  %v14724_v27 = vcombine.high %v2990_v50, %v3002_v36  ;;  %v14726_v48 = vcombine.high %v2991_v37, %v3003_v38  ;;  %v3123_v29 = vld [vmem:[#allocation14 + $0x978] sm:$0xff] }
 0x497   :  { %12493 = vmatpush1.bf16.msra.mxu1 %v14579_v56  ;;  %v14723_v56 = vcombine.low %v2990_v50, %v3002_v36  ;;  %v3134_v50 = vld [vmem:[#allocation14 + $0x9d0] sm:$0xff] }
 0x498   :  { %12657 = vmatpush1.bf16.msra.mxu0 %v14581_v57  ;;  %12494 = vmatprep.subr.bf16.mxu1 %v14604_v59  ;;  %v14725_v57 = vcombine.low %v2991_v37, %v3003_v38  ;;  %v14748_v59 = vcombine.high %v3014_v51, %v3026_v52  ;;  %v3146_v36 = vld [vmem:[#allocation14 + $0xa30] sm:$0xff]  ;;  %v3135_v37 = vld [vmem:[#allocation14 + $0x9d8] sm:$0xff] }
 0x499   :  { %12658 = vmatprep.subr.bf16.mxu0 %v14606_v60  ;;  %v14750_v60 = vcombine.high %v3015_v55, %v3027_v44  ;;  %v3147_v38 = vld [vmem:[#allocation14 + $0xa38] sm:$0xff] }
 0x49b   :  { %12495 = vmatpush1.bf16.msra.mxu1 %v14603_v5  ;;  %v14747_v5 = vcombine.low %v3014_v51, %v3026_v52  ;;  %v3158_v51 = vld [vmem:[#allocation14 + $0xa90] sm:$0xff] }
 0x49c   :  { %12659 = vmatpush1.bf16.msra.mxu0 %v14605_v6  ;;  %12496 = vmatprep.subr.bf16.mxu1 %v14628_v7  ;;  %v14749_v6 = vcombine.low %v3015_v55, %v3027_v44  ;;  %v14772_v7 = vcombine.high %v3038_v62, %v3050_v63  ;;  %v3170_v52 = vld [vmem:[#allocation14 + $0xaf0] sm:$0xff]  ;;  %v3159_v55 = vld [vmem:[#allocation14 + $0xa98] sm:$0xff] }
 0x49d   :  { %12660 = vmatprep.subr.bf16.mxu0 %v14630_v9  ;;  %v14774_v9 = vcombine.high %v3039_v1, %v3051_v4  ;;  %v3171_v44 = vld [vmem:[#allocation14 + $0xaf8] sm:$0xff] }
 0x49f   :  { %12497 = vmatpush1.bf16.msra.mxu1 %v14627_v15  ;;  %v14771_v15 = vcombine.low %v3038_v62, %v3050_v63  ;;  %v3182_v62 = vld [vmem:[#allocation14 + $0xb50] sm:$0xff] }
 0x4a0   :  { %12661 = vmatpush1.bf16.msra.mxu0 %v14629_v10  ;;  %12498 = vmatprep.subr.bf16.mxu1 %v14652_v16  ;;  %v14773_v10 = vcombine.low %v3039_v1, %v3051_v4  ;;  %v14796_v16 = vcombine.high %v3062_v25, %v3074_v12  ;;  %v3194_v63 = vld [vmem:[#allocation14 + $0xbb0] sm:$0xff]  ;;  %v3183_v1 = vld [vmem:[#allocation14 + $0xb58] sm:$0xff] }
 0x4a1   :  { %12662 = vmatprep.subr.bf16.mxu0 %v14654_v17  ;;  %v14798_v17 = vcombine.high %v3063_v2, %v3075_v14  ;;  %v3195_v4 = vld [vmem:[#allocation14 + $0xbb8] sm:$0xff] }
 0x4a3   :  { %12499 = vmatpush1.bf16.msra.mxu1 %v14651_v26  ;;  %v14795_v26 = vcombine.low %v3062_v25, %v3074_v12  ;;  %v3206_v25 = vld [vmem:[#allocation14 + $0xc10] sm:$0xff] }
 0x4a4   :  { %12663 = vmatpush1.bf16.msra.mxu0 %v14653_v21  ;;  %12500 = vmatprep.subr.bf16.mxu1 %v14676_v22  ;;  %v14797_v21 = vcombine.low %v3063_v2, %v3075_v14  ;;  %v14820_v22 = vcombine.high %v3086_v18, %v3098_v8  ;;  %v3218_v12 = vld [vmem:[#allocation14 + $0xc70] sm:$0xff]  ;;  %v3207_v2 = vld [vmem:[#allocation14 + $0xc18] sm:$0xff] }
 0x4a5   :  { %12664 = vmatprep.subr.bf16.mxu0 %v14678_v23  ;;  %v14822_v23 = vcombine.high %v3087_v19, %v3099_v20  ;;  %v3219_v14 = vld [vmem:[#allocation14 + $0xc78] sm:$0xff] }
 0x4a7   :  { %12501 = vmatpush1.bf16.msra.mxu1 %v14675_v30  ;;  %v14819_v30 = vcombine.low %v3086_v18, %v3098_v8  ;;  %v3230_v18 = vld [vmem:[#allocation14 + $0xcd0] sm:$0xff] }
 0x4a8   :  { %12665 = vmatpush1.bf16.msra.mxu0 %v14677_v31  ;;  %12502 = vmatprep.subr.bf16.mxu1 %v14700_v32  ;;  %v14821_v31 = vcombine.low %v3087_v19, %v3099_v20  ;;  %v14844_v32 = vcombine.high %v3110_v24, %v3122_v33  ;;  %v3242_v8 = vld [vmem:[#allocation14 + $0xd30] sm:$0xff]  ;;  %v14939_v19 = vcombine.low %v3206_v25, %v3218_v12  ;;  %v3231_v20 = vld [vmem:[#allocation14 + $0xcd8] sm:$0xff] }
 0x4a9   :  { %12666 = vmatprep.subr.bf16.mxu0 %v14702_v34  ;;  %v14846_v34 = vcombine.high %v3111_v28, %v3123_v29 }
 0x4ab   :  { %12503 = vmatpush1.bf16.msra.mxu1 %v14699_v39  ;;  %v14843_v39 = vcombine.low %v3110_v24, %v3122_v33  ;;  %v3266_v24 = vld [vmem:[#allocation14 + $0xdf0] sm:$0xff] }
 0x4ac   :  { %12667 = vmatpush1.bf16.msra.mxu0 %v14701_v41  ;;  %12504 = vmatprep.subr.bf16.mxu1 %v14724_v27  ;;  %v14845_v41 = vcombine.low %v3111_v28, %v3123_v29  ;;  %v14868_v27 = vcombine.high %v3134_v50, %v3146_v36  ;;  %v3255_v28 = vld [vmem:[#allocation14 + $0xd98] sm:$0xff] }
 0x4ad   :  { %12668 = vmatprep.subr.bf16.mxu0 %v14726_v48  ;;  %v14870_v48 = vcombine.high %v3135_v37, %v3147_v38  ;;  %v3267_v29 = vld [vmem:[#allocation14 + $0xdf8] sm:$0xff] }
 0x4af   :  { %12505 = vmatpush1.bf16.msra.mxu1 %v14723_v56  ;;  %v14867_v56 = vcombine.low %v3134_v50, %v3146_v36  ;;  %v3278_v50 = vld [vmem:[#allocation14 + $0xe50] sm:$0xff] }
 0x4b0   :  { %12669 = vmatpush1.bf16.msra.mxu0 %v14725_v57  ;;  %12506 = vmatprep.subr.bf16.mxu1 %v14748_v59  ;;  %v14869_v57 = vcombine.low %v3135_v37, %v3147_v38  ;;  %v14892_v59 = vcombine.high %v3158_v51, %v3170_v52  ;;  %v3290_v36 = vld [vmem:[#allocation14 + $0xeb0] sm:$0xff]  ;;  %v3279_v37 = vld [vmem:[#allocation14 + $0xe58] sm:$0xff] }
 0x4b1   :  { %12670 = vmatprep.subr.bf16.mxu0 %v14750_v60  ;;  %v14894_v60 = vcombine.high %v3159_v55, %v3171_v44  ;;  %v3291_v38 = vld [vmem:[#allocation14 + $0xeb8] sm:$0xff] }
 0x4b3   :  { %12507 = vmatpush1.bf16.msra.mxu1 %v14747_v5  ;;  %v14891_v5 = vcombine.low %v3158_v51, %v3170_v52  ;;  %v3302_v51 = vld [vmem:[#allocation14 + $0xf10] sm:$0xff] }
 0x4b4   :  { %12671 = vmatpush1.bf16.msra.mxu0 %v14749_v6  ;;  %12508 = vmatprep.subr.bf16.mxu1 %v14772_v7  ;;  %v14893_v6 = vcombine.low %v3159_v55, %v3171_v44  ;;  %v14916_v7 = vcombine.high %v3182_v62, %v3194_v63  ;;  %v3314_v52 = vld [vmem:[#allocation14 + $0xf70] sm:$0xff]  ;;  %v3303_v55 = vld [vmem:[#allocation14 + $0xf18] sm:$0xff] }
 0x4b5   :  { %12672 = vmatprep.subr.bf16.mxu0 %v14774_v9  ;;  %v14918_v9 = vcombine.high %v3183_v1, %v3195_v4  ;;  %v3315_v44 = vld [vmem:[#allocation14 + $0xf78] sm:$0xff] }
 0x4b7   :  { %12509 = vmatpush1.bf16.msra.mxu1 %v14771_v15  ;;  %v14915_v15 = vcombine.low %v3182_v62, %v3194_v63  ;;  %v3326_v62 = vld [vmem:[#allocation14 + $0xfd0] sm:$0xff] }
 0x4b8   :  { %12673 = vmatpush1.bf16.msra.mxu0 %v14773_v10  ;;  %12510 = vmatprep.subr.bf16.mxu1 %v14796_v16  ;;  %v14917_v10 = vcombine.low %v3183_v1, %v3195_v4  ;;  %v14940_v16 = vcombine.high %v3206_v25, %v3218_v12  ;;  %v3338_v63 = vld [vmem:[#allocation14 + $0x1030] sm:$0xff]  ;;  %v3327_v1 = vld [vmem:[#allocation14 + $0xfd8] sm:$0xff] }
 0x4b9   :  { %12674 = vmatprep.subr.bf16.mxu0 %v14798_v17  ;;  %v14942_v17 = vcombine.high %v3207_v2, %v3219_v14  ;;  %v3339_v4 = vld [vmem:[#allocation14 + $0x1038] sm:$0xff]  ;;  %v3350_v25 = vld [vmem:[#allocation14 + $0x1090] sm:$0xff] }
 0x4ba   :  { %v3362_v12 = vld [vmem:[#allocation14 + $0x10f0] sm:$0xff] }
 0x4bb   :  { %12511 = vmatpush1.bf16.msra.mxu1 %v14795_v26  ;;  %v3243_v26 = vld [vmem:[#allocation14 + $0xd38] sm:$0xff] }
 0x4bc   :  { %12675 = vmatpush1.bf16.msra.mxu0 %v14797_v21  ;;  %12512 = vmatprep.subr.bf16.mxu1 %v14820_v22  ;;  %v14941_v21 = vcombine.low %v3207_v2, %v3219_v14  ;;  %v14964_v22 = vcombine.high %v3230_v18, %v3242_v8  ;;  %v14966_v33 = vcombine.high %v3231_v20, %v3243_v26  ;;  %v3351_v2 = vld [vmem:[#allocation14 + $0x1098] sm:$0xff] }
 0x4bd   :  { %12676 = vmatprep.subr.bf16.mxu0 %v14822_v23  ;;  %v3254_v23 = vld [vmem:[#allocation14 + $0xd90] sm:$0xff]  ;;  %v3363_v14 = vld [vmem:[#allocation14 + $0x10f8] sm:$0xff] }
 0x4bf   :  { %12513 = vmatpush1.bf16.msra.mxu1 %v14819_v30  ;;  %v14963_v30 = vcombine.low %v3230_v18, %v3242_v8  ;;  %v3374_v18 = vld [vmem:[#allocation14 + $0x1150] sm:$0xff] }
 0x4c0   :  { %12677 = vmatpush1.bf16.msra.mxu0 %v14821_v31  ;;  %12514 = vmatprep.subr.bf16.mxu1 %v14844_v32  ;;  %v14965_v31 = vcombine.low %v3231_v20, %v3243_v26  ;;  %v14988_v32 = vcombine.high %v3254_v23, %v3266_v24  ;;  %v3386_v8 = vld [vmem:[#allocation14 + $0x11b0] sm:$0xff]  ;;  %v3387_v20 = vld [vmem:[#allocation14 + $0x11b8] sm:$0xff]  ;;  %v15083_v26 = vcombine.low %v3350_v25, %v3362_v12 }
 0x4c1   :  { %12678 = vmatprep.subr.bf16.mxu0 %v14846_v34  ;;  %v14990_v34 = vcombine.high %v3255_v28, %v3267_v29 }
 0x4c3   :  { %12515 = vmatpush1.bf16.msra.mxu1 %v14843_v39  ;;  %v14987_v39 = vcombine.low %v3254_v23, %v3266_v24  ;;  %v3398_v24 = vld [vmem:[#allocation14 + $0x1210] sm:$0xff] }
 0x4c4   :  { %12679 = vmatpush1.bf16.msra.mxu0 %v14845_v41  ;;  %12516 = vmatprep.subr.bf16.mxu1 %v14868_v27  ;;  %v14989_v41 = vcombine.low %v3255_v28, %v3267_v29  ;;  %v15012_v27 = vcombine.high %v3278_v50, %v3290_v36  ;;  %v3399_v28 = vld [vmem:[#allocation14 + $0x1218] sm:$0xff] }
 0x4c5   :  { %12680 = vmatprep.subr.bf16.mxu0 %v14870_v48  ;;  %v15014_v48 = vcombine.high %v3279_v37, %v3291_v38  ;;  %v3411_v29 = vld [vmem:[#allocation14 + $0x1278] sm:$0xff] }
 0x4c7   :  { %12517 = vmatpush1.bf16.msra.mxu1 %v14867_v56  ;;  %v15011_v56 = vcombine.low %v3278_v50, %v3290_v36  ;;  %v3422_v50 = vld [vmem:[#allocation14 + $0x12d0] sm:$0xff] }
 0x4c8   :  { %12681 = vmatpush1.bf16.msra.mxu0 %v14869_v57  ;;  %12518 = vmatprep.subr.bf16.mxu1 %v14892_v59  ;;  %v15013_v57 = vcombine.low %v3279_v37, %v3291_v38  ;;  %v15036_v59 = vcombine.high %v3302_v51, %v3314_v52  ;;  %v3434_v36 = vld [vmem:[#allocation14 + $0x1330] sm:$0xff]  ;;  %v3423_v37 = vld [vmem:[#allocation14 + $0x12d8] sm:$0xff] }
 0x4c9   :  { %12682 = vmatprep.subr.bf16.mxu0 %v14894_v60  ;;  %v15038_v60 = vcombine.high %v3303_v55, %v3315_v44  ;;  %v3435_v38 = vld [vmem:[#allocation14 + $0x1338] sm:$0xff] }
 0x4cb   :  { %12519 = vmatpush1.bf16.msra.mxu1 %v14891_v5  ;;  %v15035_v5 = vcombine.low %v3302_v51, %v3314_v52  ;;  %v3446_v51 = vld [vmem:[#allocation14 + $0x1390] sm:$0xff] }
 0x4cc   :  { %12683 = vmatpush1.bf16.msra.mxu0 %v14893_v6  ;;  %12520 = vmatprep.subr.bf16.mxu1 %v14916_v7  ;;  %v15037_v6 = vcombine.low %v3303_v55, %v3315_v44  ;;  %v15060_v7 = vcombine.high %v3326_v62, %v3338_v63  ;;  %v3458_v52 = vld [vmem:[#allocation14 + $0x13f0] sm:$0xff]  ;;  %v3447_v55 = vld [vmem:[#allocation14 + $0x1398] sm:$0xff] }
 0x4cd   :  { %12684 = vmatprep.subr.bf16.mxu0 %v14918_v9  ;;  %v15062_v9 = vcombine.high %v3327_v1, %v3339_v4  ;;  %v3459_v44 = vld [vmem:[#allocation14 + $0x13f8] sm:$0xff] }
 0x4cf   :  { %12521 = vmatpush1.bf16.msra.mxu1 %v14915_v15  ;;  %v15059_v15 = vcombine.low %v3326_v62, %v3338_v63  ;;  %v3470_v62 = vld [vmem:[#allocation14 + $0x1450] sm:$0xff] }
 0x4d0   :  { %12685 = vmatpush1.bf16.msra.mxu0 %v14917_v10  ;;  %12531 = vmatprep.subr.bf16.mxu1 %v14940_v16  ;;  %v15061_v10 = vcombine.low %v3327_v1, %v3339_v4  ;;  %v15084_v16 = vcombine.high %v3350_v25, %v3362_v12  ;;  %v3482_v63 = vld [vmem:[#allocation14 + $0x14b0] sm:$0xff]  ;;  %v3471_v1 = vld [vmem:[#allocation14 + $0x1458] sm:$0xff] }
 0x4d1   :  { %12695 = vmatprep.subr.bf16.mxu0 %v14942_v17  ;;  %v15086_v17 = vcombine.high %v3351_v2, %v3363_v14  ;;  %v3483_v4 = vld [vmem:[#allocation14 + $0x14b8] sm:$0xff]  ;;  %v3494_v25 = vld [vmem:[#allocation14 + $0x1510] sm:$0xff] }
 0x4d2   :  { %12523 = vmatmul.mubr.bf16.vlgmr.msra.gmra.mrb[16].mxu1 %v17001_v49  ;;  %v3506_v12 = vld [vmem:[#allocation14 + $0x1570] sm:$0xff] }
 0x4d3   :  { %12687 = vmatmul.mubr.bf16.vlgmr.msra.gmra.mrb[20].mxu0 %v17001_v49  ;;  %12532 = vmatpush1.bf16.msra.mxu1 %v14939_v19  ;;  %v3375_v19 = vld [vmem:[#allocation14 + $0x1158] sm:$0xff] }
 0x4d4   :  { %12563 = vmatprep.mubr.bf16.mxu1 %v17005_v58  ;;  %12696 = vmatpush1.bf16.msra.mxu0 %v14941_v21  ;;  %v15085_v21 = vcombine.low %v3351_v2, %v3363_v14  ;;  %v15110_v23 = vcombine.high %v3375_v19, %v3387_v20  ;;  %v3495_v2 = vld [vmem:[#allocation14 + $0x1518] sm:$0xff] }
 0x4d5   :  { %12727 = vmatprep.mubr.bf16.mxu0 %v17005_v58  ;;  %12533 = vmatprep.subr.bf16.mxu1 %v14964_v22  ;;  %v15108_v22 = vcombine.high %v3374_v18, %v3386_v8  ;;  %v3507_v14 = vld [vmem:[#allocation14 + $0x1578] sm:$0xff] }
 0x4d6   :  { %12697 = vmatprep.subr.bf16.mxu0 %v14966_v33  ;;  %v3410_v33 = vld [vmem:[#allocation14 + $0x1270] sm:$0xff] }
 0x4d7   :  { %12534 = vmatpush1.bf16.msra.mxu1 %v14963_v30  ;;  %v15107_v30 = vcombine.low %v3374_v18, %v3386_v8  ;;  %v3518_v18 = vld [vmem:[#allocation14 + $0x15d0] sm:$0xff] }
 0x4d8   :  { %12698 = vmatpush1.bf16.msra.mxu0 %v14965_v31  ;;  %12535 = vmatprep.subr.bf16.mxu1 %v14988_v32  ;;  %v15109_v31 = vcombine.low %v3375_v19, %v3387_v20  ;;  %v15132_v32 = vcombine.high %v3398_v24, %v3410_v33  ;;  %v3530_v8 = vld [vmem:[#allocation14 + $0x1630] sm:$0xff]  ;;  %v3519_v19 = vld [vmem:[#allocation14 + $0x15d8] sm:$0xff] }
 0x4d9   :  { %12699 = vmatprep.subr.bf16.mxu0 %v14990_v34  ;;  %v15134_v34 = vcombine.high %v3399_v28, %v3411_v29  ;;  %v3531_v20 = vld [vmem:[#allocation14 + $0x1638] sm:$0xff] }
 0x4db   :  { %12536 = vmatpush1.bf16.msra.mxu1 %v14987_v39  ;;  %v15131_v39 = vcombine.low %v3398_v24, %v3410_v33  ;;  %v3542_v24 = vld [vmem:[#allocation14 + $0x1690] sm:$0xff] }
 0x4dc   :  { %12700 = vmatpush1.bf16.msra.mxu0 %v14989_v41  ;;  %12537 = vmatprep.subr.bf16.mxu1 %v15012_v27  ;;  %v15133_v41 = vcombine.low %v3399_v28, %v3411_v29  ;;  %v15156_v27 = vcombine.high %v3422_v50, %v3434_v36  ;;  %v3554_v33 = vld [vmem:[#allocation14 + $0x16f0] sm:$0xff]  ;;  %v3543_v28 = vld [vmem:[#allocation14 + $0x1698] sm:$0xff] }
 0x4dd   :  { %12701 = vmatprep.subr.bf16.mxu0 %v15014_v48  ;;  %v15158_v48 = vcombine.high %v3423_v37, %v3435_v38  ;;  %v3555_v29 = vld [vmem:[#allocation14 + $0x16f8] sm:$0xff] }
 0x4df   :  { %12538 = vmatpush1.bf16.msra.mxu1 %v15011_v56  ;;  %v15155_v56 = vcombine.low %v3422_v50, %v3434_v36  ;;  %v3566_v50 = vld [vmem:[#allocation14 + $0x1750] sm:$0xff] }
 0x4e0   :  { %12702 = vmatpush1.bf16.msra.mxu0 %v15013_v57  ;;  %12539 = vmatprep.subr.bf16.mxu1 %v15036_v59  ;;  %v15157_v57 = vcombine.low %v3423_v37, %v3435_v38  ;;  %v15180_v59 = vcombine.high %v3446_v51, %v3458_v52  ;;  %v3578_v36 = vld [vmem:[#allocation14 + $0x17b0] sm:$0xff]  ;;  %v3567_v37 = vld [vmem:[#allocation14 + $0x1758] sm:$0xff] }
 0x4e1   :  { %12703 = vmatprep.subr.bf16.mxu0 %v15038_v60  ;;  %v15182_v60 = vcombine.high %v3447_v55, %v3459_v44  ;;  %v3579_v38 = vld [vmem:[#allocation14 + $0x17b8] sm:$0xff] }
 0x4e3   :  { %12540 = vmatpush1.bf16.msra.mxu1 %v15035_v5  ;;  %v15179_v5 = vcombine.low %v3446_v51, %v3458_v52  ;;  %v3590_v51 = vld [vmem:[#allocation14 + $0x1810] sm:$0xff] }
 0x4e4   :  { %12704 = vmatpush1.bf16.msra.mxu0 %v15037_v6  ;;  %12541 = vmatprep.subr.bf16.mxu1 %v15060_v7  ;;  %v15181_v6 = vcombine.low %v3447_v55, %v3459_v44  ;;  %v15204_v7 = vcombine.high %v3470_v62, %v3482_v63  ;;  %v3602_v52 = vld [vmem:[#allocation14 + $0x1870] sm:$0xff]  ;;  %v3591_v55 = vld [vmem:[#allocation14 + $0x1818] sm:$0xff] }
 0x4e5   :  { %12705 = vmatprep.subr.bf16.mxu0 %v15062_v9  ;;  %v15206_v9 = vcombine.high %v3471_v1, %v3483_v4  ;;  %v3603_v44 = vld [vmem:[#allocation14 + $0x1878] sm:$0xff] }
 0x4e7   :  { %12542 = vmatpush1.bf16.msra.mxu1 %v15059_v15  ;;  %v15203_v15 = vcombine.low %v3470_v62, %v3482_v63  ;;  %v3614_v62 = vld [vmem:[#allocation14 + $0x18d0] sm:$0xff] }
 0x4e8   :  { %12706 = vmatpush1.bf16.msra.mxu0 %v15061_v10  ;;  %12543 = vmatprep.subr.bf16.mxu1 %v15084_v16  ;;  %v15205_v10 = vcombine.low %v3471_v1, %v3483_v4  ;;  %v15228_v16 = vcombine.high %v3494_v25, %v3506_v12  ;;  %v3626_v63 = vld [vmem:[#allocation14 + $0x1930] sm:$0xff]  ;;  %v15323_v1 = vcombine.low %v3590_v51, %v3602_v52  ;;  %v3615_v4 = vld [vmem:[#allocation14 + $0x18d8] sm:$0xff] }
 0x4e9   :  { %12707 = vmatprep.subr.bf16.mxu0 %v15086_v17  ;;  %v15230_v17 = vcombine.high %v3495_v2, %v3507_v14 }
 0x4eb   :  { %12544 = vmatpush1.bf16.msra.mxu1 %v15083_v26  ;;  %v15227_v26 = vcombine.low %v3494_v25, %v3506_v12  ;;  %v3650_v25 = vld [vmem:[#allocation14 + $0x19f0] sm:$0xff] }
 0x4ec   :  { %12708 = vmatpush1.bf16.msra.mxu0 %v15085_v21  ;;  %12545 = vmatprep.subr.bf16.mxu1 %v15108_v22  ;;  %v15229_v21 = vcombine.low %v3495_v2, %v3507_v14  ;;  %v15252_v22 = vcombine.high %v3518_v18, %v3530_v8  ;;  %v3639_v2 = vld [vmem:[#allocation14 + $0x1998] sm:$0xff] }
 0x4ed   :  { %12709 = vmatprep.subr.bf16.mxu0 %v15110_v23  ;;  %v15254_v23 = vcombine.high %v3519_v19, %v3531_v20  ;;  %v3651_v14 = vld [vmem:[#allocation14 + $0x19f8] sm:$0xff] }
 0x4ef   :  { %12546 = vmatpush1.bf16.msra.mxu1 %v15107_v30  ;;  %v15251_v30 = vcombine.low %v3518_v18, %v3530_v8  ;;  %v3662_v18 = vld [vmem:[#allocation14 + $0x1a50] sm:$0xff] }
 0x4f0   :  { %12710 = vmatpush1.bf16.msra.mxu0 %v15109_v31  ;;  %12547 = vmatprep.subr.bf16.mxu1 %v15132_v32  ;;  %v15253_v31 = vcombine.low %v3519_v19, %v3531_v20  ;;  %v15276_v32 = vcombine.high %v3542_v24, %v3554_v33  ;;  %v3674_v8 = vld [vmem:[#allocation14 + $0x1ab0] sm:$0xff]  ;;  %v3663_v19 = vld [vmem:[#allocation14 + $0x1a58] sm:$0xff] }
 0x4f1   :  { %12711 = vmatprep.subr.bf16.mxu0 %v15134_v34  ;;  %v15278_v34 = vcombine.high %v3543_v28, %v3555_v29  ;;  %v3675_v20 = vld [vmem:[#allocation14 + $0x1ab8] sm:$0xff] }
 0x4f3   :  { %12548 = vmatpush1.bf16.msra.mxu1 %v15131_v39  ;;  %v15275_v39 = vcombine.low %v3542_v24, %v3554_v33  ;;  %v3686_v24 = vld [vmem:[#allocation14 + $0x1b10] sm:$0xff] }
 0x4f4   :  { %12712 = vmatpush1.bf16.msra.mxu0 %v15133_v41  ;;  %12549 = vmatprep.subr.bf16.mxu1 %v15156_v27  ;;  %v15277_v41 = vcombine.low %v3543_v28, %v3555_v29  ;;  %v15300_v27 = vcombine.high %v3566_v50, %v3578_v36  ;;  %v3698_v33 = vld [vmem:[#allocation14 + $0x1b70] sm:$0xff]  ;;  %v3687_v28 = vld [vmem:[#allocation14 + $0x1b18] sm:$0xff] }
 0x4f5   :  { %12713 = vmatprep.subr.bf16.mxu0 %v15158_v48  ;;  %v15302_v48 = vcombine.high %v3567_v37, %v3579_v38  ;;  %v3699_v29 = vld [vmem:[#allocation14 + $0x1b78] sm:$0xff] }
 0x4f7   :  { %12550 = vmatpush1.bf16.msra.mxu1 %v15155_v56  ;;  %v15299_v56 = vcombine.low %v3566_v50, %v3578_v36  ;;  %v3710_v50 = vld [vmem:[#allocation14 + $0x1bd0] sm:$0xff] }
 0x4f8   :  { %12714 = vmatpush1.bf16.msra.mxu0 %v15157_v57  ;;  %12551 = vmatprep.subr.bf16.mxu1 %v15180_v59  ;;  %v15301_v57 = vcombine.low %v3567_v37, %v3579_v38  ;;  %v15324_v59 = vcombine.high %v3590_v51, %v3602_v52  ;;  %v3722_v36 = vld [vmem:[#allocation14 + $0x1c30] sm:$0xff]  ;;  %v3711_v37 = vld [vmem:[#allocation14 + $0x1bd8] sm:$0xff] }
 0x4f9   :  { %12715 = vmatprep.subr.bf16.mxu0 %v15182_v60  ;;  %v15326_v60 = vcombine.high %v3591_v55, %v3603_v44  ;;  %v3723_v38 = vld [vmem:[#allocation14 + $0x1c38] sm:$0xff]  ;;  %v3734_v51 = vld [vmem:[#allocation14 + $0x1c90] sm:$0xff] }
 0x4fa   :  { %v3746_v52 = vld [vmem:[#allocation14 + $0x1cf0] sm:$0xff] }
 0x4fb   :  { %12552 = vmatpush1.bf16.msra.mxu1 %v15179_v5  ;;  %v3627_v5 = vld [vmem:[#allocation14 + $0x1938] sm:$0xff] }
 0x4fc   :  { %12716 = vmatpush1.bf16.msra.mxu0 %v15181_v6  ;;  %12553 = vmatprep.subr.bf16.mxu1 %v15204_v7  ;;  %v15325_v6 = vcombine.low %v3591_v55, %v3603_v44  ;;  %v15348_v7 = vcombine.high %v3614_v62, %v3626_v63  ;;  %v15350_v12 = vcombine.high %v3615_v4, %v3627_v5  ;;  %v3735_v55 = vld [vmem:[#allocation14 + $0x1c98] sm:$0xff] }
 0x4fd   :  { %12717 = vmatprep.subr.bf16.mxu0 %v15206_v9  ;;  %v3638_v9 = vld [vmem:[#allocation14 + $0x1990] sm:$0xff]  ;;  %v3747_v44 = vld [vmem:[#allocation14 + $0x1cf8] sm:$0xff] }
 0x4ff   :  { %12554 = vmatpush1.bf16.msra.mxu1 %v15203_v15  ;;  %v15347_v15 = vcombine.low %v3614_v62, %v3626_v63  ;;  %v3758_v62 = vld [vmem:[#allocation14 + $0x1d50] sm:$0xff] }
 0x500   :  { %12718 = vmatpush1.bf16.msra.mxu0 %v15205_v10  ;;  %12555 = vmatprep.subr.bf16.mxu1 %v15228_v16  ;;  %v15349_v10 = vcombine.low %v3615_v4, %v3627_v5  ;;  %v15372_v16 = vcombine.high %v3638_v9, %v3650_v25  ;;  %v3770_v63 = vld [vmem:[#allocation14 + $0x1db0] sm:$0xff]  ;;  %v3771_v4 = vld [vmem:[#allocation14 + $0x1db8] sm:$0xff]  ;;  %v15467_v5 = vcombine.low %v3734_v51, %v3746_v52 }
 0x501   :  { %12719 = vmatprep.subr.bf16.mxu0 %v15230_v17  ;;  %v15374_v17 = vcombine.high %v3639_v2, %v3651_v14 }
 0x503   :  { %12556 = vmatpush1.bf16.msra.mxu1 %v15227_v26  ;;  %v15371_v26 = vcombine.low %v3638_v9, %v3650_v25  ;;  %v3782_v25 = vld [vmem:[#allocation14 + $0x1e10] sm:$0xff] }
 0x504   :  { %12720 = vmatpush1.bf16.msra.mxu0 %v15229_v21  ;;  %12557 = vmatprep.subr.bf16.mxu1 %v15252_v22  ;;  %v15373_v21 = vcombine.low %v3639_v2, %v3651_v14  ;;  %v15396_v22 = vcombine.high %v3662_v18, %v3674_v8  ;;  %v3783_v2 = vld [vmem:[#allocation14 + $0x1e18] sm:$0xff] }
 0x505   :  { %12721 = vmatprep.subr.bf16.mxu0 %v15254_v23  ;;  %v15398_v23 = vcombine.high %v3663_v19, %v3675_v20  ;;  %v3795_v14 = vld [vmem:[#allocation14 + $0x1e78] sm:$0xff] }
 0x507   :  { %12558 = vmatpush1.bf16.msra.mxu1 %v15251_v30  ;;  %v15395_v30 = vcombine.low %v3662_v18, %v3674_v8  ;;  %v3806_v18 = vld [vmem:[#allocation14 + $0x1ed0] sm:$0xff] }
 0x508   :  { %12722 = vmatpush1.bf16.msra.mxu0 %v15253_v31  ;;  %12559 = vmatprep.subr.bf16.mxu1 %v15276_v32  ;;  %v15397_v31 = vcombine.low %v3663_v19, %v3675_v20  ;;  %v15420_v32 = vcombine.high %v3686_v24, %v3698_v33  ;;  %v3818_v8 = vld [vmem:[#allocation14 + $0x1f30] sm:$0xff]  ;;  %v3807_v19 = vld [vmem:[#allocation14 + $0x1ed8] sm:$0xff] }
 0x509   :  { %12723 = vmatprep.subr.bf16.mxu0 %v15278_v34  ;;  %v15422_v34 = vcombine.high %v3687_v28, %v3699_v29  ;;  %v3819_v20 = vld [vmem:[#allocation14 + $0x1f38] sm:$0xff] }
 0x50b   :  { %12560 = vmatpush1.bf16.msra.mxu1 %v15275_v39  ;;  %v15419_v39 = vcombine.low %v3686_v24, %v3698_v33  ;;  %v3830_v24 = vld [vmem:[#allocation14 + $0x1f90] sm:$0xff] }
 0x50c   :  { %12724 = vmatpush1.bf16.msra.mxu0 %v15277_v41  ;;  %12561 = vmatprep.subr.bf16.mxu1 %v15300_v27  ;;  %v15421_v41 = vcombine.low %v3687_v28, %v3699_v29  ;;  %v15444_v27 = vcombine.high %v3710_v50, %v3722_v36  ;;  %v3842_v33 = vld [vmem:[#allocation14 + $0x1ff0] sm:$0xff]  ;;  %v3831_v28 = vld [vmem:[#allocation14 + $0x1f98] sm:$0xff] }
 0x50d   :  { %12725 = vmatprep.subr.bf16.mxu0 %v15302_v48  ;;  %v15446_v48 = vcombine.high %v3711_v37, %v3723_v38  ;;  %v3843_v29 = vld [vmem:[#allocation14 + $0x1ff8] sm:$0xff] }
 0x50f   :  { %12562 = vmatpush1.bf16.msra.mxu1 %v15299_v56  ;;  %v15443_v56 = vcombine.low %v3710_v50, %v3722_v36  ;;  %v3854_v50 = vld [vmem:[#allocation14 + $0x2050] sm:$0xff] }
 0x510   :  { %12726 = vmatpush1.bf16.msra.mxu0 %v15301_v57  ;;  %12572 = vmatprep.subr.bf16.mxu1 %v15324_v59  ;;  %v15445_v57 = vcombine.low %v3711_v37, %v3723_v38  ;;  %v15468_v59 = vcombine.high %v3734_v51, %v3746_v52  ;;  %v3866_v36 = vld [vmem:[#allocation14 + $0x20b0] sm:$0xff]  ;;  %v3855_v37 = vld [vmem:[#allocation14 + $0x2058] sm:$0xff] }
 0x511   :  { %12736 = vmatprep.subr.bf16.mxu0 %v15326_v60  ;;  %v15470_v60 = vcombine.high %v3735_v55, %v3747_v44  ;;  %v3867_v38 = vld [vmem:[#allocation14 + $0x20b8] sm:$0xff]  ;;  %v3878_v51 = vld [vmem:[#allocation14 + $0x2110] sm:$0xff] }
 0x512   :  { %12564 = vmatmul.mubr.bf16.vlgmr.msra.gmra.mrb[16].mxu1 %v17014_v13  ;;  %v3890_v52 = vld [vmem:[#allocation14 + $0x2170] sm:$0xff] }
 0x513   :  { %12728 = vmatmul.mubr.bf16.vlgmr.msra.gmra.mrb[20].mxu0 %v17014_v13  ;;  %12573 = vmatpush1.bf16.msra.mxu1 %v15323_v1  ;;  %v3759_v1 = vld [vmem:[#allocation14 + $0x1d58] sm:$0xff] }
 0x514   :  { %12604 = vmatprep.mubr.bf16.mxu1 %v17035_v61  ;;  %12737 = vmatpush1.bf16.msra.mxu0 %v15325_v6  ;;  %v15469_v6 = vcombine.low %v3735_v55, %v3747_v44  ;;  %v15494_v9 = vcombine.high %v3759_v1, %v3771_v4  ;;  %v3879_v55 = vld [vmem:[#allocation14 + $0x2118] sm:$0xff] }
 0x515   :  { %12768 = vmatprep.mubr.bf16.mxu0 %v17035_v61  ;;  %12574 = vmatprep.subr.bf16.mxu1 %v15348_v7  ;;  %v15492_v7 = vcombine.high %v3758_v62, %v3770_v63  ;;  %v3891_v44 = vld [vmem:[#allocation14 + $0x2178] sm:$0xff] }
 0x516   :  { %12738 = vmatprep.subr.bf16.mxu0 %v15350_v12  ;;  %v3794_v12 = vld [vmem:[#allocation14 + $0x1e70] sm:$0xff] }
 0x517   :  { %12575 = vmatpush1.bf16.msra.mxu1 %v15347_v15  ;;  %v15491_v15 = vcombine.low %v3758_v62, %v3770_v63  ;;  %v3902_v62 = vld [vmem:[#allocation14 + $0x21d0] sm:$0xff] }
 0x518   :  { %12739 = vmatpush1.bf16.msra.mxu0 %v15349_v10  ;;  %12576 = vmatprep.subr.bf16.mxu1 %v15372_v16  ;;  %v15493_v10 = vcombine.low %v3759_v1, %v3771_v4  ;;  %v15516_v16 = vcombine.high %v3782_v25, %v3794_v12  ;;  %v3914_v63 = vld [vmem:[#allocation14 + $0x2230] sm:$0xff]  ;;  %v3903_v1 = vld [vmem:[#allocation14 + $0x21d8] sm:$0xff] }
 0x519   :  { %12740 = vmatprep.subr.bf16.mxu0 %v15374_v17  ;;  %v15518_v17 = vcombine.high %v3783_v2, %v3795_v14  ;;  %v3915_v4 = vld [vmem:[#allocation14 + $0x2238] sm:$0xff] }
 0x51b   :  { %12577 = vmatpush1.bf16.msra.mxu1 %v15371_v26  ;;  %v15515_v26 = vcombine.low %v3782_v25, %v3794_v12  ;;  %v3926_v25 = vld [vmem:[#allocation14 + $0x2290] sm:$0xff] }
 0x51c   :  { %12741 = vmatpush1.bf16.msra.mxu0 %v15373_v21  ;;  %12578 = vmatprep.subr.bf16.mxu1 %v15396_v22  ;;  %v15517_v21 = vcombine.low %v3783_v2, %v3795_v14  ;;  %v15540_v22 = vcombine.high %v3806_v18, %v3818_v8  ;;  %v3938_v12 = vld [vmem:[#allocation14 + $0x22f0] sm:$0xff]  ;;  %v3927_v2 = vld [vmem:[#allocation14 + $0x2298] sm:$0xff] }
 0x51d   :  { %12742 = vmatprep.subr.bf16.mxu0 %v15398_v23  ;;  %v15542_v23 = vcombine.high %v3807_v19, %v3819_v20  ;;  %v3939_v14 = vld [vmem:[#allocation14 + $0x22f8] sm:$0xff] }
 0x51f   :  { %12579 = vmatpush1.bf16.msra.mxu1 %v15395_v30  ;;  %v15539_v30 = vcombine.low %v3806_v18, %v3818_v8  ;;  %v3950_v18 = vld [vmem:[#allocation14 + $0x2350] sm:$0xff] }
 0x520   :  { %12743 = vmatpush1.bf16.msra.mxu0 %v15397_v31  ;;  %12580 = vmatprep.subr.bf16.mxu1 %v15420_v32  ;;  %v15541_v31 = vcombine.low %v3807_v19, %v3819_v20  ;;  %v15564_v32 = vcombine.high %v3830_v24, %v3842_v33  ;;  %v3962_v8 = vld [vmem:[#allocation14 + $0x23b0] sm:$0xff]  ;;  %v3951_v19 = vld [vmem:[#allocation14 + $0x2358] sm:$0xff] }
 0x521   :  { %12744 = vmatprep.subr.bf16.mxu0 %v15422_v34  ;;  %v15566_v34 = vcombine.high %v3831_v28, %v3843_v29  ;;  %v3963_v20 = vld [vmem:[#allocation14 + $0x23b8] sm:$0xff] }
 0x523   :  { %12581 = vmatpush1.bf16.msra.mxu1 %v15419_v39  ;;  %v15563_v39 = vcombine.low %v3830_v24, %v3842_v33  ;;  %v3974_v24 = vld [vmem:[#allocation14 + $0x2410] sm:$0xff] }
 0x524   :  { %12745 = vmatpush1.bf16.msra.mxu0 %v15421_v41  ;;  %12582 = vmatprep.subr.bf16.mxu1 %v15444_v27  ;;  %v15565_v41 = vcombine.low %v3831_v28, %v3843_v29  ;;  %v15588_v27 = vcombine.high %v3854_v50, %v3866_v36  ;;  %v3986_v33 = vld [vmem:[#allocation14 + $0x2470] sm:$0xff]  ;;  %v3975_v28 = vld [vmem:[#allocation14 + $0x2418] sm:$0xff] }
 0x525   :  { %12746 = vmatprep.subr.bf16.mxu0 %v15446_v48  ;;  %v15590_v48 = vcombine.high %v3855_v37, %v3867_v38  ;;  %v3987_v29 = vld [vmem:[#allocation14 + $0x2478] sm:$0xff] }
 0x527   :  { %12583 = vmatpush1.bf16.msra.mxu1 %v15443_v56  ;;  %v15587_v56 = vcombine.low %v3854_v50, %v3866_v36  ;;  %v3998_v50 = vld [vmem:[#allocation14 + $0x24d0] sm:$0xff] }
 0x528   :  { %12747 = vmatpush1.bf16.msra.mxu0 %v15445_v57  ;;  %12584 = vmatprep.subr.bf16.mxu1 %v15468_v59  ;;  %v15589_v57 = vcombine.low %v3855_v37, %v3867_v38  ;;  %v15612_v59 = vcombine.high %v3878_v51, %v3890_v52  ;;  %v4010_v36 = vld [vmem:[#allocation14 + $0x2530] sm:$0xff]  ;;  %v15707_v37 = vcombine.low %v3974_v24, %v3986_v33  ;;  %v3999_v38 = vld [vmem:[#allocation14 + $0x24d8] sm:$0xff] }
 0x529   :  { %12748 = vmatprep.subr.bf16.mxu0 %v15470_v60  ;;  %v15614_v60 = vcombine.high %v3879_v55, %v3891_v44 }
 0x52b   :  { %12585 = vmatpush1.bf16.msra.mxu1 %v15467_v5  ;;  %v15611_v5 = vcombine.low %v3878_v51, %v3890_v52  ;;  %v4034_v51 = vld [vmem:[#allocation14 + $0x25f0] sm:$0xff] }
 0x52c   :  { %12749 = vmatpush1.bf16.msra.mxu0 %v15469_v6  ;;  %12586 = vmatprep.subr.bf16.mxu1 %v15492_v7  ;;  %v15613_v6 = vcombine.low %v3879_v55, %v3891_v44  ;;  %v15636_v7 = vcombine.high %v3902_v62, %v3914_v63  ;;  %v4023_v55 = vld [vmem:[#allocation14 + $0x2598] sm:$0xff] }
 0x52d   :  { %12750 = vmatprep.subr.bf16.mxu0 %v15494_v9  ;;  %v15638_v9 = vcombine.high %v3903_v1, %v3915_v4  ;;  %v4035_v44 = vld [vmem:[#allocation14 + $0x25f8] sm:$0xff] }
 0x52f   :  { %12587 = vmatpush1.bf16.msra.mxu1 %v15491_v15  ;;  %v15635_v15 = vcombine.low %v3902_v62, %v3914_v63  ;;  %v4046_v62 = vld [vmem:[#allocation14 + $0x2650] sm:$0xff] }
 0x530   :  { %12751 = vmatpush1.bf16.msra.mxu0 %v15493_v10  ;;  %12588 = vmatprep.subr.bf16.mxu1 %v15516_v16  ;;  %v15637_v10 = vcombine.low %v3903_v1, %v3915_v4  ;;  %v15660_v16 = vcombine.high %v3926_v25, %v3938_v12  ;;  %v4058_v63 = vld [vmem:[#allocation14 + $0x26b0] sm:$0xff]  ;;  %v4047_v1 = vld [vmem:[#allocation14 + $0x2658] sm:$0xff] }
 0x531   :  { %12752 = vmatprep.subr.bf16.mxu0 %v15518_v17  ;;  %v15662_v17 = vcombine.high %v3927_v2, %v3939_v14  ;;  %v4059_v4 = vld [vmem:[#allocation14 + $0x26b8] sm:$0xff] }
 0x533   :  { %12589 = vmatpush1.bf16.msra.mxu1 %v15515_v26  ;;  %v15659_v26 = vcombine.low %v3926_v25, %v3938_v12  ;;  %v4070_v25 = vld [vmem:[#allocation14 + $0x2710] sm:$0xff] }
 0x534   :  { %12753 = vmatpush1.bf16.msra.mxu0 %v15517_v21  ;;  %12590 = vmatprep.subr.bf16.mxu1 %v15540_v22  ;;  %v15661_v21 = vcombine.low %v3927_v2, %v3939_v14  ;;  %v15684_v22 = vcombine.high %v3950_v18, %v3962_v8  ;;  %v4082_v12 = vld [vmem:[#allocation14 + $0x2770] sm:$0xff]  ;;  %v4071_v2 = vld [vmem:[#allocation14 + $0x2718] sm:$0xff] }
 0x535   :  { %12754 = vmatprep.subr.bf16.mxu0 %v15542_v23  ;;  %v15686_v23 = vcombine.high %v3951_v19, %v3963_v20  ;;  %v4083_v14 = vld [vmem:[#allocation14 + $0x2778] sm:$0xff] }
 0x537   :  { %12591 = vmatpush1.bf16.msra.mxu1 %v15539_v30  ;;  %v15683_v30 = vcombine.low %v3950_v18, %v3962_v8  ;;  %v4094_v18 = vld [vmem:[#allocation14 + $0x27d0] sm:$0xff] }
 0x538   :  { %12755 = vmatpush1.bf16.msra.mxu0 %v15541_v31  ;;  %12592 = vmatprep.subr.bf16.mxu1 %v15564_v32  ;;  %v15685_v31 = vcombine.low %v3951_v19, %v3963_v20  ;;  %v15708_v32 = vcombine.high %v3974_v24, %v3986_v33  ;;  %v4106_v8 = vld [vmem:[#allocation14 + $0x2830] sm:$0xff]  ;;  %v4095_v19 = vld [vmem:[#allocation14 + $0x27d8] sm:$0xff] }
 0x539   :  { %12756 = vmatprep.subr.bf16.mxu0 %v15566_v34  ;;  %v15710_v34 = vcombine.high %v3975_v28, %v3987_v29  ;;  %v4107_v20 = vld [vmem:[#allocation14 + $0x2838] sm:$0xff]  ;;  %v4118_v33 = vld [vmem:[#allocation14 + $0x2890] sm:$0xff] }
 0x53a   :  { %v15830_v24 = vcombine.high %v4095_v19, %v4107_v20 }
 0x53b   :  { %12593 = vmatpush1.bf16.msra.mxu1 %v15563_v39  ;;  %v4011_v39 = vld [vmem:[#allocation14 + $0x2538] sm:$0xff] }
 0x53c   :  { %12757 = vmatpush1.bf16.msra.mxu0 %v15565_v41  ;;  %12594 = vmatprep.subr.bf16.mxu1 %v15588_v27  ;;  %v15709_v41 = vcombine.low %v3975_v28, %v3987_v29  ;;  %v15732_v27 = vcombine.high %v3998_v50, %v4010_v36  ;;  %v15734_v52 = vcombine.high %v3999_v38, %v4011_v39  ;;  %v4130_v28 = vld [vmem:[#allocation14 + $0x28f0] sm:$0xff] }
 0x53d   :  { %12758 = vmatprep.subr.bf16.mxu0 %v15590_v48  ;;  %v4022_v48 = vld [vmem:[#allocation14 + $0x2590] sm:$0xff] }
 0x53f   :  { %12595 = vmatpush1.bf16.msra.mxu1 %v15587_v56  ;;  %v15731_v56 = vcombine.low %v3998_v50, %v4010_v36  ;;  %v15827_v36 = vcombine.low %v4094_v18, %v4106_v8 }
 0x540   :  { %12759 = vmatpush1.bf16.msra.mxu0 %v15589_v57  ;;  %12596 = vmatprep.subr.bf16.mxu1 %v15612_v59  ;;  %v15733_v57 = vcombine.low %v3999_v38, %v4011_v39  ;;  %v15756_v59 = vcombine.high %v4022_v48, %v4034_v51  ;;  %v15852_v38 = vcombine.high %v4118_v33, %v4130_v28 }
 0x541   :  { %12760 = vmatprep.subr.bf16.mxu0 %v15614_v60  ;;  %v15758_v60 = vcombine.high %v4023_v55, %v4035_v44 }
 0x543   :  { %12597 = vmatpush1.bf16.msra.mxu1 %v15611_v5  ;;  %v15755_v5 = vcombine.low %v4022_v48, %v4034_v51  ;;  %v4142_v48 = vld [vmem:[#allocation14 + $0x2950] sm:$0xff] }
 0x544   :  { %12761 = vmatpush1.bf16.msra.mxu0 %v15613_v6  ;;  %12598 = vmatprep.subr.bf16.mxu1 %v15636_v7  ;;  %v15757_v6 = vcombine.low %v4023_v55, %v4035_v44  ;;  %v15780_v7 = vcombine.high %v4046_v62, %v4058_v63  ;;  %v4154_v51 = vld [vmem:[#allocation14 + $0x29b0] sm:$0xff] }
 0x545   :  { %12762 = vmatprep.subr.bf16.mxu0 %v15638_v9  ;;  %v15782_v9 = vcombine.high %v4047_v1, %v4059_v4 }
 0x547   :  { %12599 = vmatpush1.bf16.msra.mxu1 %v15635_v15  ;;  %v15779_v15 = vcombine.low %v4046_v62, %v4058_v63 }
 0x548   :  { %12763 = vmatpush1.bf16.msra.mxu0 %v15637_v10  ;;  %12600 = vmatprep.subr.bf16.mxu1 %v15660_v16  ;;  %v15781_v10 = vcombine.low %v4047_v1, %v4059_v4  ;;  %v15804_v16 = vcombine.high %v4070_v25, %v4082_v12  ;;  %v15851_v4 = vcombine.low %v4118_v33, %v4130_v28  ;;  %v4214_v33 = vld [vmem:[#allocation14 + $0x2b90] sm:$0xff] }
 0x549   :  { %12764 = vmatprep.subr.bf16.mxu0 %v15662_v17  ;;  %v15806_v17 = vcombine.high %v4071_v2, %v4083_v14  ;;  %v4226_v28 = vld [vmem:[#allocation14 + $0x2bf0] sm:$0xff] }
 0x54b   :  { %12601 = vmatpush1.bf16.msra.mxu1 %v15659_v26  ;;  %v15803_v26 = vcombine.low %v4070_v25, %v4082_v12  ;;  %v4166_v12 = vld [vmem:[#allocation14 + $0x2a10] sm:$0xff] }
 0x54c   :  { %12765 = vmatpush1.bf16.msra.mxu0 %v15661_v21  ;;  %12602 = vmatprep.subr.bf16.mxu1 %v15684_v22  ;;  %v4356_v21 = vld [vmem:[#allocation16] sm:$0xff]  ;;  %v15805_v22 = vcombine.low %v4071_v2, %v4083_v14  ;;  %v4178_v2 = vld [vmem:[#allocation14 + $0x2a70] sm:$0xff]  ;;  %v4167_v14 = vld [vmem:[#allocation14 + $0x2a18] sm:$0xff] }
 0x54d   :  { %12766 = vmatprep.subr.bf16.mxu0 %v15686_v23  ;;  %v15828_v23 = vcombine.high %v4094_v18, %v4106_v8  ;;  %v4365_v29 = vrot.slane %v4356_v21, %v16939_v45  ;;  %v4377_v50 = vrot.slane %v4356_v21, %v16949_v3  ;;  %v4190_v8 = vld [vmem:[#allocation14 + $0x2ad0] sm:$0xff] }
 0x54f   :  { %12603 = vmatpush1.bf16.msra.mxu1 %v15683_v30  ;;  %v4373_v30 = vrot.slane %v4356_v21, %v16972_v54 }
 0x550   :  { %12767 = vmatpush1.bf16.msra.mxu0 %v15685_v31  ;;  %12613 = vmatprep.subr.bf16.mxu1 %v15708_v32  ;;  %v4119_v31 = vld [vmem:[#allocation14 + $0x2898] sm:$0xff] }
 0x551   :  { %12777 = vmatprep.subr.bf16.mxu0 %v15710_v34  ;;  %v4131_v32 = vld [vmem:[#allocation14 + $0x28f8] sm:$0xff]  ;;  %v4369_v34 = vrot.slane %v4356_v21, %v16942_v47  ;;  %v15899_v21 = vcombine.low %v4166_v12, %v4178_v2 }
 0x552   :  { %12605 = vmatmul.mubr.bf16.vlgmr.msra.gmra.mrb[16].mxu1 %v17037_v0 }
 0x553   :  { %12769 = vmatmul.mubr.bf16.vlgmr.msra.gmra.mrb[20].mxu0 %v17037_v0  ;;  %12614 = vmatpush1.bf16.msra.mxu1 %v15707_v37  ;;  %v15829_v37 = vcombine.low %v4095_v19, %v4107_v20  ;;  %v4202_v19 = vld [vmem:[#allocation14 + $0x2b30] sm:$0xff]  ;;  %v4191_v20 = vld [vmem:[#allocation14 + $0x2ad8] sm:$0xff] }
 0x554   :  { %12645 = vmatprep.mubr.bf16.mxu1 %v17041_v11  ;;  %12778 = vmatpush1.bf16.msra.mxu0 %v15709_v41 }
 0x555   :  { %12809 = vmatprep.mubr.bf16.mxu0 %v17041_v11  ;;  %12615 = vmatprep.subr.bf16.mxu1 %v15732_v27  ;;  %v15854_v27 = vcombine.high %v4119_v31, %v4131_v32 }
 0x556   :  { %12779 = vmatprep.subr.bf16.mxu0 %v15734_v52 }
 0x557   :  { %12616 = vmatpush1.bf16.msra.mxu1 %v15731_v56 }
 0x558   :  { %12780 = vmatpush1.bf16.msra.mxu0 %v15733_v57  ;;  %12617 = vmatprep.subr.bf16.mxu1 %v15756_v59  ;;  %v4143_v57 = vld [vmem:[#allocation14 + $0x2958] sm:$0xff] }
 0x559   :  { %12781 = vmatprep.subr.bf16.mxu0 %v15758_v60  ;;  %v4155_v59 = vld [vmem:[#allocation14 + $0x29b8] sm:$0xff] }
 0x55a   :  { %v15878_v25 = vcombine.high %v4143_v57, %v4155_v59 }
 0x55b   :  { %12618 = vmatpush1.bf16.msra.mxu1 %v15755_v5 }
 0x55c   :  { %12782 = vmatpush1.bf16.msra.mxu0 %v15757_v6  ;;  %12619 = vmatprep.subr.bf16.mxu1 %v15780_v7  ;;  %v15853_v7 = vcombine.low %v4119_v31, %v4131_v32  ;;  %v4227_v31 = vld [vmem:[#allocation14 + $0x2bf8] sm:$0xff] }
 0x55d   :  { %12783 = vmatprep.subr.bf16.mxu0 %v15782_v9  ;;  %v15876_v9 = vcombine.high %v4142_v48, %v4154_v51 }
 0x55f   :  { %12620 = vmatpush1.bf16.msra.mxu1 %v15779_v15  ;;  %v4179_v15 = vld [vmem:[#allocation14 + $0x2a78] sm:$0xff] }
 0x560   :  { %12784 = vmatpush1.bf16.msra.mxu0 %v15781_v10  ;;  %12621 = vmatprep.subr.bf16.mxu1 %v15804_v16  ;;  %v15875_v10 = vcombine.low %v4142_v48, %v4154_v51  ;;  %v15877_v16 = vcombine.low %v4143_v57, %v4155_v59  ;;  %v15902_v18 = vcombine.high %v4167_v14, %v4179_v15  ;;  %v4239_v48 = vld [vmem:[#allocation14 + $0x2c58] sm:$0xff]  ;;  %v4262_v57 = vld [vmem:[#allocation14 + $0x2d10] sm:$0xff] }
 0x561   :  { %12785 = vmatprep.subr.bf16.mxu0 %v15806_v17  ;;  %v15900_v17 = vcombine.high %v4166_v12, %v4178_v2  ;;  %v4251_v51 = vld [vmem:[#allocation14 + $0x2cb8] sm:$0xff]  ;;  %v4274_v59 = vld [vmem:[#allocation14 + $0x2d70] sm:$0xff] }
 0x562   :  { %v15995_v12 = vcombine.low %v4262_v57, %v4274_v59 }
 0x563   :  { %12622 = vmatpush1.bf16.msra.mxu1 %v15803_v26  ;;  %v4203_v26 = vld [vmem:[#allocation14 + $0x2b38] sm:$0xff] }
 0x564   :  { %12786 = vmatpush1.bf16.msra.mxu0 %v15805_v22  ;;  %12623 = vmatprep.subr.bf16.mxu1 %v15828_v23  ;;  %v15901_v22 = vcombine.low %v4167_v14, %v4179_v15  ;;  %v15924_v23 = vcombine.high %v4190_v8, %v4202_v19 }
 0x565   :  { %v12319_v39 = vpop.f32.mrb[12].mxu1  ;;  %v12483_v41 = vpop.f32.mrb[16].mxu0  ;;  %12787 = vmatprep.subr.bf16.mxu0 %v15830_v24  ;;  %v15926_v24 = vcombine.high %v4191_v20, %v4203_v26 }
 0x566   :  { %v16095_v52 = vadd.f32 %v12319_v39, %v4365_v29  ;;  %v16097_v55 = vadd.f32 %v12483_v41, %v4373_v30  ;;  %v12321_v44 = vpop.f32.mrb[13].mxu1  ;;  %v12485_v56 = vpop.f32.mrb[17].mxu0  ;;  %v4215_v30 = vld [vmem:[#allocation14 + $0x2b98] sm:$0xff]  ;;  %v4238_v41 = vld [vmem:[#allocation14 + $0x2c50] sm:$0xff] }
 0x567   :  { %v16096_v60 = vadd.f32 %v12321_v44, %v4369_v34  ;;  %v16098_v62 = vadd.f32 %v12485_v56, %v4377_v50  ;;  %v12323_v63 = vpop.f32.mrb[14].mxu1  ;;  %v12487_v1 = vpop.f32.mrb[18].mxu0  ;;  %12624 = vmatpush1.bf16.msra.mxu1 %v15827_v36  ;;  %v15923_v34 = vcombine.low %v4190_v8, %v4202_v19  ;;  %v15925_v36 = vcombine.low %v4191_v20, %v4203_v26 }
 0x568   :  { %16471 = vtanh.f32 %v16095_v52  ;;  %12788 = vmatpush1.bf16.msra.mxu0 %v15829_v37  ;;  %v12324_v5 = vpop.f32.mrb[15].mxu1  ;;  %v12488_v6 = vpop.f32.mrb[19].mxu0  ;;  %12625 = vmatprep.subr.bf16.mxu1 %v15852_v38  ;;  %v15948_v37 = vcombine.high %v4214_v33, %v4226_v28  ;;  %v15950_v39 = vcombine.high %v4215_v30, %v4227_v31  ;;  %v15947_v52 = vcombine.low %v4214_v33, %v4226_v28 }
 0x569   :  { %16473 = vtanh.f32 %v16097_v55  ;;  %12789 = vmatprep.subr.bf16.mxu0 %v15854_v27  ;;  %v4250_v27 = vld [vmem:[#allocation14 + $0x2cb0] sm:$0xff]  ;;  %v15949_v55 = vcombine.low %v4215_v30, %v4227_v31  ;;  %v15974_v56 = vcombine.high %v4239_v48, %v4251_v51  ;;  %v15973_v1 = vcombine.low %v4239_v48, %v4251_v51  ;;  %v2824_v31 = vld [vmem:[#allocation14 + $0x20] sm:$0xff]  ;;  %v2849_v51 = vld [vmem:[#allocation14 + $0xe8] sm:$0xff] }
 0x56a   :  { %16475 = vtanh.f32 %v16096_v60  ;;  %v15972_v44 = vcombine.high %v4238_v41, %v4250_v27  ;;  %v4263_v60 = vld [vmem:[#allocation14 + $0x2d18] sm:$0xff]  ;;  %v15971_v63 = vcombine.low %v4238_v41, %v4250_v27  ;;  %v4286_v6 = vld [vmem:[#allocation14 + $0x2dd0] sm:$0xff]  ;;  %v2848_v41 = vld [vmem:[#allocation14 + $0xe0] sm:$0xff] }
 0x56b   :  { %16477 = vtanh.f32 %v16098_v62  ;;  %12626 = vmatpush1.bf16.msra.mxu1 %v15851_v4  ;;  %v4275_v62 = vld [vmem:[#allocation14 + $0x2d78] sm:$0xff]  ;;  %v15996_v4 = vcombine.high %v4262_v57, %v4274_v59  ;;  %v2860_v27 = vld [vmem:[#allocation14 + $0x140] sm:$0xff] }
 0x56c   :  { %12790 = vmatpush1.bf16.msra.mxu0 %v15853_v7  ;;  %12627 = vmatprep.subr.bf16.mxu1 %v15876_v9  ;;  %v15998_v5 = vcombine.high %v4263_v60, %v4275_v62  ;;  %v4298_v7 = vld [vmem:[#allocation14 + $0x2e30] sm:$0xff]  ;;  %v4287_v9 = vld [vmem:[#allocation14 + $0x2dd8] sm:$0xff]  ;;  %v15997_v2 = vcombine.low %v4263_v60, %v4275_v62  ;;  %v2884_v57 = vld [vmem:[#allocation14 + $0x200] sm:$0xff] }
 0x56d   :  { %12791 = vmatprep.subr.bf16.mxu0 %v15878_v25  ;;  %v4299_v25 = vld [vmem:[#allocation14 + $0x2e38] sm:$0xff]  ;;  %v16020_v14 = vcombine.high %v4286_v6, %v4298_v7  ;;  %v16019_v8 = vcombine.low %v4286_v6, %v4298_v7  ;;  %v2873_v60 = vld [vmem:[#allocation14 + $0x1a8] sm:$0xff]  ;;  %v2896_v6 = vld [vmem:[#allocation14 + $0x260] sm:$0xff] }
 0x56e   :  { %v16022_v15 = vcombine.high %v4287_v9, %v4299_v25  ;;  %v16021_v19 = vcombine.low %v4287_v9, %v4299_v25  ;;  %v2885_v62 = vld [vmem:[#allocation14 + $0x208] sm:$0xff]  ;;  %v2908_v7 = vld [vmem:[#allocation14 + $0x2c0] sm:$0xff] }
 0x56f   :  { %12628 = vmatpush1.bf16.msra.mxu1 %v15875_v10  ;;  %v4310_v10 = vld [vmem:[#allocation14 + $0x2e90] sm:$0xff]  ;;  %v2897_v9 = vld [vmem:[#allocation14 + $0x268] sm:$0xff] }
 0x570   :  { %12792 = vmatpush1.bf16.msra.mxu0 %v15877_v16  ;;  %12629 = vmatprep.subr.bf16.mxu1 %v15900_v17  ;;  %v4322_v16 = vld [vmem:[#allocation14 + $0x2ef0] sm:$0xff]  ;;  %v4311_v17 = vld [vmem:[#allocation14 + $0x2e98] sm:$0xff]  ;;  %v2909_v25 = vld [vmem:[#allocation14 + $0x2c8] sm:$0xff] }
 0x571   :  { %12793 = vmatprep.subr.bf16.mxu0 %v15902_v18  ;;  %v4323_v18 = vld [vmem:[#allocation14 + $0x2ef8] sm:$0xff]  ;;  %v16044_v20 = vcombine.high %v4310_v10, %v4322_v16  ;;  %v16043_v33 = vcombine.low %v4310_v10, %v4322_v16  ;;  %v2920_v10 = vld [vmem:[#allocation14 + $0x320] sm:$0xff] }
 0x572   :  { %v16472_v29 = vpop.eup %16471  ;;  %v16046_v26 = vcombine.high %v4311_v17, %v4323_v18  ;;  %v16045_v28 = vcombine.low %v4311_v17, %v4323_v18  ;;  %v2932_v16 = vld [vmem:[#allocation14 + $0x380] sm:$0xff]  ;;  %v2921_v17 = vld [vmem:[#allocation14 + $0x328] sm:$0xff] }
 0x573   :  { %v16474_v32 = vpop.eup %16473  ;;  %14154 = vst [vmem:[#allocation17] sm:$0xff] %v16472_v29  ;;  %12630 = vmatpush1.bf16.msra.mxu1 %v15899_v21  ;;  %v4334_v21 = vld [vmem:[#allocation14 + $0x2f50] sm:$0xff]  ;;  %v2933_v18 = vld [vmem:[#allocation14 + $0x388] sm:$0xff] }
 0x574   :  { %v16476_v50 = vpop.eup %16475  ;;  %14156 = vst [vmem:[#allocation17 + $0x10] sm:$0xff] %v16474_v32  ;;  %12794 = vmatpush1.bf16.msra.mxu0 %v15901_v22  ;;  %12631 = vmatprep.subr.bf16.mxu1 %v15924_v23  ;;  %v4346_v22 = vld [vmem:[#allocation14 + $0x2fb0] sm:$0xff]  ;;  %v4335_v23 = vld [vmem:[#allocation14 + $0x2f58] sm:$0xff]  ;;  %v2836_v32 = vld [vmem:[#allocation14 + $0x80] sm:$0xff] }
 0x575   :  { %v16478_v38 = vpop.eup %16477  ;;  %14155 = vst [vmem:[#allocation17 + $0x8] sm:$0xff] %v16476_v50  ;;  %12795 = vmatprep.subr.bf16.mxu0 %v15926_v24  ;;  %v4347_v24 = vld [vmem:[#allocation14 + $0x2fb8] sm:$0xff]  ;;  %v16068_v29 = vcombine.high %v4334_v21, %v4346_v22  ;;  %v2837_v50 = vld [vmem:[#allocation14 + $0x88] sm:$0xff]  ;;  %v14559_v48 = vcombine.low %v2824_v31, %v2836_v32 }
 0x576   :  { %14157 = vst [vmem:[#allocation17 + $0x18] sm:$0xff] %v16478_v38  ;;  %v16070_v30 = vcombine.high %v4335_v23, %v4347_v24  ;;  %v14560_v38 = vcombine.high %v2824_v31, %v2836_v32  ;;  %v2968_v31 = vld [vmem:[#allocation14 + $0x4a0] sm:$0xff] }
 0x577   :  { %12632 = vmatpush1.bf16.msra.mxu1 %v15923_v34  ;;  %v2825_v34 = vld [vmem:[#allocation14 + $0x28] sm:$0xff]  ;;  %v2980_v32 = vld [vmem:[#allocation14 + $0x500] sm:$0xff] }
 0x578   :  { %12796 = vmatpush1.bf16.msra.mxu0 %v15925_v36  ;;  %12633 = vmatprep.subr.bf16.mxu1 %v15948_v37  ;;  %v16067_v36 = vcombine.low %v4334_v21, %v4346_v22  ;;  %v16069_v37 = vcombine.low %v4335_v23, %v4347_v24  ;;  %v2944_v21 = vld [vmem:[#allocation14 + $0x3e0] sm:$0xff]  ;;  %v2945_v23 = vld [vmem:[#allocation14 + $0x3e8] sm:$0xff] }
 0x579   :  { %12797 = vmatprep.subr.bf16.mxu0 %v15950_v39  ;;  %v14562_v39 = vcombine.high %v2825_v34, %v2837_v50  ;;  %v2956_v22 = vld [vmem:[#allocation14 + $0x440] sm:$0xff]  ;;  %v2957_v24 = vld [vmem:[#allocation14 + $0x448] sm:$0xff] }
 0x57b   :  { %12634 = vmatpush1.bf16.msra.mxu1 %v15947_v52  ;;  %v2861_v52 = vld [vmem:[#allocation14 + $0x148] sm:$0xff] }
 0x57c   :  { %12798 = vmatpush1.bf16.msra.mxu0 %v15949_v55  ;;  %12635 = vmatprep.subr.bf16.mxu1 %v15972_v44  ;;  %v14561_v55 = vcombine.low %v2825_v34, %v2837_v50  ;;  %v14584_v44 = vcombine.high %v2848_v41, %v2860_v27  ;;  %v14586_v59 = vcombine.high %v2849_v51, %v2861_v52  ;;  %v2969_v34 = vld [vmem:[#allocation14 + $0x4a8] sm:$0xff] }
 0x57d   :  { %12799 = vmatprep.subr.bf16.mxu0 %v15974_v56  ;;  %v2872_v56 = vld [vmem:[#allocation14 + $0x1a0] sm:$0xff]  ;;  %v2981_v50 = vld [vmem:[#allocation14 + $0x508] sm:$0xff] }
 0x57f   :  { %12636 = vmatpush1.bf16.msra.mxu1 %v15971_v63  ;;  %v14583_v63 = vcombine.low %v2848_v41, %v2860_v27  ;;  %v2992_v41 = vld [vmem:[#allocation14 + $0x560] sm:$0xff] }
 0x580   :  { %12800 = vmatpush1.bf16.msra.mxu0 %v15973_v1  ;;  %12637 = vmatprep.subr.bf16.mxu1 %v15996_v4  ;;  %v14585_v1 = vcombine.low %v2849_v51, %v2861_v52  ;;  %v14608_v4 = vcombine.high %v2872_v56, %v2884_v57  ;;  %v3004_v27 = vld [vmem:[#allocation14 + $0x5c0] sm:$0xff]  ;;  %v3005_v51 = vld [vmem:[#allocation14 + $0x5c8] sm:$0xff]  ;;  %v14703_v52 = vcombine.low %v2968_v31, %v2980_v32 }
 0x581   :  { %12801 = vmatprep.subr.bf16.mxu0 %v15998_v5  ;;  %v14610_v5 = vcombine.high %v2873_v60, %v2885_v62 }
 0x583   :  { %12638 = vmatpush1.bf16.msra.mxu1 %v15995_v12  ;;  %v14607_v12 = vcombine.low %v2872_v56, %v2884_v57  ;;  %v3016_v57 = vld [vmem:[#allocation14 + $0x620] sm:$0xff] }
 0x584   :  { %12802 = vmatpush1.bf16.msra.mxu0 %v15997_v2  ;;  %12639 = vmatprep.subr.bf16.mxu1 %v16020_v14  ;;  %v14609_v2 = vcombine.low %v2873_v60, %v2885_v62  ;;  %v14632_v14 = vcombine.high %v2896_v6, %v2908_v7  ;;  %v3017_v60 = vld [vmem:[#allocation14 + $0x628] sm:$0xff] }
 0x585   :  { %12803 = vmatprep.subr.bf16.mxu0 %v16022_v15  ;;  %v14634_v15 = vcombine.high %v2897_v9, %v2909_v25  ;;  %v3029_v62 = vld [vmem:[#allocation14 + $0x688] sm:$0xff] }
 0x587   :  { %12640 = vmatpush1.bf16.msra.mxu1 %v16019_v8  ;;  %v14631_v8 = vcombine.low %v2896_v6, %v2908_v7  ;;  %v3040_v6 = vld [vmem:[#allocation14 + $0x6e0] sm:$0xff] }
 0x588   :  { %12804 = vmatpush1.bf16.msra.mxu0 %v16021_v19  ;;  %12641 = vmatprep.subr.bf16.mxu1 %v16044_v20  ;;  %v14633_v19 = vcombine.low %v2897_v9, %v2909_v25  ;;  %v14656_v20 = vcombine.high %v2920_v10, %v2932_v16  ;;  %v3052_v7 = vld [vmem:[#allocation14 + $0x740] sm:$0xff]  ;;  %v3041_v9 = vld [vmem:[#allocation14 + $0x6e8] sm:$0xff] }
 0x589   :  { %12805 = vmatprep.subr.bf16.mxu0 %v16046_v26  ;;  %v14658_v26 = vcombine.high %v2921_v17, %v2933_v18  ;;  %v3053_v25 = vld [vmem:[#allocation14 + $0x748] sm:$0xff] }
 0x58b   :  { %12642 = vmatpush1.bf16.msra.mxu1 %v16043_v33  ;;  %v14655_v33 = vcombine.low %v2920_v10, %v2932_v16  ;;  %v3064_v10 = vld [vmem:[#allocation14 + $0x7a0] sm:$0xff] }
 0x58c   :  { %12806 = vmatpush1.bf16.msra.mxu0 %v16045_v28  ;;  %12643 = vmatprep.subr.bf16.mxu1 %v16068_v29  ;;  %v14657_v28 = vcombine.low %v2921_v17, %v2933_v18  ;;  %v14680_v29 = vcombine.high %v2944_v21, %v2956_v22  ;;  %v3076_v16 = vld [vmem:[#allocation14 + $0x800] sm:$0xff]  ;;  %v3065_v17 = vld [vmem:[#allocation14 + $0x7a8] sm:$0xff] }
 0x58d   :  { %12807 = vmatprep.subr.bf16.mxu0 %v16070_v30  ;;  %v14682_v30 = vcombine.high %v2945_v23, %v2957_v24  ;;  %v3077_v18 = vld [vmem:[#allocation14 + $0x808] sm:$0xff] }
 0x58f   :  { %12644 = vmatpush1.bf16.msra.mxu1 %v16067_v36  ;;  %v14679_v36 = vcombine.low %v2944_v21, %v2956_v22  ;;  %v3088_v21 = vld [vmem:[#allocation14 + $0x860] sm:$0xff] }
 0x590   :  { %12808 = vmatpush1.bf16.msra.mxu0 %v16069_v37  ;;  %12818 = vmatprep.subr.bf16.mxu1 %v14560_v38  ;;  %v14681_v37 = vcombine.low %v2945_v23, %v2957_v24  ;;  %v14704_v38 = vcombine.high %v2968_v31, %v2980_v32  ;;  %v3100_v22 = vld [vmem:[#allocation14 + $0x8c0] sm:$0xff]  ;;  %v3089_v23 = vld [vmem:[#allocation14 + $0x868] sm:$0xff] }
 0x591   :  { %12982 = vmatprep.subr.bf16.mxu0 %v14562_v39  ;;  %v14706_v39 = vcombine.high %v2969_v34, %v2981_v50  ;;  %v3101_v24 = vld [vmem:[#allocation14 + $0x8c8] sm:$0xff]  ;;  %v3112_v31 = vld [vmem:[#allocation14 + $0x920] sm:$0xff] }
 0x592   :  { %12646 = vmatmul.mubr.bf16.vlgmr.msra.gmra.mrb[16].mxu1 %v17052_v40  ;;  %v3124_v32 = vld [vmem:[#allocation14 + $0x980] sm:$0xff] }
 0x593   :  { %12810 = vmatmul.mubr.bf16.vlgmr.msra.gmra.mrb[20].mxu0 %v17052_v40  ;;  %12819 = vmatpush1.bf16.msra.mxu1 %v14559_v48  ;;  %v2993_v48 = vld [vmem:[#allocation14 + $0x568] sm:$0xff] }
 0x594   :  { %12850 = vmatprep.mubr.bf16.mxu1 %v16999_v43  ;;  %12983 = vmatpush1.bf16.msra.mxu0 %v14561_v55  ;;  %v14705_v55 = vcombine.low %v2969_v34, %v2981_v50  ;;  %v14730_v56 = vcombine.high %v2993_v48, %v3005_v51  ;;  %v3113_v34 = vld [vmem:[#allocation14 + $0x928] sm:$0xff] }
 0x595   :  { %13014 = vmatprep.mubr.bf16.mxu0 %v16999_v43  ;;  %12820 = vmatprep.subr.bf16.mxu1 %v14584_v44  ;;  %v14728_v44 = vcombine.high %v2992_v41, %v3004_v27  ;;  %v3125_v50 = vld [vmem:[#allocation14 + $0x988] sm:$0xff] }
 0x596   :  { %12984 = vmatprep.subr.bf16.mxu0 %v14586_v59  ;;  %v3028_v59 = vld [vmem:[#allocation14 + $0x680] sm:$0xff] }
 0x597   :  { %12821 = vmatpush1.bf16.msra.mxu1 %v14583_v63  ;;  %v14727_v63 = vcombine.low %v2992_v41, %v3004_v27  ;;  %v3136_v41 = vld [vmem:[#allocation14 + $0x9e0] sm:$0xff] }
 0x598   :  { %12985 = vmatpush1.bf16.msra.mxu0 %v14585_v1  ;;  %12822 = vmatprep.subr.bf16.mxu1 %v14608_v4  ;;  %v14729_v1 = vcombine.low %v2993_v48, %v3005_v51  ;;  %v14752_v4 = vcombine.high %v3016_v57, %v3028_v59  ;;  %v3148_v27 = vld [vmem:[#allocation14 + $0xa40] sm:$0xff]  ;;  %v3137_v48 = vld [vmem:[#allocation14 + $0x9e8] sm:$0xff] }
 0x599   :  { %12986 = vmatprep.subr.bf16.mxu0 %v14610_v5  ;;  %v14754_v5 = vcombine.high %v3017_v60, %v3029_v62  ;;  %v3149_v51 = vld [vmem:[#allocation14 + $0xa48] sm:$0xff] }
 0x59b   :  { %12823 = vmatpush1.bf16.msra.mxu1 %v14607_v12  ;;  %v14751_v12 = vcombine.low %v3016_v57, %v3028_v59  ;;  %v3160_v57 = vld [vmem:[#allocation14 + $0xaa0] sm:$0xff] }
 0x59c   :  { %12987 = vmatpush1.bf16.msra.mxu0 %v14609_v2  ;;  %12824 = vmatprep.subr.bf16.mxu1 %v14632_v14  ;;  %v14753_v2 = vcombine.low %v3017_v60, %v3029_v62  ;;  %v14776_v14 = vcombine.high %v3040_v6, %v3052_v7  ;;  %v3172_v59 = vld [vmem:[#allocation14 + $0xb00] sm:$0xff]  ;;  %v3161_v60 = vld [vmem:[#allocation14 + $0xaa8] sm:$0xff] }
 0x59d   :  { %12988 = vmatprep.subr.bf16.mxu0 %v14634_v15  ;;  %v14778_v15 = vcombine.high %v3041_v9, %v3053_v25  ;;  %v3173_v62 = vld [vmem:[#allocation14 + $0xb08] sm:$0xff] }
 0x59f   :  { %12825 = vmatpush1.bf16.msra.mxu1 %v14631_v8  ;;  %v14775_v8 = vcombine.low %v3040_v6, %v3052_v7  ;;  %v3184_v6 = vld [vmem:[#allocation14 + $0xb60] sm:$0xff] }
 0x5a0   :  { %12989 = vmatpush1.bf16.msra.mxu0 %v14633_v19  ;;  %12826 = vmatprep.subr.bf16.mxu1 %v14656_v20  ;;  %v14777_v19 = vcombine.low %v3041_v9, %v3053_v25  ;;  %v14800_v20 = vcombine.high %v3064_v10, %v3076_v16  ;;  %v3196_v7 = vld [vmem:[#allocation14 + $0xbc0] sm:$0xff]  ;;  %v3185_v9 = vld [vmem:[#allocation14 + $0xb68] sm:$0xff] }
 0x5a1   :  { %12990 = vmatprep.subr.bf16.mxu0 %v14658_v26  ;;  %v14802_v26 = vcombine.high %v3065_v17, %v3077_v18  ;;  %v3197_v25 = vld [vmem:[#allocation14 + $0xbc8] sm:$0xff] }
 0x5a3   :  { %12827 = vmatpush1.bf16.msra.mxu1 %v14655_v33  ;;  %v14799_v33 = vcombine.low %v3064_v10, %v3076_v16  ;;  %v3208_v10 = vld [vmem:[#allocation14 + $0xc20] sm:$0xff] }
 0x5a4   :  { %12991 = vmatpush1.bf16.msra.mxu0 %v14657_v28  ;;  %12828 = vmatprep.subr.bf16.mxu1 %v14680_v29  ;;  %v14801_v28 = vcombine.low %v3065_v17, %v3077_v18  ;;  %v14824_v29 = vcombine.high %v3088_v21, %v3100_v22  ;;  %v3220_v16 = vld [vmem:[#allocation14 + $0xc80] sm:$0xff]  ;;  %v3209_v17 = vld [vmem:[#allocation14 + $0xc28] sm:$0xff] }
 0x5a5   :  { %12992 = vmatprep.subr.bf16.mxu0 %v14682_v30  ;;  %v14826_v30 = vcombine.high %v3089_v23, %v3101_v24  ;;  %v3221_v18 = vld [vmem:[#allocation14 + $0xc88] sm:$0xff] }
 0x5a7   :  { %12829 = vmatpush1.bf16.msra.mxu1 %v14679_v36  ;;  %v14823_v36 = vcombine.low %v3088_v21, %v3100_v22  ;;  %v3232_v21 = vld [vmem:[#allocation14 + $0xce0] sm:$0xff] }
 0x5a8   :  { %12993 = vmatpush1.bf16.msra.mxu0 %v14681_v37  ;;  %12830 = vmatprep.subr.bf16.mxu1 %v14704_v38  ;;  %v14825_v37 = vcombine.low %v3089_v23, %v3101_v24  ;;  %v14848_v38 = vcombine.high %v3112_v31, %v3124_v32  ;;  %v3244_v22 = vld [vmem:[#allocation14 + $0xd40] sm:$0xff]  ;;  %v14943_v23 = vcombine.low %v3208_v10, %v3220_v16  ;;  %v3233_v24 = vld [vmem:[#allocation14 + $0xce8] sm:$0xff] }
 0x5a9   :  { %12994 = vmatprep.subr.bf16.mxu0 %v14706_v39  ;;  %v14850_v39 = vcombine.high %v3113_v34, %v3125_v50 }
 0x5ab   :  { %12831 = vmatpush1.bf16.msra.mxu1 %v14703_v52  ;;  %v14847_v52 = vcombine.low %v3112_v31, %v3124_v32  ;;  %v3268_v31 = vld [vmem:[#allocation14 + $0xe00] sm:$0xff] }
 0x5ac   :  { %12995 = vmatpush1.bf16.msra.mxu0 %v14705_v55  ;;  %12832 = vmatprep.subr.bf16.mxu1 %v14728_v44  ;;  %v14849_v55 = vcombine.low %v3113_v34, %v3125_v50  ;;  %v14872_v44 = vcombine.high %v3136_v41, %v3148_v27  ;;  %v3257_v34 = vld [vmem:[#allocation14 + $0xda8] sm:$0xff] }
 0x5ad   :  { %12996 = vmatprep.subr.bf16.mxu0 %v14730_v56  ;;  %v14874_v56 = vcombine.high %v3137_v48, %v3149_v51  ;;  %v3269_v50 = vld [vmem:[#allocation14 + $0xe08] sm:$0xff] }
 0x5af   :  { %12833 = vmatpush1.bf16.msra.mxu1 %v14727_v63  ;;  %v14871_v63 = vcombine.low %v3136_v41, %v3148_v27  ;;  %v3280_v41 = vld [vmem:[#allocation14 + $0xe60] sm:$0xff] }
 0x5b0   :  { %12997 = vmatpush1.bf16.msra.mxu0 %v14729_v1  ;;  %12834 = vmatprep.subr.bf16.mxu1 %v14752_v4  ;;  %v14873_v1 = vcombine.low %v3137_v48, %v3149_v51  ;;  %v14896_v4 = vcombine.high %v3160_v57, %v3172_v59  ;;  %v3292_v27 = vld [vmem:[#allocation14 + $0xec0] sm:$0xff]  ;;  %v3281_v48 = vld [vmem:[#allocation14 + $0xe68] sm:$0xff] }
 0x5b1   :  { %12998 = vmatprep.subr.bf16.mxu0 %v14754_v5  ;;  %v14898_v5 = vcombine.high %v3161_v60, %v3173_v62  ;;  %v3293_v51 = vld [vmem:[#allocation14 + $0xec8] sm:$0xff] }
 0x5b3   :  { %12835 = vmatpush1.bf16.msra.mxu1 %v14751_v12  ;;  %v14895_v12 = vcombine.low %v3160_v57, %v3172_v59  ;;  %v3304_v57 = vld [vmem:[#allocation14 + $0xf20] sm:$0xff] }
 0x5b4   :  { %12999 = vmatpush1.bf16.msra.mxu0 %v14753_v2  ;;  %12836 = vmatprep.subr.bf16.mxu1 %v14776_v14  ;;  %v14897_v2 = vcombine.low %v3161_v60, %v3173_v62  ;;  %v14920_v14 = vcombine.high %v3184_v6, %v3196_v7  ;;  %v3316_v59 = vld [vmem:[#allocation14 + $0xf80] sm:$0xff]  ;;  %v3305_v60 = vld [vmem:[#allocation14 + $0xf28] sm:$0xff] }
 0x5b5   :  { %13000 = vmatprep.subr.bf16.mxu0 %v14778_v15  ;;  %v14922_v15 = vcombine.high %v3185_v9, %v3197_v25  ;;  %v3317_v62 = vld [vmem:[#allocation14 + $0xf88] sm:$0xff] }
 0x5b7   :  { %12837 = vmatpush1.bf16.msra.mxu1 %v14775_v8  ;;  %v14919_v8 = vcombine.low %v3184_v6, %v3196_v7  ;;  %v3328_v6 = vld [vmem:[#allocation14 + $0xfe0] sm:$0xff] }
 0x5b8   :  { %13001 = vmatpush1.bf16.msra.mxu0 %v14777_v19  ;;  %12838 = vmatprep.subr.bf16.mxu1 %v14800_v20  ;;  %v14921_v19 = vcombine.low %v3185_v9, %v3197_v25  ;;  %v14944_v20 = vcombine.high %v3208_v10, %v3220_v16  ;;  %v3340_v7 = vld [vmem:[#allocation14 + $0x1040] sm:$0xff]  ;;  %v3329_v9 = vld [vmem:[#allocation14 + $0xfe8] sm:$0xff] }
 0x5b9   :  { %13002 = vmatprep.subr.bf16.mxu0 %v14802_v26  ;;  %v14946_v26 = vcombine.high %v3209_v17, %v3221_v18  ;;  %v3341_v25 = vld [vmem:[#allocation14 + $0x1048] sm:$0xff]  ;;  %v3352_v10 = vld [vmem:[#allocation14 + $0x10a0] sm:$0xff] }
 0x5ba   :  { %v3364_v16 = vld [vmem:[#allocation14 + $0x1100] sm:$0xff] }
 0x5bb   :  { %12839 = vmatpush1.bf16.msra.mxu1 %v14799_v33  ;;  %v3245_v33 = vld [vmem:[#allocation14 + $0xd48] sm:$0xff] }
 0x5bc   :  { %13003 = vmatpush1.bf16.msra.mxu0 %v14801_v28  ;;  %12840 = vmatprep.subr.bf16.mxu1 %v14824_v29  ;;  %v14945_v28 = vcombine.low %v3209_v17, %v3221_v18  ;;  %v14968_v29 = vcombine.high %v3232_v21, %v3244_v22  ;;  %v14970_v32 = vcombine.high %v3233_v24, %v3245_v33  ;;  %v3353_v17 = vld [vmem:[#allocation14 + $0x10a8] sm:$0xff] }
 0x5bd   :  { %13004 = vmatprep.subr.bf16.mxu0 %v14826_v30  ;;  %v3256_v30 = vld [vmem:[#allocation14 + $0xda0] sm:$0xff]  ;;  %v3365_v18 = vld [vmem:[#allocation14 + $0x1108] sm:$0xff] }
 0x5bf   :  { %12841 = vmatpush1.bf16.msra.mxu1 %v14823_v36  ;;  %v14967_v36 = vcombine.low %v3232_v21, %v3244_v22  ;;  %v3376_v21 = vld [vmem:[#allocation14 + $0x1160] sm:$0xff] }
 0x5c0   :  { %13005 = vmatpush1.bf16.msra.mxu0 %v14825_v37  ;;  %12842 = vmatprep.subr.bf16.mxu1 %v14848_v38  ;;  %v14969_v37 = vcombine.low %v3233_v24, %v3245_v33  ;;  %v14992_v38 = vcombine.high %v3256_v30, %v3268_v31  ;;  %v3388_v22 = vld [vmem:[#allocation14 + $0x11c0] sm:$0xff]  ;;  %v3389_v24 = vld [vmem:[#allocation14 + $0x11c8] sm:$0xff]  ;;  %v15087_v33 = vcombine.low %v3352_v10, %v3364_v16 }
 0x5c1   :  { %13006 = vmatprep.subr.bf16.mxu0 %v14850_v39  ;;  %v14994_v39 = vcombine.high %v3257_v34, %v3269_v50 }
 0x5c3   :  { %12843 = vmatpush1.bf16.msra.mxu1 %v14847_v52  ;;  %v14991_v52 = vcombine.low %v3256_v30, %v3268_v31  ;;  %v3400_v31 = vld [vmem:[#allocation14 + $0x1220] sm:$0xff] }
 0x5c4   :  { %13007 = vmatpush1.bf16.msra.mxu0 %v14849_v55  ;;  %12844 = vmatprep.subr.bf16.mxu1 %v14872_v44  ;;  %v14993_v55 = vcombine.low %v3257_v34, %v3269_v50  ;;  %v15016_v44 = vcombine.high %v3280_v41, %v3292_v27  ;;  %v3401_v34 = vld [vmem:[#allocation14 + $0x1228] sm:$0xff] }
 0x5c5   :  { %13008 = vmatprep.subr.bf16.mxu0 %v14874_v56  ;;  %v15018_v56 = vcombine.high %v3281_v48, %v3293_v51  ;;  %v3413_v50 = vld [vmem:[#allocation14 + $0x1288] sm:$0xff] }
 0x5c7   :  { %12845 = vmatpush1.bf16.msra.mxu1 %v14871_v63  ;;  %v15015_v63 = vcombine.low %v3280_v41, %v3292_v27  ;;  %v3424_v41 = vld [vmem:[#allocation14 + $0x12e0] sm:$0xff] }
 0x5c8   :  { %13009 = vmatpush1.bf16.msra.mxu0 %v14873_v1  ;;  %12846 = vmatprep.subr.bf16.mxu1 %v14896_v4  ;;  %v15017_v1 = vcombine.low %v3281_v48, %v3293_v51  ;;  %v15040_v4 = vcombine.high %v3304_v57, %v3316_v59  ;;  %v3436_v27 = vld [vmem:[#allocation14 + $0x1340] sm:$0xff]  ;;  %v3425_v48 = vld [vmem:[#allocation14 + $0x12e8] sm:$0xff] }
 0x5c9   :  { %13010 = vmatprep.subr.bf16.mxu0 %v14898_v5  ;;  %v15042_v5 = vcombine.high %v3305_v60, %v3317_v62  ;;  %v3437_v51 = vld [vmem:[#allocation14 + $0x1348] sm:$0xff] }
 0x5cb   :  { %12847 = vmatpush1.bf16.msra.mxu1 %v14895_v12  ;;  %v15039_v12 = vcombine.low %v3304_v57, %v3316_v59  ;;  %v3448_v57 = vld [vmem:[#allocation14 + $0x13a0] sm:$0xff] }
 0x5cc   :  { %13011 = vmatpush1.bf16.msra.mxu0 %v14897_v2  ;;  %12848 = vmatprep.subr.bf16.mxu1 %v14920_v14  ;;  %v15041_v2 = vcombine.low %v3305_v60, %v3317_v62  ;;  %v15064_v14 = vcombine.high %v3328_v6, %v3340_v7  ;;  %v3460_v59 = vld [vmem:[#allocation14 + $0x1400] sm:$0xff]  ;;  %v3449_v60 = vld [vmem:[#allocation14 + $0x13a8] sm:$0xff] }
 0x5cd   :  { %13012 = vmatprep.subr.bf16.mxu0 %v14922_v15  ;;  %v15066_v15 = vcombine.high %v3329_v9, %v3341_v25  ;;  %v3461_v62 = vld [vmem:[#allocation14 + $0x1408] sm:$0xff] }
 0x5cf   :  { %12849 = vmatpush1.bf16.msra.mxu1 %v14919_v8  ;;  %v15063_v8 = vcombine.low %v3328_v6, %v3340_v7  ;;  %v3472_v6 = vld [vmem:[#allocation14 + $0x1460] sm:$0xff] }
 0x5d0   :  { %13013 = vmatpush1.bf16.msra.mxu0 %v14921_v19  ;;  %12859 = vmatprep.subr.bf16.mxu1 %v14944_v20  ;;  %v15065_v19 = vcombine.low %v3329_v9, %v3341_v25  ;;  %v15088_v20 = vcombine.high %v3352_v10, %v3364_v16  ;;  %v3484_v7 = vld [vmem:[#allocation14 + $0x14c0] sm:$0xff]  ;;  %v3473_v9 = vld [vmem:[#allocation14 + $0x1468] sm:$0xff] }
 0x5d1   :  { %13023 = vmatprep.subr.bf16.mxu0 %v14946_v26  ;;  %v15090_v26 = vcombine.high %v3353_v17, %v3365_v18  ;;  %v3485_v25 = vld [vmem:[#allocation14 + $0x14c8] sm:$0xff]  ;;  %v3496_v10 = vld [vmem:[#allocation14 + $0x1520] sm:$0xff] }
 0x5d2   :  { %12851 = vmatmul.mubr.bf16.vlgmr.msra.gmra.mrb[20].mxu1 %v17001_v49  ;;  %v3508_v16 = vld [vmem:[#allocation14 + $0x1580] sm:$0xff] }
 0x5d3   :  { %13015 = vmatmul.mubr.bf16.vlgmr.msra.gmra.mrb[24].mxu0 %v17001_v49  ;;  %12860 = vmatpush1.bf16.msra.mxu1 %v14943_v23  ;;  %v3377_v23 = vld [vmem:[#allocation14 + $0x1168] sm:$0xff] }
 0x5d4   :  { %12891 = vmatprep.mubr.bf16.mxu1 %v17005_v58  ;;  %13024 = vmatpush1.bf16.msra.mxu0 %v14945_v28  ;;  %v15089_v28 = vcombine.low %v3353_v17, %v3365_v18  ;;  %v15114_v30 = vcombine.high %v3377_v23, %v3389_v24  ;;  %v3497_v17 = vld [vmem:[#allocation14 + $0x1528] sm:$0xff] }
 0x5d5   :  { %13055 = vmatprep.mubr.bf16.mxu0 %v17005_v58  ;;  %12861 = vmatprep.subr.bf16.mxu1 %v14968_v29  ;;  %v15112_v29 = vcombine.high %v3376_v21, %v3388_v22  ;;  %v3509_v18 = vld [vmem:[#allocation14 + $0x1588] sm:$0xff] }
 0x5d6   :  { %13025 = vmatprep.subr.bf16.mxu0 %v14970_v32  ;;  %v3412_v32 = vld [vmem:[#allocation14 + $0x1280] sm:$0xff] }
 0x5d7   :  { %12862 = vmatpush1.bf16.msra.mxu1 %v14967_v36  ;;  %v15111_v36 = vcombine.low %v3376_v21, %v3388_v22  ;;  %v3520_v21 = vld [vmem:[#allocation14 + $0x15e0] sm:$0xff] }
 0x5d8   :  { %13026 = vmatpush1.bf16.msra.mxu0 %v14969_v37  ;;  %12863 = vmatprep.subr.bf16.mxu1 %v14992_v38  ;;  %v15113_v37 = vcombine.low %v3377_v23, %v3389_v24  ;;  %v15136_v38 = vcombine.high %v3400_v31, %v3412_v32  ;;  %v3532_v22 = vld [vmem:[#allocation14 + $0x1640] sm:$0xff]  ;;  %v3521_v23 = vld [vmem:[#allocation14 + $0x15e8] sm:$0xff] }
 0x5d9   :  { %13027 = vmatprep.subr.bf16.mxu0 %v14994_v39  ;;  %v15138_v39 = vcombine.high %v3401_v34, %v3413_v50  ;;  %v3533_v24 = vld [vmem:[#allocation14 + $0x1648] sm:$0xff] }
 0x5db   :  { %12864 = vmatpush1.bf16.msra.mxu1 %v14991_v52  ;;  %v15135_v52 = vcombine.low %v3400_v31, %v3412_v32  ;;  %v3544_v31 = vld [vmem:[#allocation14 + $0x16a0] sm:$0xff] }
 0x5dc   :  { %13028 = vmatpush1.bf16.msra.mxu0 %v14993_v55  ;;  %12865 = vmatprep.subr.bf16.mxu1 %v15016_v44  ;;  %v15137_v55 = vcombine.low %v3401_v34, %v3413_v50  ;;  %v15160_v44 = vcombine.high %v3424_v41, %v3436_v27  ;;  %v3556_v32 = vld [vmem:[#allocation14 + $0x1700] sm:$0xff]  ;;  %v3545_v34 = vld [vmem:[#allocation14 + $0x16a8] sm:$0xff] }
 0x5dd   :  { %13029 = vmatprep.subr.bf16.mxu0 %v15018_v56  ;;  %v15162_v56 = vcombine.high %v3425_v48, %v3437_v51  ;;  %v3557_v50 = vld [vmem:[#allocation14 + $0x1708] sm:$0xff] }
 0x5df   :  { %12866 = vmatpush1.bf16.msra.mxu1 %v15015_v63  ;;  %v15159_v63 = vcombine.low %v3424_v41, %v3436_v27  ;;  %v3568_v41 = vld [vmem:[#allocation14 + $0x1760] sm:$0xff] }
 0x5e0   :  { %13030 = vmatpush1.bf16.msra.mxu0 %v15017_v1  ;;  %12867 = vmatprep.subr.bf16.mxu1 %v15040_v4  ;;  %v15161_v1 = vcombine.low %v3425_v48, %v3437_v51  ;;  %v15184_v4 = vcombine.high %v3448_v57, %v3460_v59  ;;  %v3580_v27 = vld [vmem:[#allocation14 + $0x17c0] sm:$0xff]  ;;  %v3569_v48 = vld [vmem:[#allocation14 + $0x1768] sm:$0xff] }
 0x5e1   :  { %13031 = vmatprep.subr.bf16.mxu0 %v15042_v5  ;;  %v15186_v5 = vcombine.high %v3449_v60, %v3461_v62  ;;  %v3581_v51 = vld [vmem:[#allocation14 + $0x17c8] sm:$0xff] }
 0x5e3   :  { %12868 = vmatpush1.bf16.msra.mxu1 %v15039_v12  ;;  %v15183_v12 = vcombine.low %v3448_v57, %v3460_v59  ;;  %v3592_v57 = vld [vmem:[#allocation14 + $0x1820] sm:$0xff] }
 0x5e4   :  { %13032 = vmatpush1.bf16.msra.mxu0 %v15041_v2  ;;  %12869 = vmatprep.subr.bf16.mxu1 %v15064_v14  ;;  %v15185_v2 = vcombine.low %v3449_v60, %v3461_v62  ;;  %v15208_v14 = vcombine.high %v3472_v6, %v3484_v7  ;;  %v3604_v59 = vld [vmem:[#allocation14 + $0x1880] sm:$0xff]  ;;  %v3593_v60 = vld [vmem:[#allocation14 + $0x1828] sm:$0xff] }
 0x5e5   :  { %13033 = vmatprep.subr.bf16.mxu0 %v15066_v15  ;;  %v15210_v15 = vcombine.high %v3473_v9, %v3485_v25  ;;  %v3605_v62 = vld [vmem:[#allocation14 + $0x1888] sm:$0xff] }
 0x5e7   :  { %12870 = vmatpush1.bf16.msra.mxu1 %v15063_v8  ;;  %v15207_v8 = vcombine.low %v3472_v6, %v3484_v7  ;;  %v3616_v6 = vld [vmem:[#allocation14 + $0x18e0] sm:$0xff] }
 0x5e8   :  { %13034 = vmatpush1.bf16.msra.mxu0 %v15065_v19  ;;  %12871 = vmatprep.subr.bf16.mxu1 %v15088_v20  ;;  %v15209_v19 = vcombine.low %v3473_v9, %v3485_v25  ;;  %v15232_v20 = vcombine.high %v3496_v10, %v3508_v16  ;;  %v3628_v7 = vld [vmem:[#allocation14 + $0x1940] sm:$0xff]  ;;  %v15327_v9 = vcombine.low %v3592_v57, %v3604_v59  ;;  %v3617_v25 = vld [vmem:[#allocation14 + $0x18e8] sm:$0xff] }
 0x5e9   :  { %13035 = vmatprep.subr.bf16.mxu0 %v15090_v26  ;;  %v15234_v26 = vcombine.high %v3497_v17, %v3509_v18 }
 0x5eb   :  { %12872 = vmatpush1.bf16.msra.mxu1 %v15087_v33  ;;  %v15231_v33 = vcombine.low %v3496_v10, %v3508_v16  ;;  %v3652_v10 = vld [vmem:[#allocation14 + $0x1a00] sm:$0xff] }
 0x5ec   :  { %13036 = vmatpush1.bf16.msra.mxu0 %v15089_v28  ;;  %12873 = vmatprep.subr.bf16.mxu1 %v15112_v29  ;;  %v15233_v28 = vcombine.low %v3497_v17, %v3509_v18  ;;  %v15256_v29 = vcombine.high %v3520_v21, %v3532_v22  ;;  %v3641_v17 = vld [vmem:[#allocation14 + $0x19a8] sm:$0xff] }
 0x5ed   :  { %13037 = vmatprep.subr.bf16.mxu0 %v15114_v30  ;;  %v15258_v30 = vcombine.high %v3521_v23, %v3533_v24  ;;  %v3653_v18 = vld [vmem:[#allocation14 + $0x1a08] sm:$0xff] }
 0x5ef   :  { %12874 = vmatpush1.bf16.msra.mxu1 %v15111_v36  ;;  %v15255_v36 = vcombine.low %v3520_v21, %v3532_v22  ;;  %v3664_v21 = vld [vmem:[#allocation14 + $0x1a60] sm:$0xff] }
 0x5f0   :  { %13038 = vmatpush1.bf16.msra.mxu0 %v15113_v37  ;;  %12875 = vmatprep.subr.bf16.mxu1 %v15136_v38  ;;  %v15257_v37 = vcombine.low %v3521_v23, %v3533_v24  ;;  %v15280_v38 = vcombine.high %v3544_v31, %v3556_v32  ;;  %v3676_v22 = vld [vmem:[#allocation14 + $0x1ac0] sm:$0xff]  ;;  %v3665_v23 = vld [vmem:[#allocation14 + $0x1a68] sm:$0xff] }
 0x5f1   :  { %13039 = vmatprep.subr.bf16.mxu0 %v15138_v39  ;;  %v15282_v39 = vcombine.high %v3545_v34, %v3557_v50  ;;  %v3677_v24 = vld [vmem:[#allocation14 + $0x1ac8] sm:$0xff] }
 0x5f3   :  { %12876 = vmatpush1.bf16.msra.mxu1 %v15135_v52  ;;  %v15279_v52 = vcombine.low %v3544_v31, %v3556_v32  ;;  %v3688_v31 = vld [vmem:[#allocation14 + $0x1b20] sm:$0xff] }
 0x5f4   :  { %13040 = vmatpush1.bf16.msra.mxu0 %v15137_v55  ;;  %12877 = vmatprep.subr.bf16.mxu1 %v15160_v44  ;;  %v15281_v55 = vcombine.low %v3545_v34, %v3557_v50  ;;  %v15304_v44 = vcombine.high %v3568_v41, %v3580_v27  ;;  %v3700_v32 = vld [vmem:[#allocation14 + $0x1b80] sm:$0xff]  ;;  %v3689_v34 = vld [vmem:[#allocation14 + $0x1b28] sm:$0xff] }
 0x5f5   :  { %13041 = vmatprep.subr.bf16.mxu0 %v15162_v56  ;;  %v15306_v56 = vcombine.high %v3569_v48, %v3581_v51  ;;  %v3701_v50 = vld [vmem:[#allocation14 + $0x1b88] sm:$0xff] }
 0x5f7   :  { %12878 = vmatpush1.bf16.msra.mxu1 %v15159_v63  ;;  %v15303_v63 = vcombine.low %v3568_v41, %v3580_v27  ;;  %v3712_v41 = vld [vmem:[#allocation14 + $0x1be0] sm:$0xff] }
 0x5f8   :  { %13042 = vmatpush1.bf16.msra.mxu0 %v15161_v1  ;;  %12879 = vmatprep.subr.bf16.mxu1 %v15184_v4  ;;  %v15305_v1 = vcombine.low %v3569_v48, %v3581_v51  ;;  %v15328_v4 = vcombine.high %v3592_v57, %v3604_v59  ;;  %v3724_v27 = vld [vmem:[#allocation14 + $0x1c40] sm:$0xff]  ;;  %v3713_v48 = vld [vmem:[#allocation14 + $0x1be8] sm:$0xff] }
 0x5f9   :  { %13043 = vmatprep.subr.bf16.mxu0 %v15186_v5  ;;  %v15330_v5 = vcombine.high %v3593_v60, %v3605_v62  ;;  %v3725_v51 = vld [vmem:[#allocation14 + $0x1c48] sm:$0xff]  ;;  %v3736_v57 = vld [vmem:[#allocation14 + $0x1ca0] sm:$0xff] }
 0x5fa   :  { %v3748_v59 = vld [vmem:[#allocation14 + $0x1d00] sm:$0xff] }
 0x5fb   :  { %12880 = vmatpush1.bf16.msra.mxu1 %v15183_v12  ;;  %v3629_v12 = vld [vmem:[#allocation14 + $0x1948] sm:$0xff] }
 0x5fc   :  { %13044 = vmatpush1.bf16.msra.mxu0 %v15185_v2  ;;  %12881 = vmatprep.subr.bf16.mxu1 %v15208_v14  ;;  %v15329_v2 = vcombine.low %v3593_v60, %v3605_v62  ;;  %v15352_v14 = vcombine.high %v3616_v6, %v3628_v7  ;;  %v15354_v16 = vcombine.high %v3617_v25, %v3629_v12  ;;  %v3737_v60 = vld [vmem:[#allocation14 + $0x1ca8] sm:$0xff] }
 0x5fd   :  { %13045 = vmatprep.subr.bf16.mxu0 %v15210_v15  ;;  %v3640_v15 = vld [vmem:[#allocation14 + $0x19a0] sm:$0xff]  ;;  %v3749_v62 = vld [vmem:[#allocation14 + $0x1d08] sm:$0xff] }
 0x5ff   :  { %12882 = vmatpush1.bf16.msra.mxu1 %v15207_v8  ;;  %v15351_v8 = vcombine.low %v3616_v6, %v3628_v7  ;;  %v3760_v6 = vld [vmem:[#allocation14 + $0x1d60] sm:$0xff] }
 0x600   :  { %13046 = vmatpush1.bf16.msra.mxu0 %v15209_v19  ;;  %12883 = vmatprep.subr.bf16.mxu1 %v15232_v20  ;;  %v15353_v19 = vcombine.low %v3617_v25, %v3629_v12  ;;  %v15376_v20 = vcombine.high %v3640_v15, %v3652_v10  ;;  %v3772_v7 = vld [vmem:[#allocation14 + $0x1dc0] sm:$0xff]  ;;  %v3773_v25 = vld [vmem:[#allocation14 + $0x1dc8] sm:$0xff]  ;;  %v15471_v12 = vcombine.low %v3736_v57, %v3748_v59 }
 0x601   :  { %13047 = vmatprep.subr.bf16.mxu0 %v15234_v26  ;;  %v15378_v26 = vcombine.high %v3641_v17, %v3653_v18 }
 0x603   :  { %12884 = vmatpush1.bf16.msra.mxu1 %v15231_v33  ;;  %v15375_v33 = vcombine.low %v3640_v15, %v3652_v10  ;;  %v3784_v10 = vld [vmem:[#allocation14 + $0x1e20] sm:$0xff] }
 0x604   :  { %13048 = vmatpush1.bf16.msra.mxu0 %v15233_v28  ;;  %12885 = vmatprep.subr.bf16.mxu1 %v15256_v29  ;;  %v15377_v28 = vcombine.low %v3641_v17, %v3653_v18  ;;  %v15400_v29 = vcombine.high %v3664_v21, %v3676_v22  ;;  %v3785_v17 = vld [vmem:[#allocation14 + $0x1e28] sm:$0xff] }
 0x605   :  { %13049 = vmatprep.subr.bf16.mxu0 %v15258_v30  ;;  %v15402_v30 = vcombine.high %v3665_v23, %v3677_v24  ;;  %v3797_v18 = vld [vmem:[#allocation14 + $0x1e88] sm:$0xff] }
 0x607   :  { %12886 = vmatpush1.bf16.msra.mxu1 %v15255_v36  ;;  %v15399_v36 = vcombine.low %v3664_v21, %v3676_v22  ;;  %v3808_v21 = vld [vmem:[#allocation14 + $0x1ee0] sm:$0xff] }
 0x608   :  { %13050 = vmatpush1.bf16.msra.mxu0 %v15257_v37  ;;  %12887 = vmatprep.subr.bf16.mxu1 %v15280_v38  ;;  %v15401_v37 = vcombine.low %v3665_v23, %v3677_v24  ;;  %v15424_v38 = vcombine.high %v3688_v31, %v3700_v32  ;;  %v3820_v22 = vld [vmem:[#allocation14 + $0x1f40] sm:$0xff]  ;;  %v3809_v23 = vld [vmem:[#allocation14 + $0x1ee8] sm:$0xff] }
 0x609   :  { %13051 = vmatprep.subr.bf16.mxu0 %v15282_v39  ;;  %v15426_v39 = vcombine.high %v3689_v34, %v3701_v50  ;;  %v3821_v24 = vld [vmem:[#allocation14 + $0x1f48] sm:$0xff] }
 0x60b   :  { %12888 = vmatpush1.bf16.msra.mxu1 %v15279_v52  ;;  %v15423_v52 = vcombine.low %v3688_v31, %v3700_v32  ;;  %v3832_v31 = vld [vmem:[#allocation14 + $0x1fa0] sm:$0xff] }
 0x60c   :  { %13052 = vmatpush1.bf16.msra.mxu0 %v15281_v55  ;;  %12889 = vmatprep.subr.bf16.mxu1 %v15304_v44  ;;  %v15425_v55 = vcombine.low %v3689_v34, %v3701_v50  ;;  %v15448_v44 = vcombine.high %v3712_v41, %v3724_v27  ;;  %v3844_v32 = vld [vmem:[#allocation14 + $0x2000] sm:$0xff]  ;;  %v3833_v34 = vld [vmem:[#allocation14 + $0x1fa8] sm:$0xff] }
 0x60d   :  { %13053 = vmatprep.subr.bf16.mxu0 %v15306_v56  ;;  %v15450_v56 = vcombine.high %v3713_v48, %v3725_v51  ;;  %v3845_v50 = vld [vmem:[#allocation14 + $0x2008] sm:$0xff] }
 0x60f   :  { %12890 = vmatpush1.bf16.msra.mxu1 %v15303_v63  ;;  %v15447_v63 = vcombine.low %v3712_v41, %v3724_v27  ;;  %v3856_v41 = vld [vmem:[#allocation14 + $0x2060] sm:$0xff] }
 0x610   :  { %13054 = vmatpush1.bf16.msra.mxu0 %v15305_v1  ;;  %12900 = vmatprep.subr.bf16.mxu1 %v15328_v4  ;;  %v15449_v1 = vcombine.low %v3713_v48, %v3725_v51  ;;  %v15472_v4 = vcombine.high %v3736_v57, %v3748_v59  ;;  %v3868_v27 = vld [vmem:[#allocation14 + $0x20c0] sm:$0xff]  ;;  %v3857_v48 = vld [vmem:[#allocation14 + $0x2068] sm:$0xff] }
 0x611   :  { %13064 = vmatprep.subr.bf16.mxu0 %v15330_v5  ;;  %v15474_v5 = vcombine.high %v3737_v60, %v3749_v62  ;;  %v3869_v51 = vld [vmem:[#allocation14 + $0x20c8] sm:$0xff]  ;;  %v3880_v57 = vld [vmem:[#allocation14 + $0x2120] sm:$0xff] }
 0x612   :  { %12892 = vmatmul.mubr.bf16.vlgmr.msra.gmra.mrb[20].mxu1 %v17014_v13  ;;  %v3892_v59 = vld [vmem:[#allocation14 + $0x2180] sm:$0xff] }
 0x613   :  { %13056 = vmatmul.mubr.bf16.vlgmr.msra.gmra.mrb[24].mxu0 %v17014_v13  ;;  %12901 = vmatpush1.bf16.msra.mxu1 %v15327_v9  ;;  %v3761_v9 = vld [vmem:[#allocation14 + $0x1d68] sm:$0xff] }
 0x614   :  { %12932 = vmatprep.mubr.bf16.mxu1 %v17035_v61  ;;  %13065 = vmatpush1.bf16.msra.mxu0 %v15329_v2  ;;  %v15473_v2 = vcombine.low %v3737_v60, %v3749_v62  ;;  %v15498_v15 = vcombine.high %v3761_v9, %v3773_v25  ;;  %v3881_v60 = vld [vmem:[#allocation14 + $0x2128] sm:$0xff] }
 0x615   :  { %13096 = vmatprep.mubr.bf16.mxu0 %v17035_v61  ;;  %12902 = vmatprep.subr.bf16.mxu1 %v15352_v14  ;;  %v15496_v14 = vcombine.high %v3760_v6, %v3772_v7  ;;  %v3893_v62 = vld [vmem:[#allocation14 + $0x2188] sm:$0xff] }
 0x616   :  { %13066 = vmatprep.subr.bf16.mxu0 %v15354_v16  ;;  %v3796_v16 = vld [vmem:[#allocation14 + $0x1e80] sm:$0xff] }
 0x617   :  { %12903 = vmatpush1.bf16.msra.mxu1 %v15351_v8  ;;  %v15495_v8 = vcombine.low %v3760_v6, %v3772_v7  ;;  %v3904_v6 = vld [vmem:[#allocation14 + $0x21e0] sm:$0xff] }
 0x618   :  { %13067 = vmatpush1.bf16.msra.mxu0 %v15353_v19  ;;  %12904 = vmatprep.subr.bf16.mxu1 %v15376_v20  ;;  %v15497_v19 = vcombine.low %v3761_v9, %v3773_v25  ;;  %v15520_v20 = vcombine.high %v3784_v10, %v3796_v16  ;;  %v3916_v7 = vld [vmem:[#allocation14 + $0x2240] sm:$0xff]  ;;  %v3905_v9 = vld [vmem:[#allocation14 + $0x21e8] sm:$0xff] }
 0x619   :  { %13068 = vmatprep.subr.bf16.mxu0 %v15378_v26  ;;  %v15522_v26 = vcombine.high %v3785_v17, %v3797_v18  ;;  %v3917_v25 = vld [vmem:[#allocation14 + $0x2248] sm:$0xff] }
 0x61b   :  { %12905 = vmatpush1.bf16.msra.mxu1 %v15375_v33  ;;  %v15519_v33 = vcombine.low %v3784_v10, %v3796_v16  ;;  %v3928_v10 = vld [vmem:[#allocation14 + $0x22a0] sm:$0xff] }
 0x61c   :  { %13069 = vmatpush1.bf16.msra.mxu0 %v15377_v28  ;;  %12906 = vmatprep.subr.bf16.mxu1 %v15400_v29  ;;  %v15521_v28 = vcombine.low %v3785_v17, %v3797_v18  ;;  %v15544_v29 = vcombine.high %v3808_v21, %v3820_v22  ;;  %v3940_v16 = vld [vmem:[#allocation14 + $0x2300] sm:$0xff]  ;;  %v3929_v17 = vld [vmem:[#allocation14 + $0x22a8] sm:$0xff] }
 0x61d   :  { %13070 = vmatprep.subr.bf16.mxu0 %v15402_v30  ;;  %v15546_v30 = vcombine.high %v3809_v23, %v3821_v24  ;;  %v3941_v18 = vld [vmem:[#allocation14 + $0x2308] sm:$0xff] }
 0x61f   :  { %12907 = vmatpush1.bf16.msra.mxu1 %v15399_v36  ;;  %v15543_v36 = vcombine.low %v3808_v21, %v3820_v22  ;;  %v3952_v21 = vld [vmem:[#allocation14 + $0x2360] sm:$0xff] }
 0x620   :  { %13071 = vmatpush1.bf16.msra.mxu0 %v15401_v37  ;;  %12908 = vmatprep.subr.bf16.mxu1 %v15424_v38  ;;  %v15545_v37 = vcombine.low %v3809_v23, %v3821_v24  ;;  %v15568_v38 = vcombine.high %v3832_v31, %v3844_v32  ;;  %v3964_v22 = vld [vmem:[#allocation14 + $0x23c0] sm:$0xff]  ;;  %v3953_v23 = vld [vmem:[#allocation14 + $0x2368] sm:$0xff] }
 0x621   :  { %13072 = vmatprep.subr.bf16.mxu0 %v15426_v39  ;;  %v15570_v39 = vcombine.high %v3833_v34, %v3845_v50  ;;  %v3965_v24 = vld [vmem:[#allocation14 + $0x23c8] sm:$0xff] }
 0x623   :  { %12909 = vmatpush1.bf16.msra.mxu1 %v15423_v52  ;;  %v15567_v52 = vcombine.low %v3832_v31, %v3844_v32  ;;  %v3976_v31 = vld [vmem:[#allocation14 + $0x2420] sm:$0xff] }
 0x624   :  { %13073 = vmatpush1.bf16.msra.mxu0 %v15425_v55  ;;  %12910 = vmatprep.subr.bf16.mxu1 %v15448_v44  ;;  %v15569_v55 = vcombine.low %v3833_v34, %v3845_v50  ;;  %v15592_v44 = vcombine.high %v3856_v41, %v3868_v27  ;;  %v3988_v32 = vld [vmem:[#allocation14 + $0x2480] sm:$0xff]  ;;  %v3977_v34 = vld [vmem:[#allocation14 + $0x2428] sm:$0xff] }
 0x625   :  { %13074 = vmatprep.subr.bf16.mxu0 %v15450_v56  ;;  %v15594_v56 = vcombine.high %v3857_v48, %v3869_v51  ;;  %v3989_v50 = vld [vmem:[#allocation14 + $0x2488] sm:$0xff] }
 0x627   :  { %12911 = vmatpush1.bf16.msra.mxu1 %v15447_v63  ;;  %v15591_v63 = vcombine.low %v3856_v41, %v3868_v27  ;;  %v4000_v41 = vld [vmem:[#allocation14 + $0x24e0] sm:$0xff] }
 0x628   :  { %13075 = vmatpush1.bf16.msra.mxu0 %v15449_v1  ;;  %12912 = vmatprep.subr.bf16.mxu1 %v15472_v4  ;;  %v15593_v1 = vcombine.low %v3857_v48, %v3869_v51  ;;  %v15616_v4 = vcombine.high %v3880_v57, %v3892_v59  ;;  %v4012_v27 = vld [vmem:[#allocation14 + $0x2540] sm:$0xff]  ;;  %v15711_v48 = vcombine.low %v3976_v31, %v3988_v32  ;;  %v4001_v51 = vld [vmem:[#allocation14 + $0x24e8] sm:$0xff] }
 0x629   :  { %13076 = vmatprep.subr.bf16.mxu0 %v15474_v5  ;;  %v15618_v5 = vcombine.high %v3881_v60, %v3893_v62 }
 0x62b   :  { %12913 = vmatpush1.bf16.msra.mxu1 %v15471_v12  ;;  %v15615_v12 = vcombine.low %v3880_v57, %v3892_v59  ;;  %v4036_v57 = vld [vmem:[#allocation14 + $0x2600] sm:$0xff] }
 0x62c   :  { %13077 = vmatpush1.bf16.msra.mxu0 %v15473_v2  ;;  %12914 = vmatprep.subr.bf16.mxu1 %v15496_v14  ;;  %v15617_v2 = vcombine.low %v3881_v60, %v3893_v62  ;;  %v15640_v14 = vcombine.high %v3904_v6, %v3916_v7  ;;  %v4025_v60 = vld [vmem:[#allocation14 + $0x25a8] sm:$0xff] }
 0x62d   :  { %13078 = vmatprep.subr.bf16.mxu0 %v15498_v15  ;;  %v15642_v15 = vcombine.high %v3905_v9, %v3917_v25  ;;  %v4037_v62 = vld [vmem:[#allocation14 + $0x2608] sm:$0xff] }
 0x62f   :  { %12915 = vmatpush1.bf16.msra.mxu1 %v15495_v8  ;;  %v15639_v8 = vcombine.low %v3904_v6, %v3916_v7  ;;  %v4048_v6 = vld [vmem:[#allocation14 + $0x2660] sm:$0xff] }
 0x630   :  { %13079 = vmatpush1.bf16.msra.mxu0 %v15497_v19  ;;  %12916 = vmatprep.subr.bf16.mxu1 %v15520_v20  ;;  %v15641_v19 = vcombine.low %v3905_v9, %v3917_v25  ;;  %v15664_v20 = vcombine.high %v3928_v10, %v3940_v16  ;;  %v4060_v7 = vld [vmem:[#allocation14 + $0x26c0] sm:$0xff]  ;;  %v4049_v9 = vld [vmem:[#allocation14 + $0x2668] sm:$0xff] }
 0x631   :  { %13080 = vmatprep.subr.bf16.mxu0 %v15522_v26  ;;  %v15666_v26 = vcombine.high %v3929_v17, %v3941_v18  ;;  %v4061_v25 = vld [vmem:[#allocation14 + $0x26c8] sm:$0xff] }
 0x633   :  { %12917 = vmatpush1.bf16.msra.mxu1 %v15519_v33  ;;  %v15663_v33 = vcombine.low %v3928_v10, %v3940_v16  ;;  %v4072_v10 = vld [vmem:[#allocation14 + $0x2720] sm:$0xff] }
 0x634   :  { %13081 = vmatpush1.bf16.msra.mxu0 %v15521_v28  ;;  %12918 = vmatprep.subr.bf16.mxu1 %v15544_v29  ;;  %v15665_v28 = vcombine.low %v3929_v17, %v3941_v18  ;;  %v15688_v29 = vcombine.high %v3952_v21, %v3964_v22  ;;  %v4084_v16 = vld [vmem:[#allocation14 + $0x2780] sm:$0xff]  ;;  %v4073_v17 = vld [vmem:[#allocation14 + $0x2728] sm:$0xff] }
 0x635   :  { %13082 = vmatprep.subr.bf16.mxu0 %v15546_v30  ;;  %v15690_v30 = vcombine.high %v3953_v23, %v3965_v24  ;;  %v4085_v18 = vld [vmem:[#allocation14 + $0x2788] sm:$0xff] }
 0x637   :  { %12919 = vmatpush1.bf16.msra.mxu1 %v15543_v36  ;;  %v15687_v36 = vcombine.low %v3952_v21, %v3964_v22  ;;  %v4096_v21 = vld [vmem:[#allocation14 + $0x27e0] sm:$0xff] }
 0x638   :  { %13083 = vmatpush1.bf16.msra.mxu0 %v15545_v37  ;;  %12920 = vmatprep.subr.bf16.mxu1 %v15568_v38  ;;  %v15689_v37 = vcombine.low %v3953_v23, %v3965_v24  ;;  %v15712_v38 = vcombine.high %v3976_v31, %v3988_v32  ;;  %v4108_v22 = vld [vmem:[#allocation14 + $0x2840] sm:$0xff]  ;;  %v4097_v23 = vld [vmem:[#allocation14 + $0x27e8] sm:$0xff] }
 0x639   :  { %13084 = vmatprep.subr.bf16.mxu0 %v15570_v39  ;;  %v15714_v39 = vcombine.high %v3977_v34, %v3989_v50  ;;  %v4109_v24 = vld [vmem:[#allocation14 + $0x2848] sm:$0xff]  ;;  %v4120_v31 = vld [vmem:[#allocation14 + $0x28a0] sm:$0xff] }
 0x63a   :  { %v4132_v32 = vld [vmem:[#allocation14 + $0x2900] sm:$0xff] }
 0x63b   :  { %12921 = vmatpush1.bf16.msra.mxu1 %v15567_v52  ;;  %v4013_v52 = vld [vmem:[#allocation14 + $0x2548] sm:$0xff] }
 0x63c   :  { %13085 = vmatpush1.bf16.msra.mxu0 %v15569_v55  ;;  %12922 = vmatprep.subr.bf16.mxu1 %v15592_v44  ;;  %v15713_v55 = vcombine.low %v3977_v34, %v3989_v50  ;;  %v15736_v44 = vcombine.high %v4000_v41, %v4012_v27  ;;  %v15738_v59 = vcombine.high %v4001_v51, %v4013_v52  ;;  %v16520_v34 = vld [vmem:[#allocation16] sm:$0xff] }
 0x63d   :  { %13086 = vmatprep.subr.bf16.mxu0 %v15594_v56  ;;  %v4024_v56 = vld [vmem:[#allocation14 + $0x25a0] sm:$0xff]  ;;  %v4381_v50 = vrot.slane %v16520_v34, %v17019_v42 }
 0x63f   :  { %12923 = vmatpush1.bf16.msra.mxu1 %v15591_v63  ;;  %v15735_v63 = vcombine.low %v4000_v41, %v4012_v27  ;;  %v15831_v41 = vcombine.low %v4096_v21, %v4108_v22  ;;  %v4393_v27 = vrot.slane %v16520_v34, %v17025_v53 }
 0x640   :  { %13087 = vmatpush1.bf16.msra.mxu0 %v15593_v1  ;;  %12924 = vmatprep.subr.bf16.mxu1 %v15616_v4  ;;  %v15737_v1 = vcombine.low %v4001_v51, %v4013_v52  ;;  %v15760_v4 = vcombine.high %v4024_v56, %v4036_v57  ;;  %v15856_v51 = vcombine.high %v4120_v31, %v4132_v32 }
 0x641   :  { %13088 = vmatprep.subr.bf16.mxu0 %v15618_v5  ;;  %v15762_v5 = vcombine.high %v4025_v60, %v4037_v62 }
 0x643   :  { %12925 = vmatpush1.bf16.msra.mxu1 %v15615_v12  ;;  %v15759_v12 = vcombine.low %v4024_v56, %v4036_v57  ;;  %v4156_v56 = vld [vmem:[#allocation14 + $0x29c0] sm:$0xff] }
 0x644   :  { %13089 = vmatpush1.bf16.msra.mxu0 %v15617_v2  ;;  %12926 = vmatprep.subr.bf16.mxu1 %v15640_v14  ;;  %v15761_v2 = vcombine.low %v4025_v60, %v4037_v62  ;;  %v15784_v14 = vcombine.high %v4048_v6, %v4060_v7  ;;  %v4145_v62 = vld [vmem:[#allocation14 + $0x2968] sm:$0xff] }
 0x645   :  { %13090 = vmatprep.subr.bf16.mxu0 %v15642_v15  ;;  %v15786_v15 = vcombine.high %v4049_v9, %v4061_v25 }
 0x647   :  { %12927 = vmatpush1.bf16.msra.mxu1 %v15639_v8  ;;  %v15783_v8 = vcombine.low %v4048_v6, %v4060_v7  ;;  %v15855_v7 = vcombine.low %v4120_v31, %v4132_v32  ;;  %v4216_v32 = vld [vmem:[#allocation14 + $0x2ba0] sm:$0xff] }
 0x648   :  { %13091 = vmatpush1.bf16.msra.mxu0 %v15641_v19  ;;  %12928 = vmatprep.subr.bf16.mxu1 %v15664_v20  ;;  %v15785_v19 = vcombine.low %v4049_v9, %v4061_v25  ;;  %v15808_v20 = vcombine.high %v4072_v10, %v4084_v16 }
 0x649   :  { %13092 = vmatprep.subr.bf16.mxu0 %v15666_v26  ;;  %v15810_v26 = vcombine.high %v4073_v17, %v4085_v18 }
 0x64b   :  { %12929 = vmatpush1.bf16.msra.mxu1 %v15663_v33  ;;  %v15807_v33 = vcombine.low %v4072_v10, %v4084_v16  ;;  %v4168_v16 = vld [vmem:[#allocation14 + $0x2a20] sm:$0xff] }
 0x64c   :  { %13093 = vmatpush1.bf16.msra.mxu0 %v15665_v28  ;;  %12930 = vmatprep.subr.bf16.mxu1 %v15688_v29  ;;  %v15809_v28 = vcombine.low %v4073_v17, %v4085_v18  ;;  %v15832_v29 = vcombine.high %v4096_v21, %v4108_v22  ;;  %v4180_v17 = vld [vmem:[#allocation14 + $0x2a80] sm:$0xff]  ;;  %v4169_v18 = vld [vmem:[#allocation14 + $0x2a28] sm:$0xff] }
 0x64d   :  { %13094 = vmatprep.subr.bf16.mxu0 %v15690_v30  ;;  %v15834_v30 = vcombine.high %v4097_v23, %v4109_v24  ;;  %v4192_v22 = vld [vmem:[#allocation14 + $0x2ae0] sm:$0xff] }
 0x64f   :  { %12931 = vmatpush1.bf16.msra.mxu1 %v15687_v36  ;;  %v4121_v36 = vld [vmem:[#allocation14 + $0x28a8] sm:$0xff] }
 0x650   :  { %13095 = vmatpush1.bf16.msra.mxu0 %v15689_v37  ;;  %12941 = vmatprep.subr.bf16.mxu1 %v15712_v38  ;;  %v4133_v37 = vld [vmem:[#allocation14 + $0x2908] sm:$0xff]  ;;  %v4389_v38 = vrot.slane %v16520_v34, %v17048_v35 }
 0x651   :  { %13105 = vmatprep.subr.bf16.mxu0 %v15714_v39  ;;  %v4385_v39 = vrot.slane %v16520_v34, %v17022_v46  ;;  %v4228_v34 = vld [vmem:[#allocation14 + $0x2c00] sm:$0xff] }
 0x652   :  { %12933 = vmatmul.mubr.bf16.vlgmr.msra.gmra.mrb[20].mxu1 %v17037_v0 }
 0x653   :  { %13097 = vmatmul.mubr.bf16.vlgmr.msra.gmra.mrb[24].mxu0 %v17037_v0  ;;  %12942 = vmatpush1.bf16.msra.mxu1 %v15711_v48  ;;  %v15833_v48 = vcombine.low %v4097_v23, %v4109_v24  ;;  %v4204_v23 = vld [vmem:[#allocation14 + $0x2b40] sm:$0xff]  ;;  %v4193_v24 = vld [vmem:[#allocation14 + $0x2ae8] sm:$0xff] }
 0x654   :  { %12973 = vmatprep.mubr.bf16.mxu1 %v17041_v11  ;;  %13106 = vmatpush1.bf16.msra.mxu0 %v15713_v55  ;;  %v15858_v55 = vcombine.high %v4121_v36, %v4133_v37 }
 0x655   :  { %13137 = vmatprep.mubr.bf16.mxu0 %v17041_v11  ;;  %12943 = vmatprep.subr.bf16.mxu1 %v15736_v44  ;;  %v4144_v44 = vld [vmem:[#allocation14 + $0x2960] sm:$0xff] }
 0x656   :  { %13107 = vmatprep.subr.bf16.mxu0 %v15738_v59 }
 0x657   :  { %12944 = vmatpush1.bf16.msra.mxu1 %v15735_v63  ;;  %v4157_v63 = vld [vmem:[#allocation14 + $0x29c8] sm:$0xff] }
 0x658   :  { %13108 = vmatpush1.bf16.msra.mxu0 %v15737_v1  ;;  %12945 = vmatprep.subr.bf16.mxu1 %v15760_v4  ;;  %v15882_v10 = vcombine.high %v4145_v62, %v4157_v63 }
 0x659   :  { %13109 = vmatprep.subr.bf16.mxu0 %v15762_v5 }
 0x65b   :  { %12946 = vmatpush1.bf16.msra.mxu1 %v15759_v12 }
 0x65c   :  { %13110 = vmatpush1.bf16.msra.mxu0 %v15761_v2  ;;  %12947 = vmatprep.subr.bf16.mxu1 %v15784_v14  ;;  %v15857_v2 = vcombine.low %v4121_v36, %v4133_v37  ;;  %v15880_v14 = vcombine.high %v4144_v44, %v4156_v56  ;;  %v4217_v36 = vld [vmem:[#allocation14 + $0x2ba8] sm:$0xff] }
 0x65d   :  { %13111 = vmatprep.subr.bf16.mxu0 %v15786_v15  ;;  %v4229_v37 = vld [vmem:[#allocation14 + $0x2c08] sm:$0xff] }
 0x65f   :  { %12948 = vmatpush1.bf16.msra.mxu1 %v15783_v8  ;;  %v4181_v8 = vld [vmem:[#allocation14 + $0x2a88] sm:$0xff] }
 0x660   :  { %13112 = vmatpush1.bf16.msra.mxu0 %v15785_v19  ;;  %12949 = vmatprep.subr.bf16.mxu1 %v15808_v20  ;;  %v15879_v19 = vcombine.low %v4144_v44, %v4156_v56  ;;  %v15881_v20 = vcombine.low %v4145_v62, %v4157_v63  ;;  %v15906_v21 = vcombine.high %v4169_v18, %v4181_v8  ;;  %v4252_v44 = vld [vmem:[#allocation14 + $0x2cc0] sm:$0xff]  ;;  %v4241_v56 = vld [vmem:[#allocation14 + $0x2c68] sm:$0xff] }
 0x661   :  { %13113 = vmatprep.subr.bf16.mxu0 %v15810_v26  ;;  %v15904_v26 = vcombine.high %v4168_v16, %v4180_v17 }
 0x663   :  { %12950 = vmatpush1.bf16.msra.mxu1 %v15807_v33  ;;  %v4205_v33 = vld [vmem:[#allocation14 + $0x2b48] sm:$0xff] }
 0x664   :  { %13114 = vmatpush1.bf16.msra.mxu0 %v15809_v28  ;;  %12951 = vmatprep.subr.bf16.mxu1 %v15832_v29  ;;  %v15903_v28 = vcombine.low %v4168_v16, %v4180_v17  ;;  %v15905_v29 = vcombine.low %v4169_v18, %v4181_v8  ;;  %v15930_v31 = vcombine.high %v4193_v24, %v4205_v33 }
 0x665   :  { %v12647_v52 = vpop.f32.mrb[16].mxu1  ;;  %13115 = vmatprep.subr.bf16.mxu0 %v15834_v30  ;;  %v15928_v30 = vcombine.high %v4192_v22, %v4204_v23 }
 0x666   :  { %v16099_v57 = vadd.f32 %v12647_v52, %v4381_v50  ;;  %v12811_v59 = vpop.f32.mrb[20].mxu0  ;;  %v12649_v60 = vpop.f32.mrb[17].mxu1  ;;  %v15954_v52 = vcombine.high %v4217_v36, %v4229_v37 }
 0x667   :  { %v16101_v1 = vadd.f32 %v12811_v59, %v4389_v38  ;;  %v16100_v4 = vadd.f32 %v12649_v60, %v4385_v39  ;;  %v12813_v5 = vpop.f32.mrb[21].mxu0  ;;  %v12651_v6 = vpop.f32.mrb[18].mxu1  ;;  %12952 = vmatpush1.bf16.msra.mxu1 %v15831_v41  ;;  %v15927_v39 = vcombine.low %v4192_v22, %v4204_v23  ;;  %v15951_v59 = vcombine.low %v4216_v32, %v4228_v34 }
 0x668   :  { %16479 = vtanh.f32 %v16099_v57  ;;  %v16102_v9 = vadd.f32 %v12813_v5, %v4393_v27  ;;  %v12815_v25 = vpop.f32.mrb[22].mxu0  ;;  %13116 = vmatpush1.bf16.msra.mxu0 %v15833_v48  ;;  %v12652_v12 = vpop.f32.mrb[19].mxu1  ;;  %12953 = vmatprep.subr.bf16.mxu1 %v15856_v51  ;;  %v15929_v27 = vcombine.low %v4193_v24, %v4205_v33  ;;  %v15952_v48 = vcombine.high %v4216_v32, %v4228_v34  ;;  %v4253_v57 = vld [vmem:[#allocation14 + $0x2cc8] sm:$0xff] }
 0x669   :  { %16481 = vtanh.f32 %v16101_v1  ;;  %v12816_v15 = vpop.f32.mrb[23].mxu0  ;;  %13117 = vmatprep.subr.bf16.mxu0 %v15858_v55  ;;  %v4240_v55 = vld [vmem:[#allocation14 + $0x2c60] sm:$0xff]  ;;  %v15953_v60 = vcombine.low %v4217_v36, %v4229_v37  ;;  %v15978_v63 = vcombine.high %v4241_v56, %v4253_v57  ;;  %v4265_v5 = vld [vmem:[#allocation14 + $0x2d28] sm:$0xff]  ;;  %v2826_v37 = vld [vmem:[#allocation14 + $0x30] sm:$0xff] }
 0x66a   :  { %16483 = vtanh.f32 %v16100_v4  ;;  %v15976_v62 = vcombine.high %v4240_v55, %v4252_v44  ;;  %v4264_v1 = vld [vmem:[#allocation14 + $0x2d20] sm:$0xff]  ;;  %v4277_v6 = vld [vmem:[#allocation14 + $0x2d88] sm:$0xff] }
 0x66b   :  { %16485 = vtanh.f32 %v16102_v9  ;;  %12954 = vmatpush1.bf16.msra.mxu1 %v15855_v7  ;;  %v4276_v4 = vld [vmem:[#allocation14 + $0x2d80] sm:$0xff]  ;;  %v15975_v7 = vcombine.low %v4240_v55, %v4252_v44  ;;  %v15977_v9 = vcombine.low %v4241_v56, %v4253_v57  ;;  %v16002_v12 = vcombine.high %v4265_v5, %v4277_v6  ;;  %v4289_v15 = vld [vmem:[#allocation14 + $0x2de8] sm:$0xff]  ;;  %v2850_v55 = vld [vmem:[#allocation14 + $0xf0] sm:$0xff] }
 0x66c   :  { %13118 = vmatpush1.bf16.msra.mxu0 %v15857_v2  ;;  %12955 = vmatprep.subr.bf16.mxu1 %v15880_v14  ;;  %v16000_v25 = vcombine.high %v4264_v1, %v4276_v4  ;;  %v4288_v2 = vld [vmem:[#allocation14 + $0x2de0] sm:$0xff]  ;;  %v15999_v16 = vcombine.low %v4264_v1, %v4276_v4  ;;  %v16001_v17 = vcombine.low %v4265_v5, %v4277_v6  ;;  %v2862_v44 = vld [vmem:[#allocation14 + $0x150] sm:$0xff]  ;;  %v2851_v57 = vld [vmem:[#allocation14 + $0xf8] sm:$0xff] }
 0x66d   :  { %13119 = vmatprep.subr.bf16.mxu0 %v15882_v10  ;;  %v4300_v14 = vld [vmem:[#allocation14 + $0x2e40] sm:$0xff]  ;;  %v4301_v10 = vld [vmem:[#allocation14 + $0x2e48] sm:$0xff]  ;;  %v2886_v1 = vld [vmem:[#allocation14 + $0x210] sm:$0xff] }
 0x66e   :  { %v16024_v18 = vcombine.high %v4288_v2, %v4300_v14  ;;  %v16026_v8 = vcombine.high %v4289_v15, %v4301_v10  ;;  %v16023_v22 = vcombine.low %v4288_v2, %v4300_v14  ;;  %v16025_v23 = vcombine.low %v4289_v15, %v4301_v10  ;;  %v2875_v5 = vld [vmem:[#allocation14 + $0x1b8] sm:$0xff]  ;;  %v2898_v2 = vld [vmem:[#allocation14 + $0x270] sm:$0xff] }
 0x66f   :  { %12956 = vmatpush1.bf16.msra.mxu1 %v15879_v19  ;;  %v4312_v19 = vld [vmem:[#allocation14 + $0x2ea0] sm:$0xff]  ;;  %v2887_v6 = vld [vmem:[#allocation14 + $0x218] sm:$0xff]  ;;  %v2910_v14 = vld [vmem:[#allocation14 + $0x2d0] sm:$0xff] }
 0x670   :  { %13120 = vmatpush1.bf16.msra.mxu0 %v15881_v20  ;;  %12957 = vmatprep.subr.bf16.mxu1 %v15904_v26  ;;  %v4324_v20 = vld [vmem:[#allocation14 + $0x2f00] sm:$0xff]  ;;  %v4313_v26 = vld [vmem:[#allocation14 + $0x2ea8] sm:$0xff]  ;;  %v2899_v15 = vld [vmem:[#allocation14 + $0x278] sm:$0xff] }
 0x671   :  { %13121 = vmatprep.subr.bf16.mxu0 %v15906_v21  ;;  %v4325_v21 = vld [vmem:[#allocation14 + $0x2f08] sm:$0xff]  ;;  %v16048_v24 = vcombine.high %v4312_v19, %v4324_v20  ;;  %v16047_v32 = vcombine.low %v4312_v19, %v4324_v20  ;;  %v2911_v10 = vld [vmem:[#allocation14 + $0x2d8] sm:$0xff]  ;;  %v2922_v19 = vld [vmem:[#allocation14 + $0x330] sm:$0xff] }
 0x672   :  { %v16480_v50 = vpop.eup %16479  ;;  %v16050_v33 = vcombine.high %v4313_v26, %v4325_v21  ;;  %v16049_v34 = vcombine.low %v4313_v26, %v4325_v21  ;;  %v2934_v20 = vld [vmem:[#allocation14 + $0x390] sm:$0xff]  ;;  %v2923_v26 = vld [vmem:[#allocation14 + $0x338] sm:$0xff] }
 0x673   :  { %v16482_v38 = vpop.eup %16481  ;;  %14158 = vst [vmem:[#allocation17 + $0x20] sm:$0xff] %v16480_v50  ;;  %12958 = vmatpush1.bf16.msra.mxu1 %v15903_v28  ;;  %v4336_v28 = vld [vmem:[#allocation14 + $0x2f60] sm:$0xff]  ;;  %v2935_v21 = vld [vmem:[#allocation14 + $0x398] sm:$0xff] }
 0x674   :  { %v16484_v41 = vpop.eup %16483  ;;  %14160 = vst [vmem:[#allocation17 + $0x30] sm:$0xff] %v16482_v38  ;;  %13122 = vmatpush1.bf16.msra.mxu0 %v15905_v29  ;;  %12959 = vmatprep.subr.bf16.mxu1 %v15928_v30  ;;  %v4348_v29 = vld [vmem:[#allocation14 + $0x2fc0] sm:$0xff]  ;;  %v4337_v30 = vld [vmem:[#allocation14 + $0x2f68] sm:$0xff]  ;;  %v2838_v38 = vld [vmem:[#allocation14 + $0x90] sm:$0xff] }
 0x675   :  { %v16486_v51 = vpop.eup %16485  ;;  %14159 = vst [vmem:[#allocation17 + $0x28] sm:$0xff] %v16484_v41  ;;  %13123 = vmatprep.subr.bf16.mxu0 %v15930_v31  ;;  %v4349_v31 = vld [vmem:[#allocation14 + $0x2fc8] sm:$0xff]  ;;  %v16072_v50 = vcombine.high %v4336_v28, %v4348_v29  ;;  %v2839_v41 = vld [vmem:[#allocation14 + $0x98] sm:$0xff]  ;;  %v14563_v56 = vcombine.low %v2826_v37, %v2838_v38 }
 0x676   :  { %14161 = vst [vmem:[#allocation17 + $0x38] sm:$0xff] %v16486_v51  ;;  %v16074_v36 = vcombine.high %v4337_v30, %v4349_v31  ;;  %v14564_v51 = vcombine.high %v2826_v37, %v2838_v38  ;;  %v2970_v37 = vld [vmem:[#allocation14 + $0x4b0] sm:$0xff] }
 0x677   :  { %12960 = vmatpush1.bf16.msra.mxu1 %v15927_v39  ;;  %v2827_v39 = vld [vmem:[#allocation14 + $0x38] sm:$0xff]  ;;  %v2982_v38 = vld [vmem:[#allocation14 + $0x510] sm:$0xff] }
 0x678   :  { %13124 = vmatpush1.bf16.msra.mxu0 %v15929_v27  ;;  %12961 = vmatprep.subr.bf16.mxu1 %v15952_v48  ;;  %v16071_v27 = vcombine.low %v4336_v28, %v4348_v29  ;;  %v16073_v48 = vcombine.low %v4337_v30, %v4349_v31  ;;  %v2946_v28 = vld [vmem:[#allocation14 + $0x3f0] sm:$0xff]  ;;  %v2947_v30 = vld [vmem:[#allocation14 + $0x3f8] sm:$0xff] }
 0x679   :  { %13125 = vmatprep.subr.bf16.mxu0 %v15954_v52  ;;  %v14566_v52 = vcombine.high %v2827_v39, %v2839_v41  ;;  %v2958_v29 = vld [vmem:[#allocation14 + $0x450] sm:$0xff]  ;;  %v2959_v31 = vld [vmem:[#allocation14 + $0x458] sm:$0xff] }
 0x67b   :  { %12962 = vmatpush1.bf16.msra.mxu1 %v15951_v59  ;;  %v2863_v59 = vld [vmem:[#allocation14 + $0x158] sm:$0xff] }
 0x67c   :  { %13126 = vmatpush1.bf16.msra.mxu0 %v15953_v60  ;;  %12963 = vmatprep.subr.bf16.mxu1 %v15976_v62  ;;  %v14565_v60 = vcombine.low %v2827_v39, %v2839_v41  ;;  %v14588_v62 = vcombine.high %v2850_v55, %v2862_v44  ;;  %v14590_v4 = vcombine.high %v2851_v57, %v2863_v59  ;;  %v2971_v39 = vld [vmem:[#allocation14 + $0x4b8] sm:$0xff] }
 0x67d   :  { %13127 = vmatprep.subr.bf16.mxu0 %v15978_v63  ;;  %v2874_v63 = vld [vmem:[#allocation14 + $0x1b0] sm:$0xff]  ;;  %v2983_v41 = vld [vmem:[#allocation14 + $0x518] sm:$0xff] }
 0x67f   :  { %12964 = vmatpush1.bf16.msra.mxu1 %v15975_v7  ;;  %v14587_v7 = vcombine.low %v2850_v55, %v2862_v44  ;;  %v2994_v55 = vld [vmem:[#allocation14 + $0x570] sm:$0xff] }
 0x680   :  { %13128 = vmatpush1.bf16.msra.mxu0 %v15977_v9  ;;  %12965 = vmatprep.subr.bf16.mxu1 %v16000_v25  ;;  %v14589_v9 = vcombine.low %v2851_v57, %v2863_v59  ;;  %v14612_v25 = vcombine.high %v2874_v63, %v2886_v1  ;;  %v3006_v44 = vld [vmem:[#allocation14 + $0x5d0] sm:$0xff]  ;;  %v3007_v57 = vld [vmem:[#allocation14 + $0x5d8] sm:$0xff]  ;;  %v14707_v59 = vcombine.low %v2970_v37, %v2982_v38 }
 0x681   :  { %13129 = vmatprep.subr.bf16.mxu0 %v16002_v12  ;;  %v14614_v12 = vcombine.high %v2875_v5, %v2887_v6 }
 0x683   :  { %12966 = vmatpush1.bf16.msra.mxu1 %v15999_v16  ;;  %v14611_v16 = vcombine.low %v2874_v63, %v2886_v1  ;;  %v3018_v1 = vld [vmem:[#allocation14 + $0x630] sm:$0xff] }
 0x684   :  { %13130 = vmatpush1.bf16.msra.mxu0 %v16001_v17  ;;  %12967 = vmatprep.subr.bf16.mxu1 %v16024_v18  ;;  %v14613_v17 = vcombine.low %v2875_v5, %v2887_v6  ;;  %v14636_v18 = vcombine.high %v2898_v2, %v2910_v14  ;;  %v3019_v5 = vld [vmem:[#allocation14 + $0x638] sm:$0xff] }
 0x685   :  { %13131 = vmatprep.subr.bf16.mxu0 %v16026_v8  ;;  %v14638_v8 = vcombine.high %v2899_v15, %v2911_v10  ;;  %v3031_v6 = vld [vmem:[#allocation14 + $0x698] sm:$0xff] }
 0x687   :  { %12968 = vmatpush1.bf16.msra.mxu1 %v16023_v22  ;;  %v14635_v22 = vcombine.low %v2898_v2, %v2910_v14  ;;  %v3042_v2 = vld [vmem:[#allocation14 + $0x6f0] sm:$0xff] }
 0x688   :  { %13132 = vmatpush1.bf16.msra.mxu0 %v16025_v23  ;;  %12969 = vmatprep.subr.bf16.mxu1 %v16048_v24  ;;  %v14637_v23 = vcombine.low %v2899_v15, %v2911_v10  ;;  %v14660_v24 = vcombine.high %v2922_v19, %v2934_v20  ;;  %v3054_v14 = vld [vmem:[#allocation14 + $0x750] sm:$0xff]  ;;  %v3043_v15 = vld [vmem:[#allocation14 + $0x6f8] sm:$0xff] }
 0x689   :  { %13133 = vmatprep.subr.bf16.mxu0 %v16050_v33  ;;  %v14662_v33 = vcombine.high %v2923_v26, %v2935_v21  ;;  %v3055_v10 = vld [vmem:[#allocation14 + $0x758] sm:$0xff] }
 0x68b   :  { %12970 = vmatpush1.bf16.msra.mxu1 %v16047_v32  ;;  %v14659_v32 = vcombine.low %v2922_v19, %v2934_v20  ;;  %v3066_v19 = vld [vmem:[#allocation14 + $0x7b0] sm:$0xff] }
 0x68c   :  { %13134 = vmatpush1.bf16.msra.mxu0 %v16049_v34  ;;  %12971 = vmatprep.subr.bf16.mxu1 %v16072_v50  ;;  %v14661_v34 = vcombine.low %v2923_v26, %v2935_v21  ;;  %v14684_v50 = vcombine.high %v2946_v28, %v2958_v29  ;;  %v3078_v20 = vld [vmem:[#allocation14 + $0x810] sm:$0xff]  ;;  %v3067_v26 = vld [vmem:[#allocation14 + $0x7b8] sm:$0xff] }
 0x68d   :  { %13135 = vmatprep.subr.bf16.mxu0 %v16074_v36  ;;  %v14686_v36 = vcombine.high %v2947_v30, %v2959_v31  ;;  %v3079_v21 = vld [vmem:[#allocation14 + $0x818] sm:$0xff] }
 0x68f   :  { %12972 = vmatpush1.bf16.msra.mxu1 %v16071_v27  ;;  %v14683_v27 = vcombine.low %v2946_v28, %v2958_v29  ;;  %v3090_v28 = vld [vmem:[#allocation14 + $0x870] sm:$0xff] }
 0x690   :  { %13136 = vmatpush1.bf16.msra.mxu0 %v16073_v48  ;;  %13146 = vmatprep.subr.bf16.mxu1 %v14564_v51  ;;  %v14685_v48 = vcombine.low %v2947_v30, %v2959_v31  ;;  %v14708_v51 = vcombine.high %v2970_v37, %v2982_v38  ;;  %v3102_v29 = vld [vmem:[#allocation14 + $0x8d0] sm:$0xff]  ;;  %v3091_v30 = vld [vmem:[#allocation14 + $0x878] sm:$0xff] }
 0x691   :  { %13310 = vmatprep.subr.bf16.mxu0 %v14566_v52  ;;  %v14710_v52 = vcombine.high %v2971_v39, %v2983_v41  ;;  %v3103_v31 = vld [vmem:[#allocation14 + $0x8d8] sm:$0xff]  ;;  %v3114_v37 = vld [vmem:[#allocation14 + $0x930] sm:$0xff] }
 0x692   :  { %12974 = vmatmul.mubr.bf16.vlgmr.msra.gmra.mrb[20].mxu1 %v17052_v40  ;;  %v3126_v38 = vld [vmem:[#allocation14 + $0x990] sm:$0xff] }
 0x693   :  { %13138 = vmatmul.mubr.bf16.vlgmr.msra.gmra.mrb[24].mxu0 %v17052_v40  ;;  %13147 = vmatpush1.bf16.msra.mxu1 %v14563_v56  ;;  %v2995_v56 = vld [vmem:[#allocation14 + $0x578] sm:$0xff] }
 0x694   :  { %13178 = vmatprep.mubr.bf16.mxu1 %v16999_v43  ;;  %13311 = vmatpush1.bf16.msra.mxu0 %v14565_v60  ;;  %v14709_v60 = vcombine.low %v2971_v39, %v2983_v41  ;;  %v14734_v63 = vcombine.high %v2995_v56, %v3007_v57  ;;  %v3115_v39 = vld [vmem:[#allocation14 + $0x938] sm:$0xff] }
 0x695   :  { %13342 = vmatprep.mubr.bf16.mxu0 %v16999_v43  ;;  %13148 = vmatprep.subr.bf16.mxu1 %v14588_v62  ;;  %v14732_v62 = vcombine.high %v2994_v55, %v3006_v44  ;;  %v3127_v41 = vld [vmem:[#allocation14 + $0x998] sm:$0xff] }
 0x696   :  { %13312 = vmatprep.subr.bf16.mxu0 %v14590_v4  ;;  %v3030_v4 = vld [vmem:[#allocation14 + $0x690] sm:$0xff] }
 0x697   :  { %13149 = vmatpush1.bf16.msra.mxu1 %v14587_v7  ;;  %v14731_v7 = vcombine.low %v2994_v55, %v3006_v44  ;;  %v3138_v55 = vld [vmem:[#allocation14 + $0x9f0] sm:$0xff] }
 0x698   :  { %13313 = vmatpush1.bf16.msra.mxu0 %v14589_v9  ;;  %13150 = vmatprep.subr.bf16.mxu1 %v14612_v25  ;;  %v14733_v9 = vcombine.low %v2995_v56, %v3007_v57  ;;  %v14756_v25 = vcombine.high %v3018_v1, %v3030_v4  ;;  %v3150_v44 = vld [vmem:[#allocation14 + $0xa50] sm:$0xff]  ;;  %v3139_v56 = vld [vmem:[#allocation14 + $0x9f8] sm:$0xff] }
 0x699   :  { %13314 = vmatprep.subr.bf16.mxu0 %v14614_v12  ;;  %v14758_v12 = vcombine.high %v3019_v5, %v3031_v6  ;;  %v3151_v57 = vld [vmem:[#allocation14 + $0xa58] sm:$0xff] }
 0x69b   :  { %13151 = vmatpush1.bf16.msra.mxu1 %v14611_v16  ;;  %v14755_v16 = vcombine.low %v3018_v1, %v3030_v4  ;;  %v3162_v1 = vld [vmem:[#allocation14 + $0xab0] sm:$0xff] }
 0x69c   :  { %13315 = vmatpush1.bf16.msra.mxu0 %v14613_v17  ;;  %13152 = vmatprep.subr.bf16.mxu1 %v14636_v18  ;;  %v14757_v17 = vcombine.low %v3019_v5, %v3031_v6  ;;  %v14780_v18 = vcombine.high %v3042_v2, %v3054_v14  ;;  %v3174_v4 = vld [vmem:[#allocation14 + $0xb10] sm:$0xff]  ;;  %v3163_v5 = vld [vmem:[#allocation14 + $0xab8] sm:$0xff] }
 0x69d   :  { %13316 = vmatprep.subr.bf16.mxu0 %v14638_v8  ;;  %v14782_v8 = vcombine.high %v3043_v15, %v3055_v10  ;;  %v3175_v6 = vld [vmem:[#allocation14 + $0xb18] sm:$0xff] }
 0x69f   :  { %13153 = vmatpush1.bf16.msra.mxu1 %v14635_v22  ;;  %v14779_v22 = vcombine.low %v3042_v2, %v3054_v14  ;;  %v3186_v2 = vld [vmem:[#allocation14 + $0xb70] sm:$0xff] }
 0x6a0   :  { %13317 = vmatpush1.bf16.msra.mxu0 %v14637_v23  ;;  %13154 = vmatprep.subr.bf16.mxu1 %v14660_v24  ;;  %v14781_v23 = vcombine.low %v3043_v15, %v3055_v10  ;;  %v14804_v24 = vcombine.high %v3066_v19, %v3078_v20  ;;  %v3198_v14 = vld [vmem:[#allocation14 + $0xbd0] sm:$0xff]  ;;  %v3187_v15 = vld [vmem:[#allocation14 + $0xb78] sm:$0xff] }
 0x6a1   :  { %13318 = vmatprep.subr.bf16.mxu0 %v14662_v33  ;;  %v14806_v33 = vcombine.high %v3067_v26, %v3079_v21  ;;  %v3199_v10 = vld [vmem:[#allocation14 + $0xbd8] sm:$0xff] }
 0x6a3   :  { %13155 = vmatpush1.bf16.msra.mxu1 %v14659_v32  ;;  %v14803_v32 = vcombine.low %v3066_v19, %v3078_v20  ;;  %v3210_v19 = vld [vmem:[#allocation14 + $0xc30] sm:$0xff] }
 0x6a4   :  { %13319 = vmatpush1.bf16.msra.mxu0 %v14661_v34  ;;  %13156 = vmatprep.subr.bf16.mxu1 %v14684_v50  ;;  %v14805_v34 = vcombine.low %v3067_v26, %v3079_v21  ;;  %v14828_v50 = vcombine.high %v3090_v28, %v3102_v29  ;;  %v3222_v20 = vld [vmem:[#allocation14 + $0xc90] sm:$0xff]  ;;  %v3211_v26 = vld [vmem:[#allocation14 + $0xc38] sm:$0xff] }
 0x6a5   :  { %13320 = vmatprep.subr.bf16.mxu0 %v14686_v36  ;;  %v14830_v36 = vcombine.high %v3091_v30, %v3103_v31  ;;  %v3223_v21 = vld [vmem:[#allocation14 + $0xc98] sm:$0xff] }
 0x6a7   :  { %13157 = vmatpush1.bf16.msra.mxu1 %v14683_v27  ;;  %v14827_v27 = vcombine.low %v3090_v28, %v3102_v29  ;;  %v3234_v28 = vld [vmem:[#allocation14 + $0xcf0] sm:$0xff] }
 0x6a8   :  { %13321 = vmatpush1.bf16.msra.mxu0 %v14685_v48  ;;  %13158 = vmatprep.subr.bf16.mxu1 %v14708_v51  ;;  %v14829_v48 = vcombine.low %v3091_v30, %v3103_v31  ;;  %v14852_v51 = vcombine.high %v3114_v37, %v3126_v38  ;;  %v3246_v29 = vld [vmem:[#allocation14 + $0xd50] sm:$0xff]  ;;  %v14947_v30 = vcombine.low %v3210_v19, %v3222_v20  ;;  %v3235_v31 = vld [vmem:[#allocation14 + $0xcf8] sm:$0xff] }
 0x6a9   :  { %13322 = vmatprep.subr.bf16.mxu0 %v14710_v52  ;;  %v14854_v52 = vcombine.high %v3115_v39, %v3127_v41 }
 0x6ab   :  { %13159 = vmatpush1.bf16.msra.mxu1 %v14707_v59  ;;  %v14851_v59 = vcombine.low %v3114_v37, %v3126_v38  ;;  %v3270_v37 = vld [vmem:[#allocation14 + $0xe10] sm:$0xff] }
 0x6ac   :  { %13323 = vmatpush1.bf16.msra.mxu0 %v14709_v60  ;;  %13160 = vmatprep.subr.bf16.mxu1 %v14732_v62  ;;  %v14853_v60 = vcombine.low %v3115_v39, %v3127_v41  ;;  %v14876_v62 = vcombine.high %v3138_v55, %v3150_v44  ;;  %v3259_v39 = vld [vmem:[#allocation14 + $0xdb8] sm:$0xff] }
 0x6ad   :  { %13324 = vmatprep.subr.bf16.mxu0 %v14734_v63  ;;  %v14878_v63 = vcombine.high %v3139_v56, %v3151_v57  ;;  %v3271_v41 = vld [vmem:[#allocation14 + $0xe18] sm:$0xff] }
 0x6af   :  { %13161 = vmatpush1.bf16.msra.mxu1 %v14731_v7  ;;  %v14875_v7 = vcombine.low %v3138_v55, %v3150_v44  ;;  %v3282_v55 = vld [vmem:[#allocation14 + $0xe70] sm:$0xff] }
 0x6b0   :  { %13325 = vmatpush1.bf16.msra.mxu0 %v14733_v9  ;;  %13162 = vmatprep.subr.bf16.mxu1 %v14756_v25  ;;  %v14877_v9 = vcombine.low %v3139_v56, %v3151_v57  ;;  %v14900_v25 = vcombine.high %v3162_v1, %v3174_v4  ;;  %v3294_v44 = vld [vmem:[#allocation14 + $0xed0] sm:$0xff]  ;;  %v3283_v56 = vld [vmem:[#allocation14 + $0xe78] sm:$0xff] }
 0x6b1   :  { %13326 = vmatprep.subr.bf16.mxu0 %v14758_v12  ;;  %v14902_v12 = vcombine.high %v3163_v5, %v3175_v6  ;;  %v3295_v57 = vld [vmem:[#allocation14 + $0xed8] sm:$0xff] }
 0x6b3   :  { %13163 = vmatpush1.bf16.msra.mxu1 %v14755_v16  ;;  %v14899_v16 = vcombine.low %v3162_v1, %v3174_v4  ;;  %v3306_v1 = vld [vmem:[#allocation14 + $0xf30] sm:$0xff] }
 0x6b4   :  { %13327 = vmatpush1.bf16.msra.mxu0 %v14757_v17  ;;  %13164 = vmatprep.subr.bf16.mxu1 %v14780_v18  ;;  %v14901_v17 = vcombine.low %v3163_v5, %v3175_v6  ;;  %v14924_v18 = vcombine.high %v3186_v2, %v3198_v14  ;;  %v3318_v4 = vld [vmem:[#allocation14 + $0xf90] sm:$0xff]  ;;  %v3307_v5 = vld [vmem:[#allocation14 + $0xf38] sm:$0xff] }
 0x6b5   :  { %13328 = vmatprep.subr.bf16.mxu0 %v14782_v8  ;;  %v14926_v8 = vcombine.high %v3187_v15, %v3199_v10  ;;  %v3319_v6 = vld [vmem:[#allocation14 + $0xf98] sm:$0xff] }
 0x6b7   :  { %13165 = vmatpush1.bf16.msra.mxu1 %v14779_v22  ;;  %v14923_v22 = vcombine.low %v3186_v2, %v3198_v14  ;;  %v3330_v2 = vld [vmem:[#allocation14 + $0xff0] sm:$0xff] }
 0x6b8   :  { %13329 = vmatpush1.bf16.msra.mxu0 %v14781_v23  ;;  %13166 = vmatprep.subr.bf16.mxu1 %v14804_v24  ;;  %v14925_v23 = vcombine.low %v3187_v15, %v3199_v10  ;;  %v14948_v24 = vcombine.high %v3210_v19, %v3222_v20  ;;  %v3342_v14 = vld [vmem:[#allocation14 + $0x1050] sm:$0xff]  ;;  %v3331_v15 = vld [vmem:[#allocation14 + $0xff8] sm:$0xff] }
 0x6b9   :  { %13330 = vmatprep.subr.bf16.mxu0 %v14806_v33  ;;  %v14950_v33 = vcombine.high %v3211_v26, %v3223_v21  ;;  %v3343_v10 = vld [vmem:[#allocation14 + $0x1058] sm:$0xff]  ;;  %v3354_v19 = vld [vmem:[#allocation14 + $0x10b0] sm:$0xff] }
 0x6ba   :  { %v3366_v20 = vld [vmem:[#allocation14 + $0x1110] sm:$0xff] }
 0x6bb   :  { %13167 = vmatpush1.bf16.msra.mxu1 %v14803_v32  ;;  %v3247_v32 = vld [vmem:[#allocation14 + $0xd58] sm:$0xff] }
 0x6bc   :  { %13331 = vmatpush1.bf16.msra.mxu0 %v14805_v34  ;;  %13168 = vmatprep.subr.bf16.mxu1 %v14828_v50  ;;  %v14949_v34 = vcombine.low %v3211_v26, %v3223_v21  ;;  %v14972_v50 = vcombine.high %v3234_v28, %v3246_v29  ;;  %v14974_v38 = vcombine.high %v3235_v31, %v3247_v32  ;;  %v3355_v26 = vld [vmem:[#allocation14 + $0x10b8] sm:$0xff] }
 0x6bd   :  { %13332 = vmatprep.subr.bf16.mxu0 %v14830_v36  ;;  %v3258_v36 = vld [vmem:[#allocation14 + $0xdb0] sm:$0xff]  ;;  %v3367_v21 = vld [vmem:[#allocation14 + $0x1118] sm:$0xff] }
 0x6bf   :  { %13169 = vmatpush1.bf16.msra.mxu1 %v14827_v27  ;;  %v14971_v27 = vcombine.low %v3234_v28, %v3246_v29  ;;  %v3378_v28 = vld [vmem:[#allocation14 + $0x1170] sm:$0xff] }
 0x6c0   :  { %13333 = vmatpush1.bf16.msra.mxu0 %v14829_v48  ;;  %13170 = vmatprep.subr.bf16.mxu1 %v14852_v51  ;;  %v14973_v48 = vcombine.low %v3235_v31, %v3247_v32  ;;  %v14996_v51 = vcombine.high %v3258_v36, %v3270_v37  ;;  %v3390_v29 = vld [vmem:[#allocation14 + $0x11d0] sm:$0xff]  ;;  %v3391_v31 = vld [vmem:[#allocation14 + $0x11d8] sm:$0xff]  ;;  %v15091_v32 = vcombine.low %v3354_v19, %v3366_v20 }
 0x6c1   :  { %13334 = vmatprep.subr.bf16.mxu0 %v14854_v52  ;;  %v14998_v52 = vcombine.high %v3259_v39, %v3271_v41 }
 0x6c3   :  { %13171 = vmatpush1.bf16.msra.mxu1 %v14851_v59  ;;  %v14995_v59 = vcombine.low %v3258_v36, %v3270_v37  ;;  %v3402_v37 = vld [vmem:[#allocation14 + $0x1230] sm:$0xff] }
 0x6c4   :  { %13335 = vmatpush1.bf16.msra.mxu0 %v14853_v60  ;;  %13172 = vmatprep.subr.bf16.mxu1 %v14876_v62  ;;  %v14997_v60 = vcombine.low %v3259_v39, %v3271_v41  ;;  %v15020_v62 = vcombine.high %v3282_v55, %v3294_v44  ;;  %v3403_v39 = vld [vmem:[#allocation14 + $0x1238] sm:$0xff] }
 0x6c5   :  { %13336 = vmatprep.subr.bf16.mxu0 %v14878_v63  ;;  %v15022_v63 = vcombine.high %v3283_v56, %v3295_v57  ;;  %v3415_v41 = vld [vmem:[#allocation14 + $0x1298] sm:$0xff] }
 0x6c7   :  { %13173 = vmatpush1.bf16.msra.mxu1 %v14875_v7  ;;  %v15019_v7 = vcombine.low %v3282_v55, %v3294_v44  ;;  %v3426_v55 = vld [vmem:[#allocation14 + $0x12f0] sm:$0xff] }
 0x6c8   :  { %13337 = vmatpush1.bf16.msra.mxu0 %v14877_v9  ;;  %13174 = vmatprep.subr.bf16.mxu1 %v14900_v25  ;;  %v15021_v9 = vcombine.low %v3283_v56, %v3295_v57  ;;  %v15044_v25 = vcombine.high %v3306_v1, %v3318_v4  ;;  %v3438_v44 = vld [vmem:[#allocation14 + $0x1350] sm:$0xff]  ;;  %v3427_v56 = vld [vmem:[#allocation14 + $0x12f8] sm:$0xff] }
 0x6c9   :  { %13338 = vmatprep.subr.bf16.mxu0 %v14902_v12  ;;  %v15046_v12 = vcombine.high %v3307_v5, %v3319_v6  ;;  %v3439_v57 = vld [vmem:[#allocation14 + $0x1358] sm:$0xff] }
 0x6cb   :  { %13175 = vmatpush1.bf16.msra.mxu1 %v14899_v16  ;;  %v15043_v16 = vcombine.low %v3306_v1, %v3318_v4  ;;  %v3450_v1 = vld [vmem:[#allocation14 + $0x13b0] sm:$0xff] }
 0x6cc   :  { %13339 = vmatpush1.bf16.msra.mxu0 %v14901_v17  ;;  %13176 = vmatprep.subr.bf16.mxu1 %v14924_v18  ;;  %v15045_v17 = vcombine.low %v3307_v5, %v3319_v6  ;;  %v15068_v18 = vcombine.high %v3330_v2, %v3342_v14  ;;  %v3462_v4 = vld [vmem:[#allocation14 + $0x1410] sm:$0xff]  ;;  %v3451_v5 = vld [vmem:[#allocation14 + $0x13b8] sm:$0xff] }
 0x6cd   :  { %13340 = vmatprep.subr.bf16.mxu0 %v14926_v8  ;;  %v15070_v8 = vcombine.high %v3331_v15, %v3343_v10  ;;  %v3463_v6 = vld [vmem:[#allocation14 + $0x1418] sm:$0xff] }
 0x6cf   :  { %13177 = vmatpush1.bf16.msra.mxu1 %v14923_v22  ;;  %v15067_v22 = vcombine.low %v3330_v2, %v3342_v14  ;;  %v3474_v2 = vld [vmem:[#allocation14 + $0x1470] sm:$0xff] }
 0x6d0   :  { %13341 = vmatpush1.bf16.msra.mxu0 %v14925_v23  ;;  %13187 = vmatprep.subr.bf16.mxu1 %v14948_v24  ;;  %v15069_v23 = vcombine.low %v3331_v15, %v3343_v10  ;;  %v15092_v24 = vcombine.high %v3354_v19, %v3366_v20  ;;  %v3486_v14 = vld [vmem:[#allocation14 + $0x14d0] sm:$0xff]  ;;  %v3475_v15 = vld [vmem:[#allocation14 + $0x1478] sm:$0xff] }
 0x6d1   :  { %13351 = vmatprep.subr.bf16.mxu0 %v14950_v33  ;;  %v15094_v33 = vcombine.high %v3355_v26, %v3367_v21  ;;  %v3487_v10 = vld [vmem:[#allocation14 + $0x14d8] sm:$0xff]  ;;  %v3498_v19 = vld [vmem:[#allocation14 + $0x1530] sm:$0xff] }
 0x6d2   :  { %13179 = vmatmul.mubr.bf16.vlgmr.msra.gmra.mrb[24].mxu1 %v17001_v49  ;;  %v3510_v20 = vld [vmem:[#allocation14 + $0x1590] sm:$0xff] }
 0x6d3   :  { %13343 = vmatmul.mubr.bf16.vlgmr.msra.gmra.mrb[28].mxu0 %v17001_v49  ;;  %13188 = vmatpush1.bf16.msra.mxu1 %v14947_v30  ;;  %v3379_v30 = vld [vmem:[#allocation14 + $0x1178] sm:$0xff] }
 0x6d4   :  { %13219 = vmatprep.mubr.bf16.mxu1 %v17005_v58  ;;  %13352 = vmatpush1.bf16.msra.mxu0 %v14949_v34  ;;  %v15093_v34 = vcombine.low %v3355_v26, %v3367_v21  ;;  %v15118_v36 = vcombine.high %v3379_v30, %v3391_v31  ;;  %v3499_v26 = vld [vmem:[#allocation14 + $0x1538] sm:$0xff] }
 0x6d5   :  { %13383 = vmatprep.mubr.bf16.mxu0 %v17005_v58  ;;  %13189 = vmatprep.subr.bf16.mxu1 %v14972_v50  ;;  %v15116_v50 = vcombine.high %v3378_v28, %v3390_v29  ;;  %v3511_v21 = vld [vmem:[#allocation14 + $0x1598] sm:$0xff] }
 0x6d6   :  { %13353 = vmatprep.subr.bf16.mxu0 %v14974_v38  ;;  %v3414_v38 = vld [vmem:[#allocation14 + $0x1290] sm:$0xff] }
 0x6d7   :  { %13190 = vmatpush1.bf16.msra.mxu1 %v14971_v27  ;;  %v15115_v27 = vcombine.low %v3378_v28, %v3390_v29  ;;  %v3522_v28 = vld [vmem:[#allocation14 + $0x15f0] sm:$0xff] }
 0x6d8   :  { %13354 = vmatpush1.bf16.msra.mxu0 %v14973_v48  ;;  %13191 = vmatprep.subr.bf16.mxu1 %v14996_v51  ;;  %v15117_v48 = vcombine.low %v3379_v30, %v3391_v31  ;;  %v15140_v51 = vcombine.high %v3402_v37, %v3414_v38  ;;  %v3534_v29 = vld [vmem:[#allocation14 + $0x1650] sm:$0xff]  ;;  %v3523_v30 = vld [vmem:[#allocation14 + $0x15f8] sm:$0xff] }
 0x6d9   :  { %13355 = vmatprep.subr.bf16.mxu0 %v14998_v52  ;;  %v15142_v52 = vcombine.high %v3403_v39, %v3415_v41  ;;  %v3535_v31 = vld [vmem:[#allocation14 + $0x1658] sm:$0xff] }
 0x6db   :  { %13192 = vmatpush1.bf16.msra.mxu1 %v14995_v59  ;;  %v15139_v59 = vcombine.low %v3402_v37, %v3414_v38  ;;  %v3546_v37 = vld [vmem:[#allocation14 + $0x16b0] sm:$0xff] }
 0x6dc   :  { %13356 = vmatpush1.bf16.msra.mxu0 %v14997_v60  ;;  %13193 = vmatprep.subr.bf16.mxu1 %v15020_v62  ;;  %v15141_v60 = vcombine.low %v3403_v39, %v3415_v41  ;;  %v15164_v62 = vcombine.high %v3426_v55, %v3438_v44  ;;  %v3558_v38 = vld [vmem:[#allocation14 + $0x1710] sm:$0xff]  ;;  %v3547_v39 = vld [vmem:[#allocation14 + $0x16b8] sm:$0xff] }
 0x6dd   :  { %13357 = vmatprep.subr.bf16.mxu0 %v15022_v63  ;;  %v15166_v63 = vcombine.high %v3427_v56, %v3439_v57  ;;  %v3559_v41 = vld [vmem:[#allocation14 + $0x1718] sm:$0xff] }
 0x6df   :  { %13194 = vmatpush1.bf16.msra.mxu1 %v15019_v7  ;;  %v15163_v7 = vcombine.low %v3426_v55, %v3438_v44  ;;  %v3570_v55 = vld [vmem:[#allocation14 + $0x1770] sm:$0xff] }
 0x6e0   :  { %13358 = vmatpush1.bf16.msra.mxu0 %v15021_v9  ;;  %13195 = vmatprep.subr.bf16.mxu1 %v15044_v25  ;;  %v15165_v9 = vcombine.low %v3427_v56, %v3439_v57  ;;  %v15188_v25 = vcombine.high %v3450_v1, %v3462_v4  ;;  %v3582_v44 = vld [vmem:[#allocation14 + $0x17d0] sm:$0xff]  ;;  %v3571_v56 = vld [vmem:[#allocation14 + $0x1778] sm:$0xff] }
 0x6e1   :  { %13359 = vmatprep.subr.bf16.mxu0 %v15046_v12  ;;  %v15190_v12 = vcombine.high %v3451_v5, %v3463_v6  ;;  %v3583_v57 = vld [vmem:[#allocation14 + $0x17d8] sm:$0xff] }
 0x6e3   :  { %13196 = vmatpush1.bf16.msra.mxu1 %v15043_v16  ;;  %v15187_v16 = vcombine.low %v3450_v1, %v3462_v4  ;;  %v3594_v1 = vld [vmem:[#allocation14 + $0x1830] sm:$0xff] }
 0x6e4   :  { %13360 = vmatpush1.bf16.msra.mxu0 %v15045_v17  ;;  %13197 = vmatprep.subr.bf16.mxu1 %v15068_v18  ;;  %v15189_v17 = vcombine.low %v3451_v5, %v3463_v6  ;;  %v15212_v18 = vcombine.high %v3474_v2, %v3486_v14  ;;  %v3606_v4 = vld [vmem:[#allocation14 + $0x1890] sm:$0xff]  ;;  %v3595_v5 = vld [vmem:[#allocation14 + $0x1838] sm:$0xff] }
 0x6e5   :  { %13361 = vmatprep.subr.bf16.mxu0 %v15070_v8  ;;  %v15214_v8 = vcombine.high %v3475_v15, %v3487_v10  ;;  %v3607_v6 = vld [vmem:[#allocation14 + $0x1898] sm:$0xff] }
 0x6e7   :  { %13198 = vmatpush1.bf16.msra.mxu1 %v15067_v22  ;;  %v15211_v22 = vcombine.low %v3474_v2, %v3486_v14  ;;  %v3618_v2 = vld [vmem:[#allocation14 + $0x18f0] sm:$0xff] }
 0x6e8   :  { %13362 = vmatpush1.bf16.msra.mxu0 %v15069_v23  ;;  %13199 = vmatprep.subr.bf16.mxu1 %v15092_v24  ;;  %v15213_v23 = vcombine.low %v3475_v15, %v3487_v10  ;;  %v15236_v24 = vcombine.high %v3498_v19, %v3510_v20  ;;  %v3630_v14 = vld [vmem:[#allocation14 + $0x1950] sm:$0xff]  ;;  %v15331_v15 = vcombine.low %v3594_v1, %v3606_v4  ;;  %v3619_v10 = vld [vmem:[#allocation14 + $0x18f8] sm:$0xff] }
 0x6e9   :  { %13363 = vmatprep.subr.bf16.mxu0 %v15094_v33  ;;  %v15238_v33 = vcombine.high %v3499_v26, %v3511_v21 }
 0x6eb   :  { %13200 = vmatpush1.bf16.msra.mxu1 %v15091_v32  ;;  %v15235_v32 = vcombine.low %v3498_v19, %v3510_v20  ;;  %v3654_v19 = vld [vmem:[#allocation14 + $0x1a10] sm:$0xff] }
 0x6ec   :  { %13364 = vmatpush1.bf16.msra.mxu0 %v15093_v34  ;;  %13201 = vmatprep.subr.bf16.mxu1 %v15116_v50  ;;  %v15237_v34 = vcombine.low %v3499_v26, %v3511_v21  ;;  %v15260_v50 = vcombine.high %v3522_v28, %v3534_v29  ;;  %v3643_v26 = vld [vmem:[#allocation14 + $0x19b8] sm:$0xff] }
 0x6ed   :  { %13365 = vmatprep.subr.bf16.mxu0 %v15118_v36  ;;  %v15262_v36 = vcombine.high %v3523_v30, %v3535_v31  ;;  %v3655_v21 = vld [vmem:[#allocation14 + $0x1a18] sm:$0xff] }
 0x6ef   :  { %13202 = vmatpush1.bf16.msra.mxu1 %v15115_v27  ;;  %v15259_v27 = vcombine.low %v3522_v28, %v3534_v29  ;;  %v3666_v28 = vld [vmem:[#allocation14 + $0x1a70] sm:$0xff] }
 0x6f0   :  { %13366 = vmatpush1.bf16.msra.mxu0 %v15117_v48  ;;  %13203 = vmatprep.subr.bf16.mxu1 %v15140_v51  ;;  %v15261_v48 = vcombine.low %v3523_v30, %v3535_v31  ;;  %v15284_v51 = vcombine.high %v3546_v37, %v3558_v38  ;;  %v3678_v29 = vld [vmem:[#allocation14 + $0x1ad0] sm:$0xff]  ;;  %v3667_v30 = vld [vmem:[#allocation14 + $0x1a78] sm:$0xff] }
 0x6f1   :  { %13367 = vmatprep.subr.bf16.mxu0 %v15142_v52  ;;  %v15286_v52 = vcombine.high %v3547_v39, %v3559_v41  ;;  %v3679_v31 = vld [vmem:[#allocation14 + $0x1ad8] sm:$0xff] }
 0x6f3   :  { %13204 = vmatpush1.bf16.msra.mxu1 %v15139_v59  ;;  %v15283_v59 = vcombine.low %v3546_v37, %v3558_v38  ;;  %v3690_v37 = vld [vmem:[#allocation14 + $0x1b30] sm:$0xff] }
 0x6f4   :  { %13368 = vmatpush1.bf16.msra.mxu0 %v15141_v60  ;;  %13205 = vmatprep.subr.bf16.mxu1 %v15164_v62  ;;  %v15285_v60 = vcombine.low %v3547_v39, %v3559_v41  ;;  %v15308_v62 = vcombine.high %v3570_v55, %v3582_v44  ;;  %v3702_v38 = vld [vmem:[#allocation14 + $0x1b90] sm:$0xff]  ;;  %v3691_v39 = vld [vmem:[#allocation14 + $0x1b38] sm:$0xff] }
 0x6f5   :  { %13369 = vmatprep.subr.bf16.mxu0 %v15166_v63  ;;  %v15310_v63 = vcombine.high %v3571_v56, %v3583_v57  ;;  %v3703_v41 = vld [vmem:[#allocation14 + $0x1b98] sm:$0xff] }
 0x6f7   :  { %13206 = vmatpush1.bf16.msra.mxu1 %v15163_v7  ;;  %v15307_v7 = vcombine.low %v3570_v55, %v3582_v44  ;;  %v3714_v55 = vld [vmem:[#allocation14 + $0x1bf0] sm:$0xff] }
 0x6f8   :  { %13370 = vmatpush1.bf16.msra.mxu0 %v15165_v9  ;;  %13207 = vmatprep.subr.bf16.mxu1 %v15188_v25  ;;  %v15309_v9 = vcombine.low %v3571_v56, %v3583_v57  ;;  %v15332_v25 = vcombine.high %v3594_v1, %v3606_v4  ;;  %v3726_v44 = vld [vmem:[#allocation14 + $0x1c50] sm:$0xff]  ;;  %v3715_v56 = vld [vmem:[#allocation14 + $0x1bf8] sm:$0xff] }
 0x6f9   :  { %13371 = vmatprep.subr.bf16.mxu0 %v15190_v12  ;;  %v15334_v12 = vcombine.high %v3595_v5, %v3607_v6  ;;  %v3727_v57 = vld [vmem:[#allocation14 + $0x1c58] sm:$0xff]  ;;  %v3738_v1 = vld [vmem:[#allocation14 + $0x1cb0] sm:$0xff] }
 0x6fa   :  { %v3750_v4 = vld [vmem:[#allocation14 + $0x1d10] sm:$0xff] }
 0x6fb   :  { %13208 = vmatpush1.bf16.msra.mxu1 %v15187_v16  ;;  %v3631_v16 = vld [vmem:[#allocation14 + $0x1958] sm:$0xff] }
 0x6fc   :  { %13372 = vmatpush1.bf16.msra.mxu0 %v15189_v17  ;;  %13209 = vmatprep.subr.bf16.mxu1 %v15212_v18  ;;  %v15333_v17 = vcombine.low %v3595_v5, %v3607_v6  ;;  %v15356_v18 = vcombine.high %v3618_v2, %v3630_v14  ;;  %v15358_v20 = vcombine.high %v3619_v10, %v3631_v16  ;;  %v3739_v5 = vld [vmem:[#allocation14 + $0x1cb8] sm:$0xff] }
 0x6fd   :  { %13373 = vmatprep.subr.bf16.mxu0 %v15214_v8  ;;  %v3642_v8 = vld [vmem:[#allocation14 + $0x19b0] sm:$0xff]  ;;  %v3751_v6 = vld [vmem:[#allocation14 + $0x1d18] sm:$0xff] }
 0x6ff   :  { %13210 = vmatpush1.bf16.msra.mxu1 %v15211_v22  ;;  %v15355_v22 = vcombine.low %v3618_v2, %v3630_v14  ;;  %v3762_v2 = vld [vmem:[#allocation14 + $0x1d70] sm:$0xff] }
 0x700   :  { %13374 = vmatpush1.bf16.msra.mxu0 %v15213_v23  ;;  %13211 = vmatprep.subr.bf16.mxu1 %v15236_v24  ;;  %v15357_v23 = vcombine.low %v3619_v10, %v3631_v16  ;;  %v15380_v24 = vcombine.high %v3642_v8, %v3654_v19  ;;  %v3774_v14 = vld [vmem:[#allocation14 + $0x1dd0] sm:$0xff]  ;;  %v3775_v10 = vld [vmem:[#allocation14 + $0x1dd8] sm:$0xff]  ;;  %v15475_v16 = vcombine.low %v3738_v1, %v3750_v4 }
 0x701   :  { %13375 = vmatprep.subr.bf16.mxu0 %v15238_v33  ;;  %v15382_v33 = vcombine.high %v3643_v26, %v3655_v21 }
 0x703   :  { %13212 = vmatpush1.bf16.msra.mxu1 %v15235_v32  ;;  %v15379_v32 = vcombine.low %v3642_v8, %v3654_v19  ;;  %v3786_v19 = vld [vmem:[#allocation14 + $0x1e30] sm:$0xff] }
 0x704   :  { %13376 = vmatpush1.bf16.msra.mxu0 %v15237_v34  ;;  %13213 = vmatprep.subr.bf16.mxu1 %v15260_v50  ;;  %v15381_v34 = vcombine.low %v3643_v26, %v3655_v21  ;;  %v15404_v50 = vcombine.high %v3666_v28, %v3678_v29  ;;  %v3787_v26 = vld [vmem:[#allocation14 + $0x1e38] sm:$0xff] }
 0x705   :  { %13377 = vmatprep.subr.bf16.mxu0 %v15262_v36  ;;  %v15406_v36 = vcombine.high %v3667_v30, %v3679_v31  ;;  %v3799_v21 = vld [vmem:[#allocation14 + $0x1e98] sm:$0xff] }
 0x707   :  { %13214 = vmatpush1.bf16.msra.mxu1 %v15259_v27  ;;  %v15403_v27 = vcombine.low %v3666_v28, %v3678_v29  ;;  %v3810_v28 = vld [vmem:[#allocation14 + $0x1ef0] sm:$0xff] }
 0x708   :  { %13378 = vmatpush1.bf16.msra.mxu0 %v15261_v48  ;;  %13215 = vmatprep.subr.bf16.mxu1 %v15284_v51  ;;  %v15405_v48 = vcombine.low %v3667_v30, %v3679_v31  ;;  %v15428_v51 = vcombine.high %v3690_v37, %v3702_v38  ;;  %v3822_v29 = vld [vmem:[#allocation14 + $0x1f50] sm:$0xff]  ;;  %v3811_v30 = vld [vmem:[#allocation14 + $0x1ef8] sm:$0xff] }
 0x709   :  { %13379 = vmatprep.subr.bf16.mxu0 %v15286_v52  ;;  %v15430_v52 = vcombine.high %v3691_v39, %v3703_v41  ;;  %v3823_v31 = vld [vmem:[#allocation14 + $0x1f58] sm:$0xff] }
 0x70b   :  { %13216 = vmatpush1.bf16.msra.mxu1 %v15283_v59  ;;  %v15427_v59 = vcombine.low %v3690_v37, %v3702_v38  ;;  %v3834_v37 = vld [vmem:[#allocation14 + $0x1fb0] sm:$0xff] }
 0x70c   :  { %13380 = vmatpush1.bf16.msra.mxu0 %v15285_v60  ;;  %13217 = vmatprep.subr.bf16.mxu1 %v15308_v62  ;;  %v15429_v60 = vcombine.low %v3691_v39, %v3703_v41  ;;  %v15452_v62 = vcombine.high %v3714_v55, %v3726_v44  ;;  %v3846_v38 = vld [vmem:[#allocation14 + $0x2010] sm:$0xff]  ;;  %v3835_v39 = vld [vmem:[#allocation14 + $0x1fb8] sm:$0xff] }
 0x70d   :  { %13381 = vmatprep.subr.bf16.mxu0 %v15310_v63  ;;  %v15454_v63 = vcombine.high %v3715_v56, %v3727_v57  ;;  %v3847_v41 = vld [vmem:[#allocation14 + $0x2018] sm:$0xff] }
 0x70f   :  { %13218 = vmatpush1.bf16.msra.mxu1 %v15307_v7  ;;  %v15451_v7 = vcombine.low %v3714_v55, %v3726_v44  ;;  %v3858_v55 = vld [vmem:[#allocation14 + $0x2070] sm:$0xff] }
 0x710   :  { %13382 = vmatpush1.bf16.msra.mxu0 %v15309_v9  ;;  %13228 = vmatprep.subr.bf16.mxu1 %v15332_v25  ;;  %v15453_v9 = vcombine.low %v3715_v56, %v3727_v57  ;;  %v15476_v25 = vcombine.high %v3738_v1, %v3750_v4  ;;  %v3870_v44 = vld [vmem:[#allocation14 + $0x20d0] sm:$0xff]  ;;  %v3859_v56 = vld [vmem:[#allocation14 + $0x2078] sm:$0xff] }
 0x711   :  { %13392 = vmatprep.subr.bf16.mxu0 %v15334_v12  ;;  %v15478_v12 = vcombine.high %v3739_v5, %v3751_v6  ;;  %v3871_v57 = vld [vmem:[#allocation14 + $0x20d8] sm:$0xff]  ;;  %v3882_v1 = vld [vmem:[#allocation14 + $0x2130] sm:$0xff] }
 0x712   :  { %13220 = vmatmul.mubr.bf16.vlgmr.msra.gmra.mrb[24].mxu1 %v17014_v13  ;;  %v3894_v4 = vld [vmem:[#allocation14 + $0x2190] sm:$0xff] }
 0x713   :  { %13384 = vmatmul.mubr.bf16.vlgmr.msra.gmra.mrb[28].mxu0 %v17014_v13  ;;  %13229 = vmatpush1.bf16.msra.mxu1 %v15331_v15  ;;  %v3763_v15 = vld [vmem:[#allocation14 + $0x1d78] sm:$0xff] }
 0x714   :  { %13260 = vmatprep.mubr.bf16.mxu1 %v17035_v61  ;;  %13393 = vmatpush1.bf16.msra.mxu0 %v15333_v17  ;;  %v15477_v17 = vcombine.low %v3739_v5, %v3751_v6  ;;  %v15502_v8 = vcombine.high %v3763_v15, %v3775_v10  ;;  %v3883_v5 = vld [vmem:[#allocation14 + $0x2138] sm:$0xff] }
 0x715   :  { %13424 = vmatprep.mubr.bf16.mxu0 %v17035_v61  ;;  %13230 = vmatprep.subr.bf16.mxu1 %v15356_v18  ;;  %v15500_v18 = vcombine.high %v3762_v2, %v3774_v14  ;;  %v3895_v6 = vld [vmem:[#allocation14 + $0x2198] sm:$0xff] }
 0x716   :  { %13394 = vmatprep.subr.bf16.mxu0 %v15358_v20  ;;  %v3798_v20 = vld [vmem:[#allocation14 + $0x1e90] sm:$0xff] }
 0x717   :  { %13231 = vmatpush1.bf16.msra.mxu1 %v15355_v22  ;;  %v15499_v22 = vcombine.low %v3762_v2, %v3774_v14  ;;  %v3906_v2 = vld [vmem:[#allocation14 + $0x21f0] sm:$0xff] }
 0x718   :  { %13395 = vmatpush1.bf16.msra.mxu0 %v15357_v23  ;;  %13232 = vmatprep.subr.bf16.mxu1 %v15380_v24  ;;  %v15501_v23 = vcombine.low %v3763_v15, %v3775_v10  ;;  %v15524_v24 = vcombine.high %v3786_v19, %v3798_v20  ;;  %v3918_v14 = vld [vmem:[#allocation14 + $0x2250] sm:$0xff]  ;;  %v3907_v15 = vld [vmem:[#allocation14 + $0x21f8] sm:$0xff] }
 0x719   :  { %13396 = vmatprep.subr.bf16.mxu0 %v15382_v33  ;;  %v15526_v33 = vcombine.high %v3787_v26, %v3799_v21  ;;  %v3919_v10 = vld [vmem:[#allocation14 + $0x2258] sm:$0xff] }
 0x71b   :  { %13233 = vmatpush1.bf16.msra.mxu1 %v15379_v32  ;;  %v15523_v32 = vcombine.low %v3786_v19, %v3798_v20  ;;  %v3930_v19 = vld [vmem:[#allocation14 + $0x22b0] sm:$0xff] }
 0x71c   :  { %13397 = vmatpush1.bf16.msra.mxu0 %v15381_v34  ;;  %13234 = vmatprep.subr.bf16.mxu1 %v15404_v50  ;;  %v15525_v34 = vcombine.low %v3787_v26, %v3799_v21  ;;  %v15548_v50 = vcombine.high %v3810_v28, %v3822_v29  ;;  %v3942_v20 = vld [vmem:[#allocation14 + $0x2310] sm:$0xff]  ;;  %v3931_v26 = vld [vmem:[#allocation14 + $0x22b8] sm:$0xff] }
 0x71d   :  { %13398 = vmatprep.subr.bf16.mxu0 %v15406_v36  ;;  %v15550_v36 = vcombine.high %v3811_v30, %v3823_v31  ;;  %v3943_v21 = vld [vmem:[#allocation14 + $0x2318] sm:$0xff] }
 0x71f   :  { %13235 = vmatpush1.bf16.msra.mxu1 %v15403_v27  ;;  %v15547_v27 = vcombine.low %v3810_v28, %v3822_v29  ;;  %v3954_v28 = vld [vmem:[#allocation14 + $0x2370] sm:$0xff] }
 0x720   :  { %13399 = vmatpush1.bf16.msra.mxu0 %v15405_v48  ;;  %13236 = vmatprep.subr.bf16.mxu1 %v15428_v51  ;;  %v15549_v48 = vcombine.low %v3811_v30, %v3823_v31  ;;  %v15572_v51 = vcombine.high %v3834_v37, %v3846_v38  ;;  %v3966_v29 = vld [vmem:[#allocation14 + $0x23d0] sm:$0xff]  ;;  %v3955_v30 = vld [vmem:[#allocation14 + $0x2378] sm:$0xff] }
 0x721   :  { %13400 = vmatprep.subr.bf16.mxu0 %v15430_v52  ;;  %v15574_v52 = vcombine.high %v3835_v39, %v3847_v41  ;;  %v3967_v31 = vld [vmem:[#allocation14 + $0x23d8] sm:$0xff] }
 0x723   :  { %13237 = vmatpush1.bf16.msra.mxu1 %v15427_v59  ;;  %v15571_v59 = vcombine.low %v3834_v37, %v3846_v38  ;;  %v3978_v37 = vld [vmem:[#allocation14 + $0x2430] sm:$0xff] }
 0x724   :  { %13401 = vmatpush1.bf16.msra.mxu0 %v15429_v60  ;;  %13238 = vmatprep.subr.bf16.mxu1 %v15452_v62  ;;  %v15573_v60 = vcombine.low %v3835_v39, %v3847_v41  ;;  %v15596_v62 = vcombine.high %v3858_v55, %v3870_v44  ;;  %v3990_v38 = vld [vmem:[#allocation14 + $0x2490] sm:$0xff]  ;;  %v3979_v39 = vld [vmem:[#allocation14 + $0x2438] sm:$0xff] }
 0x725   :  { %13402 = vmatprep.subr.bf16.mxu0 %v15454_v63  ;;  %v15598_v63 = vcombine.high %v3859_v56, %v3871_v57  ;;  %v3991_v41 = vld [vmem:[#allocation14 + $0x2498] sm:$0xff] }
 0x727   :  { %13239 = vmatpush1.bf16.msra.mxu1 %v15451_v7  ;;  %v15595_v7 = vcombine.low %v3858_v55, %v3870_v44  ;;  %v4002_v55 = vld [vmem:[#allocation14 + $0x24f0] sm:$0xff] }
 0x728   :  { %13403 = vmatpush1.bf16.msra.mxu0 %v15453_v9  ;;  %13240 = vmatprep.subr.bf16.mxu1 %v15476_v25  ;;  %v15597_v9 = vcombine.low %v3859_v56, %v3871_v57  ;;  %v15620_v25 = vcombine.high %v3882_v1, %v3894_v4  ;;  %v4014_v44 = vld [vmem:[#allocation14 + $0x2550] sm:$0xff]  ;;  %v15715_v56 = vcombine.low %v3978_v37, %v3990_v38  ;;  %v4003_v57 = vld [vmem:[#allocation14 + $0x24f8] sm:$0xff] }
 0x729   :  { %13404 = vmatprep.subr.bf16.mxu0 %v15478_v12  ;;  %v15622_v12 = vcombine.high %v3883_v5, %v3895_v6 }
 0x72b   :  { %13241 = vmatpush1.bf16.msra.mxu1 %v15475_v16  ;;  %v15619_v16 = vcombine.low %v3882_v1, %v3894_v4  ;;  %v4038_v1 = vld [vmem:[#allocation14 + $0x2610] sm:$0xff] }
 0x72c   :  { %13405 = vmatpush1.bf16.msra.mxu0 %v15477_v17  ;;  %13242 = vmatprep.subr.bf16.mxu1 %v15500_v18  ;;  %v15621_v17 = vcombine.low %v3883_v5, %v3895_v6  ;;  %v15644_v18 = vcombine.high %v3906_v2, %v3918_v14  ;;  %v4027_v5 = vld [vmem:[#allocation14 + $0x25b8] sm:$0xff] }
 0x72d   :  { %13406 = vmatprep.subr.bf16.mxu0 %v15502_v8  ;;  %v15646_v8 = vcombine.high %v3907_v15, %v3919_v10  ;;  %v4039_v6 = vld [vmem:[#allocation14 + $0x2618] sm:$0xff] }
 0x72f   :  { %13243 = vmatpush1.bf16.msra.mxu1 %v15499_v22  ;;  %v15643_v22 = vcombine.low %v3906_v2, %v3918_v14  ;;  %v4050_v2 = vld [vmem:[#allocation14 + $0x2670] sm:$0xff] }
 0x730   :  { %13407 = vmatpush1.bf16.msra.mxu0 %v15501_v23  ;;  %13244 = vmatprep.subr.bf16.mxu1 %v15524_v24  ;;  %v15645_v23 = vcombine.low %v3907_v15, %v3919_v10  ;;  %v15668_v24 = vcombine.high %v3930_v19, %v3942_v20  ;;  %v4062_v14 = vld [vmem:[#allocation14 + $0x26d0] sm:$0xff]  ;;  %v4051_v15 = vld [vmem:[#allocation14 + $0x2678] sm:$0xff] }
 0x731   :  { %13408 = vmatprep.subr.bf16.mxu0 %v15526_v33  ;;  %v15670_v33 = vcombine.high %v3931_v26, %v3943_v21  ;;  %v4063_v10 = vld [vmem:[#allocation14 + $0x26d8] sm:$0xff] }
 0x733   :  { %13245 = vmatpush1.bf16.msra.mxu1 %v15523_v32  ;;  %v15667_v32 = vcombine.low %v3930_v19, %v3942_v20  ;;  %v4074_v19 = vld [vmem:[#allocation14 + $0x2730] sm:$0xff] }
 0x734   :  { %13409 = vmatpush1.bf16.msra.mxu0 %v15525_v34  ;;  %13246 = vmatprep.subr.bf16.mxu1 %v15548_v50  ;;  %v15669_v34 = vcombine.low %v3931_v26, %v3943_v21  ;;  %v15692_v50 = vcombine.high %v3954_v28, %v3966_v29  ;;  %v4086_v20 = vld [vmem:[#allocation14 + $0x2790] sm:$0xff]  ;;  %v4075_v26 = vld [vmem:[#allocation14 + $0x2738] sm:$0xff] }
 0x735   :  { %13410 = vmatprep.subr.bf16.mxu0 %v15550_v36  ;;  %v15694_v36 = vcombine.high %v3955_v30, %v3967_v31  ;;  %v4087_v21 = vld [vmem:[#allocation14 + $0x2798] sm:$0xff] }
 0x737   :  { %13247 = vmatpush1.bf16.msra.mxu1 %v15547_v27  ;;  %v15691_v27 = vcombine.low %v3954_v28, %v3966_v29  ;;  %v4098_v28 = vld [vmem:[#allocation14 + $0x27f0] sm:$0xff] }
 0x738   :  { %13411 = vmatpush1.bf16.msra.mxu0 %v15549_v48  ;;  %13248 = vmatprep.subr.bf16.mxu1 %v15572_v51  ;;  %v15693_v48 = vcombine.low %v3955_v30, %v3967_v31  ;;  %v15716_v51 = vcombine.high %v3978_v37, %v3990_v38  ;;  %v4110_v29 = vld [vmem:[#allocation14 + $0x2850] sm:$0xff]  ;;  %v4099_v30 = vld [vmem:[#allocation14 + $0x27f8] sm:$0xff] }
 0x739   :  { %13412 = vmatprep.subr.bf16.mxu0 %v15574_v52  ;;  %v15718_v52 = vcombine.high %v3979_v39, %v3991_v41  ;;  %v4111_v31 = vld [vmem:[#allocation14 + $0x2858] sm:$0xff]  ;;  %v4122_v38 = vld [vmem:[#allocation14 + $0x28b0] sm:$0xff] }
 0x73a   :  { %v15838_v37 = vcombine.high %v4099_v30, %v4111_v31 }
 0x73b   :  { %13249 = vmatpush1.bf16.msra.mxu1 %v15571_v59  ;;  %v4015_v59 = vld [vmem:[#allocation14 + $0x2558] sm:$0xff] }
 0x73c   :  { %13413 = vmatpush1.bf16.msra.mxu0 %v15573_v60  ;;  %13250 = vmatprep.subr.bf16.mxu1 %v15596_v62  ;;  %v15717_v60 = vcombine.low %v3979_v39, %v3991_v41  ;;  %v15740_v62 = vcombine.high %v4002_v55, %v4014_v44  ;;  %v15742_v4 = vcombine.high %v4003_v57, %v4015_v59  ;;  %v4134_v39 = vld [vmem:[#allocation14 + $0x2910] sm:$0xff] }
 0x73d   :  { %13414 = vmatprep.subr.bf16.mxu0 %v15598_v63  ;;  %v4026_v63 = vld [vmem:[#allocation14 + $0x25b0] sm:$0xff] }
 0x73f   :  { %13251 = vmatpush1.bf16.msra.mxu1 %v15595_v7  ;;  %v15739_v7 = vcombine.low %v4002_v55, %v4014_v44  ;;  %v15835_v55 = vcombine.low %v4098_v28, %v4110_v29 }
 0x740   :  { %13415 = vmatpush1.bf16.msra.mxu0 %v15597_v9  ;;  %13252 = vmatprep.subr.bf16.mxu1 %v15620_v25  ;;  %v15741_v9 = vcombine.low %v4003_v57, %v4015_v59  ;;  %v15764_v25 = vcombine.high %v4026_v63, %v4038_v1  ;;  %v15860_v57 = vcombine.high %v4122_v38, %v4134_v39 }
 0x741   :  { %13416 = vmatprep.subr.bf16.mxu0 %v15622_v12  ;;  %v15766_v12 = vcombine.high %v4027_v5, %v4039_v6 }
 0x743   :  { %13253 = vmatpush1.bf16.msra.mxu1 %v15619_v16  ;;  %v15763_v16 = vcombine.low %v4026_v63, %v4038_v1  ;;  %v4158_v63 = vld [vmem:[#allocation14 + $0x29d0] sm:$0xff] }
 0x744   :  { %13417 = vmatpush1.bf16.msra.mxu0 %v15621_v17  ;;  %13254 = vmatprep.subr.bf16.mxu1 %v15644_v18  ;;  %v15765_v17 = vcombine.low %v4027_v5, %v4039_v6  ;;  %v15788_v18 = vcombine.high %v4050_v2, %v4062_v14  ;;  %v4147_v6 = vld [vmem:[#allocation14 + $0x2978] sm:$0xff] }
 0x745   :  { %13418 = vmatprep.subr.bf16.mxu0 %v15646_v8  ;;  %v15790_v8 = vcombine.high %v4051_v15, %v4063_v10 }
 0x747   :  { %13255 = vmatpush1.bf16.msra.mxu1 %v15643_v22  ;;  %v15787_v22 = vcombine.low %v4050_v2, %v4062_v14  ;;  %v15859_v14 = vcombine.low %v4122_v38, %v4134_v39  ;;  %v4218_v38 = vld [vmem:[#allocation14 + $0x2bb0] sm:$0xff] }
 0x748   :  { %13419 = vmatpush1.bf16.msra.mxu0 %v15645_v23  ;;  %13256 = vmatprep.subr.bf16.mxu1 %v15668_v24  ;;  %v15789_v23 = vcombine.low %v4051_v15, %v4063_v10  ;;  %v15812_v24 = vcombine.high %v4074_v19, %v4086_v20  ;;  %v4230_v39 = vld [vmem:[#allocation14 + $0x2c10] sm:$0xff] }
 0x749   :  { %13420 = vmatprep.subr.bf16.mxu0 %v15670_v33  ;;  %v15814_v33 = vcombine.high %v4075_v26, %v4087_v21 }
 0x74b   :  { %13257 = vmatpush1.bf16.msra.mxu1 %v15667_v32  ;;  %v15811_v32 = vcombine.low %v4074_v19, %v4086_v20  ;;  %v4170_v20 = vld [vmem:[#allocation14 + $0x2a30] sm:$0xff] }
 0x74c   :  { %13421 = vmatpush1.bf16.msra.mxu0 %v15669_v34  ;;  %13258 = vmatprep.subr.bf16.mxu1 %v15692_v50  ;;  %v4357_v34 = vld [vmem:[#allocation16 + $0x8] sm:$0xff]  ;;  %v15813_v50 = vcombine.low %v4075_v26, %v4087_v21  ;;  %v4182_v26 = vld [vmem:[#allocation14 + $0x2a90] sm:$0xff]  ;;  %v4171_v21 = vld [vmem:[#allocation14 + $0x2a38] sm:$0xff] }
 0x74d   :  { %13422 = vmatprep.subr.bf16.mxu0 %v15694_v36  ;;  %v15836_v36 = vcombine.high %v4098_v28, %v4110_v29  ;;  %v4397_v41 = vrot.slane %v4357_v34, %v16939_v45  ;;  %v4409_v44 = vrot.slane %v4357_v34, %v16949_v3  ;;  %v4194_v29 = vld [vmem:[#allocation14 + $0x2af0] sm:$0xff] }
 0x74f   :  { %13259 = vmatpush1.bf16.msra.mxu1 %v15691_v27  ;;  %v4123_v27 = vld [vmem:[#allocation14 + $0x28b8] sm:$0xff] }
 0x750   :  { %13423 = vmatpush1.bf16.msra.mxu0 %v15693_v48  ;;  %13269 = vmatprep.subr.bf16.mxu1 %v15716_v51  ;;  %v4135_v48 = vld [vmem:[#allocation14 + $0x2918] sm:$0xff]  ;;  %v4405_v51 = vrot.slane %v4357_v34, %v16972_v54 }
 0x751   :  { %13433 = vmatprep.subr.bf16.mxu0 %v15718_v52  ;;  %v4401_v52 = vrot.slane %v4357_v34, %v16942_v47  ;;  %v15907_v34 = vcombine.low %v4170_v20, %v4182_v26 }
 0x752   :  { %13261 = vmatmul.mubr.bf16.vlgmr.msra.gmra.mrb[24].mxu1 %v17037_v0 }
 0x753   :  { %13425 = vmatmul.mubr.bf16.vlgmr.msra.gmra.mrb[28].mxu0 %v17037_v0  ;;  %13270 = vmatpush1.bf16.msra.mxu1 %v15715_v56  ;;  %v15837_v56 = vcombine.low %v4099_v30, %v4111_v31  ;;  %v4206_v30 = vld [vmem:[#allocation14 + $0x2b50] sm:$0xff]  ;;  %v4195_v31 = vld [vmem:[#allocation14 + $0x2af8] sm:$0xff] }
 0x754   :  { %13301 = vmatprep.mubr.bf16.mxu1 %v17041_v11  ;;  %13434 = vmatpush1.bf16.msra.mxu0 %v15717_v60  ;;  %v15862_v60 = vcombine.high %v4123_v27, %v4135_v48 }
 0x755   :  { %13465 = vmatprep.mubr.bf16.mxu0 %v17041_v11  ;;  %13271 = vmatprep.subr.bf16.mxu1 %v15740_v62  ;;  %v4146_v62 = vld [vmem:[#allocation14 + $0x2970] sm:$0xff] }
 0x756   :  { %13435 = vmatprep.subr.bf16.mxu0 %v15742_v4 }
 0x757   :  { %13272 = vmatpush1.bf16.msra.mxu1 %v15739_v7  ;;  %v4159_v7 = vld [vmem:[#allocation14 + $0x29d8] sm:$0xff] }
 0x758   :  { %13436 = vmatpush1.bf16.msra.mxu0 %v15741_v9  ;;  %13273 = vmatprep.subr.bf16.mxu1 %v15764_v25  ;;  %v15886_v19 = vcombine.high %v4147_v6, %v4159_v7 }
 0x759   :  { %13437 = vmatprep.subr.bf16.mxu0 %v15766_v12 }
 0x75b   :  { %13274 = vmatpush1.bf16.msra.mxu1 %v15763_v16 }
 0x75c   :  { %13438 = vmatpush1.bf16.msra.mxu0 %v15765_v17  ;;  %13275 = vmatprep.subr.bf16.mxu1 %v15788_v18  ;;  %v15861_v17 = vcombine.low %v4123_v27, %v4135_v48  ;;  %v15884_v18 = vcombine.high %v4146_v62, %v4158_v63  ;;  %v4219_v27 = vld [vmem:[#allocation14 + $0x2bb8] sm:$0xff] }
 0x75d   :  { %13439 = vmatprep.subr.bf16.mxu0 %v15790_v8  ;;  %v4231_v48 = vld [vmem:[#allocation14 + $0x2c18] sm:$0xff] }
 0x75f   :  { %13276 = vmatpush1.bf16.msra.mxu1 %v15787_v22  ;;  %v4183_v22 = vld [vmem:[#allocation14 + $0x2a98] sm:$0xff] }
 0x760   :  { %13440 = vmatpush1.bf16.msra.mxu0 %v15789_v23  ;;  %13277 = vmatprep.subr.bf16.mxu1 %v15812_v24  ;;  %v15883_v23 = vcombine.low %v4146_v62, %v4158_v63  ;;  %v15885_v24 = vcombine.low %v4147_v6, %v4159_v7  ;;  %v15910_v28 = vcombine.high %v4171_v21, %v4183_v22  ;;  %v4254_v62 = vld [vmem:[#allocation14 + $0x2cd0] sm:$0xff]  ;;  %v4243_v63 = vld [vmem:[#allocation14 + $0x2c78] sm:$0xff] }
 0x761   :  { %13441 = vmatprep.subr.bf16.mxu0 %v15814_v33  ;;  %v15908_v33 = vcombine.high %v4170_v20, %v4182_v26 }
 0x763   :  { %13278 = vmatpush1.bf16.msra.mxu1 %v15811_v32  ;;  %v4207_v32 = vld [vmem:[#allocation14 + $0x2b58] sm:$0xff] }
 0x764   :  { %13442 = vmatpush1.bf16.msra.mxu0 %v15813_v50  ;;  %13279 = vmatprep.subr.bf16.mxu1 %v15836_v36  ;;  %v15909_v50 = vcombine.low %v4171_v21, %v4183_v22  ;;  %v15932_v36 = vcombine.high %v4194_v29, %v4206_v30 }
 0x765   :  { %v12975_v59 = vpop.f32.mrb[20].mxu1  ;;  %13443 = vmatprep.subr.bf16.mxu0 %v15838_v37  ;;  %v15934_v37 = vcombine.high %v4195_v31, %v4207_v32 }
 0x766   :  { %v16103_v1 = vadd.f32 %v12975_v59, %v4397_v41  ;;  %v13139_v4 = vpop.f32.mrb[24].mxu0  ;;  %v12977_v5 = vpop.f32.mrb[21].mxu1  ;;  %v15958_v59 = vcombine.high %v4219_v27, %v4231_v48 }
 0x767   :  { %v16105_v9 = vadd.f32 %v13139_v4, %v4405_v51  ;;  %v16104_v25 = vadd.f32 %v12977_v5, %v4401_v52  ;;  %v13141_v12 = vpop.f32.mrb[25].mxu0  ;;  %v12979_v2 = vpop.f32.mrb[22].mxu1  ;;  %13280 = vmatpush1.bf16.msra.mxu1 %v15835_v55  ;;  %v15931_v52 = vcombine.low %v4194_v29, %v4206_v30  ;;  %v15955_v4 = vcombine.low %v4218_v38, %v4230_v39 }
 0x768   :  { %16487 = vtanh.f32 %v16103_v1  ;;  %v16106_v15 = vadd.f32 %v13141_v12, %v4409_v44  ;;  %v13143_v10 = vpop.f32.mrb[26].mxu0  ;;  %13444 = vmatpush1.bf16.msra.mxu0 %v15837_v56  ;;  %v12980_v16 = vpop.f32.mrb[23].mxu1  ;;  %13281 = vmatprep.subr.bf16.mxu1 %v15860_v57  ;;  %v15933_v44 = vcombine.low %v4195_v31, %v4207_v32  ;;  %v15956_v56 = vcombine.high %v4218_v38, %v4230_v39  ;;  %v4255_v1 = vld [vmem:[#allocation14 + $0x2cd8] sm:$0xff] }
 0x769   :  { %16489 = vtanh.f32 %v16105_v9  ;;  %v13144_v8 = vpop.f32.mrb[27].mxu0  ;;  %13445 = vmatprep.subr.bf16.mxu0 %v15862_v60  ;;  %v4242_v60 = vld [vmem:[#allocation14 + $0x2c70] sm:$0xff]  ;;  %v15957_v5 = vcombine.low %v4219_v27, %v4231_v48  ;;  %v15982_v7 = vcombine.high %v4243_v63, %v4255_v1  ;;  %v4267_v12 = vld [vmem:[#allocation14 + $0x2d38] sm:$0xff]  ;;  %v2828_v48 = vld [vmem:[#allocation14 + $0x40] sm:$0xff] }
 0x76a   :  { %16491 = vtanh.f32 %v16104_v25  ;;  %v15980_v6 = vcombine.high %v4242_v60, %v4254_v62  ;;  %v4266_v9 = vld [vmem:[#allocation14 + $0x2d30] sm:$0xff]  ;;  %v4279_v2 = vld [vmem:[#allocation14 + $0x2d98] sm:$0xff] }
 0x76b   :  { %16493 = vtanh.f32 %v16106_v15  ;;  %13282 = vmatpush1.bf16.msra.mxu1 %v15859_v14  ;;  %v4278_v25 = vld [vmem:[#allocation14 + $0x2d90] sm:$0xff]  ;;  %v15979_v14 = vcombine.low %v4242_v60, %v4254_v62  ;;  %v15981_v15 = vcombine.low %v4243_v63, %v4255_v1  ;;  %v16006_v16 = vcombine.high %v4267_v12, %v4279_v2  ;;  %v4291_v8 = vld [vmem:[#allocation14 + $0x2df8] sm:$0xff]  ;;  %v2852_v60 = vld [vmem:[#allocation14 + $0x100] sm:$0xff] }
 0x76c   :  { %13446 = vmatpush1.bf16.msra.mxu0 %v15861_v17  ;;  %13283 = vmatprep.subr.bf16.mxu1 %v15884_v18  ;;  %v16004_v10 = vcombine.high %v4266_v9, %v4278_v25  ;;  %v4290_v17 = vld [vmem:[#allocation14 + $0x2df0] sm:$0xff]  ;;  %v16003_v20 = vcombine.low %v4266_v9, %v4278_v25  ;;  %v16005_v26 = vcombine.low %v4267_v12, %v4279_v2  ;;  %v2864_v62 = vld [vmem:[#allocation14 + $0x160] sm:$0xff]  ;;  %v2853_v1 = vld [vmem:[#allocation14 + $0x108] sm:$0xff] }
 0x76d   :  { %13447 = vmatprep.subr.bf16.mxu0 %v15886_v19  ;;  %v4302_v18 = vld [vmem:[#allocation14 + $0x2e50] sm:$0xff]  ;;  %v4303_v19 = vld [vmem:[#allocation14 + $0x2e58] sm:$0xff]  ;;  %v2888_v9 = vld [vmem:[#allocation14 + $0x220] sm:$0xff] }
 0x76e   :  { %v16028_v21 = vcombine.high %v4290_v17, %v4302_v18  ;;  %v16030_v22 = vcombine.high %v4291_v8, %v4303_v19  ;;  %v16027_v29 = vcombine.low %v4290_v17, %v4302_v18  ;;  %v16029_v30 = vcombine.low %v4291_v8, %v4303_v19  ;;  %v2877_v12 = vld [vmem:[#allocation14 + $0x1c8] sm:$0xff]  ;;  %v2900_v17 = vld [vmem:[#allocation14 + $0x280] sm:$0xff] }
 0x76f   :  { %13284 = vmatpush1.bf16.msra.mxu1 %v15883_v23  ;;  %v4314_v23 = vld [vmem:[#allocation14 + $0x2eb0] sm:$0xff]  ;;  %v2889_v2 = vld [vmem:[#allocation14 + $0x228] sm:$0xff]  ;;  %v2912_v18 = vld [vmem:[#allocation14 + $0x2e0] sm:$0xff] }
 0x770   :  { %13448 = vmatpush1.bf16.msra.mxu0 %v15885_v24  ;;  %13285 = vmatprep.subr.bf16.mxu1 %v15908_v33  ;;  %v4326_v24 = vld [vmem:[#allocation14 + $0x2f10] sm:$0xff]  ;;  %v4315_v33 = vld [vmem:[#allocation14 + $0x2eb8] sm:$0xff]  ;;  %v2901_v8 = vld [vmem:[#allocation14 + $0x288] sm:$0xff] }
 0x771   :  { %13449 = vmatprep.subr.bf16.mxu0 %v15910_v28  ;;  %v4327_v28 = vld [vmem:[#allocation14 + $0x2f18] sm:$0xff]  ;;  %v16052_v31 = vcombine.high %v4314_v23, %v4326_v24  ;;  %v16051_v38 = vcombine.low %v4314_v23, %v4326_v24  ;;  %v2913_v19 = vld [vmem:[#allocation14 + $0x2e8] sm:$0xff]  ;;  %v2924_v23 = vld [vmem:[#allocation14 + $0x340] sm:$0xff] }
 0x772   :  { %v16488_v41 = vpop.eup %16487  ;;  %v16054_v32 = vcombine.high %v4315_v33, %v4327_v28  ;;  %v16053_v39 = vcombine.low %v4315_v33, %v4327_v28  ;;  %v2936_v24 = vld [vmem:[#allocation14 + $0x3a0] sm:$0xff]  ;;  %v2925_v33 = vld [vmem:[#allocation14 + $0x348] sm:$0xff] }
 0x773   :  { %v16490_v51 = vpop.eup %16489  ;;  %14162 = vst [vmem:[#allocation17 + $0x40] sm:$0xff] %v16488_v41  ;;  %13286 = vmatpush1.bf16.msra.mxu1 %v15907_v34  ;;  %v4338_v34 = vld [vmem:[#allocation14 + $0x2f70] sm:$0xff]  ;;  %v2937_v28 = vld [vmem:[#allocation14 + $0x3a8] sm:$0xff] }
 0x774   :  { %v16492_v55 = vpop.eup %16491  ;;  %14164 = vst [vmem:[#allocation17 + $0x50] sm:$0xff] %v16490_v51  ;;  %13450 = vmatpush1.bf16.msra.mxu0 %v15909_v50  ;;  %13287 = vmatprep.subr.bf16.mxu1 %v15932_v36  ;;  %v4350_v50 = vld [vmem:[#allocation14 + $0x2fd0] sm:$0xff]  ;;  %v4339_v36 = vld [vmem:[#allocation14 + $0x2f78] sm:$0xff]  ;;  %v2840_v51 = vld [vmem:[#allocation14 + $0xa0] sm:$0xff] }
 0x775   :  { %v16494_v57 = vpop.eup %16493  ;;  %14163 = vst [vmem:[#allocation17 + $0x48] sm:$0xff] %v16492_v55  ;;  %13451 = vmatprep.subr.bf16.mxu0 %v15934_v37  ;;  %v4351_v37 = vld [vmem:[#allocation14 + $0x2fd8] sm:$0xff]  ;;  %v16076_v41 = vcombine.high %v4338_v34, %v4350_v50  ;;  %v2841_v55 = vld [vmem:[#allocation14 + $0xa8] sm:$0xff]  ;;  %v14567_v63 = vcombine.low %v2828_v48, %v2840_v51 }
 0x776   :  { %14165 = vst [vmem:[#allocation17 + $0x58] sm:$0xff] %v16494_v57  ;;  %v16078_v27 = vcombine.high %v4339_v36, %v4351_v37  ;;  %v14568_v57 = vcombine.high %v2828_v48, %v2840_v51  ;;  %v2972_v48 = vld [vmem:[#allocation14 + $0x4c0] sm:$0xff] }
 0x777   :  { %13288 = vmatpush1.bf16.msra.mxu1 %v15931_v52  ;;  %v2829_v52 = vld [vmem:[#allocation14 + $0x48] sm:$0xff]  ;;  %v2984_v51 = vld [vmem:[#allocation14 + $0x520] sm:$0xff] }
 0x778   :  { %13452 = vmatpush1.bf16.msra.mxu0 %v15933_v44  ;;  %13289 = vmatprep.subr.bf16.mxu1 %v15956_v56  ;;  %v16075_v44 = vcombine.low %v4338_v34, %v4350_v50  ;;  %v16077_v56 = vcombine.low %v4339_v36, %v4351_v37  ;;  %v2948_v34 = vld [vmem:[#allocation14 + $0x400] sm:$0xff]  ;;  %v2949_v36 = vld [vmem:[#allocation14 + $0x408] sm:$0xff] }
 0x779   :  { %13453 = vmatprep.subr.bf16.mxu0 %v15958_v59  ;;  %v14570_v59 = vcombine.high %v2829_v52, %v2841_v55  ;;  %v2960_v50 = vld [vmem:[#allocation14 + $0x460] sm:$0xff]  ;;  %v2961_v37 = vld [vmem:[#allocation14 + $0x468] sm:$0xff] }
 0x77b   :  { %13290 = vmatpush1.bf16.msra.mxu1 %v15955_v4  ;;  %v2865_v4 = vld [vmem:[#allocation14 + $0x168] sm:$0xff] }
 0x77c   :  { %13454 = vmatpush1.bf16.msra.mxu0 %v15957_v5  ;;  %13291 = vmatprep.subr.bf16.mxu1 %v15980_v6  ;;  %v14569_v5 = vcombine.low %v2829_v52, %v2841_v55  ;;  %v14592_v6 = vcombine.high %v2852_v60, %v2864_v62  ;;  %v14594_v25 = vcombine.high %v2853_v1, %v2865_v4  ;;  %v2973_v52 = vld [vmem:[#allocation14 + $0x4c8] sm:$0xff] }
 0x77d   :  { %13455 = vmatprep.subr.bf16.mxu0 %v15982_v7  ;;  %v2876_v7 = vld [vmem:[#allocation14 + $0x1c0] sm:$0xff]  ;;  %v2985_v55 = vld [vmem:[#allocation14 + $0x528] sm:$0xff] }
 0x77f   :  { %13292 = vmatpush1.bf16.msra.mxu1 %v15979_v14  ;;  %v14591_v14 = vcombine.low %v2852_v60, %v2864_v62  ;;  %v2996_v60 = vld [vmem:[#allocation14 + $0x580] sm:$0xff] }
 0x780   :  { %13456 = vmatpush1.bf16.msra.mxu0 %v15981_v15  ;;  %13293 = vmatprep.subr.bf16.mxu1 %v16004_v10  ;;  %v14593_v15 = vcombine.low %v2853_v1, %v2865_v4  ;;  %v14616_v10 = vcombine.high %v2876_v7, %v2888_v9  ;;  %v3008_v62 = vld [vmem:[#allocation14 + $0x5e0] sm:$0xff]  ;;  %v3009_v1 = vld [vmem:[#allocation14 + $0x5e8] sm:$0xff]  ;;  %v14711_v4 = vcombine.low %v2972_v48, %v2984_v51 }
 0x781   :  { %13457 = vmatprep.subr.bf16.mxu0 %v16006_v16  ;;  %v14618_v16 = vcombine.high %v2877_v12, %v2889_v2 }
 0x783   :  { %13294 = vmatpush1.bf16.msra.mxu1 %v16003_v20  ;;  %v14615_v20 = vcombine.low %v2876_v7, %v2888_v9  ;;  %v3020_v9 = vld [vmem:[#allocation14 + $0x640] sm:$0xff] }
 0x784   :  { %13458 = vmatpush1.bf16.msra.mxu0 %v16005_v26  ;;  %13295 = vmatprep.subr.bf16.mxu1 %v16028_v21  ;;  %v14617_v26 = vcombine.low %v2877_v12, %v2889_v2  ;;  %v14640_v21 = vcombine.high %v2900_v17, %v2912_v18  ;;  %v3021_v12 = vld [vmem:[#allocation14 + $0x648] sm:$0xff] }
 0x785   :  { %13459 = vmatprep.subr.bf16.mxu0 %v16030_v22  ;;  %v14642_v22 = vcombine.high %v2901_v8, %v2913_v19  ;;  %v3033_v2 = vld [vmem:[#allocation14 + $0x6a8] sm:$0xff] }
 0x787   :  { %13296 = vmatpush1.bf16.msra.mxu1 %v16027_v29  ;;  %v14639_v29 = vcombine.low %v2900_v17, %v2912_v18  ;;  %v3044_v17 = vld [vmem:[#allocation14 + $0x700] sm:$0xff] }
 0x788   :  { %13460 = vmatpush1.bf16.msra.mxu0 %v16029_v30  ;;  %13297 = vmatprep.subr.bf16.mxu1 %v16052_v31  ;;  %v14641_v30 = vcombine.low %v2901_v8, %v2913_v19  ;;  %v14664_v31 = vcombine.high %v2924_v23, %v2936_v24  ;;  %v3056_v18 = vld [vmem:[#allocation14 + $0x760] sm:$0xff]  ;;  %v3045_v8 = vld [vmem:[#allocation14 + $0x708] sm:$0xff] }
 0x789   :  { %13461 = vmatprep.subr.bf16.mxu0 %v16054_v32  ;;  %v14666_v32 = vcombine.high %v2925_v33, %v2937_v28  ;;  %v3057_v19 = vld [vmem:[#allocation14 + $0x768] sm:$0xff] }
 0x78b   :  { %13298 = vmatpush1.bf16.msra.mxu1 %v16051_v38  ;;  %v14663_v38 = vcombine.low %v2924_v23, %v2936_v24  ;;  %v3068_v23 = vld [vmem:[#allocation14 + $0x7c0] sm:$0xff] }
 0x78c   :  { %13462 = vmatpush1.bf16.msra.mxu0 %v16053_v39  ;;  %13299 = vmatprep.subr.bf16.mxu1 %v16076_v41  ;;  %v14665_v39 = vcombine.low %v2925_v33, %v2937_v28  ;;  %v14688_v41 = vcombine.high %v2948_v34, %v2960_v50  ;;  %v3080_v24 = vld [vmem:[#allocation14 + $0x820] sm:$0xff]  ;;  %v3069_v33 = vld [vmem:[#allocation14 + $0x7c8] sm:$0xff] }
 0x78d   :  { %13463 = vmatprep.subr.bf16.mxu0 %v16078_v27  ;;  %v14690_v27 = vcombine.high %v2949_v36, %v2961_v37  ;;  %v3081_v28 = vld [vmem:[#allocation14 + $0x828] sm:$0xff] }
 0x78f   :  { %13300 = vmatpush1.bf16.msra.mxu1 %v16075_v44  ;;  %v14687_v44 = vcombine.low %v2948_v34, %v2960_v50  ;;  %v3092_v34 = vld [vmem:[#allocation14 + $0x880] sm:$0xff] }
 0x790   :  { %13464 = vmatpush1.bf16.msra.mxu0 %v16077_v56  ;;  %13474 = vmatprep.subr.bf16.mxu1 %v14568_v57  ;;  %v14689_v56 = vcombine.low %v2949_v36, %v2961_v37  ;;  %v14712_v57 = vcombine.high %v2972_v48, %v2984_v51  ;;  %v3104_v50 = vld [vmem:[#allocation14 + $0x8e0] sm:$0xff]  ;;  %v3093_v36 = vld [vmem:[#allocation14 + $0x888] sm:$0xff] }
 0x791   :  { %13638 = vmatprep.subr.bf16.mxu0 %v14570_v59  ;;  %v14714_v59 = vcombine.high %v2973_v52, %v2985_v55  ;;  %v3105_v37 = vld [vmem:[#allocation14 + $0x8e8] sm:$0xff]  ;;  %v3116_v48 = vld [vmem:[#allocation14 + $0x940] sm:$0xff] }
 0x792   :  { %13302 = vmatmul.mubr.bf16.vlgmr.msra.gmra.mrb[24].mxu1 %v17052_v40  ;;  %v3128_v51 = vld [vmem:[#allocation14 + $0x9a0] sm:$0xff] }
 0x793   :  { %13466 = vmatmul.mubr.bf16.vlgmr.msra.gmra.mrb[28].mxu0 %v17052_v40  ;;  %13475 = vmatpush1.bf16.msra.mxu1 %v14567_v63  ;;  %v2997_v63 = vld [vmem:[#allocation14 + $0x588] sm:$0xff] }
 0x794   :  { %13506 = vmatprep.mubr.bf16.mxu1 %v16999_v43  ;;  %13639 = vmatpush1.bf16.msra.mxu0 %v14569_v5  ;;  %v14713_v5 = vcombine.low %v2973_v52, %v2985_v55  ;;  %v14738_v7 = vcombine.high %v2997_v63, %v3009_v1  ;;  %v3117_v52 = vld [vmem:[#allocation14 + $0x948] sm:$0xff] }
 0x795   :  { %13670 = vmatprep.mubr.bf16.mxu0 %v16999_v43  ;;  %13476 = vmatprep.subr.bf16.mxu1 %v14592_v6  ;;  %v14736_v6 = vcombine.high %v2996_v60, %v3008_v62  ;;  %v3129_v55 = vld [vmem:[#allocation14 + $0x9a8] sm:$0xff] }
 0x796   :  { %13640 = vmatprep.subr.bf16.mxu0 %v14594_v25  ;;  %v3032_v25 = vld [vmem:[#allocation14 + $0x6a0] sm:$0xff] }
 0x797   :  { %13477 = vmatpush1.bf16.msra.mxu1 %v14591_v14  ;;  %v14735_v14 = vcombine.low %v2996_v60, %v3008_v62  ;;  %v3140_v60 = vld [vmem:[#allocation14 + $0xa00] sm:$0xff] }
 0x798   :  { %13641 = vmatpush1.bf16.msra.mxu0 %v14593_v15  ;;  %13478 = vmatprep.subr.bf16.mxu1 %v14616_v10  ;;  %v14737_v15 = vcombine.low %v2997_v63, %v3009_v1  ;;  %v14760_v10 = vcombine.high %v3020_v9, %v3032_v25  ;;  %v3152_v62 = vld [vmem:[#allocation14 + $0xa60] sm:$0xff]  ;;  %v3141_v63 = vld [vmem:[#allocation14 + $0xa08] sm:$0xff] }
 0x799   :  { %13642 = vmatprep.subr.bf16.mxu0 %v14618_v16  ;;  %v14762_v16 = vcombine.high %v3021_v12, %v3033_v2  ;;  %v3153_v1 = vld [vmem:[#allocation14 + $0xa68] sm:$0xff] }
 0x79b   :  { %13479 = vmatpush1.bf16.msra.mxu1 %v14615_v20  ;;  %v14759_v20 = vcombine.low %v3020_v9, %v3032_v25  ;;  %v3164_v9 = vld [vmem:[#allocation14 + $0xac0] sm:$0xff] }
 0x79c   :  { %13643 = vmatpush1.bf16.msra.mxu0 %v14617_v26  ;;  %13480 = vmatprep.subr.bf16.mxu1 %v14640_v21  ;;  %v14761_v26 = vcombine.low %v3021_v12, %v3033_v2  ;;  %v14784_v21 = vcombine.high %v3044_v17, %v3056_v18  ;;  %v3176_v25 = vld [vmem:[#allocation14 + $0xb20] sm:$0xff]  ;;  %v3165_v12 = vld [vmem:[#allocation14 + $0xac8] sm:$0xff] }
 0x79d   :  { %13644 = vmatprep.subr.bf16.mxu0 %v14642_v22  ;;  %v14786_v22 = vcombine.high %v3045_v8, %v3057_v19  ;;  %v3177_v2 = vld [vmem:[#allocation14 + $0xb28] sm:$0xff] }
 0x79f   :  { %13481 = vmatpush1.bf16.msra.mxu1 %v14639_v29  ;;  %v14783_v29 = vcombine.low %v3044_v17, %v3056_v18  ;;  %v3188_v17 = vld [vmem:[#allocation14 + $0xb80] sm:$0xff] }
 0x7a0   :  { %13645 = vmatpush1.bf16.msra.mxu0 %v14641_v30  ;;  %13482 = vmatprep.subr.bf16.mxu1 %v14664_v31  ;;  %v14785_v30 = vcombine.low %v3045_v8, %v3057_v19  ;;  %v14808_v31 = vcombine.high %v3068_v23, %v3080_v24  ;;  %v3200_v18 = vld [vmem:[#allocation14 + $0xbe0] sm:$0xff]  ;;  %v3189_v8 = vld [vmem:[#allocation14 + $0xb88] sm:$0xff] }
 0x7a1   :  { %13646 = vmatprep.subr.bf16.mxu0 %v14666_v32  ;;  %v14810_v32 = vcombine.high %v3069_v33, %v3081_v28  ;;  %v3201_v19 = vld [vmem:[#allocation14 + $0xbe8] sm:$0xff] }
 0x7a3   :  { %13483 = vmatpush1.bf16.msra.mxu1 %v14663_v38  ;;  %v14807_v38 = vcombine.low %v3068_v23, %v3080_v24  ;;  %v3212_v23 = vld [vmem:[#allocation14 + $0xc40] sm:$0xff] }
 0x7a4   :  { %13647 = vmatpush1.bf16.msra.mxu0 %v14665_v39  ;;  %13484 = vmatprep.subr.bf16.mxu1 %v14688_v41  ;;  %v14809_v39 = vcombine.low %v3069_v33, %v3081_v28  ;;  %v14832_v41 = vcombine.high %v3092_v34, %v3104_v50  ;;  %v3224_v24 = vld [vmem:[#allocation14 + $0xca0] sm:$0xff]  ;;  %v3213_v33 = vld [vmem:[#allocation14 + $0xc48] sm:$0xff] }
 0x7a5   :  { %13648 = vmatprep.subr.bf16.mxu0 %v14690_v27  ;;  %v14834_v27 = vcombine.high %v3093_v36, %v3105_v37  ;;  %v3225_v28 = vld [vmem:[#allocation14 + $0xca8] sm:$0xff] }
 0x7a7   :  { %13485 = vmatpush1.bf16.msra.mxu1 %v14687_v44  ;;  %v14831_v44 = vcombine.low %v3092_v34, %v3104_v50  ;;  %v3236_v34 = vld [vmem:[#allocation14 + $0xd00] sm:$0xff] }
 0x7a8   :  { %13649 = vmatpush1.bf16.msra.mxu0 %v14689_v56  ;;  %13486 = vmatprep.subr.bf16.mxu1 %v14712_v57  ;;  %v14833_v56 = vcombine.low %v3093_v36, %v3105_v37  ;;  %v14856_v57 = vcombine.high %v3116_v48, %v3128_v51  ;;  %v3248_v50 = vld [vmem:[#allocation14 + $0xd60] sm:$0xff]  ;;  %v14951_v36 = vcombine.low %v3212_v23, %v3224_v24  ;;  %v3237_v37 = vld [vmem:[#allocation14 + $0xd08] sm:$0xff] }
 0x7a9   :  { %13650 = vmatprep.subr.bf16.mxu0 %v14714_v59  ;;  %v14858_v59 = vcombine.high %v3117_v52, %v3129_v55 }
 0x7ab   :  { %13487 = vmatpush1.bf16.msra.mxu1 %v14711_v4  ;;  %v14855_v4 = vcombine.low %v3116_v48, %v3128_v51  ;;  %v3272_v48 = vld [vmem:[#allocation14 + $0xe20] sm:$0xff] }
 0x7ac   :  { %13651 = vmatpush1.bf16.msra.mxu0 %v14713_v5  ;;  %13488 = vmatprep.subr.bf16.mxu1 %v14736_v6  ;;  %v14857_v5 = vcombine.low %v3117_v52, %v3129_v55  ;;  %v14880_v6 = vcombine.high %v3140_v60, %v3152_v62  ;;  %v3261_v52 = vld [vmem:[#allocation14 + $0xdc8] sm:$0xff] }
 0x7ad   :  { %13652 = vmatprep.subr.bf16.mxu0 %v14738_v7  ;;  %v14882_v7 = vcombine.high %v3141_v63, %v3153_v1  ;;  %v3273_v55 = vld [vmem:[#allocation14 + $0xe28] sm:$0xff] }
 0x7af   :  { %13489 = vmatpush1.bf16.msra.mxu1 %v14735_v14  ;;  %v14879_v14 = vcombine.low %v3140_v60, %v3152_v62  ;;  %v3284_v60 = vld [vmem:[#allocation14 + $0xe80] sm:$0xff] }
 0x7b0   :  { %13653 = vmatpush1.bf16.msra.mxu0 %v14737_v15  ;;  %13490 = vmatprep.subr.bf16.mxu1 %v14760_v10  ;;  %v14881_v15 = vcombine.low %v3141_v63, %v3153_v1  ;;  %v14904_v10 = vcombine.high %v3164_v9, %v3176_v25  ;;  %v3296_v62 = vld [vmem:[#allocation14 + $0xee0] sm:$0xff]  ;;  %v3285_v63 = vld [vmem:[#allocation14 + $0xe88] sm:$0xff] }
 0x7b1   :  { %13654 = vmatprep.subr.bf16.mxu0 %v14762_v16  ;;  %v14906_v16 = vcombine.high %v3165_v12, %v3177_v2  ;;  %v3297_v1 = vld [vmem:[#allocation14 + $0xee8] sm:$0xff] }
 0x7b3   :  { %13491 = vmatpush1.bf16.msra.mxu1 %v14759_v20  ;;  %v14903_v20 = vcombine.low %v3164_v9, %v3176_v25  ;;  %v3308_v9 = vld [vmem:[#allocation14 + $0xf40] sm:$0xff] }
 0x7b4   :  { %13655 = vmatpush1.bf16.msra.mxu0 %v14761_v26  ;;  %13492 = vmatprep.subr.bf16.mxu1 %v14784_v21  ;;  %v14905_v26 = vcombine.low %v3165_v12, %v3177_v2  ;;  %v14928_v21 = vcombine.high %v3188_v17, %v3200_v18  ;;  %v3320_v25 = vld [vmem:[#allocation14 + $0xfa0] sm:$0xff]  ;;  %v3309_v12 = vld [vmem:[#allocation14 + $0xf48] sm:$0xff] }
 0x7b5   :  { %13656 = vmatprep.subr.bf16.mxu0 %v14786_v22  ;;  %v14930_v22 = vcombine.high %v3189_v8, %v3201_v19  ;;  %v3321_v2 = vld [vmem:[#allocation14 + $0xfa8] sm:$0xff] }
 0x7b7   :  { %13493 = vmatpush1.bf16.msra.mxu1 %v14783_v29  ;;  %v14927_v29 = vcombine.low %v3188_v17, %v3200_v18  ;;  %v3332_v17 = vld [vmem:[#allocation14 + $0x1000] sm:$0xff] }
 0x7b8   :  { %13657 = vmatpush1.bf16.msra.mxu0 %v14785_v30  ;;  %13494 = vmatprep.subr.bf16.mxu1 %v14808_v31  ;;  %v14929_v30 = vcombine.low %v3189_v8, %v3201_v19  ;;  %v14952_v31 = vcombine.high %v3212_v23, %v3224_v24  ;;  %v3344_v18 = vld [vmem:[#allocation14 + $0x1060] sm:$0xff]  ;;  %v3333_v8 = vld [vmem:[#allocation14 + $0x1008] sm:$0xff] }
 0x7b9   :  { %13658 = vmatprep.subr.bf16.mxu0 %v14810_v32  ;;  %v14954_v32 = vcombine.high %v3213_v33, %v3225_v28  ;;  %v3345_v19 = vld [vmem:[#allocation14 + $0x1068] sm:$0xff]  ;;  %v3356_v23 = vld [vmem:[#allocation14 + $0x10c0] sm:$0xff] }
 0x7ba   :  { %v3368_v24 = vld [vmem:[#allocation14 + $0x1120] sm:$0xff] }
 0x7bb   :  { %13495 = vmatpush1.bf16.msra.mxu1 %v14807_v38  ;;  %v3249_v38 = vld [vmem:[#allocation14 + $0xd68] sm:$0xff] }
 0x7bc   :  { %13659 = vmatpush1.bf16.msra.mxu0 %v14809_v39  ;;  %13496 = vmatprep.subr.bf16.mxu1 %v14832_v41  ;;  %v14953_v39 = vcombine.low %v3213_v33, %v3225_v28  ;;  %v14976_v41 = vcombine.high %v3236_v34, %v3248_v50  ;;  %v14978_v51 = vcombine.high %v3237_v37, %v3249_v38  ;;  %v3357_v33 = vld [vmem:[#allocation14 + $0x10c8] sm:$0xff] }
 0x7bd   :  { %13660 = vmatprep.subr.bf16.mxu0 %v14834_v27  ;;  %v3260_v27 = vld [vmem:[#allocation14 + $0xdc0] sm:$0xff]  ;;  %v3369_v28 = vld [vmem:[#allocation14 + $0x1128] sm:$0xff] }
 0x7bf   :  { %13497 = vmatpush1.bf16.msra.mxu1 %v14831_v44  ;;  %v14975_v44 = vcombine.low %v3236_v34, %v3248_v50  ;;  %v3380_v34 = vld [vmem:[#allocation14 + $0x1180] sm:$0xff] }
 0x7c0   :  { %13661 = vmatpush1.bf16.msra.mxu0 %v14833_v56  ;;  %13498 = vmatprep.subr.bf16.mxu1 %v14856_v57  ;;  %v14977_v56 = vcombine.low %v3237_v37, %v3249_v38  ;;  %v15000_v57 = vcombine.high %v3260_v27, %v3272_v48  ;;  %v3392_v50 = vld [vmem:[#allocation14 + $0x11e0] sm:$0xff]  ;;  %v3393_v37 = vld [vmem:[#allocation14 + $0x11e8] sm:$0xff]  ;;  %v15095_v38 = vcombine.low %v3356_v23, %v3368_v24 }
 0x7c1   :  { %13662 = vmatprep.subr.bf16.mxu0 %v14858_v59  ;;  %v15002_v59 = vcombine.high %v3261_v52, %v3273_v55 }
 0x7c3   :  { %13499 = vmatpush1.bf16.msra.mxu1 %v14855_v4  ;;  %v14999_v4 = vcombine.low %v3260_v27, %v3272_v48  ;;  %v3404_v48 = vld [vmem:[#allocation14 + $0x1240] sm:$0xff] }
 0x7c4   :  { %13663 = vmatpush1.bf16.msra.mxu0 %v14857_v5  ;;  %13500 = vmatprep.subr.bf16.mxu1 %v14880_v6  ;;  %v15001_v5 = vcombine.low %v3261_v52, %v3273_v55  ;;  %v15024_v6 = vcombine.high %v3284_v60, %v3296_v62  ;;  %v3405_v52 = vld [vmem:[#allocation14 + $0x1248] sm:$0xff] }
 0x7c5   :  { %13664 = vmatprep.subr.bf16.mxu0 %v14882_v7  ;;  %v15026_v7 = vcombine.high %v3285_v63, %v3297_v1  ;;  %v3417_v55 = vld [vmem:[#allocation14 + $0x12a8] sm:$0xff] }
 0x7c7   :  { %13501 = vmatpush1.bf16.msra.mxu1 %v14879_v14  ;;  %v15023_v14 = vcombine.low %v3284_v60, %v3296_v62  ;;  %v3428_v60 = vld [vmem:[#allocation14 + $0x1300] sm:$0xff] }
 0x7c8   :  { %13665 = vmatpush1.bf16.msra.mxu0 %v14881_v15  ;;  %13502 = vmatprep.subr.bf16.mxu1 %v14904_v10  ;;  %v15025_v15 = vcombine.low %v3285_v63, %v3297_v1  ;;  %v15048_v10 = vcombine.high %v3308_v9, %v3320_v25  ;;  %v3440_v62 = vld [vmem:[#allocation14 + $0x1360] sm:$0xff]  ;;  %v3429_v63 = vld [vmem:[#allocation14 + $0x1308] sm:$0xff] }
 0x7c9   :  { %13666 = vmatprep.subr.bf16.mxu0 %v14906_v16  ;;  %v15050_v16 = vcombine.high %v3309_v12, %v3321_v2  ;;  %v3441_v1 = vld [vmem:[#allocation14 + $0x1368] sm:$0xff] }
 0x7cb   :  { %13503 = vmatpush1.bf16.msra.mxu1 %v14903_v20  ;;  %v15047_v20 = vcombine.low %v3308_v9, %v3320_v25  ;;  %v3452_v9 = vld [vmem:[#allocation14 + $0x13c0] sm:$0xff] }
 0x7cc   :  { %13667 = vmatpush1.bf16.msra.mxu0 %v14905_v26  ;;  %13504 = vmatprep.subr.bf16.mxu1 %v14928_v21  ;;  %v15049_v26 = vcombine.low %v3309_v12, %v3321_v2  ;;  %v15072_v21 = vcombine.high %v3332_v17, %v3344_v18  ;;  %v3464_v25 = vld [vmem:[#allocation14 + $0x1420] sm:$0xff]  ;;  %v3453_v12 = vld [vmem:[#allocation14 + $0x13c8] sm:$0xff] }
 0x7cd   :  { %13668 = vmatprep.subr.bf16.mxu0 %v14930_v22  ;;  %v15074_v22 = vcombine.high %v3333_v8, %v3345_v19  ;;  %v3465_v2 = vld [vmem:[#allocation14 + $0x1428] sm:$0xff] }
 0x7cf   :  { %13505 = vmatpush1.bf16.msra.mxu1 %v14927_v29  ;;  %v15071_v29 = vcombine.low %v3332_v17, %v3344_v18  ;;  %v3476_v17 = vld [vmem:[#allocation14 + $0x1480] sm:$0xff] }
 0x7d0   :  { %13669 = vmatpush1.bf16.msra.mxu0 %v14929_v30  ;;  %13515 = vmatprep.subr.bf16.mxu1 %v14952_v31  ;;  %v15073_v30 = vcombine.low %v3333_v8, %v3345_v19  ;;  %v15096_v31 = vcombine.high %v3356_v23, %v3368_v24  ;;  %v3488_v18 = vld [vmem:[#allocation14 + $0x14e0] sm:$0xff]  ;;  %v3477_v8 = vld [vmem:[#allocation14 + $0x1488] sm:$0xff] }
 0x7d1   :  { %13679 = vmatprep.subr.bf16.mxu0 %v14954_v32  ;;  %v15098_v32 = vcombine.high %v3357_v33, %v3369_v28  ;;  %v3489_v19 = vld [vmem:[#allocation14 + $0x14e8] sm:$0xff]  ;;  %v3500_v23 = vld [vmem:[#allocation14 + $0x1540] sm:$0xff] }
 0x7d2   :  { %13507 = vmatmul.mubr.bf16.vlgmr.msra.gmra.mrb[28].mxu1 %v17001_v49  ;;  %v3512_v24 = vld [vmem:[#allocation14 + $0x15a0] sm:$0xff] }
 0x7d3   :  { %13671 = vmatmul.mubr.bf16.vlgmr.msra.gmra.mrb[32].mxu0 %v17001_v49  ;;  %13516 = vmatpush1.bf16.msra.mxu1 %v14951_v36  ;;  %v3381_v36 = vld [vmem:[#allocation14 + $0x1188] sm:$0xff] }
 0x7d4   :  { %13547 = vmatprep.mubr.bf16.mxu1 %v17005_v58  ;;  %13680 = vmatpush1.bf16.msra.mxu0 %v14953_v39  ;;  %v15097_v39 = vcombine.low %v3357_v33, %v3369_v28  ;;  %v15122_v27 = vcombine.high %v3381_v36, %v3393_v37  ;;  %v3501_v33 = vld [vmem:[#allocation14 + $0x1548] sm:$0xff] }
 0x7d5   :  { %13711 = vmatprep.mubr.bf16.mxu0 %v17005_v58  ;;  %13517 = vmatprep.subr.bf16.mxu1 %v14976_v41  ;;  %v15120_v41 = vcombine.high %v3380_v34, %v3392_v50  ;;  %v3513_v28 = vld [vmem:[#allocation14 + $0x15a8] sm:$0xff] }
 0x7d6   :  { %13681 = vmatprep.subr.bf16.mxu0 %v14978_v51  ;;  %v3416_v51 = vld [vmem:[#allocation14 + $0x12a0] sm:$0xff] }
 0x7d7   :  { %13518 = vmatpush1.bf16.msra.mxu1 %v14975_v44  ;;  %v15119_v44 = vcombine.low %v3380_v34, %v3392_v50  ;;  %v3524_v34 = vld [vmem:[#allocation14 + $0x1600] sm:$0xff] }
 0x7d8   :  { %13682 = vmatpush1.bf16.msra.mxu0 %v14977_v56  ;;  %13519 = vmatprep.subr.bf16.mxu1 %v15000_v57  ;;  %v15121_v56 = vcombine.low %v3381_v36, %v3393_v37  ;;  %v15144_v57 = vcombine.high %v3404_v48, %v3416_v51  ;;  %v3536_v50 = vld [vmem:[#allocation14 + $0x1660] sm:$0xff]  ;;  %v3525_v36 = vld [vmem:[#allocation14 + $0x1608] sm:$0xff] }
 0x7d9   :  { %13683 = vmatprep.subr.bf16.mxu0 %v15002_v59  ;;  %v15146_v59 = vcombine.high %v3405_v52, %v3417_v55  ;;  %v3537_v37 = vld [vmem:[#allocation14 + $0x1668] sm:$0xff] }
 0x7db   :  { %13520 = vmatpush1.bf16.msra.mxu1 %v14999_v4  ;;  %v15143_v4 = vcombine.low %v3404_v48, %v3416_v51  ;;  %v3548_v48 = vld [vmem:[#allocation14 + $0x16c0] sm:$0xff] }
 0x7dc   :  { %13684 = vmatpush1.bf16.msra.mxu0 %v15001_v5  ;;  %13521 = vmatprep.subr.bf16.mxu1 %v15024_v6  ;;  %v15145_v5 = vcombine.low %v3405_v52, %v3417_v55  ;;  %v15168_v6 = vcombine.high %v3428_v60, %v3440_v62  ;;  %v3560_v51 = vld [vmem:[#allocation14 + $0x1720] sm:$0xff]  ;;  %v3549_v52 = vld [vmem:[#allocation14 + $0x16c8] sm:$0xff] }
 0x7dd   :  { %13685 = vmatprep.subr.bf16.mxu0 %v15026_v7  ;;  %v15170_v7 = vcombine.high %v3429_v63, %v3441_v1  ;;  %v3561_v55 = vld [vmem:[#allocation14 + $0x1728] sm:$0xff] }
 0x7df   :  { %13522 = vmatpush1.bf16.msra.mxu1 %v15023_v14  ;;  %v15167_v14 = vcombine.low %v3428_v60, %v3440_v62  ;;  %v3572_v60 = vld [vmem:[#allocation14 + $0x1780] sm:$0xff] }
 0x7e0   :  { %13686 = vmatpush1.bf16.msra.mxu0 %v15025_v15  ;;  %13523 = vmatprep.subr.bf16.mxu1 %v15048_v10  ;;  %v15169_v15 = vcombine.low %v3429_v63, %v3441_v1  ;;  %v15192_v10 = vcombine.high %v3452_v9, %v3464_v25  ;;  %v3584_v62 = vld [vmem:[#allocation14 + $0x17e0] sm:$0xff]  ;;  %v3573_v63 = vld [vmem:[#allocation14 + $0x1788] sm:$0xff] }
 0x7e1   :  { %13687 = vmatprep.subr.bf16.mxu0 %v15050_v16  ;;  %v15194_v16 = vcombine.high %v3453_v12, %v3465_v2  ;;  %v3585_v1 = vld [vmem:[#allocation14 + $0x17e8] sm:$0xff] }
 0x7e3   :  { %13524 = vmatpush1.bf16.msra.mxu1 %v15047_v20  ;;  %v15191_v20 = vcombine.low %v3452_v9, %v3464_v25  ;;  %v3596_v9 = vld [vmem:[#allocation14 + $0x1840] sm:$0xff] }
 0x7e4   :  { %13688 = vmatpush1.bf16.msra.mxu0 %v15049_v26  ;;  %13525 = vmatprep.subr.bf16.mxu1 %v15072_v21  ;;  %v15193_v26 = vcombine.low %v3453_v12, %v3465_v2  ;;  %v15216_v21 = vcombine.high %v3476_v17, %v3488_v18  ;;  %v3608_v25 = vld [vmem:[#allocation14 + $0x18a0] sm:$0xff]  ;;  %v3597_v12 = vld [vmem:[#allocation14 + $0x1848] sm:$0xff] }
 0x7e5   :  { %13689 = vmatprep.subr.bf16.mxu0 %v15074_v22  ;;  %v15218_v22 = vcombine.high %v3477_v8, %v3489_v19  ;;  %v3609_v2 = vld [vmem:[#allocation14 + $0x18a8] sm:$0xff] }
 0x7e7   :  { %13526 = vmatpush1.bf16.msra.mxu1 %v15071_v29  ;;  %v15215_v29 = vcombine.low %v3476_v17, %v3488_v18  ;;  %v3620_v17 = vld [vmem:[#allocation14 + $0x1900] sm:$0xff] }
 0x7e8   :  { %13690 = vmatpush1.bf16.msra.mxu0 %v15073_v30  ;;  %13527 = vmatprep.subr.bf16.mxu1 %v15096_v31  ;;  %v15217_v30 = vcombine.low %v3477_v8, %v3489_v19  ;;  %v15240_v31 = vcombine.high %v3500_v23, %v3512_v24  ;;  %v3632_v18 = vld [vmem:[#allocation14 + $0x1960] sm:$0xff]  ;;  %v15335_v8 = vcombine.low %v3596_v9, %v3608_v25  ;;  %v3621_v19 = vld [vmem:[#allocation14 + $0x1908] sm:$0xff] }
 0x7e9   :  { %13691 = vmatprep.subr.bf16.mxu0 %v15098_v32  ;;  %v15242_v32 = vcombine.high %v3501_v33, %v3513_v28 }
 0x7eb   :  { %13528 = vmatpush1.bf16.msra.mxu1 %v15095_v38  ;;  %v15239_v38 = vcombine.low %v3500_v23, %v3512_v24  ;;  %v3656_v23 = vld [vmem:[#allocation14 + $0x1a20] sm:$0xff] }
 0x7ec   :  { %13692 = vmatpush1.bf16.msra.mxu0 %v15097_v39  ;;  %13529 = vmatprep.subr.bf16.mxu1 %v15120_v41  ;;  %v15241_v39 = vcombine.low %v3501_v33, %v3513_v28  ;;  %v15264_v41 = vcombine.high %v3524_v34, %v3536_v50  ;;  %v3645_v33 = vld [vmem:[#allocation14 + $0x19c8] sm:$0xff] }
 0x7ed   :  { %13693 = vmatprep.subr.bf16.mxu0 %v15122_v27  ;;  %v15266_v27 = vcombine.high %v3525_v36, %v3537_v37  ;;  %v3657_v28 = vld [vmem:[#allocation14 + $0x1a28] sm:$0xff] }
 0x7ef   :  { %13530 = vmatpush1.bf16.msra.mxu1 %v15119_v44  ;;  %v15263_v44 = vcombine.low %v3524_v34, %v3536_v50  ;;  %v3668_v34 = vld [vmem:[#allocation14 + $0x1a80] sm:$0xff] }
 0x7f0   :  { %13694 = vmatpush1.bf16.msra.mxu0 %v15121_v56  ;;  %13531 = vmatprep.subr.bf16.mxu1 %v15144_v57  ;;  %v15265_v56 = vcombine.low %v3525_v36, %v3537_v37  ;;  %v15288_v57 = vcombine.high %v3548_v48, %v3560_v51  ;;  %v3680_v50 = vld [vmem:[#allocation14 + $0x1ae0] sm:$0xff]  ;;  %v3669_v36 = vld [vmem:[#allocation14 + $0x1a88] sm:$0xff] }
 0x7f1   :  { %13695 = vmatprep.subr.bf16.mxu0 %v15146_v59  ;;  %v15290_v59 = vcombine.high %v3549_v52, %v3561_v55  ;;  %v3681_v37 = vld [vmem:[#allocation14 + $0x1ae8] sm:$0xff] }
 0x7f3   :  { %13532 = vmatpush1.bf16.msra.mxu1 %v15143_v4  ;;  %v15287_v4 = vcombine.low %v3548_v48, %v3560_v51  ;;  %v3692_v48 = vld [vmem:[#allocation14 + $0x1b40] sm:$0xff] }
 0x7f4   :  { %13696 = vmatpush1.bf16.msra.mxu0 %v15145_v5  ;;  %13533 = vmatprep.subr.bf16.mxu1 %v15168_v6  ;;  %v15289_v5 = vcombine.low %v3549_v52, %v3561_v55  ;;  %v15312_v6 = vcombine.high %v3572_v60, %v3584_v62  ;;  %v3704_v51 = vld [vmem:[#allocation14 + $0x1ba0] sm:$0xff]  ;;  %v3693_v52 = vld [vmem:[#allocation14 + $0x1b48] sm:$0xff] }
 0x7f5   :  { %13697 = vmatprep.subr.bf16.mxu0 %v15170_v7  ;;  %v15314_v7 = vcombine.high %v3573_v63, %v3585_v1  ;;  %v3705_v55 = vld [vmem:[#allocation14 + $0x1ba8] sm:$0xff] }
 0x7f7   :  { %13534 = vmatpush1.bf16.msra.mxu1 %v15167_v14  ;;  %v15311_v14 = vcombine.low %v3572_v60, %v3584_v62  ;;  %v3716_v60 = vld [vmem:[#allocation14 + $0x1c00] sm:$0xff] }
 0x7f8   :  { %13698 = vmatpush1.bf16.msra.mxu0 %v15169_v15  ;;  %13535 = vmatprep.subr.bf16.mxu1 %v15192_v10  ;;  %v15313_v15 = vcombine.low %v3573_v63, %v3585_v1  ;;  %v15336_v10 = vcombine.high %v3596_v9, %v3608_v25  ;;  %v3728_v62 = vld [vmem:[#allocation14 + $0x1c60] sm:$0xff]  ;;  %v3717_v63 = vld [vmem:[#allocation14 + $0x1c08] sm:$0xff] }
 0x7f9   :  { %13699 = vmatprep.subr.bf16.mxu0 %v15194_v16  ;;  %v15338_v16 = vcombine.high %v3597_v12, %v3609_v2  ;;  %v3729_v1 = vld [vmem:[#allocation14 + $0x1c68] sm:$0xff]  ;;  %v3740_v9 = vld [vmem:[#allocation14 + $0x1cc0] sm:$0xff] }
 0x7fa   :  { %v3752_v25 = vld [vmem:[#allocation14 + $0x1d20] sm:$0xff] }
 0x7fb   :  { %13536 = vmatpush1.bf16.msra.mxu1 %v15191_v20  ;;  %v3633_v20 = vld [vmem:[#allocation14 + $0x1968] sm:$0xff] }
 0x7fc   :  { %13700 = vmatpush1.bf16.msra.mxu0 %v15193_v26  ;;  %13537 = vmatprep.subr.bf16.mxu1 %v15216_v21  ;;  %v15337_v26 = vcombine.low %v3597_v12, %v3609_v2  ;;  %v15360_v21 = vcombine.high %v3620_v17, %v3632_v18  ;;  %v15362_v24 = vcombine.high %v3621_v19, %v3633_v20  ;;  %v3741_v12 = vld [vmem:[#allocation14 + $0x1cc8] sm:$0xff] }
 0x7fd   :  { %13701 = vmatprep.subr.bf16.mxu0 %v15218_v22  ;;  %v3644_v22 = vld [vmem:[#allocation14 + $0x19c0] sm:$0xff]  ;;  %v3753_v2 = vld [vmem:[#allocation14 + $0x1d28] sm:$0xff] }
 0x7ff   :  { %13538 = vmatpush1.bf16.msra.mxu1 %v15215_v29  ;;  %v15359_v29 = vcombine.low %v3620_v17, %v3632_v18  ;;  %v3764_v17 = vld [vmem:[#allocation14 + $0x1d80] sm:$0xff] }
 0x800   :  { %13702 = vmatpush1.bf16.msra.mxu0 %v15217_v30  ;;  %13539 = vmatprep.subr.bf16.mxu1 %v15240_v31  ;;  %v15361_v30 = vcombine.low %v3621_v19, %v3633_v20  ;;  %v15384_v31 = vcombine.high %v3644_v22, %v3656_v23  ;;  %v3776_v18 = vld [vmem:[#allocation14 + $0x1de0] sm:$0xff]  ;;  %v3777_v19 = vld [vmem:[#allocation14 + $0x1de8] sm:$0xff]  ;;  %v15479_v20 = vcombine.low %v3740_v9, %v3752_v25 }
 0x801   :  { %13703 = vmatprep.subr.bf16.mxu0 %v15242_v32  ;;  %v15386_v32 = vcombine.high %v3645_v33, %v3657_v28 }
 0x803   :  { %13540 = vmatpush1.bf16.msra.mxu1 %v15239_v38  ;;  %v15383_v38 = vcombine.low %v3644_v22, %v3656_v23  ;;  %v3788_v23 = vld [vmem:[#allocation14 + $0x1e40] sm:$0xff] }
 0x804   :  { %13704 = vmatpush1.bf16.msra.mxu0 %v15241_v39  ;;  %13541 = vmatprep.subr.bf16.mxu1 %v15264_v41  ;;  %v15385_v39 = vcombine.low %v3645_v33, %v3657_v28  ;;  %v15408_v41 = vcombine.high %v3668_v34, %v3680_v50  ;;  %v3789_v33 = vld [vmem:[#allocation14 + $0x1e48] sm:$0xff] }
 0x805   :  { %13705 = vmatprep.subr.bf16.mxu0 %v15266_v27  ;;  %v15410_v27 = vcombine.high %v3669_v36, %v3681_v37  ;;  %v3801_v28 = vld [vmem:[#allocation14 + $0x1ea8] sm:$0xff] }
 0x807   :  { %13542 = vmatpush1.bf16.msra.mxu1 %v15263_v44  ;;  %v15407_v44 = vcombine.low %v3668_v34, %v3680_v50  ;;  %v3812_v34 = vld [vmem:[#allocation14 + $0x1f00] sm:$0xff] }
 0x808   :  { %13706 = vmatpush1.bf16.msra.mxu0 %v15265_v56  ;;  %13543 = vmatprep.subr.bf16.mxu1 %v15288_v57  ;;  %v15409_v56 = vcombine.low %v3669_v36, %v3681_v37  ;;  %v15432_v57 = vcombine.high %v3692_v48, %v3704_v51  ;;  %v3824_v50 = vld [vmem:[#allocation14 + $0x1f60] sm:$0xff]  ;;  %v3813_v36 = vld [vmem:[#allocation14 + $0x1f08] sm:$0xff] }
 0x809   :  { %13707 = vmatprep.subr.bf16.mxu0 %v15290_v59  ;;  %v15434_v59 = vcombine.high %v3693_v52, %v3705_v55  ;;  %v3825_v37 = vld [vmem:[#allocation14 + $0x1f68] sm:$0xff] }
 0x80b   :  { %13544 = vmatpush1.bf16.msra.mxu1 %v15287_v4  ;;  %v15431_v4 = vcombine.low %v3692_v48, %v3704_v51  ;;  %v3836_v48 = vld [vmem:[#allocation14 + $0x1fc0] sm:$0xff] }
 0x80c   :  { %13708 = vmatpush1.bf16.msra.mxu0 %v15289_v5  ;;  %13545 = vmatprep.subr.bf16.mxu1 %v15312_v6  ;;  %v15433_v5 = vcombine.low %v3693_v52, %v3705_v55  ;;  %v15456_v6 = vcombine.high %v3716_v60, %v3728_v62  ;;  %v3848_v51 = vld [vmem:[#allocation14 + $0x2020] sm:$0xff]  ;;  %v3837_v52 = vld [vmem:[#allocation14 + $0x1fc8] sm:$0xff] }
 0x80d   :  { %13709 = vmatprep.subr.bf16.mxu0 %v15314_v7  ;;  %v15458_v7 = vcombine.high %v3717_v63, %v3729_v1  ;;  %v3849_v55 = vld [vmem:[#allocation14 + $0x2028] sm:$0xff] }
 0x80f   :  { %13546 = vmatpush1.bf16.msra.mxu1 %v15311_v14  ;;  %v15455_v14 = vcombine.low %v3716_v60, %v3728_v62  ;;  %v3860_v60 = vld [vmem:[#allocation14 + $0x2080] sm:$0xff] }
 0x810   :  { %13710 = vmatpush1.bf16.msra.mxu0 %v15313_v15  ;;  %13556 = vmatprep.subr.bf16.mxu1 %v15336_v10  ;;  %v15457_v15 = vcombine.low %v3717_v63, %v3729_v1  ;;  %v15480_v10 = vcombine.high %v3740_v9, %v3752_v25  ;;  %v3872_v62 = vld [vmem:[#allocation14 + $0x20e0] sm:$0xff]  ;;  %v3861_v63 = vld [vmem:[#allocation14 + $0x2088] sm:$0xff] }
 0x811   :  { %13720 = vmatprep.subr.bf16.mxu0 %v15338_v16  ;;  %v15482_v16 = vcombine.high %v3741_v12, %v3753_v2  ;;  %v3873_v1 = vld [vmem:[#allocation14 + $0x20e8] sm:$0xff]  ;;  %v3884_v9 = vld [vmem:[#allocation14 + $0x2140] sm:$0xff] }
 0x812   :  { %13548 = vmatmul.mubr.bf16.vlgmr.msra.gmra.mrb[28].mxu1 %v17014_v13  ;;  %v3896_v25 = vld [vmem:[#allocation14 + $0x21a0] sm:$0xff] }
 0x813   :  { %13712 = vmatmul.mubr.bf16.vlgmr.msra.gmra.mrb[32].mxu0 %v17014_v13  ;;  %13557 = vmatpush1.bf16.msra.mxu1 %v15335_v8  ;;  %v3765_v8 = vld [vmem:[#allocation14 + $0x1d88] sm:$0xff] }
 0x814   :  { %13588 = vmatprep.mubr.bf16.mxu1 %v17035_v61  ;;  %13721 = vmatpush1.bf16.msra.mxu0 %v15337_v26  ;;  %v15481_v26 = vcombine.low %v3741_v12, %v3753_v2  ;;  %v15506_v22 = vcombine.high %v3765_v8, %v3777_v19  ;;  %v3885_v12 = vld [vmem:[#allocation14 + $0x2148] sm:$0xff] }
 0x815   :  { %13752 = vmatprep.mubr.bf16.mxu0 %v17035_v61  ;;  %13558 = vmatprep.subr.bf16.mxu1 %v15360_v21  ;;  %v15504_v21 = vcombine.high %v3764_v17, %v3776_v18  ;;  %v3897_v2 = vld [vmem:[#allocation14 + $0x21a8] sm:$0xff] }
 0x816   :  { %13722 = vmatprep.subr.bf16.mxu0 %v15362_v24  ;;  %v3800_v24 = vld [vmem:[#allocation14 + $0x1ea0] sm:$0xff] }
 0x817   :  { %13559 = vmatpush1.bf16.msra.mxu1 %v15359_v29  ;;  %v15503_v29 = vcombine.low %v3764_v17, %v3776_v18  ;;  %v3908_v17 = vld [vmem:[#allocation14 + $0x2200] sm:$0xff] }
 0x818   :  { %13723 = vmatpush1.bf16.msra.mxu0 %v15361_v30  ;;  %13560 = vmatprep.subr.bf16.mxu1 %v15384_v31  ;;  %v15505_v30 = vcombine.low %v3765_v8, %v3777_v19  ;;  %v15528_v31 = vcombine.high %v3788_v23, %v3800_v24  ;;  %v3920_v18 = vld [vmem:[#allocation14 + $0x2260] sm:$0xff]  ;;  %v3909_v8 = vld [vmem:[#allocation14 + $0x2208] sm:$0xff] }
 0x819   :  { %13724 = vmatprep.subr.bf16.mxu0 %v15386_v32  ;;  %v15530_v32 = vcombine.high %v3789_v33, %v3801_v28  ;;  %v3921_v19 = vld [vmem:[#allocation14 + $0x2268] sm:$0xff] }
 0x81b   :  { %13561 = vmatpush1.bf16.msra.mxu1 %v15383_v38  ;;  %v15527_v38 = vcombine.low %v3788_v23, %v3800_v24  ;;  %v3932_v23 = vld [vmem:[#allocation14 + $0x22c0] sm:$0xff] }
 0x81c   :  { %13725 = vmatpush1.bf16.msra.mxu0 %v15385_v39  ;;  %13562 = vmatprep.subr.bf16.mxu1 %v15408_v41  ;;  %v15529_v39 = vcombine.low %v3789_v33, %v3801_v28  ;;  %v15552_v41 = vcombine.high %v3812_v34, %v3824_v50  ;;  %v3944_v24 = vld [vmem:[#allocation14 + $0x2320] sm:$0xff]  ;;  %v3933_v33 = vld [vmem:[#allocation14 + $0x22c8] sm:$0xff] }
 0x81d   :  { %13726 = vmatprep.subr.bf16.mxu0 %v15410_v27  ;;  %v15554_v27 = vcombine.high %v3813_v36, %v3825_v37  ;;  %v3945_v28 = vld [vmem:[#allocation14 + $0x2328] sm:$0xff] }
 0x81f   :  { %13563 = vmatpush1.bf16.msra.mxu1 %v15407_v44  ;;  %v15551_v44 = vcombine.low %v3812_v34, %v3824_v50  ;;  %v3956_v34 = vld [vmem:[#allocation14 + $0x2380] sm:$0xff] }
 0x820   :  { %13727 = vmatpush1.bf16.msra.mxu0 %v15409_v56  ;;  %13564 = vmatprep.subr.bf16.mxu1 %v15432_v57  ;;  %v15553_v56 = vcombine.low %v3813_v36, %v3825_v37  ;;  %v15576_v57 = vcombine.high %v3836_v48, %v3848_v51  ;;  %v3968_v50 = vld [vmem:[#allocation14 + $0x23e0] sm:$0xff]  ;;  %v3957_v36 = vld [vmem:[#allocation14 + $0x2388] sm:$0xff] }
 0x821   :  { %13728 = vmatprep.subr.bf16.mxu0 %v15434_v59  ;;  %v15578_v59 = vcombine.high %v3837_v52, %v3849_v55  ;;  %v3969_v37 = vld [vmem:[#allocation14 + $0x23e8] sm:$0xff] }
 0x823   :  { %13565 = vmatpush1.bf16.msra.mxu1 %v15431_v4  ;;  %v15575_v4 = vcombine.low %v3836_v48, %v3848_v51  ;;  %v3980_v48 = vld [vmem:[#allocation14 + $0x2440] sm:$0xff] }
 0x824   :  { %13729 = vmatpush1.bf16.msra.mxu0 %v15433_v5  ;;  %13566 = vmatprep.subr.bf16.mxu1 %v15456_v6  ;;  %v15577_v5 = vcombine.low %v3837_v52, %v3849_v55  ;;  %v15600_v6 = vcombine.high %v3860_v60, %v3872_v62  ;;  %v3992_v51 = vld [vmem:[#allocation14 + $0x24a0] sm:$0xff]  ;;  %v3981_v52 = vld [vmem:[#allocation14 + $0x2448] sm:$0xff] }
 0x825   :  { %13730 = vmatprep.subr.bf16.mxu0 %v15458_v7  ;;  %v15602_v7 = vcombine.high %v3861_v63, %v3873_v1  ;;  %v3993_v55 = vld [vmem:[#allocation14 + $0x24a8] sm:$0xff] }
 0x827   :  { %13567 = vmatpush1.bf16.msra.mxu1 %v15455_v14  ;;  %v15599_v14 = vcombine.low %v3860_v60, %v3872_v62  ;;  %v4004_v60 = vld [vmem:[#allocation14 + $0x2500] sm:$0xff] }
 0x828   :  { %13731 = vmatpush1.bf16.msra.mxu0 %v15457_v15  ;;  %13568 = vmatprep.subr.bf16.mxu1 %v15480_v10  ;;  %v15601_v15 = vcombine.low %v3861_v63, %v3873_v1  ;;  %v15624_v10 = vcombine.high %v3884_v9, %v3896_v25  ;;  %v4016_v62 = vld [vmem:[#allocation14 + $0x2560] sm:$0xff]  ;;  %v15719_v63 = vcombine.low %v3980_v48, %v3992_v51  ;;  %v4005_v1 = vld [vmem:[#allocation14 + $0x2508] sm:$0xff] }
 0x829   :  { %13732 = vmatprep.subr.bf16.mxu0 %v15482_v16  ;;  %v15626_v16 = vcombine.high %v3885_v12, %v3897_v2 }
 0x82b   :  { %13569 = vmatpush1.bf16.msra.mxu1 %v15479_v20  ;;  %v15623_v20 = vcombine.low %v3884_v9, %v3896_v25  ;;  %v4040_v9 = vld [vmem:[#allocation14 + $0x2620] sm:$0xff] }
 0x82c   :  { %13733 = vmatpush1.bf16.msra.mxu0 %v15481_v26  ;;  %13570 = vmatprep.subr.bf16.mxu1 %v15504_v21  ;;  %v15625_v26 = vcombine.low %v3885_v12, %v3897_v2  ;;  %v15648_v21 = vcombine.high %v3908_v17, %v3920_v18  ;;  %v4029_v12 = vld [vmem:[#allocation14 + $0x25c8] sm:$0xff] }
 0x82d   :  { %13734 = vmatprep.subr.bf16.mxu0 %v15506_v22  ;;  %v15650_v22 = vcombine.high %v3909_v8, %v3921_v19  ;;  %v4041_v2 = vld [vmem:[#allocation14 + $0x2628] sm:$0xff] }
 0x82f   :  { %13571 = vmatpush1.bf16.msra.mxu1 %v15503_v29  ;;  %v15647_v29 = vcombine.low %v3908_v17, %v3920_v18  ;;  %v4052_v17 = vld [vmem:[#allocation14 + $0x2680] sm:$0xff] }
 0x830   :  { %13735 = vmatpush1.bf16.msra.mxu0 %v15505_v30  ;;  %13572 = vmatprep.subr.bf16.mxu1 %v15528_v31  ;;  %v15649_v30 = vcombine.low %v3909_v8, %v3921_v19  ;;  %v15672_v31 = vcombine.high %v3932_v23, %v3944_v24  ;;  %v4064_v18 = vld [vmem:[#allocation14 + $0x26e0] sm:$0xff]  ;;  %v4053_v8 = vld [vmem:[#allocation14 + $0x2688] sm:$0xff] }
 0x831   :  { %13736 = vmatprep.subr.bf16.mxu0 %v15530_v32  ;;  %v15674_v32 = vcombine.high %v3933_v33, %v3945_v28  ;;  %v4065_v19 = vld [vmem:[#allocation14 + $0x26e8] sm:$0xff] }
 0x833   :  { %13573 = vmatpush1.bf16.msra.mxu1 %v15527_v38  ;;  %v15671_v38 = vcombine.low %v3932_v23, %v3944_v24  ;;  %v4076_v23 = vld [vmem:[#allocation14 + $0x2740] sm:$0xff] }
 0x834   :  { %13737 = vmatpush1.bf16.msra.mxu0 %v15529_v39  ;;  %13574 = vmatprep.subr.bf16.mxu1 %v15552_v41  ;;  %v15673_v39 = vcombine.low %v3933_v33, %v3945_v28  ;;  %v15696_v41 = vcombine.high %v3956_v34, %v3968_v50  ;;  %v4088_v24 = vld [vmem:[#allocation14 + $0x27a0] sm:$0xff]  ;;  %v4077_v33 = vld [vmem:[#allocation14 + $0x2748] sm:$0xff] }
 0x835   :  { %13738 = vmatprep.subr.bf16.mxu0 %v15554_v27  ;;  %v15698_v27 = vcombine.high %v3957_v36, %v3969_v37  ;;  %v4089_v28 = vld [vmem:[#allocation14 + $0x27a8] sm:$0xff] }
 0x837   :  { %13575 = vmatpush1.bf16.msra.mxu1 %v15551_v44  ;;  %v15695_v44 = vcombine.low %v3956_v34, %v3968_v50  ;;  %v4100_v34 = vld [vmem:[#allocation14 + $0x2800] sm:$0xff] }
 0x838   :  { %13739 = vmatpush1.bf16.msra.mxu0 %v15553_v56  ;;  %13576 = vmatprep.subr.bf16.mxu1 %v15576_v57  ;;  %v15697_v56 = vcombine.low %v3957_v36, %v3969_v37  ;;  %v15720_v57 = vcombine.high %v3980_v48, %v3992_v51  ;;  %v4112_v50 = vld [vmem:[#allocation14 + $0x2860] sm:$0xff]  ;;  %v4101_v36 = vld [vmem:[#allocation14 + $0x2808] sm:$0xff] }
 0x839   :  { %13740 = vmatprep.subr.bf16.mxu0 %v15578_v59  ;;  %v15722_v59 = vcombine.high %v3981_v52, %v3993_v55  ;;  %v4113_v37 = vld [vmem:[#allocation14 + $0x2868] sm:$0xff]  ;;  %v4124_v48 = vld [vmem:[#allocation14 + $0x28c0] sm:$0xff] }
 0x83a   :  { %v4136_v51 = vld [vmem:[#allocation14 + $0x2920] sm:$0xff] }
 0x83b   :  { %13577 = vmatpush1.bf16.msra.mxu1 %v15575_v4  ;;  %v4017_v4 = vld [vmem:[#allocation14 + $0x2568] sm:$0xff] }
 0x83c   :  { %13741 = vmatpush1.bf16.msra.mxu0 %v15577_v5  ;;  %13578 = vmatprep.subr.bf16.mxu1 %v15600_v6  ;;  %v15721_v5 = vcombine.low %v3981_v52, %v3993_v55  ;;  %v15744_v6 = vcombine.high %v4004_v60, %v4016_v62  ;;  %v15746_v25 = vcombine.high %v4005_v1, %v4017_v4  ;;  %v16521_v52 = vld [vmem:[#allocation16 + $0x8] sm:$0xff] }
 0x83d   :  { %13742 = vmatprep.subr.bf16.mxu0 %v15602_v7  ;;  %v4028_v7 = vld [vmem:[#allocation14 + $0x25c0] sm:$0xff]  ;;  %v4413_v55 = vrot.slane %v16521_v52, %v17019_v42 }
 0x83f   :  { %13579 = vmatpush1.bf16.msra.mxu1 %v15599_v14  ;;  %v15743_v14 = vcombine.low %v4004_v60, %v4016_v62  ;;  %v15839_v60 = vcombine.low %v4100_v34, %v4112_v50  ;;  %v4425_v62 = vrot.slane %v16521_v52, %v17025_v53 }
 0x840   :  { %13743 = vmatpush1.bf16.msra.mxu0 %v15601_v15  ;;  %13580 = vmatprep.subr.bf16.mxu1 %v15624_v10  ;;  %v15745_v15 = vcombine.low %v4005_v1, %v4017_v4  ;;  %v15768_v10 = vcombine.high %v4028_v7, %v4040_v9  ;;  %v15864_v1 = vcombine.high %v4124_v48, %v4136_v51 }
 0x841   :  { %13744 = vmatprep.subr.bf16.mxu0 %v15626_v16  ;;  %v15770_v16 = vcombine.high %v4029_v12, %v4041_v2 }
 0x843   :  { %13581 = vmatpush1.bf16.msra.mxu1 %v15623_v20  ;;  %v15767_v20 = vcombine.low %v4028_v7, %v4040_v9  ;;  %v4160_v7 = vld [vmem:[#allocation14 + $0x29e0] sm:$0xff] }
 0x844   :  { %13745 = vmatpush1.bf16.msra.mxu0 %v15625_v26  ;;  %13582 = vmatprep.subr.bf16.mxu1 %v15648_v21  ;;  %v15769_v26 = vcombine.low %v4029_v12, %v4041_v2  ;;  %v15792_v21 = vcombine.high %v4052_v17, %v4064_v18  ;;  %v4149_v2 = vld [vmem:[#allocation14 + $0x2988] sm:$0xff] }
 0x845   :  { %13746 = vmatprep.subr.bf16.mxu0 %v15650_v22  ;;  %v15794_v22 = vcombine.high %v4053_v8, %v4065_v19 }
 0x847   :  { %13583 = vmatpush1.bf16.msra.mxu1 %v15647_v29  ;;  %v15791_v29 = vcombine.low %v4052_v17, %v4064_v18  ;;  %v15863_v18 = vcombine.low %v4124_v48, %v4136_v51  ;;  %v4220_v51 = vld [vmem:[#allocation14 + $0x2bc0] sm:$0xff] }
 0x848   :  { %13747 = vmatpush1.bf16.msra.mxu0 %v15649_v30  ;;  %13584 = vmatprep.subr.bf16.mxu1 %v15672_v31  ;;  %v15793_v30 = vcombine.low %v4053_v8, %v4065_v19  ;;  %v15816_v31 = vcombine.high %v4076_v23, %v4088_v24 }
 0x849   :  { %13748 = vmatprep.subr.bf16.mxu0 %v15674_v32  ;;  %v15818_v32 = vcombine.high %v4077_v33, %v4089_v28 }
 0x84b   :  { %13585 = vmatpush1.bf16.msra.mxu1 %v15671_v38  ;;  %v15815_v38 = vcombine.low %v4076_v23, %v4088_v24  ;;  %v4172_v24 = vld [vmem:[#allocation14 + $0x2a40] sm:$0xff] }
 0x84c   :  { %13749 = vmatpush1.bf16.msra.mxu0 %v15673_v39  ;;  %13586 = vmatprep.subr.bf16.mxu1 %v15696_v41  ;;  %v15817_v39 = vcombine.low %v4077_v33, %v4089_v28  ;;  %v15840_v41 = vcombine.high %v4100_v34, %v4112_v50  ;;  %v4184_v33 = vld [vmem:[#allocation14 + $0x2aa0] sm:$0xff]  ;;  %v4173_v28 = vld [vmem:[#allocation14 + $0x2a48] sm:$0xff] }
 0x84d   :  { %13750 = vmatprep.subr.bf16.mxu0 %v15698_v27  ;;  %v15842_v27 = vcombine.high %v4101_v36, %v4113_v37  ;;  %v4196_v50 = vld [vmem:[#allocation14 + $0x2b00] sm:$0xff] }
 0x84f   :  { %13587 = vmatpush1.bf16.msra.mxu1 %v15695_v44  ;;  %v4125_v44 = vld [vmem:[#allocation14 + $0x28c8] sm:$0xff] }
 0x850   :  { %13751 = vmatpush1.bf16.msra.mxu0 %v15697_v56  ;;  %13597 = vmatprep.subr.bf16.mxu1 %v15720_v57  ;;  %v4137_v56 = vld [vmem:[#allocation14 + $0x2928] sm:$0xff]  ;;  %v4421_v57 = vrot.slane %v16521_v52, %v17048_v35 }
 0x851   :  { %13761 = vmatprep.subr.bf16.mxu0 %v15722_v59  ;;  %v4417_v59 = vrot.slane %v16521_v52, %v17022_v46  ;;  %v4232_v52 = vld [vmem:[#allocation14 + $0x2c20] sm:$0xff] }
 0x852   :  { %13589 = vmatmul.mubr.bf16.vlgmr.msra.gmra.mrb[28].mxu1 %v17037_v0 }
 0x853   :  { %13753 = vmatmul.mubr.bf16.vlgmr.msra.gmra.mrb[32].mxu0 %v17037_v0  ;;  %13598 = vmatpush1.bf16.msra.mxu1 %v15719_v63  ;;  %v15841_v63 = vcombine.low %v4101_v36, %v4113_v37  ;;  %v4208_v36 = vld [vmem:[#allocation14 + $0x2b60] sm:$0xff]  ;;  %v4197_v37 = vld [vmem:[#allocation14 + $0x2b08] sm:$0xff] }
 0x854   :  { %13629 = vmatprep.mubr.bf16.mxu1 %v17041_v11  ;;  %13762 = vmatpush1.bf16.msra.mxu0 %v15721_v5  ;;  %v15866_v5 = vcombine.high %v4125_v44, %v4137_v56 }
 0x855   :  { %13793 = vmatprep.mubr.bf16.mxu0 %v17041_v11  ;;  %13599 = vmatprep.subr.bf16.mxu1 %v15744_v6  ;;  %v4148_v6 = vld [vmem:[#allocation14 + $0x2980] sm:$0xff] }
 0x856   :  { %13763 = vmatprep.subr.bf16.mxu0 %v15746_v25 }
 0x857   :  { %13600 = vmatpush1.bf16.msra.mxu1 %v15743_v14  ;;  %v4161_v14 = vld [vmem:[#allocation14 + $0x29e8] sm:$0xff] }
 0x858   :  { %13764 = vmatpush1.bf16.msra.mxu0 %v15745_v15  ;;  %13601 = vmatprep.subr.bf16.mxu1 %v15768_v10  ;;  %v15890_v23 = vcombine.high %v4149_v2, %v4161_v14 }
 0x859   :  { %13765 = vmatprep.subr.bf16.mxu0 %v15770_v16 }
 0x85b   :  { %13602 = vmatpush1.bf16.msra.mxu1 %v15767_v20 }
 0x85c   :  { %13766 = vmatpush1.bf16.msra.mxu0 %v15769_v26  ;;  %13603 = vmatprep.subr.bf16.mxu1 %v15792_v21  ;;  %v15865_v26 = vcombine.low %v4125_v44, %v4137_v56  ;;  %v15888_v21 = vcombine.high %v4148_v6, %v4160_v7  ;;  %v4221_v44 = vld [vmem:[#allocation14 + $0x2bc8] sm:$0xff] }
 0x85d   :  { %13767 = vmatprep.subr.bf16.mxu0 %v15794_v22  ;;  %v4233_v56 = vld [vmem:[#allocation14 + $0x2c28] sm:$0xff] }
 0x85f   :  { %13604 = vmatpush1.bf16.msra.mxu1 %v15791_v29  ;;  %v4185_v29 = vld [vmem:[#allocation14 + $0x2aa8] sm:$0xff] }
 0x860   :  { %13768 = vmatpush1.bf16.msra.mxu0 %v15793_v30  ;;  %13605 = vmatprep.subr.bf16.mxu1 %v15816_v31  ;;  %v15887_v30 = vcombine.low %v4148_v6, %v4160_v7  ;;  %v15889_v31 = vcombine.low %v4149_v2, %v4161_v14  ;;  %v15914_v34 = vcombine.high %v4173_v28, %v4185_v29  ;;  %v4256_v6 = vld [vmem:[#allocation14 + $0x2ce0] sm:$0xff]  ;;  %v4245_v7 = vld [vmem:[#allocation14 + $0x2c88] sm:$0xff] }
 0x861   :  { %13769 = vmatprep.subr.bf16.mxu0 %v15818_v32  ;;  %v15912_v32 = vcombine.high %v4172_v24, %v4184_v33 }
 0x863   :  { %13606 = vmatpush1.bf16.msra.mxu1 %v15815_v38  ;;  %v4209_v38 = vld [vmem:[#allocation14 + $0x2b68] sm:$0xff] }
 0x864   :  { %13770 = vmatpush1.bf16.msra.mxu0 %v15817_v39  ;;  %13607 = vmatprep.subr.bf16.mxu1 %v15840_v41  ;;  %v15911_v39 = vcombine.low %v4172_v24, %v4184_v33  ;;  %v15913_v41 = vcombine.low %v4173_v28, %v4185_v29  ;;  %v15938_v48 = vcombine.high %v4197_v37, %v4209_v38 }
 0x865   :  { %v13303_v4 = vpop.f32.mrb[24].mxu1  ;;  %13771 = vmatprep.subr.bf16.mxu0 %v15842_v27  ;;  %v15936_v27 = vcombine.high %v4196_v50, %v4208_v36 }
 0x866   :  { %v16107_v9 = vadd.f32 %v13303_v4, %v4413_v55  ;;  %v13467_v25 = vpop.f32.mrb[28].mxu0  ;;  %v13305_v12 = vpop.f32.mrb[25].mxu1  ;;  %v15962_v4 = vcombine.high %v4221_v44, %v4233_v56 }
 0x867   :  { %v16109_v15 = vadd.f32 %v13467_v25, %v4421_v57  ;;  %v16108_v10 = vadd.f32 %v13305_v12, %v4417_v59  ;;  %v13469_v16 = vpop.f32.mrb[29].mxu0  ;;  %v13307_v17 = vpop.f32.mrb[26].mxu1  ;;  %13608 = vmatpush1.bf16.msra.mxu1 %v15839_v60  ;;  %v15935_v59 = vcombine.low %v4196_v50, %v4208_v36  ;;  %v15959_v25 = vcombine.low %v4220_v51, %v4232_v52 }
 0x868   :  { %16495 = vtanh.f32 %v16107_v9  ;;  %v16110_v8 = vadd.f32 %v13469_v16, %v4425_v62  ;;  %v13471_v19 = vpop.f32.mrb[30].mxu0  ;;  %13772 = vmatpush1.bf16.msra.mxu0 %v15841_v63  ;;  %v13308_v20 = vpop.f32.mrb[27].mxu1  ;;  %13609 = vmatprep.subr.bf16.mxu1 %v15864_v1  ;;  %v15937_v62 = vcombine.low %v4197_v37, %v4209_v38  ;;  %v15960_v63 = vcombine.high %v4220_v51, %v4232_v52  ;;  %v4257_v9 = vld [vmem:[#allocation14 + $0x2ce8] sm:$0xff] }
 0x869   :  { %16497 = vtanh.f32 %v16109_v15  ;;  %v13472_v22 = vpop.f32.mrb[31].mxu0  ;;  %13773 = vmatprep.subr.bf16.mxu0 %v15866_v5  ;;  %v4244_v5 = vld [vmem:[#allocation14 + $0x2c80] sm:$0xff]  ;;  %v15961_v12 = vcombine.low %v4221_v44, %v4233_v56  ;;  %v15986_v14 = vcombine.high %v4245_v7, %v4257_v9  ;;  %v4269_v16 = vld [vmem:[#allocation14 + $0x2d48] sm:$0xff]  ;;  %v2830_v56 = vld [vmem:[#allocation14 + $0x50] sm:$0xff] }
 0x86a   :  { %16499 = vtanh.f32 %v16108_v10  ;;  %v15984_v2 = vcombine.high %v4244_v5, %v4256_v6  ;;  %v4268_v15 = vld [vmem:[#allocation14 + $0x2d40] sm:$0xff]  ;;  %v4281_v17 = vld [vmem:[#allocation14 + $0x2da8] sm:$0xff] }
 0x86b   :  { %16501 = vtanh.f32 %v16110_v8  ;;  %13610 = vmatpush1.bf16.msra.mxu1 %v15863_v18  ;;  %v4280_v10 = vld [vmem:[#allocation14 + $0x2da0] sm:$0xff]  ;;  %v15983_v18 = vcombine.low %v4244_v5, %v4256_v6  ;;  %v15985_v8 = vcombine.low %v4245_v7, %v4257_v9  ;;  %v16010_v20 = vcombine.high %v4269_v16, %v4281_v17  ;;  %v4293_v22 = vld [vmem:[#allocation14 + $0x2e08] sm:$0xff]  ;;  %v2854_v5 = vld [vmem:[#allocation14 + $0x110] sm:$0xff] }
 0x86c   :  { %13774 = vmatpush1.bf16.msra.mxu0 %v15865_v26  ;;  %13611 = vmatprep.subr.bf16.mxu1 %v15888_v21  ;;  %v16008_v19 = vcombine.high %v4268_v15, %v4280_v10  ;;  %v4292_v26 = vld [vmem:[#allocation14 + $0x2e00] sm:$0xff]  ;;  %v16007_v24 = vcombine.low %v4268_v15, %v4280_v10  ;;  %v16009_v33 = vcombine.low %v4269_v16, %v4281_v17  ;;  %v2866_v6 = vld [vmem:[#allocation14 + $0x170] sm:$0xff]  ;;  %v2855_v9 = vld [vmem:[#allocation14 + $0x118] sm:$0xff] }
 0x86d   :  { %13775 = vmatprep.subr.bf16.mxu0 %v15890_v23  ;;  %v4304_v21 = vld [vmem:[#allocation14 + $0x2e60] sm:$0xff]  ;;  %v4305_v23 = vld [vmem:[#allocation14 + $0x2e68] sm:$0xff]  ;;  %v2890_v15 = vld [vmem:[#allocation14 + $0x230] sm:$0xff] }
 0x86e   :  { %v16032_v28 = vcombine.high %v4292_v26, %v4304_v21  ;;  %v16034_v29 = vcombine.high %v4293_v22, %v4305_v23  ;;  %v16031_v50 = vcombine.low %v4292_v26, %v4304_v21  ;;  %v16033_v36 = vcombine.low %v4293_v22, %v4305_v23  ;;  %v2879_v16 = vld [vmem:[#allocation14 + $0x1d8] sm:$0xff]  ;;  %v2902_v26 = vld [vmem:[#allocation14 + $0x290] sm:$0xff] }
 0x86f   :  { %13612 = vmatpush1.bf16.msra.mxu1 %v15887_v30  ;;  %v4316_v30 = vld [vmem:[#allocation14 + $0x2ec0] sm:$0xff]  ;;  %v2891_v17 = vld [vmem:[#allocation14 + $0x238] sm:$0xff]  ;;  %v2914_v21 = vld [vmem:[#allocation14 + $0x2f0] sm:$0xff] }
 0x870   :  { %13776 = vmatpush1.bf16.msra.mxu0 %v15889_v31  ;;  %13613 = vmatprep.subr.bf16.mxu1 %v15912_v32  ;;  %v4328_v31 = vld [vmem:[#allocation14 + $0x2f20] sm:$0xff]  ;;  %v4317_v32 = vld [vmem:[#allocation14 + $0x2ec8] sm:$0xff]  ;;  %v2903_v22 = vld [vmem:[#allocation14 + $0x298] sm:$0xff] }
 0x871   :  { %13777 = vmatprep.subr.bf16.mxu0 %v15914_v34  ;;  %v4329_v34 = vld [vmem:[#allocation14 + $0x2f28] sm:$0xff]  ;;  %v16056_v37 = vcombine.high %v4316_v30, %v4328_v31  ;;  %v16055_v51 = vcombine.low %v4316_v30, %v4328_v31  ;;  %v2915_v23 = vld [vmem:[#allocation14 + $0x2f8] sm:$0xff]  ;;  %v2926_v30 = vld [vmem:[#allocation14 + $0x350] sm:$0xff] }
 0x872   :  { %v16496_v55 = vpop.eup %16495  ;;  %v16058_v38 = vcombine.high %v4317_v32, %v4329_v34  ;;  %v16057_v52 = vcombine.low %v4317_v32, %v4329_v34  ;;  %v2938_v31 = vld [vmem:[#allocation14 + $0x3b0] sm:$0xff]  ;;  %v2927_v32 = vld [vmem:[#allocation14 + $0x358] sm:$0xff] }
 0x873   :  { %v16498_v57 = vpop.eup %16497  ;;  %14166 = vst [vmem:[#allocation17 + $0x60] sm:$0xff] %v16496_v55  ;;  %13614 = vmatpush1.bf16.msra.mxu1 %v15911_v39  ;;  %v4340_v39 = vld [vmem:[#allocation14 + $0x2f80] sm:$0xff]  ;;  %v2939_v34 = vld [vmem:[#allocation14 + $0x3b8] sm:$0xff] }
 0x874   :  { %v16500_v60 = vpop.eup %16499  ;;  %14168 = vst [vmem:[#allocation17 + $0x70] sm:$0xff] %v16498_v57  ;;  %13778 = vmatpush1.bf16.msra.mxu0 %v15913_v41  ;;  %13615 = vmatprep.subr.bf16.mxu1 %v15936_v27  ;;  %v4352_v41 = vld [vmem:[#allocation14 + $0x2fe0] sm:$0xff]  ;;  %v4341_v27 = vld [vmem:[#allocation14 + $0x2f88] sm:$0xff]  ;;  %v2842_v57 = vld [vmem:[#allocation14 + $0xb0] sm:$0xff] }
 0x875   :  { %v16502_v1 = vpop.eup %16501  ;;  %14167 = vst [vmem:[#allocation17 + $0x68] sm:$0xff] %v16500_v60  ;;  %13779 = vmatprep.subr.bf16.mxu0 %v15938_v48  ;;  %v4353_v48 = vld [vmem:[#allocation14 + $0x2fe8] sm:$0xff]  ;;  %v16080_v55 = vcombine.high %v4340_v39, %v4352_v41  ;;  %v2843_v60 = vld [vmem:[#allocation14 + $0xb8] sm:$0xff]  ;;  %v14571_v7 = vcombine.low %v2830_v56, %v2842_v57 }
 0x876   :  { %14169 = vst [vmem:[#allocation17 + $0x78] sm:$0xff] %v16502_v1  ;;  %v16082_v44 = vcombine.high %v4341_v27, %v4353_v48  ;;  %v14572_v1 = vcombine.high %v2830_v56, %v2842_v57  ;;  %v2986_v56 = vld [vmem:[#allocation14 + $0x530] sm:$0xff]  ;;  %v2975_v57 = vld [vmem:[#allocation14 + $0x4d8] sm:$0xff] }
 0x877   :  { %13616 = vmatpush1.bf16.msra.mxu1 %v15935_v59  ;;  %v2831_v59 = vld [vmem:[#allocation14 + $0x58] sm:$0xff] }
 0x878   :  { %13780 = vmatpush1.bf16.msra.mxu0 %v15937_v62  ;;  %13617 = vmatprep.subr.bf16.mxu1 %v15960_v63  ;;  %v16079_v62 = vcombine.low %v4340_v39, %v4352_v41  ;;  %v16081_v63 = vcombine.low %v4341_v27, %v4353_v48  ;;  %v2962_v39 = vld [vmem:[#allocation14 + $0x470] sm:$0xff]  ;;  %v2951_v41 = vld [vmem:[#allocation14 + $0x418] sm:$0xff]  ;;  %v14667_v48 = vcombine.low %v2926_v30, %v2938_v31 }
 0x879   :  { %13781 = vmatprep.subr.bf16.mxu0 %v15962_v4  ;;  %v14574_v4 = vcombine.high %v2831_v59, %v2843_v60  ;;  %v2963_v27 = vld [vmem:[#allocation14 + $0x478] sm:$0xff] }
 0x87b   :  { %13618 = vmatpush1.bf16.msra.mxu1 %v15959_v25  ;;  %v2867_v25 = vld [vmem:[#allocation14 + $0x178] sm:$0xff] }
 0x87c   :  { %13782 = vmatpush1.bf16.msra.mxu0 %v15961_v12  ;;  %13619 = vmatprep.subr.bf16.mxu1 %v15984_v2  ;;  %v14573_v12 = vcombine.low %v2831_v59, %v2843_v60  ;;  %v14596_v2 = vcombine.high %v2854_v5, %v2866_v6  ;;  %v14598_v10 = vcombine.high %v2855_v9, %v2867_v25  ;;  %v2987_v59 = vld [vmem:[#allocation14 + $0x538] sm:$0xff] }
 0x87d   :  { %13783 = vmatprep.subr.bf16.mxu0 %v15986_v14  ;;  %v2878_v14 = vld [vmem:[#allocation14 + $0x1d0] sm:$0xff] }
 0x87f   :  { %13620 = vmatpush1.bf16.msra.mxu1 %v15983_v18  ;;  %v14595_v18 = vcombine.low %v2854_v5, %v2866_v6  ;;  %v3010_v5 = vld [vmem:[#allocation14 + $0x5f0] sm:$0xff]  ;;  %v2999_v6 = vld [vmem:[#allocation14 + $0x598] sm:$0xff] }
 0x880   :  { %13784 = vmatpush1.bf16.msra.mxu0 %v15985_v8  ;;  %13621 = vmatprep.subr.bf16.mxu1 %v16008_v19  ;;  %v14597_v8 = vcombine.low %v2855_v9, %v2867_v25  ;;  %v14620_v19 = vcombine.high %v2878_v14, %v2890_v15  ;;  %v14717_v25 = vcombine.low %v2975_v57, %v2987_v59 }
 0x881   :  { %13785 = vmatprep.subr.bf16.mxu0 %v16010_v20  ;;  %v14622_v20 = vcombine.high %v2879_v16, %v2891_v17 }
 0x883   :  { %13622 = vmatpush1.bf16.msra.mxu1 %v16007_v24  ;;  %v14619_v24 = vcombine.low %v2878_v14, %v2890_v15  ;;  %v3022_v14 = vld [vmem:[#allocation14 + $0x650] sm:$0xff] }
 0x884   :  { %13786 = vmatpush1.bf16.msra.mxu0 %v16009_v33  ;;  %13623 = vmatprep.subr.bf16.mxu1 %v16032_v28  ;;  %v14621_v33 = vcombine.low %v2879_v16, %v2891_v17  ;;  %v14644_v28 = vcombine.high %v2902_v26, %v2914_v21  ;;  %v3034_v15 = vld [vmem:[#allocation14 + $0x6b0] sm:$0xff]  ;;  %v3035_v16 = vld [vmem:[#allocation14 + $0x6b8] sm:$0xff] }
 0x885   :  { %13787 = vmatprep.subr.bf16.mxu0 %v16034_v29  ;;  %v14646_v29 = vcombine.high %v2903_v22, %v2915_v23 }
 0x887   :  { %13624 = vmatpush1.bf16.msra.mxu1 %v16031_v50  ;;  %v14645_v50 = vcombine.low %v2903_v22, %v2915_v23  ;;  %v3059_v22 = vld [vmem:[#allocation14 + $0x778] sm:$0xff]  ;;  %v14763_v23 = vcombine.low %v3022_v14, %v3034_v15 }
 0x888   :  { %13788 = vmatpush1.bf16.msra.mxu0 %v16033_v36  ;;  %13625 = vmatprep.subr.bf16.mxu1 %v16056_v37  ;;  %v14668_v36 = vcombine.high %v2926_v30, %v2938_v31  ;;  %v14670_v37 = vcombine.high %v2927_v32, %v2939_v34  ;;  %v3082_v30 = vld [vmem:[#allocation14 + $0x830] sm:$0xff]  ;;  %v3071_v31 = vld [vmem:[#allocation14 + $0x7d8] sm:$0xff] }
 0x889   :  { %13789 = vmatprep.subr.bf16.mxu0 %v16058_v38  ;;  %v2950_v38 = vld [vmem:[#allocation14 + $0x410] sm:$0xff] }
 0x88a   :  { %v14691_v60 = vcombine.low %v2950_v38, %v2962_v39 }
 0x88b   :  { %13626 = vmatpush1.bf16.msra.mxu1 %v16055_v51  ;;  %v14669_v51 = vcombine.low %v2927_v32, %v2939_v34  ;;  %v3083_v32 = vld [vmem:[#allocation14 + $0x838] sm:$0xff] }
 0x88c   :  { %13790 = vmatpush1.bf16.msra.mxu0 %v16057_v52  ;;  %13627 = vmatprep.subr.bf16.mxu1 %v16080_v55  ;;  %v14692_v52 = vcombine.high %v2950_v38, %v2962_v39  ;;  %v14694_v55 = vcombine.high %v2951_v41, %v2963_v27  ;;  %v3106_v38 = vld [vmem:[#allocation14 + $0x8f0] sm:$0xff]  ;;  %v3095_v39 = vld [vmem:[#allocation14 + $0x898] sm:$0xff] }
 0x88d   :  { %13791 = vmatprep.subr.bf16.mxu0 %v16082_v44  ;;  %v2974_v44 = vld [vmem:[#allocation14 + $0x4d0] sm:$0xff] }
 0x88e   :  { %v14715_v9 = vcombine.low %v2974_v44, %v2986_v56 }
 0x88f   :  { %13628 = vmatpush1.bf16.msra.mxu1 %v16079_v62  ;;  %v14693_v62 = vcombine.low %v2951_v41, %v2963_v27  ;;  %v3107_v41 = vld [vmem:[#allocation14 + $0x8f8] sm:$0xff] }
 0x890   :  { %13792 = vmatpush1.bf16.msra.mxu0 %v16081_v63  ;;  %13802 = vmatprep.subr.bf16.mxu1 %v14572_v1  ;;  %v14716_v63 = vcombine.high %v2974_v44, %v2986_v56  ;;  %v14718_v1 = vcombine.high %v2975_v57, %v2987_v59  ;;  %v3130_v44 = vld [vmem:[#allocation14 + $0x9b0] sm:$0xff]  ;;  %v3119_v56 = vld [vmem:[#allocation14 + $0x958] sm:$0xff] }
 0x891   :  { %13966 = vmatprep.subr.bf16.mxu0 %v14574_v4  ;;  %v2998_v4 = vld [vmem:[#allocation14 + $0x590] sm:$0xff]  ;;  %v3131_v57 = vld [vmem:[#allocation14 + $0x9b8] sm:$0xff] }
 0x892   :  { %13630 = vmatmul.mubr.bf16.vlgmr.msra.gmra.mrb[28].mxu1 %v17052_v40  ;;  %v14739_v17 = vcombine.low %v2998_v4, %v3010_v5 }
 0x893   :  { %13794 = vmatmul.mubr.bf16.vlgmr.msra.gmra.mrb[32].mxu0 %v17052_v40  ;;  %13803 = vmatpush1.bf16.msra.mxu1 %v14571_v7  ;;  %v3011_v7 = vld [vmem:[#allocation14 + $0x5f8] sm:$0xff] }
 0x894   :  { %13834 = vmatprep.mubr.bf16.mxu1 %v16999_v43  ;;  %13967 = vmatpush1.bf16.msra.mxu0 %v14573_v12  ;;  %v14740_v12 = vcombine.high %v2998_v4, %v3010_v5  ;;  %v3154_v4 = vld [vmem:[#allocation14 + $0xa70] sm:$0xff]  ;;  %v3143_v5 = vld [vmem:[#allocation14 + $0xa18] sm:$0xff] }
 0x895   :  { %13998 = vmatprep.mubr.bf16.mxu0 %v16999_v43  ;;  %13804 = vmatprep.subr.bf16.mxu1 %v14596_v2  ;;  %v14643_v43 = vcombine.low %v2902_v26, %v2914_v21  ;;  %v14742_v2 = vcombine.high %v2999_v6, %v3011_v7  ;;  %v3058_v26 = vld [vmem:[#allocation14 + $0x770] sm:$0xff]  ;;  %v3047_v21 = vld [vmem:[#allocation14 + $0x718] sm:$0xff] }
 0x896   :  { %13968 = vmatprep.subr.bf16.mxu0 %v14598_v10  ;;  %v3023_v10 = vld [vmem:[#allocation14 + $0x658] sm:$0xff] }
 0x897   :  { %13805 = vmatpush1.bf16.msra.mxu1 %v14595_v18  ;;  %v14741_v18 = vcombine.low %v2999_v6, %v3011_v7  ;;  %v3155_v6 = vld [vmem:[#allocation14 + $0xa78] sm:$0xff] }
 0x898   :  { %13969 = vmatpush1.bf16.msra.mxu0 %v14597_v8  ;;  %13806 = vmatprep.subr.bf16.mxu1 %v14620_v19  ;;  %v14764_v8 = vcombine.high %v3022_v14, %v3034_v15  ;;  %v14766_v19 = vcombine.high %v3023_v10, %v3035_v16  ;;  %v3178_v14 = vld [vmem:[#allocation14 + $0xb30] sm:$0xff]  ;;  %v3167_v15 = vld [vmem:[#allocation14 + $0xad8] sm:$0xff] }
 0x899   :  { %13970 = vmatprep.subr.bf16.mxu0 %v14622_v20  ;;  %v3046_v20 = vld [vmem:[#allocation14 + $0x710] sm:$0xff] }
 0x89a   :  { %v14787_v34 = vcombine.low %v3046_v20, %v3058_v26 }
 0x89b   :  { %13807 = vmatpush1.bf16.msra.mxu1 %v14619_v24  ;;  %v14765_v24 = vcombine.low %v3023_v10, %v3035_v16  ;;  %v3179_v10 = vld [vmem:[#allocation14 + $0xb38] sm:$0xff] }
 0x89c   :  { %13971 = vmatpush1.bf16.msra.mxu0 %v14621_v33  ;;  %13808 = vmatprep.subr.bf16.mxu1 %v14644_v28  ;;  %v14788_v33 = vcombine.high %v3046_v20, %v3058_v26  ;;  %v14790_v28 = vcombine.high %v3047_v21, %v3059_v22  ;;  %v3202_v20 = vld [vmem:[#allocation14 + $0xbf0] sm:$0xff]  ;;  %v3191_v26 = vld [vmem:[#allocation14 + $0xb98] sm:$0xff] }
 0x89d   :  { %13972 = vmatprep.subr.bf16.mxu0 %v14646_v29  ;;  %v3070_v29 = vld [vmem:[#allocation14 + $0x7d0] sm:$0xff] }
 0x89e   :  { %v14811_v27 = vcombine.low %v3070_v29, %v3082_v30 }
 0x89f   :  { %13809 = vmatpush1.bf16.msra.mxu1 %v14643_v43  ;;  %v14789_v43 = vcombine.low %v3047_v21, %v3059_v22  ;;  %v3203_v21 = vld [vmem:[#allocation14 + $0xbf8] sm:$0xff] }
 0x8a0   :  { %13973 = vmatpush1.bf16.msra.mxu0 %v14645_v50  ;;  %13810 = vmatprep.subr.bf16.mxu1 %v14668_v36  ;;  %v14812_v50 = vcombine.high %v3070_v29, %v3082_v30  ;;  %v14814_v36 = vcombine.high %v3071_v31, %v3083_v32  ;;  %v3226_v29 = vld [vmem:[#allocation14 + $0xcb0] sm:$0xff]  ;;  %v3215_v30 = vld [vmem:[#allocation14 + $0xc58] sm:$0xff] }
 0x8a1   :  { %13974 = vmatprep.subr.bf16.mxu0 %v14670_v37  ;;  %v3094_v37 = vld [vmem:[#allocation14 + $0x890] sm:$0xff] }
 0x8a2   :  { %v14835_v59 = vcombine.low %v3094_v37, %v3106_v38 }
 0x8a3   :  { %13811 = vmatpush1.bf16.msra.mxu1 %v14667_v48  ;;  %v14813_v48 = vcombine.low %v3071_v31, %v3083_v32  ;;  %v3227_v31 = vld [vmem:[#allocation14 + $0xcb8] sm:$0xff] }
 0x8a4   :  { %13975 = vmatpush1.bf16.msra.mxu0 %v14669_v51  ;;  %13812 = vmatprep.subr.bf16.mxu1 %v14692_v52  ;;  %v14836_v51 = vcombine.high %v3094_v37, %v3106_v38  ;;  %v14838_v52 = vcombine.high %v3095_v39, %v3107_v41  ;;  %v3250_v37 = vld [vmem:[#allocation14 + $0xd70] sm:$0xff] }
 0x8a5   :  { %13976 = vmatprep.subr.bf16.mxu0 %v14694_v55  ;;  %v3118_v55 = vld [vmem:[#allocation14 + $0x950] sm:$0xff] }
 0x8a6   :  { %v14859_v7 = vcombine.low %v3118_v55, %v3130_v44 }
 0x8a7   :  { %13813 = vmatpush1.bf16.msra.mxu1 %v14691_v60  ;;  %v14837_v60 = vcombine.low %v3095_v39, %v3107_v41  ;;  %v3239_v39 = vld [vmem:[#allocation14 + $0xd18] sm:$0xff] }
 0x8a8   :  { %13977 = vmatpush1.bf16.msra.mxu0 %v14693_v62  ;;  %13814 = vmatprep.subr.bf16.mxu1 %v14716_v63  ;;  %v14860_v62 = vcombine.high %v3118_v55, %v3130_v44  ;;  %v14862_v63 = vcombine.high %v3119_v56, %v3131_v57  ;;  %v3251_v41 = vld [vmem:[#allocation14 + $0xd78] sm:$0xff] }
 0x8a9   :  { %13978 = vmatprep.subr.bf16.mxu0 %v14718_v1  ;;  %v3142_v1 = vld [vmem:[#allocation14 + $0xa10] sm:$0xff]  ;;  %v14982_v55 = vcombine.high %v3239_v39, %v3251_v41  ;;  %v3263_v44 = vld [vmem:[#allocation14 + $0xdd8] sm:$0xff] }
 0x8aa   :  { %v14883_v16 = vcombine.low %v3142_v1, %v3154_v4 }
 0x8ab   :  { %13815 = vmatpush1.bf16.msra.mxu1 %v14715_v9  ;;  %v14861_v9 = vcombine.low %v3119_v56, %v3131_v57  ;;  %v3275_v56 = vld [vmem:[#allocation14 + $0xe38] sm:$0xff] }
 0x8ac   :  { %13979 = vmatpush1.bf16.msra.mxu0 %v14717_v25  ;;  %13816 = vmatprep.subr.bf16.mxu1 %v14740_v12  ;;  %v14884_v25 = vcombine.high %v3142_v1, %v3154_v4  ;;  %v14886_v12 = vcombine.high %v3143_v5, %v3155_v6  ;;  %v3298_v1 = vld [vmem:[#allocation14 + $0xef0] sm:$0xff]  ;;  %v3287_v4 = vld [vmem:[#allocation14 + $0xe98] sm:$0xff] }
 0x8ad   :  { %13980 = vmatprep.subr.bf16.mxu0 %v14742_v2  ;;  %v3166_v2 = vld [vmem:[#allocation14 + $0xad0] sm:$0xff] }
 0x8ae   :  { %v14907_v22 = vcombine.low %v3166_v2, %v3178_v14 }
 0x8af   :  { %13817 = vmatpush1.bf16.msra.mxu1 %v14739_v17  ;;  %v14885_v17 = vcombine.low %v3143_v5, %v3155_v6  ;;  %v3299_v5 = vld [vmem:[#allocation14 + $0xef8] sm:$0xff] }
 0x8b0   :  { %13981 = vmatpush1.bf16.msra.mxu0 %v14741_v18  ;;  %13818 = vmatprep.subr.bf16.mxu1 %v14764_v8  ;;  %v14908_v18 = vcombine.high %v3166_v2, %v3178_v14  ;;  %v14910_v8 = vcombine.high %v3167_v15, %v3179_v10  ;;  %v3311_v2 = vld [vmem:[#allocation14 + $0xf58] sm:$0xff] }
 0x8b1   :  { %13982 = vmatprep.subr.bf16.mxu0 %v14766_v19  ;;  %v3190_v19 = vld [vmem:[#allocation14 + $0xb90] sm:$0xff]  ;;  %v3323_v14 = vld [vmem:[#allocation14 + $0xfb8] sm:$0xff] }
 0x8b2   :  { %v14931_v32 = vcombine.low %v3190_v19, %v3202_v20 }
 0x8b3   :  { %13819 = vmatpush1.bf16.msra.mxu1 %v14763_v23  ;;  %v14909_v23 = vcombine.low %v3167_v15, %v3179_v10  ;;  %v15029_v15 = vcombine.low %v3287_v4, %v3299_v5 }
 0x8b4   :  { %13983 = vmatpush1.bf16.msra.mxu0 %v14765_v24  ;;  %13820 = vmatprep.subr.bf16.mxu1 %v14788_v33  ;;  %v14932_v24 = vcombine.high %v3190_v19, %v3202_v20  ;;  %v14934_v33 = vcombine.high %v3191_v26, %v3203_v21  ;;  %v3347_v19 = vld [vmem:[#allocation14 + $0x1078] sm:$0xff] }
 0x8b5   :  { %13984 = vmatprep.subr.bf16.mxu0 %v14790_v28  ;;  %v3214_v28 = vld [vmem:[#allocation14 + $0xc50] sm:$0xff] }
 0x8b6   :  { %v14955_v38 = vcombine.low %v3214_v28, %v3226_v29 }
 0x8b7   :  { %13821 = vmatpush1.bf16.msra.mxu1 %v14787_v34  ;;  %v14933_v34 = vcombine.low %v3191_v26, %v3203_v21  ;;  %v15053_v26 = vcombine.low %v3311_v2, %v3323_v14 }
 0x8b8   :  { %13985 = vmatpush1.bf16.msra.mxu0 %v14789_v43  ;;  %13822 = vmatprep.subr.bf16.mxu1 %v14812_v50  ;;  %v14956_v43 = vcombine.high %v3214_v28, %v3226_v29  ;;  %v14958_v50 = vcombine.high %v3215_v30, %v3227_v31  ;;  %v3371_v28 = vld [vmem:[#allocation14 + $0x1138] sm:$0xff] }
 0x8b9   :  { %13986 = vmatprep.subr.bf16.mxu0 %v14814_v36  ;;  %v3238_v36 = vld [vmem:[#allocation14 + $0xd10] sm:$0xff] }
 0x8ba   :  { %v14979_v57 = vcombine.low %v3238_v36, %v3250_v37 }
 0x8bb   :  { %13823 = vmatpush1.bf16.msra.mxu1 %v14811_v27  ;;  %v14957_v27 = vcombine.low %v3215_v30, %v3227_v31 }
 0x8bc   :  { %13987 = vmatpush1.bf16.msra.mxu0 %v14813_v48  ;;  %13824 = vmatprep.subr.bf16.mxu1 %v14836_v51  ;;  %v14980_v48 = vcombine.high %v3238_v36, %v3250_v37  ;;  %v3262_v51 = vld [vmem:[#allocation14 + $0xdd0] sm:$0xff]  ;;  %v3395_v36 = vld [vmem:[#allocation14 + $0x11f8] sm:$0xff] }
 0x8bd   :  { %13988 = vmatprep.subr.bf16.mxu0 %v14838_v52  ;;  %v3274_v52 = vld [vmem:[#allocation14 + $0xe30] sm:$0xff] }
 0x8be   :  { %v15003_v6 = vcombine.low %v3262_v51, %v3274_v52 }
 0x8bf   :  { %13825 = vmatpush1.bf16.msra.mxu1 %v14835_v59  ;;  %v14981_v59 = vcombine.low %v3239_v39, %v3251_v41 }
 0x8c0   :  { %13989 = vmatpush1.bf16.msra.mxu0 %v14837_v60  ;;  %13826 = vmatprep.subr.bf16.mxu1 %v14860_v62  ;;  %v15004_v60 = vcombine.high %v3262_v51, %v3274_v52  ;;  %v15006_v62 = vcombine.high %v3263_v44, %v3275_v56  ;;  %v3407_v51 = vld [vmem:[#allocation14 + $0x1258] sm:$0xff] }
 0x8c1   :  { %13990 = vmatprep.subr.bf16.mxu0 %v14862_v63  ;;  %v3286_v63 = vld [vmem:[#allocation14 + $0xe90] sm:$0xff]  ;;  %v3419_v52 = vld [vmem:[#allocation14 + $0x12b8] sm:$0xff] }
 0x8c3   :  { %13827 = vmatpush1.bf16.msra.mxu1 %v14859_v7  ;;  %v15028_v7 = vcombine.high %v3286_v63, %v3298_v1 }
 0x8c4   :  { %13991 = vmatpush1.bf16.msra.mxu0 %v14861_v9  ;;  %13828 = vmatprep.subr.bf16.mxu1 %v14884_v25  ;;  %v15030_v9 = vcombine.high %v3287_v4, %v3299_v5  ;;  %v3310_v25 = vld [vmem:[#allocation14 + $0xf50] sm:$0xff]  ;;  %v15149_v4 = vcombine.low %v3407_v51, %v3419_v52 }
 0x8c5   :  { %13992 = vmatprep.subr.bf16.mxu0 %v14886_v12  ;;  %v3322_v12 = vld [vmem:[#allocation14 + $0xfb0] sm:$0xff] }
 0x8c6   :  { %v15052_v10 = vcombine.high %v3310_v25, %v3322_v12  ;;  %v15051_v20 = vcombine.low %v3310_v25, %v3322_v12  ;;  %v3467_v25 = vld [vmem:[#allocation14 + $0x1438] sm:$0xff] }
 0x8c7   :  { %13829 = vmatpush1.bf16.msra.mxu1 %v14883_v16  ;;  %v15054_v16 = vcombine.high %v3311_v2, %v3323_v14 }
 0x8c8   :  { %13993 = vmatpush1.bf16.msra.mxu0 %v14885_v17  ;;  %13830 = vmatprep.subr.bf16.mxu1 %v14908_v18  ;;  %v3334_v17 = vld [vmem:[#allocation14 + $0x1010] sm:$0xff] }
 0x8c9   :  { %13994 = vmatprep.subr.bf16.mxu0 %v14910_v8  ;;  %v3346_v18 = vld [vmem:[#allocation14 + $0x1070] sm:$0xff]  ;;  %v3335_v8 = vld [vmem:[#allocation14 + $0x1018] sm:$0xff] }
 0x8ca   :  { %v15076_v21 = vcombine.high %v3334_v17, %v3346_v18  ;;  %v15075_v29 = vcombine.low %v3334_v17, %v3346_v18  ;;  %v15077_v30 = vcombine.low %v3335_v8, %v3347_v19  ;;  %v3491_v17 = vld [vmem:[#allocation14 + $0x14f8] sm:$0xff] }
 0x8cb   :  { %13831 = vmatpush1.bf16.msra.mxu1 %v14907_v22  ;;  %v15078_v22 = vcombine.high %v3335_v8, %v3347_v19 }
 0x8cc   :  { %13995 = vmatpush1.bf16.msra.mxu0 %v14909_v23  ;;  %13832 = vmatprep.subr.bf16.mxu1 %v14932_v24  ;;  %v3358_v23 = vld [vmem:[#allocation14 + $0x10d0] sm:$0xff] }
 0x8cd   :  { %13996 = vmatprep.subr.bf16.mxu0 %v14934_v33  ;;  %v3370_v24 = vld [vmem:[#allocation14 + $0x1130] sm:$0xff]  ;;  %v3359_v33 = vld [vmem:[#allocation14 + $0x10d8] sm:$0xff] }
 0x8ce   :  { %v15100_v31 = vcombine.high %v3358_v23, %v3370_v24  ;;  %v15099_v37 = vcombine.low %v3358_v23, %v3370_v24  ;;  %v3515_v23 = vld [vmem:[#allocation14 + $0x15b8] sm:$0xff] }
 0x8cf   :  { %13833 = vmatpush1.bf16.msra.mxu1 %v14931_v32  ;;  %v15102_v32 = vcombine.high %v3359_v33, %v3371_v28 }
 0x8d0   :  { %13997 = vmatpush1.bf16.msra.mxu0 %v14933_v34  ;;  %13843 = vmatprep.subr.bf16.mxu1 %v14956_v43  ;;  %v3382_v34 = vld [vmem:[#allocation14 + $0x1190] sm:$0xff] }
 0x8d1   :  { %14007 = vmatprep.subr.bf16.mxu0 %v14958_v50  ;;  %v3394_v43 = vld [vmem:[#allocation14 + $0x11f0] sm:$0xff]  ;;  %v3383_v50 = vld [vmem:[#allocation14 + $0x1198] sm:$0xff] }
 0x8d2   :  { %13835 = vmatmul.mubr.bf16.vlgmr.msra.gmra.mrb[32].mxu1 %v17001_v49  ;;  %v15124_v39 = vcombine.high %v3382_v34, %v3394_v43  ;;  %v15126_v41 = vcombine.high %v3383_v50, %v3395_v36 }
 0x8d3   :  { %13999 = vmatmul.mubr.bf16.vlgmr.msra.gmra.mrb[36].mxu0 %v17001_v49  ;;  %13844 = vmatpush1.bf16.msra.mxu1 %v14955_v38  ;;  %v15005_v49 = vcombine.low %v3263_v44, %v3275_v56  ;;  %v15101_v38 = vcombine.low %v3359_v33, %v3371_v28  ;;  %v15125_v44 = vcombine.low %v3383_v50, %v3395_v36 }
 0x8d4   :  { %13875 = vmatprep.mubr.bf16.mxu1 %v17005_v58  ;;  %14008 = vmatpush1.bf16.msra.mxu0 %v14957_v27  ;;  %v3406_v27 = vld [vmem:[#allocation14 + $0x1250] sm:$0xff] }
 0x8d5   :  { %14039 = vmatprep.mubr.bf16.mxu0 %v17005_v58  ;;  %13845 = vmatprep.subr.bf16.mxu1 %v14980_v48  ;;  %v15027_v58 = vcombine.low %v3286_v63, %v3298_v1  ;;  %v3418_v48 = vld [vmem:[#allocation14 + $0x12b0] sm:$0xff]  ;;  %v3443_v63 = vld [vmem:[#allocation14 + $0x1378] sm:$0xff] }
 0x8d6   :  { %14009 = vmatprep.subr.bf16.mxu0 %v14982_v55  ;;  %v15123_v55 = vcombine.low %v3382_v34, %v3394_v43  ;;  %v15148_v56 = vcombine.high %v3406_v27, %v3418_v48  ;;  %v15147_v1 = vcombine.low %v3406_v27, %v3418_v48  ;;  %v3539_v34 = vld [vmem:[#allocation14 + $0x1678] sm:$0xff] }
 0x8d7   :  { %13846 = vmatpush1.bf16.msra.mxu1 %v14979_v57  ;;  %v15150_v57 = vcombine.high %v3407_v51, %v3419_v52  ;;  %v3563_v27 = vld [vmem:[#allocation14 + $0x1738] sm:$0xff] }
 0x8d8   :  { %14010 = vmatpush1.bf16.msra.mxu0 %v14981_v59  ;;  %13847 = vmatprep.subr.bf16.mxu1 %v15004_v60  ;;  %v3430_v59 = vld [vmem:[#allocation14 + $0x1310] sm:$0xff] }
 0x8d9   :  { %14011 = vmatprep.subr.bf16.mxu0 %v15006_v62  ;;  %v3442_v60 = vld [vmem:[#allocation14 + $0x1370] sm:$0xff]  ;;  %v3431_v62 = vld [vmem:[#allocation14 + $0x1318] sm:$0xff] }
 0x8da   :  { %v15172_v5 = vcombine.high %v3430_v59, %v3442_v60  ;;  %v15171_v12 = vcombine.low %v3430_v59, %v3442_v60  ;;  %v15173_v2 = vcombine.low %v3431_v62, %v3443_v63  ;;  %v3587_v59 = vld [vmem:[#allocation14 + $0x17f8] sm:$0xff] }
 0x8db   :  { %13848 = vmatpush1.bf16.msra.mxu1 %v15003_v6  ;;  %v15174_v6 = vcombine.high %v3431_v62, %v3443_v63 }
 0x8dc   :  { %14012 = vmatpush1.bf16.msra.mxu0 %v15005_v49  ;;  %13849 = vmatprep.subr.bf16.mxu1 %v15028_v7  ;;  %v3454_v49 = vld [vmem:[#allocation14 + $0x13d0] sm:$0xff] }
 0x8dd   :  { %14013 = vmatprep.subr.bf16.mxu0 %v15030_v9  ;;  %v3466_v7 = vld [vmem:[#allocation14 + $0x1430] sm:$0xff]  ;;  %v3455_v9 = vld [vmem:[#allocation14 + $0x13d8] sm:$0xff] }
 0x8de   :  { %v15196_v14 = vcombine.high %v3454_v49, %v3466_v7  ;;  %v15195_v18 = vcombine.low %v3454_v49, %v3466_v7  ;;  %v15197_v8 = vcombine.low %v3455_v9, %v3467_v25  ;;  %v3611_v49 = vld [vmem:[#allocation14 + $0x18b8] sm:$0xff] }
 0x8df   :  { %13850 = vmatpush1.bf16.msra.mxu1 %v15027_v58  ;;  %v15198_v58 = vcombine.high %v3455_v9, %v3467_v25 }
 0x8e0   :  { %14014 = vmatpush1.bf16.msra.mxu0 %v15029_v15  ;;  %13851 = vmatprep.subr.bf16.mxu1 %v15052_v10  ;;  %v3478_v15 = vld [vmem:[#allocation14 + $0x1490] sm:$0xff] }
 0x8e1   :  { %14015 = vmatprep.subr.bf16.mxu0 %v15054_v16  ;;  %v3490_v10 = vld [vmem:[#allocation14 + $0x14f0] sm:$0xff]  ;;  %v3479_v16 = vld [vmem:[#allocation14 + $0x1498] sm:$0xff] }
 0x8e2   :  { %v15220_v19 = vcombine.high %v3478_v15, %v3490_v10  ;;  %v15219_v24 = vcombine.low %v3478_v15, %v3490_v10  ;;  %v15221_v33 = vcombine.low %v3479_v16, %v3491_v17  ;;  %v3623_v15 = vld [vmem:[#allocation14 + $0x1918] sm:$0xff] }
 0x8e3   :  { %13852 = vmatpush1.bf16.msra.mxu1 %v15051_v20  ;;  %v15222_v20 = vcombine.high %v3479_v16, %v3491_v17  ;;  %v3635_v10 = vld [vmem:[#allocation14 + $0x1978] sm:$0xff] }
 0x8e4   :  { %14016 = vmatpush1.bf16.msra.mxu0 %v15053_v26  ;;  %13853 = vmatprep.subr.bf16.mxu1 %v15076_v21  ;;  %v3502_v26 = vld [vmem:[#allocation14 + $0x1550] sm:$0xff] }
 0x8e5   :  { %14017 = vmatprep.subr.bf16.mxu0 %v15078_v22  ;;  %v3514_v21 = vld [vmem:[#allocation14 + $0x15b0] sm:$0xff]  ;;  %v3503_v22 = vld [vmem:[#allocation14 + $0x1558] sm:$0xff] }
 0x8e6   :  { %v15244_v28 = vcombine.high %v3502_v26, %v3514_v21  ;;  %v15243_v43 = vcombine.low %v3502_v26, %v3514_v21  ;;  %v15245_v50 = vcombine.low %v3503_v22, %v3515_v23  ;;  %v3659_v26 = vld [vmem:[#allocation14 + $0x1a38] sm:$0xff] }
 0x8e7   :  { %13854 = vmatpush1.bf16.msra.mxu1 %v15075_v29  ;;  %v15246_v29 = vcombine.high %v3503_v22, %v3515_v23  ;;  %v15365_v22 = vcombine.low %v3623_v15, %v3635_v10 }
 0x8e8   :  { %14018 = vmatpush1.bf16.msra.mxu0 %v15077_v30  ;;  %13855 = vmatprep.subr.bf16.mxu1 %v15100_v31  ;;  %v3526_v30 = vld [vmem:[#allocation14 + $0x1610] sm:$0xff] }
 0x8e9   :  { %14019 = vmatprep.subr.bf16.mxu0 %v15102_v32  ;;  %v3538_v31 = vld [vmem:[#allocation14 + $0x1670] sm:$0xff]  ;;  %v3527_v32 = vld [vmem:[#allocation14 + $0x1618] sm:$0xff] }
 0x8ea   :  { %v15268_v36 = vcombine.high %v3526_v30, %v3538_v31  ;;  %v15267_v48 = vcombine.low %v3526_v30, %v3538_v31  ;;  %v15269_v51 = vcombine.low %v3527_v32, %v3539_v34  ;;  %v3683_v30 = vld [vmem:[#allocation14 + $0x1af8] sm:$0xff] }
 0x8eb   :  { %13856 = vmatpush1.bf16.msra.mxu1 %v15099_v37  ;;  %v15270_v37 = vcombine.high %v3527_v32, %v3539_v34 }
 0x8ec   :  { %14020 = vmatpush1.bf16.msra.mxu0 %v15101_v38  ;;  %13857 = vmatprep.subr.bf16.mxu1 %v15124_v39  ;;  %v3550_v38 = vld [vmem:[#allocation14 + $0x16d0] sm:$0xff] }
 0x8ed   :  { %14021 = vmatprep.subr.bf16.mxu0 %v15126_v41  ;;  %v3562_v39 = vld [vmem:[#allocation14 + $0x1730] sm:$0xff]  ;;  %v3551_v41 = vld [vmem:[#allocation14 + $0x16d8] sm:$0xff] }
 0x8ee   :  { %v15292_v52 = vcombine.high %v3550_v38, %v3562_v39  ;;  %v15291_v60 = vcombine.low %v3550_v38, %v3562_v39  ;;  %v15293_v62 = vcombine.low %v3551_v41, %v3563_v27 }
 0x8ef   :  { %13858 = vmatpush1.bf16.msra.mxu1 %v15123_v55  ;;  %v15294_v55 = vcombine.high %v3551_v41, %v3563_v27  ;;  %v3718_v27 = vld [vmem:[#allocation14 + $0x1c10] sm:$0xff] }
 0x8f0   :  { %14022 = vmatpush1.bf16.msra.mxu0 %v15125_v44  ;;  %13859 = vmatprep.subr.bf16.mxu1 %v15148_v56  ;;  %v3574_v44 = vld [vmem:[#allocation14 + $0x1790] sm:$0xff] }
 0x8f1   :  { %14023 = vmatprep.subr.bf16.mxu0 %v15150_v57  ;;  %v3586_v56 = vld [vmem:[#allocation14 + $0x17f0] sm:$0xff]  ;;  %v3575_v57 = vld [vmem:[#allocation14 + $0x1798] sm:$0xff] }
 0x8f2   :  { %v15316_v63 = vcombine.high %v3574_v44, %v3586_v56  ;;  %v15315_v7 = vcombine.low %v3574_v44, %v3586_v56  ;;  %v15317_v9 = vcombine.low %v3575_v57, %v3587_v59 }
 0x8f3   :  { %13860 = vmatpush1.bf16.msra.mxu1 %v15147_v1  ;;  %v15318_v1 = vcombine.high %v3575_v57, %v3587_v59  ;;  %v3742_v59 = vld [vmem:[#allocation14 + $0x1cd0] sm:$0xff] }
 0x8f4   :  { %14024 = vmatpush1.bf16.msra.mxu0 %v15149_v4  ;;  %13861 = vmatprep.subr.bf16.mxu1 %v15172_v5  ;;  %v3598_v4 = vld [vmem:[#allocation14 + $0x1850] sm:$0xff] }
 0x8f5   :  { %14025 = vmatprep.subr.bf16.mxu0 %v15174_v6  ;;  %v3610_v5 = vld [vmem:[#allocation14 + $0x18b0] sm:$0xff]  ;;  %v3599_v6 = vld [vmem:[#allocation14 + $0x1858] sm:$0xff] }
 0x8f6   :  { %v15340_v25 = vcombine.high %v3598_v4, %v3610_v5  ;;  %v15341_v16 = vcombine.low %v3599_v6, %v3611_v49 }
 0x8f7   :  { %13862 = vmatpush1.bf16.msra.mxu1 %v15171_v12  ;;  %v15342_v12 = vcombine.high %v3599_v6, %v3611_v49  ;;  %v3766_v49 = vld [vmem:[#allocation14 + $0x1d90] sm:$0xff] }
 0x8f8   :  { %14026 = vmatpush1.bf16.msra.mxu0 %v15173_v2  ;;  %13863 = vmatprep.subr.bf16.mxu1 %v15196_v14  ;;  %v3622_v2 = vld [vmem:[#allocation14 + $0x1910] sm:$0xff] }
 0x8f9   :  { %14027 = vmatprep.subr.bf16.mxu0 %v15198_v58  ;;  %v3634_v14 = vld [vmem:[#allocation14 + $0x1970] sm:$0xff]  ;;  %v15339_v58 = vcombine.low %v3598_v4, %v3610_v5 }
 0x8fa   :  { %v15364_v17 = vcombine.high %v3622_v2, %v3634_v14  ;;  %v15363_v21 = vcombine.low %v3622_v2, %v3634_v14 }
 0x8fb   :  { %13864 = vmatpush1.bf16.msra.mxu1 %v15195_v18  ;;  %v3646_v18 = vld [vmem:[#allocation14 + $0x19d0] sm:$0xff] }
 0x8fc   :  { %14028 = vmatpush1.bf16.msra.mxu0 %v15197_v8  ;;  %13865 = vmatprep.subr.bf16.mxu1 %v15220_v19  ;;  %v3658_v8 = vld [vmem:[#allocation14 + $0x1a30] sm:$0xff]  ;;  %v15366_v19 = vcombine.high %v3623_v15, %v3635_v10 }
 0x8fd   :  { %14029 = vmatprep.subr.bf16.mxu0 %v15222_v20  ;;  %v3647_v20 = vld [vmem:[#allocation14 + $0x19d8] sm:$0xff]  ;;  %v15388_v23 = vcombine.high %v3646_v18, %v3658_v8  ;;  %v15387_v31 = vcombine.low %v3646_v18, %v3658_v8  ;;  %v3790_v15 = vld [vmem:[#allocation14 + $0x1e50] sm:$0xff] }
 0x8fe   :  { %v3802_v10 = vld [vmem:[#allocation14 + $0x1eb0] sm:$0xff] }
 0x8ff   :  { %13866 = vmatpush1.bf16.msra.mxu1 %v15219_v24  ;;  %v15390_v24 = vcombine.high %v3647_v20, %v3659_v26 }
 0x900   :  { %14030 = vmatpush1.bf16.msra.mxu0 %v15221_v33  ;;  %13867 = vmatprep.subr.bf16.mxu1 %v15244_v28  ;;  %v3670_v33 = vld [vmem:[#allocation14 + $0x1a90] sm:$0xff] }
 0x901   :  { %14031 = vmatprep.subr.bf16.mxu0 %v15246_v29  ;;  %v3682_v28 = vld [vmem:[#allocation14 + $0x1af0] sm:$0xff]  ;;  %v3671_v29 = vld [vmem:[#allocation14 + $0x1a98] sm:$0xff] }
 0x902   :  { %v15412_v32 = vcombine.high %v3670_v33, %v3682_v28  ;;  %v15414_v34 = vcombine.high %v3671_v29, %v3683_v30  ;;  %v15413_v38 = vcombine.low %v3671_v29, %v3683_v30  ;;  %v3838_v30 = vld [vmem:[#allocation14 + $0x1fd0] sm:$0xff] }
 0x903   :  { %13868 = vmatpush1.bf16.msra.mxu1 %v15243_v43  ;;  %v3694_v43 = vld [vmem:[#allocation14 + $0x1b50] sm:$0xff] }
 0x904   :  { %14032 = vmatpush1.bf16.msra.mxu0 %v15245_v50  ;;  %13869 = vmatprep.subr.bf16.mxu1 %v15268_v36  ;;  %v3706_v50 = vld [vmem:[#allocation14 + $0x1bb0] sm:$0xff]  ;;  %v3695_v36 = vld [vmem:[#allocation14 + $0x1b58] sm:$0xff] }
 0x905   :  { %14033 = vmatprep.subr.bf16.mxu0 %v15270_v37  ;;  %v3707_v37 = vld [vmem:[#allocation14 + $0x1bb8] sm:$0xff]  ;;  %v15436_v39 = vcombine.high %v3694_v43, %v3706_v50 }
 0x906   :  { %v15438_v41 = vcombine.high %v3695_v36, %v3707_v37  ;;  %v15437_v44 = vcombine.low %v3695_v36, %v3707_v37  ;;  %v3862_v37 = vld [vmem:[#allocation14 + $0x2090] sm:$0xff] }
 0x907   :  { %13870 = vmatpush1.bf16.msra.mxu1 %v15267_v48  ;;  %v3730_v48 = vld [vmem:[#allocation14 + $0x1c70] sm:$0xff] }
 0x908   :  { %14034 = vmatpush1.bf16.msra.mxu0 %v15269_v51  ;;  %13871 = vmatprep.subr.bf16.mxu1 %v15292_v52  ;;  %v3719_v51 = vld [vmem:[#allocation14 + $0x1c18] sm:$0xff]  ;;  %v15460_v56 = vcombine.high %v3718_v27, %v3730_v48 }
 0x909   :  { %14035 = vmatprep.subr.bf16.mxu0 %v15294_v55  ;;  %v3731_v52 = vld [vmem:[#allocation14 + $0x1c78] sm:$0xff]  ;;  %v15435_v55 = vcombine.low %v3694_v43, %v3706_v50 }
 0x90a   :  { %v15462_v57 = vcombine.high %v3719_v51, %v3731_v52  ;;  %v15461_v4 = vcombine.low %v3719_v51, %v3731_v52  ;;  %v3886_v52 = vld [vmem:[#allocation14 + $0x2150] sm:$0xff] }
 0x90b   :  { %13872 = vmatpush1.bf16.msra.mxu1 %v15291_v60  ;;  %v3754_v60 = vld [vmem:[#allocation14 + $0x1d30] sm:$0xff] }
 0x90c   :  { %14036 = vmatpush1.bf16.msra.mxu0 %v15293_v62  ;;  %13873 = vmatprep.subr.bf16.mxu1 %v15316_v63  ;;  %v3743_v62 = vld [vmem:[#allocation14 + $0x1cd8] sm:$0xff]  ;;  %v15484_v5 = vcombine.high %v3742_v59, %v3754_v60 }
 0x90d   :  { %14037 = vmatprep.subr.bf16.mxu0 %v15318_v1  ;;  %v3755_v63 = vld [vmem:[#allocation14 + $0x1d38] sm:$0xff]  ;;  %v15459_v1 = vcombine.low %v3718_v27, %v3730_v48 }
 0x90e   :  { %v15486_v6 = vcombine.high %v3743_v62, %v3755_v63  ;;  %v15485_v2 = vcombine.low %v3743_v62, %v3755_v63  ;;  %v3910_v63 = vld [vmem:[#allocation14 + $0x2210] sm:$0xff] }
 0x90f   :  { %13874 = vmatpush1.bf16.msra.mxu1 %v15315_v7  ;;  %v3778_v7 = vld [vmem:[#allocation14 + $0x1df0] sm:$0xff] }
 0x910   :  { %14038 = vmatpush1.bf16.msra.mxu0 %v15317_v9  ;;  %13884 = vmatprep.subr.bf16.mxu1 %v15340_v25  ;;  %v3767_v9 = vld [vmem:[#allocation14 + $0x1d98] sm:$0xff]  ;;  %v15508_v14 = vcombine.high %v3766_v49, %v3778_v7  ;;  %v15507_v18 = vcombine.low %v3766_v49, %v3778_v7 }
 0x911   :  { %14048 = vmatprep.subr.bf16.mxu0 %v15342_v12  ;;  %v3779_v25 = vld [vmem:[#allocation14 + $0x1df8] sm:$0xff]  ;;  %v15483_v12 = vcombine.low %v3742_v59, %v3754_v60 }
 0x912   :  { %13876 = vmatmul.mubr.bf16.vlgmr.msra.gmra.mrb[32].mxu1 %v17014_v13  ;;  %v15509_v8 = vcombine.low %v3767_v9, %v3779_v25 }
 0x913   :  { %14040 = vmatmul.mubr.bf16.vlgmr.msra.gmra.mrb[36].mxu0 %v17014_v13  ;;  %13885 = vmatpush1.bf16.msra.mxu1 %v15339_v58  ;;  %v15389_v13 = vcombine.low %v3647_v20, %v3659_v26  ;;  %v15510_v58 = vcombine.high %v3767_v9, %v3779_v25  ;;  %v3814_v26 = vld [vmem:[#allocation14 + $0x1f10] sm:$0xff] }
 0x914   :  { %13916 = vmatprep.mubr.bf16.mxu1 %v17035_v61  ;;  %14049 = vmatpush1.bf16.msra.mxu0 %v15341_v16  ;;  %v3791_v16 = vld [vmem:[#allocation14 + $0x1e58] sm:$0xff]  ;;  %v3934_v25 = vld [vmem:[#allocation14 + $0x22d0] sm:$0xff] }
 0x915   :  { %14080 = vmatprep.mubr.bf16.mxu0 %v17035_v61  ;;  %13886 = vmatprep.subr.bf16.mxu1 %v15364_v17  ;;  %v15411_v61 = vcombine.low %v3670_v33, %v3682_v28  ;;  %v3803_v17 = vld [vmem:[#allocation14 + $0x1eb8] sm:$0xff] }
 0x916   :  { %14050 = vmatprep.subr.bf16.mxu0 %v15366_v19  ;;  %v15532_v19 = vcombine.high %v3790_v15, %v3802_v10  ;;  %v15534_v20 = vcombine.high %v3791_v16, %v3803_v17  ;;  %v15533_v33 = vcombine.low %v3791_v16, %v3803_v17  ;;  %v3958_v17 = vld [vmem:[#allocation14 + $0x2390] sm:$0xff] }
 0x917   :  { %13887 = vmatpush1.bf16.msra.mxu1 %v15363_v21  ;;  %v3826_v21 = vld [vmem:[#allocation14 + $0x1f70] sm:$0xff] }
 0x918   :  { %14051 = vmatpush1.bf16.msra.mxu0 %v15365_v22  ;;  %13888 = vmatprep.subr.bf16.mxu1 %v15388_v23  ;;  %v3815_v22 = vld [vmem:[#allocation14 + $0x1f18] sm:$0xff]  ;;  %v15556_v28 = vcombine.high %v3814_v26, %v3826_v21 }
 0x919   :  { %14052 = vmatprep.subr.bf16.mxu0 %v15390_v24  ;;  %v3827_v23 = vld [vmem:[#allocation14 + $0x1f78] sm:$0xff]  ;;  %v15531_v24 = vcombine.low %v3790_v15, %v3802_v10 }
 0x91a   :  { %v15558_v29 = vcombine.high %v3815_v22, %v3827_v23  ;;  %v15557_v43 = vcombine.low %v3815_v22, %v3827_v23  ;;  %v3982_v23 = vld [vmem:[#allocation14 + $0x2450] sm:$0xff] }
 0x91b   :  { %13889 = vmatpush1.bf16.msra.mxu1 %v15387_v31  ;;  %v3850_v31 = vld [vmem:[#allocation14 + $0x2030] sm:$0xff] }
 0x91c   :  { %14053 = vmatpush1.bf16.msra.mxu0 %v15389_v13  ;;  %13890 = vmatprep.subr.bf16.mxu1 %v15412_v32  ;;  %v3839_v13 = vld [vmem:[#allocation14 + $0x1fd8] sm:$0xff]  ;;  %v15580_v50 = vcombine.high %v3838_v30, %v3850_v31 }
 0x91d   :  { %14054 = vmatprep.subr.bf16.mxu0 %v15414_v34  ;;  %v3851_v32 = vld [vmem:[#allocation14 + $0x2038] sm:$0xff]  ;;  %v15555_v34 = vcombine.low %v3814_v26, %v3826_v21 }
 0x91e   :  { %v15582_v36 = vcombine.high %v3839_v13, %v3851_v32  ;;  %v15581_v27 = vcombine.low %v3839_v13, %v3851_v32  ;;  %v4006_v32 = vld [vmem:[#allocation14 + $0x2510] sm:$0xff] }
 0x91f   :  { %13891 = vmatpush1.bf16.msra.mxu1 %v15411_v61  ;;  %v3874_v61 = vld [vmem:[#allocation14 + $0x20f0] sm:$0xff] }
 0x920   :  { %14055 = vmatpush1.bf16.msra.mxu0 %v15413_v38  ;;  %13892 = vmatprep.subr.bf16.mxu1 %v15436_v39  ;;  %v3863_v38 = vld [vmem:[#allocation14 + $0x2098] sm:$0xff]  ;;  %v15604_v48 = vcombine.high %v3862_v37, %v3874_v61 }
 0x921   :  { %14056 = vmatprep.subr.bf16.mxu0 %v15438_v41  ;;  %v3875_v39 = vld [vmem:[#allocation14 + $0x20f8] sm:$0xff]  ;;  %v15579_v41 = vcombine.low %v3838_v30, %v3850_v31 }
 0x922   :  { %v15606_v51 = vcombine.high %v3863_v38, %v3875_v39  ;;  %v15605_v59 = vcombine.low %v3863_v38, %v3875_v39  ;;  %v4030_v38 = vld [vmem:[#allocation14 + $0x25d0] sm:$0xff] }
 0x923   :  { %13893 = vmatpush1.bf16.msra.mxu1 %v15435_v55  ;;  %v3898_v55 = vld [vmem:[#allocation14 + $0x21b0] sm:$0xff] }
 0x924   :  { %14057 = vmatpush1.bf16.msra.mxu0 %v15437_v44  ;;  %13894 = vmatprep.subr.bf16.mxu1 %v15460_v56  ;;  %v3887_v44 = vld [vmem:[#allocation14 + $0x2158] sm:$0xff]  ;;  %v15628_v60 = vcombine.high %v3886_v52, %v3898_v55  ;;  %v4042_v39 = vld [vmem:[#allocation14 + $0x2630] sm:$0xff] }
 0x925   :  { %14058 = vmatprep.subr.bf16.mxu0 %v15462_v57  ;;  %v3899_v56 = vld [vmem:[#allocation14 + $0x21b8] sm:$0xff]  ;;  %v15603_v57 = vcombine.low %v3862_v37, %v3874_v61 }
 0x926   :  { %v15630_v62 = vcombine.high %v3887_v44, %v3899_v56  ;;  %v15629_v49 = vcombine.low %v3887_v44, %v3899_v56  ;;  %v4054_v56 = vld [vmem:[#allocation14 + $0x2690] sm:$0xff] }
 0x927   :  { %13895 = vmatpush1.bf16.msra.mxu1 %v15459_v1  ;;  %v3922_v1 = vld [vmem:[#allocation14 + $0x2270] sm:$0xff] }
 0x928   :  { %14059 = vmatpush1.bf16.msra.mxu0 %v15461_v4  ;;  %13896 = vmatprep.subr.bf16.mxu1 %v15484_v5  ;;  %v3911_v4 = vld [vmem:[#allocation14 + $0x2218] sm:$0xff]  ;;  %v15652_v7 = vcombine.high %v3910_v63, %v3922_v1 }
 0x929   :  { %14060 = vmatprep.subr.bf16.mxu0 %v15486_v6  ;;  %v3923_v5 = vld [vmem:[#allocation14 + $0x2278] sm:$0xff]  ;;  %v15627_v6 = vcombine.low %v3886_v52, %v3898_v55  ;;  %v15772_v55 = vcombine.high %v4030_v38, %v4042_v39 }
 0x92a   :  { %v15654_v9 = vcombine.high %v3911_v4, %v3923_v5  ;;  %v15653_v15 = vcombine.low %v3911_v4, %v3923_v5  ;;  %v4078_v4 = vld [vmem:[#allocation14 + $0x2750] sm:$0xff] }
 0x92b   :  { %13897 = vmatpush1.bf16.msra.mxu1 %v15483_v12  ;;  %v3946_v12 = vld [vmem:[#allocation14 + $0x2330] sm:$0xff] }
 0x92c   :  { %14061 = vmatpush1.bf16.msra.mxu0 %v15485_v2  ;;  %13898 = vmatprep.subr.bf16.mxu1 %v15508_v14  ;;  %v3935_v2 = vld [vmem:[#allocation14 + $0x22d8] sm:$0xff]  ;;  %v15676_v10 = vcombine.high %v3934_v25, %v3946_v12  ;;  %v4090_v5 = vld [vmem:[#allocation14 + $0x27b0] sm:$0xff] }
 0x92d   :  { %14062 = vmatprep.subr.bf16.mxu0 %v15510_v58  ;;  %v3947_v14 = vld [vmem:[#allocation14 + $0x2338] sm:$0xff]  ;;  %v15651_v58 = vcombine.low %v3910_v63, %v3922_v1 }
 0x92e   :  { %v15678_v16 = vcombine.high %v3935_v2, %v3947_v14  ;;  %v15677_v26 = vcombine.low %v3935_v2, %v3947_v14  ;;  %v4114_v2 = vld [vmem:[#allocation14 + $0x2870] sm:$0xff]  ;;  %v4103_v14 = vld [vmem:[#allocation14 + $0x2818] sm:$0xff] }
 0x92f   :  { %13899 = vmatpush1.bf16.msra.mxu1 %v15507_v18  ;;  %v3970_v18 = vld [vmem:[#allocation14 + $0x23f0] sm:$0xff] }
 0x930   :  { %14063 = vmatpush1.bf16.msra.mxu0 %v15509_v8  ;;  %13900 = vmatprep.subr.bf16.mxu1 %v15532_v19  ;;  %v3959_v8 = vld [vmem:[#allocation14 + $0x2398] sm:$0xff]  ;;  %v15700_v21 = vcombine.high %v3958_v17, %v3970_v18 }
 0x931   :  { %14064 = vmatprep.subr.bf16.mxu0 %v15534_v20  ;;  %v3971_v19 = vld [vmem:[#allocation14 + $0x23f8] sm:$0xff]  ;;  %v15675_v20 = vcombine.low %v3934_v25, %v3946_v12  ;;  %v4102_v12 = vld [vmem:[#allocation14 + $0x2810] sm:$0xff] }
 0x932   :  { %v15702_v22 = vcombine.high %v3959_v8, %v3971_v19  ;;  %v15701_v30 = vcombine.low %v3959_v8, %v3971_v19  ;;  %v4126_v8 = vld [vmem:[#allocation14 + $0x28d0] sm:$0xff] }
 0x933   :  { %13901 = vmatpush1.bf16.msra.mxu1 %v15531_v24  ;;  %v3994_v24 = vld [vmem:[#allocation14 + $0x24b0] sm:$0xff] }
 0x934   :  { %14065 = vmatpush1.bf16.msra.mxu0 %v15533_v33  ;;  %13902 = vmatprep.subr.bf16.mxu1 %v15556_v28  ;;  %v3983_v33 = vld [vmem:[#allocation14 + $0x2458] sm:$0xff]  ;;  %v15724_v31 = vcombine.high %v3982_v23, %v3994_v24  ;;  %v4138_v19 = vld [vmem:[#allocation14 + $0x2930] sm:$0xff] }
 0x935   :  { %14066 = vmatprep.subr.bf16.mxu0 %v15558_v29  ;;  %v3995_v28 = vld [vmem:[#allocation14 + $0x24b8] sm:$0xff]  ;;  %v15699_v29 = vcombine.low %v3958_v17, %v3970_v18  ;;  %v15844_v17 = vcombine.high %v4102_v12, %v4114_v2 }
 0x936   :  { %v15726_v13 = vcombine.high %v3983_v33, %v3995_v28  ;;  %v15725_v37 = vcombine.low %v3983_v33, %v3995_v28 }
 0x937   :  { %13903 = vmatpush1.bf16.msra.mxu1 %v15555_v34  ;;  %v4018_v34 = vld [vmem:[#allocation14 + $0x2570] sm:$0xff] }
 0x938   :  { %14067 = vmatpush1.bf16.msra.mxu0 %v15557_v43  ;;  %13904 = vmatprep.subr.bf16.mxu1 %v15580_v50  ;;  %v15723_v43 = vcombine.low %v3982_v23, %v3994_v24  ;;  %v4007_v50 = vld [vmem:[#allocation14 + $0x2518] sm:$0xff]  ;;  %v15748_v61 = vcombine.high %v4006_v32, %v4018_v34  ;;  %v15843_v24 = vcombine.low %v4102_v12, %v4114_v2 }
 0x939   :  { %14068 = vmatprep.subr.bf16.mxu0 %v15582_v36  ;;  %v4019_v36 = vld [vmem:[#allocation14 + $0x2578] sm:$0xff] }
 0x93a   :  { %v15749_v52 = vcombine.low %v4007_v50, %v4019_v36  ;;  %v4223_v2 = vld [vmem:[#allocation14 + $0x2bd8] sm:$0xff] }
 0x93b   :  { %13905 = vmatpush1.bf16.msra.mxu1 %v15579_v41  ;;  %v15750_v41 = vcombine.high %v4007_v50, %v4019_v36  ;;  %v4163_v50 = vld [vmem:[#allocation14 + $0x29f8] sm:$0xff] }
 0x93c   :  { %14069 = vmatpush1.bf16.msra.mxu0 %v15581_v27  ;;  %13906 = vmatprep.subr.bf16.mxu1 %v15604_v48  ;;  %v4031_v27 = vld [vmem:[#allocation14 + $0x25d8] sm:$0xff] }
 0x93d   :  { %14070 = vmatprep.subr.bf16.mxu0 %v15606_v51  ;;  %v4043_v48 = vld [vmem:[#allocation14 + $0x2638] sm:$0xff]  ;;  %v15747_v51 = vcombine.low %v4006_v32, %v4018_v34 }
 0x93e   :  { %v15774_v44 = vcombine.high %v4031_v27, %v4043_v48 }
 0x93f   :  { %13907 = vmatpush1.bf16.msra.mxu1 %v15603_v57  ;;  %v4066_v57 = vld [vmem:[#allocation14 + $0x26f0] sm:$0xff] }
 0x940   :  { %14071 = vmatpush1.bf16.msra.mxu0 %v15605_v59  ;;  %13908 = vmatprep.subr.bf16.mxu1 %v15628_v60  ;;  %v4055_v59 = vld [vmem:[#allocation14 + $0x2698] sm:$0xff]  ;;  %v15796_v63 = vcombine.high %v4054_v56, %v4066_v57 }
 0x941   :  { %14072 = vmatprep.subr.bf16.mxu0 %v15630_v62  ;;  %v4067_v60 = vld [vmem:[#allocation14 + $0x26f8] sm:$0xff]  ;;  %v15771_v62 = vcombine.low %v4030_v38, %v4042_v39  ;;  %v15867_v38 = vcombine.low %v4126_v8, %v4138_v19 }
 0x942   :  { %v15798_v1 = vcombine.high %v4055_v59, %v4067_v60 }
 0x943   :  { %13909 = vmatpush1.bf16.msra.mxu1 %v15627_v6  ;;  %v4079_v6 = vld [vmem:[#allocation14 + $0x2758] sm:$0xff] }
 0x944   :  { %14073 = vmatpush1.bf16.msra.mxu0 %v15629_v49  ;;  %13910 = vmatprep.subr.bf16.mxu1 %v15652_v7  ;;  %v4091_v49 = vld [vmem:[#allocation14 + $0x27b8] sm:$0xff]  ;;  %v15797_v7 = vcombine.low %v4055_v59, %v4067_v60 }
 0x945   :  { %14074 = vmatprep.subr.bf16.mxu0 %v15654_v9  ;;  %v15820_v9 = vcombine.high %v4078_v4, %v4090_v5  ;;  %v15822_v25 = vcombine.high %v4079_v6, %v4091_v49 }
 0x947   :  { %13911 = vmatpush1.bf16.msra.mxu1 %v15651_v58  ;;  %v4115_v58 = vld [vmem:[#allocation14 + $0x2878] sm:$0xff] }
 0x948   :  { %14075 = vmatpush1.bf16.msra.mxu0 %v15653_v15  ;;  %13912 = vmatprep.subr.bf16.mxu1 %v15676_v10  ;;  %v15819_v15 = vcombine.low %v4078_v4, %v4090_v5  ;;  %v17150_v10 = vld [vmem:[#allocation16 + $0x10] sm:$0xff]  ;;  %v15846_v18 = vcombine.high %v4103_v14, %v4115_v58  ;;  %v15845_v28 = vcombine.low %v4103_v14, %v4115_v58  ;;  %v4199_v4 = vld [vmem:[#allocation14 + $0x2b18] sm:$0xff] }
 0x949   :  { %14076 = vmatprep.subr.bf16.mxu0 %v15678_v16  ;;  %v15821_v16 = vcombine.low %v4079_v6, %v4091_v49  ;;  %v4433_v23 = vrot.slane %v17150_v10, %v16942_v47  ;;  %v4441_v33 = vrot.slane %v17150_v10, %v16949_v3  ;;  %v4211_v5 = vld [vmem:[#allocation14 + $0x2b78] sm:$0xff] }
 0x94a   :  { %v4235_v14 = vld [vmem:[#allocation14 + $0x2c38] sm:$0xff] }
 0x94b   :  { %13913 = vmatpush1.bf16.msra.mxu1 %v15675_v20  ;;  %v4429_v20 = vrot.slane %v17150_v10, %v16939_v45 }
 0x94c   :  { %14077 = vmatpush1.bf16.msra.mxu0 %v15677_v26  ;;  %13914 = vmatprep.subr.bf16.mxu1 %v15700_v21  ;;  %v4127_v26 = vld [vmem:[#allocation14 + $0x28d8] sm:$0xff] }
 0x94d   :  { %14078 = vmatprep.subr.bf16.mxu0 %v15702_v22  ;;  %v4139_v21 = vld [vmem:[#allocation14 + $0x2938] sm:$0xff]  ;;  %v4437_v22 = vrot.slane %v17150_v10, %v16972_v54 }
 0x94e   :  { %v15870_v45 = vcombine.high %v4127_v26, %v4139_v21  ;;  %v4151_v54 = vld [vmem:[#allocation14 + $0x2998] sm:$0xff] }
 0x94f   :  { %13915 = vmatpush1.bf16.msra.mxu1 %v15699_v29  ;;  %v15868_v29 = vcombine.high %v4126_v8, %v4138_v19  ;;  %v15893_v60 = vcombine.low %v4151_v54, %v4163_v50  ;;  %v15966_v19 = vcombine.high %v4223_v2, %v4235_v14 }
 0x950   :  { %14079 = vmatpush1.bf16.msra.mxu0 %v15701_v30  ;;  %13925 = vmatprep.subr.bf16.mxu1 %v15724_v31  ;;  %v4150_v31 = vld [vmem:[#allocation14 + $0x2990] sm:$0xff] }
 0x951   :  { %14089 = vmatprep.subr.bf16.mxu0 %v15726_v13  ;;  %v4162_v13 = vld [vmem:[#allocation14 + $0x29f0] sm:$0xff] }
 0x952   :  { %13917 = vmatmul.mubr.bf16.vlgmr.msra.gmra.mrb[32].mxu1 %v17037_v0  ;;  %v15891_v59 = vcombine.low %v4150_v31, %v4162_v13 }
 0x953   :  { %14081 = vmatmul.mubr.bf16.vlgmr.msra.gmra.mrb[36].mxu0 %v17037_v0  ;;  %13926 = vmatpush1.bf16.msra.mxu1 %v15723_v43  ;;  %v15773_v0 = vcombine.low %v4031_v27, %v4043_v48  ;;  %v15869_v27 = vcombine.low %v4127_v26, %v4139_v21  ;;  %v15892_v48 = vcombine.high %v4150_v31, %v4162_v13  ;;  %v4258_v26 = vld [vmem:[#allocation14 + $0x2cf0] sm:$0xff]  ;;  %v4247_v21 = vld [vmem:[#allocation14 + $0x2c98] sm:$0xff] }
 0x954   :  { %13957 = vmatprep.mubr.bf16.mxu1 %v17041_v11  ;;  %14090 = vmatpush1.bf16.msra.mxu0 %v15725_v37  ;;  %v4283_v31 = vld [vmem:[#allocation14 + $0x2db8] sm:$0xff] }
 0x955   :  { %14121 = vmatprep.mubr.bf16.mxu0 %v17041_v11  ;;  %13927 = vmatprep.subr.bf16.mxu1 %v15748_v61  ;;  %v15795_v11 = vcombine.low %v4054_v56, %v4066_v57  ;;  %v4175_v56 = vld [vmem:[#allocation14 + $0x2a58] sm:$0xff] }
 0x956   :  { %14091 = vmatprep.subr.bf16.mxu0 %v15750_v41  ;;  %v4187_v57 = vld [vmem:[#allocation14 + $0x2ab8] sm:$0xff] }
 0x957   :  { %13928 = vmatpush1.bf16.msra.mxu1 %v15747_v51  ;;  %v15917_v49 = vcombine.low %v4175_v56, %v4187_v57 }
 0x958   :  { %14092 = vmatpush1.bf16.msra.mxu0 %v15749_v52  ;;  %13929 = vmatprep.subr.bf16.mxu1 %v15772_v55  ;;  %v15894_v52 = vcombine.high %v4151_v54, %v4163_v50  ;;  %v4174_v55 = vld [vmem:[#allocation14 + $0x2a50] sm:$0xff] }
 0x959   :  { %14093 = vmatprep.subr.bf16.mxu0 %v15774_v44  ;;  %v4186_v44 = vld [vmem:[#allocation14 + $0x2ab0] sm:$0xff] }
 0x95a   :  { %v15915_v6 = vcombine.low %v4174_v55, %v4186_v44  ;;  %v4294_v54 = vld [vmem:[#allocation14 + $0x2e10] sm:$0xff] }
 0x95b   :  { %13930 = vmatpush1.bf16.msra.mxu1 %v15771_v62  ;;  %v15916_v62 = vcombine.high %v4174_v55, %v4186_v44  ;;  %v4306_v50 = vld [vmem:[#allocation14 + $0x2e70] sm:$0xff] }
 0x95c   :  { %14094 = vmatpush1.bf16.msra.mxu0 %v15773_v0  ;;  %13931 = vmatprep.subr.bf16.mxu1 %v15796_v63  ;;  %v15918_v0 = vcombine.high %v4175_v56, %v4187_v57  ;;  %v4198_v63 = vld [vmem:[#allocation14 + $0x2b10] sm:$0xff] }
 0x95d   :  { %14095 = vmatprep.subr.bf16.mxu0 %v15798_v1  ;;  %v4210_v1 = vld [vmem:[#allocation14 + $0x2b70] sm:$0xff] }
 0x95e   :  { %v4342_v56 = vld [vmem:[#allocation14 + $0x2f90] sm:$0xff] }
 0x95f   :  { %13932 = vmatpush1.bf16.msra.mxu1 %v15795_v11  ;;  %v15940_v11 = vcombine.high %v4198_v63, %v4210_v1  ;;  %v4354_v57 = vld [vmem:[#allocation14 + $0x2ff0] sm:$0xff] }
 0x960   :  { %14096 = vmatpush1.bf16.msra.mxu0 %v15797_v7  ;;  %13933 = vmatprep.subr.bf16.mxu1 %v15820_v9  ;;  %v15942_v7 = vcombine.high %v4199_v4, %v4211_v5  ;;  %v4222_v9 = vld [vmem:[#allocation14 + $0x2bd0] sm:$0xff] }
 0x961   :  { %14097 = vmatprep.subr.bf16.mxu0 %v15822_v25  ;;  %v4234_v25 = vld [vmem:[#allocation14 + $0x2c30] sm:$0xff] }
 0x963   :  { %13934 = vmatpush1.bf16.msra.mxu1 %v15819_v15  ;;  %v15939_v15 = vcombine.low %v4198_v63, %v4210_v1  ;;  %v16084_v63 = vcombine.high %v4342_v56, %v4354_v57 }
 0x964   :  { %14098 = vmatpush1.bf16.msra.mxu0 %v15821_v16  ;;  %13935 = vmatprep.subr.bf16.mxu1 %v15844_v17  ;;  %v15941_v17 = vcombine.low %v4199_v4, %v4211_v5  ;;  %v16083_v4 = vcombine.low %v4342_v56, %v4354_v57 }
 0x965   :  { %v13631_v30 = vpop.f32.mrb[28].mxu1  ;;  %14099 = vmatprep.subr.bf16.mxu0 %v15846_v18  ;;  %v15964_v18 = vcombine.high %v4222_v9, %v4234_v25 }
 0x966   :  { %v16111_v32 = vadd.f32 %v13631_v30, %v4429_v20  ;;  %v13795_v34 = vpop.f32.mrb[32].mxu0  ;;  %v13633_v43 = vpop.f32.mrb[29].mxu1  ;;  %v4246_v20 = vld [vmem:[#allocation14 + $0x2c90] sm:$0xff] }
 0x967   :  { %v16113_v36 = vadd.f32 %v13795_v34, %v4437_v22  ;;  %v16112_v47 = vadd.f32 %v13633_v43, %v4433_v23  ;;  %v13797_v37 = vpop.f32.mrb[33].mxu0  ;;  %v13635_v61 = vpop.f32.mrb[30].mxu1  ;;  %13936 = vmatpush1.bf16.msra.mxu1 %v15843_v24  ;;  %v4259_v22 = vld [vmem:[#allocation14 + $0x2cf8] sm:$0xff]  ;;  %v15963_v23 = vcombine.low %v4222_v9, %v4234_v25  ;;  %v15965_v24 = vcombine.low %v4223_v2, %v4235_v14  ;;  %v4282_v30 = vld [vmem:[#allocation14 + $0x2db0] sm:$0xff] }
 0x968   :  { %16503 = vtanh.f32 %v16111_v32  ;;  %v16114_v3 = vadd.f32 %v13797_v37, %v4441_v33  ;;  %v13799_v39 = vpop.f32.mrb[34].mxu0  ;;  %14100 = vmatpush1.bf16.msra.mxu0 %v15845_v28  ;;  %v13636_v41 = vpop.f32.mrb[31].mxu1  ;;  %13937 = vmatprep.subr.bf16.mxu1 %v15868_v29  ;;  %v15988_v33 = vcombine.high %v4246_v20, %v4258_v26  ;;  %v15990_v28 = vcombine.high %v4247_v21, %v4259_v22  ;;  %v4270_v29 = vld [vmem:[#allocation14 + $0x2d50] sm:$0xff] }
 0x969   :  { %16505 = vtanh.f32 %v16113_v36  ;;  %v13800_v51 = vpop.f32.mrb[35].mxu0  ;;  %14101 = vmatprep.subr.bf16.mxu0 %v15870_v45  ;;  %v4271_v45 = vld [vmem:[#allocation14 + $0x2d58] sm:$0xff]  ;;  %v15987_v13 = vcombine.low %v4246_v20, %v4258_v26  ;;  %v15989_v32 = vcombine.low %v4247_v21, %v4259_v22  ;;  %v16012_v34 = vcombine.high %v4270_v29, %v4282_v30  ;;  %v4318_v39 = vld [vmem:[#allocation14 + $0x2ed0] sm:$0xff] }
 0x96a   :  { %16507 = vtanh.f32 %v16112_v47  ;;  %v16014_v43 = vcombine.high %v4271_v45, %v4283_v31  ;;  %v4295_v36 = vld [vmem:[#allocation14 + $0x2e18] sm:$0xff]  ;;  %v16011_v37 = vcombine.low %v4270_v29, %v4282_v30  ;;  %v16013_v61 = vcombine.low %v4271_v45, %v4283_v31  ;;  %v4330_v41 = vld [vmem:[#allocation14 + $0x2f30] sm:$0xff] }
 0x96b   :  { %16509 = vtanh.f32 %v16114_v3  ;;  %13938 = vmatpush1.bf16.msra.mxu1 %v15867_v38  ;;  %v4307_v47 = vld [vmem:[#allocation14 + $0x2e78] sm:$0xff]  ;;  %v16036_v38 = vcombine.high %v4294_v54, %v4306_v50  ;;  %v16035_v51 = vcombine.low %v4294_v54, %v4306_v50  ;;  %v16060_v55 = vcombine.high %v4318_v39, %v4330_v41 }
 0x96c   :  { %14102 = vmatpush1.bf16.msra.mxu0 %v15869_v27  ;;  %13939 = vmatprep.subr.bf16.mxu1 %v15892_v48  ;;  %v16038_v3 = vcombine.high %v4295_v36, %v4307_v47  ;;  %v4319_v27 = vld [vmem:[#allocation14 + $0x2ed8] sm:$0xff] }
 0x96d   :  { %14103 = vmatprep.subr.bf16.mxu0 %v15894_v52  ;;  %v4331_v48 = vld [vmem:[#allocation14 + $0x2f38] sm:$0xff]  ;;  %v16037_v52 = vcombine.low %v4295_v36, %v4307_v47 }
 0x96e   :  { %v16062_v44 = vcombine.high %v4319_v27, %v4331_v48 }
 0x96f   :  { %13940 = vmatpush1.bf16.msra.mxu1 %v15891_v59  ;;  %v4343_v59 = vld [vmem:[#allocation14 + $0x2f98] sm:$0xff] }
 0x970   :  { %14104 = vmatpush1.bf16.msra.mxu0 %v15893_v60  ;;  %13941 = vmatprep.subr.bf16.mxu1 %v15916_v62  ;;  %v4355_v60 = vld [vmem:[#allocation14 + $0x2ff8] sm:$0xff]  ;;  %v16059_v62 = vcombine.low %v4318_v39, %v4330_v41 }
 0x971   :  { %14105 = vmatprep.subr.bf16.mxu0 %v15918_v0  ;;  %v16061_v0 = vcombine.low %v4319_v27, %v4331_v48  ;;  %v16086_v1 = vcombine.high %v4343_v59, %v4355_v60  ;;  %v16085_v5 = vcombine.low %v4343_v59, %v4355_v60 }
 0x972   :  { %v16504_v12 = vpop.eup %16503 }
 0x973   :  { %v16506_v58 = vpop.eup %16505  ;;  %14170 = vst [vmem:[#allocation17 + $0x80] sm:$0xff] %v16504_v12  ;;  %13942 = vmatpush1.bf16.msra.mxu1 %v15915_v6  ;;  %v4445_v6 = vrot.slane %v17150_v10, %v17019_v42 }
 0x974   :  { %v16508_v16 = vpop.eup %16507  ;;  %14172 = vst [vmem:[#allocation17 + $0x90] sm:$0xff] %v16506_v58  ;;  %14106 = vmatpush1.bf16.msra.mxu0 %v15917_v49  ;;  %13943 = vmatprep.subr.bf16.mxu1 %v15940_v11  ;;  %v4453_v49 = vrot.slane %v17150_v10, %v17048_v35  ;;  %v4449_v11 = vrot.slane %v17150_v10, %v17022_v46 }
 0x975   :  { %v16510_v8 = vpop.eup %16509  ;;  %14171 = vst [vmem:[#allocation17 + $0x88] sm:$0xff] %v16508_v16  ;;  %14107 = vmatprep.subr.bf16.mxu0 %v15942_v7  ;;  %v4457_v7 = vrot.slane %v17150_v10, %v17025_v53 }
 0x976   :  { %14173 = vst [vmem:[#allocation17 + $0x98] sm:$0xff] %v16510_v8 }
 0x977   :  { %13944 = vmatpush1.bf16.msra.mxu1 %v15939_v15 }
 0x978   :  { %14108 = vmatpush1.bf16.msra.mxu0 %v15941_v17  ;;  %13945 = vmatprep.subr.bf16.mxu1 %v15964_v18 }
 0x979   :  { %14109 = vmatprep.subr.bf16.mxu0 %v15966_v19 }
 0x97b   :  { %13946 = vmatpush1.bf16.msra.mxu1 %v15963_v23 }
 0x97c   :  { %14110 = vmatpush1.bf16.msra.mxu0 %v15965_v24  ;;  %13947 = vmatprep.subr.bf16.mxu1 %v15988_v33 }
 0x97d   :  { %14111 = vmatprep.subr.bf16.mxu0 %v15990_v28 }
 0x97f   :  { %13948 = vmatpush1.bf16.msra.mxu1 %v15987_v13 }
 0x980   :  { %14112 = vmatpush1.bf16.msra.mxu0 %v15989_v32  ;;  %13949 = vmatprep.subr.bf16.mxu1 %v16012_v34 }
 0x981   :  { %14113 = vmatprep.subr.bf16.mxu0 %v16014_v43 }
 0x983   :  { %13950 = vmatpush1.bf16.msra.mxu1 %v16011_v37 }
 0x984   :  { %14114 = vmatpush1.bf16.msra.mxu0 %v16013_v61  ;;  %13951 = vmatprep.subr.bf16.mxu1 %v16036_v38 }
 0x985   :  { %14115 = vmatprep.subr.bf16.mxu0 %v16038_v3 }
 0x987   :  { %13952 = vmatpush1.bf16.msra.mxu1 %v16035_v51 }
 0x988   :  { %14116 = vmatpush1.bf16.msra.mxu0 %v16037_v52  ;;  %13953 = vmatprep.subr.bf16.mxu1 %v16060_v55 }
 0x989   :  { %14117 = vmatprep.subr.bf16.mxu0 %v16062_v44 }
 0x98b   :  { %13954 = vmatpush1.bf16.msra.mxu1 %v16059_v62 }
 0x98c   :  { %14118 = vmatpush1.bf16.msra.mxu0 %v16061_v0  ;;  %13955 = vmatprep.subr.bf16.mxu1 %v16084_v63 }
 0x98d   :  { %14119 = vmatprep.subr.bf16.mxu0 %v16086_v1 }
 0x98f   :  { %13956 = vmatpush1.bf16.msra.mxu1 %v16083_v4 }
 0x990   :  { %14120 = vmatpush1.bf16.msra.mxu0 %v16085_v5 }
 0x992   :  { %13958 = vmatmul.mubr.bf16.vlgmr.msra.gmra.mrb[32].mxu1 %v17052_v40 }
 0x993   :  { %14122 = vmatmul.mubr.bf16.vlgmr.msra.gmra.mrb[36].mxu0 %v17052_v40 }
 0xa65   :  { %v13959_v9 = vpop.f32.mrb[32].mxu1 }
 0xa66   :  { %v16115_v25 = vadd.f32 %v13959_v9, %v4445_v6  ;;  %v14123_v12 = vpop.f32.mrb[36].mxu0  ;;  %v13961_v2 = vpop.f32.mrb[33].mxu1 }
 0xa67   :  { %v16117_v14 = vadd.f32 %v14123_v12, %v4453_v49  ;;  %v16116_v58 = vadd.f32 %v13961_v2, %v4449_v11  ;;  %v14125_v15 = vpop.f32.mrb[37].mxu0  ;;  %v13963_v40 = vpop.f32.mrb[34].mxu1 }
 0xa68   :  { %16511 = vtanh.f32 %v16115_v25  ;;  %v16118_v16 = vadd.f32 %v14125_v15, %v4457_v7  ;;  %v14127_v42 = vpop.f32.mrb[38].mxu0  ;;  %v13964_v17 = vpop.f32.mrb[35].mxu1 }
 0xa69   :  { %16513 = vtanh.f32 %v16117_v14  ;;  %v14128_v35 = vpop.f32.mrb[39].mxu0 }
 0xa6a   :  { %16515 = vtanh.f32 %v16116_v58 }
 0xa6b   :  { %16517 = vtanh.f32 %v16118_v16 }
 0xa72   :  { %v16512_v46 = vpop.eup %16511 }
 0xa73   :  { %v16514_v53 = vpop.eup %16513  ;;  %14174 = vst [vmem:[#allocation17 + $0xa0] sm:$0xff] %v16512_v46 }
 0xa74   :  { %v16516_v10 = vpop.eup %16515  ;;  %14176 = vst [vmem:[#allocation17 + $0xb0] sm:$0xff] %v16514_v53 }
 0xa75   :  { %v16518_v18 = vpop.eup %16517  ;;  %14175 = vst [vmem:[#allocation17 + $0xa8] sm:$0xff] %v16516_v10 }
 0xa76   :  { %14177 = vst [vmem:[#allocation17 + $0xb8] sm:$0xff] %v16518_v18 }
 0xa77   :  { %16731 = shalt.err (!%p16728_p6)
}
 0xa78   :  { %s16732_s2 = scalar_lea.hbm %s17191_s9, 3072 }
 0xa79   :  { %p16733_p7 = scmp.ne.s32.totalorder %s17191_s9, %s16732_s2  ;;  %p16736_p8 = scmp.lt.u32.totalorder %s16732_s2, %s17191_s9 }
 0xa7b   :  { %p16738_p9 = pnand %p16736_p8, %p16733_p7 }
 0xa7d   :  { %16741 = shalt.err (!%p16738_p9)
}
 0xa7e   :  { %14187 = dma.vmem_to_hbm [thread:$0]  %s14185_s3, 3072, %s17191_s9, [#allocation4]  }
 0xa7f   :  { %16752 = dma.done.wait [#allocation4], 3072  }
 0xa80   :  { %16753 = vsyncadd [#allocation4], 4294964224 }
 0xa81   :  { %14191 = vsyncpa [#allocation3], 1 }
 0xa82   :  { %14192 = vsyncpa [#allocation6], 1 }
 0xa83   :  { %14193 = vsyncpa [#allocation9], 1 }
 0xa84   :  { %14194 = vsyncpa [#allocation12], 1 }
 0xa85   :  { %14195 = vsyncpa [#allocation15], 1 }
 0xa86   :  { %14196 = vsyncpa [#allocation4], 1 }

</bundles_post_ra>
